<compile_context>
chip_gen: v6e
topology: v6e:2x2x1
jax: 0.10.0
libtpu: 0.0.40
codegen_flags: <defaults>
</compile_context>

<pallas_src>
import functools

import jax
import jax.numpy as jnp
from jax.experimental import pallas as pl
from jax.experimental.pallas import tpu as pltpu


C = 64          # hidden channels (fixed by the module)
KH = KW = 3     # 3x3 'same' convs


def dqn_fused_kernel(xcol_ref, w1_ref, b1_ref, w234_ref, b234_ref,
                     w5_ref, b5_ref, o_ref, act_ref, sh_ref, *, H, W, NB):
    """conv1..conv5 for NB batch elements, intermediates resident in VMEM.

    xcol_ref : (1, M, 9)        bf16  layer-1 im2col (t = dy*3 + dx)
    w1_ref   : (9, C)           bf16
    b1_ref   : (1, C)           f32
    w234_ref : (3, 3, 3C, C)    bf16  [layer, dy, dx*C + cin, cout]
    b234_ref : (3, C)           f32
    w5_ref   : (1, C)           bf16  layer-5 (1x1 conv) weights
    b5_ref   : (1,)             f32   in SMEM
    o_ref    : (1, M)           f32   lane-dense output row
    act_ref  : (NB, H+2, W+2, C) f32  zero-haloed activation scratch (VMEM)
    sh_ref   : (NB, H+2, W, 3C)  bf16 dx-folded patch scratch (K = dx*C + cin)
    with M = NB * H * W.
    """
    HW = H * W
    M = NB * HW
    C3 = KW * C

    # Zero only the halo; the interior is fully rewritten by every layer and
    # no layer ever writes the halo rows/cols.
    act_ref[:, 0:1, :, :] = jnp.zeros((NB, 1, W + 2, C), jnp.float32)
    act_ref[:, H + 1:H + 2, :, :] = jnp.zeros((NB, 1, W + 2, C), jnp.float32)
    act_ref[:, :, 0:1, :] = jnp.zeros((NB, H + 2, 1, C), jnp.float32)
    act_ref[:, :, W + 1:W + 2, :] = jnp.zeros((NB, H + 2, 1, C), jnp.float32)

    # ---- layer 1: 3x3 conv, 1 -> 64, one (M, 9) @ (9, 64) bf16 matmul -----
    a = jnp.dot(xcol_ref[0], w1_ref[...], preferred_element_type=jnp.float32)
    a = jnp.maximum(a + b1_ref[0, :], 0.0)                         # (M, C) f32

    # ---- layers 2-4: 3x3 'same' conv, 64 -> 64, 3 dots of K=192 per layer -
    for layer in range(3):
        act_ref[:, 1:H + 1, 1:W + 1, :] = a.reshape(NB, H, W, C)
        # Three dx-shifted copies, each written (cast to bf16) at lane offset
        # dx*C so the dx taps sit side by side on the contraction axis.
        for dx in range(KW):
            sh_ref[:, :, :, dx * C:(dx + 1) * C] = (
                act_ref[:, :, dx:dx + W, :].astype(jnp.bfloat16))
        acc = None
        for dy in range(KH):     # dy shifts are free leading-axis offsets
            patch = sh_ref[:, dy:dy + H, :, :].reshape(M, C3)      # bf16
            d = jnp.dot(patch, w234_ref[layer, dy, :, :],
                        preferred_element_type=jnp.float32)
            acc = d if acc is None else acc + d
        a = jnp.maximum(acc + b234_ref[layer, :], 0.0)             # (M, C) f32

    # ---- layer 5: 1x1 conv, 64 -> 1, transpose-free, lane-dense output ----
    y = jax.lax.dot_general(
        w5_ref[...], a.astype(jnp.bfloat16),
        dimension_numbers=(((1,), (1,)), ((), ())),
        preferred_element_type=jnp.float32)                        # (1, M)
    o_ref[...] = y + b5_ref[0]


def _block_batch_for_device(n):
    """One batch element per grid step on multi-TC chips (v7x), else fold all."""
    try:
        kind = jax.devices()[0].device_kind.lower()
    except Exception:
        kind = ""
    nb = 1 if "7" in kind else n
    return nb if (nb > 0 and n % nb == 0) else 1


@functools.partial(jax.jit, static_argnames=("block_batch",))
def dqn_forward_impl(x_nchw, params, *, block_batch):
    """DQN.forward: NCHW in, NCHW out (like PyTorch), one fused Pallas call."""
    (w1, b1), (w2, b2), (w3, b3), (w4, b4), (w5, b5) = params
    N, _, H, W = x_nchw.shape
    HW = H * W
    NB = block_batch
    NBLK = N // NB
    M = NB * HW
    NTAP = KH * KW

    # Layer-1 im2col in the wrapper (layout plumbing on the tiny 1-channel
    # input): x_col[n, h*W + w, dy*3 + dx] = x_pad[n, h + dy, w + dx].
    xp = jnp.pad(x_nchw[:, 0], ((0, 0), (1, 1), (1, 1)))           # (N, H+2, W+2)
    x_col = jnp.stack(
        [xp[:, dy:dy + H, dx:dx + W].reshape(N, HW)
         for dy in range(KH) for dx in range(KW)], axis=-1)        # (N, HW, 9)
    x_col = x_col.reshape(NBLK, M, NTAP).astype(jnp.bfloat16)

    # Tap-major weight layouts; bf16 MXU operands (f32 accumulation in-kernel).
    w1_r = w1.reshape(NTAP, C).astype(jnp.bfloat16)                # (9, C)
    b1_r = b1.reshape(1, C)
    w234 = jnp.stack([w2, w3, w4]).reshape(
        3, KH, KW * C, C).astype(jnp.bfloat16)                     # (3,3,192,C)
    b234 = jnp.stack([b2, b3, b4])                                 # (3, C)
    w5_r = w5.reshape(1, C).astype(jnp.bfloat16)                   # (1, C)
    b5_r = b5.reshape(1)                                           # SMEM scalar

    kernel = functools.partial(dqn_fused_kernel, H=H, W=W, NB=NB)
    out = pl.pallas_call(
        kernel,
        out_shape=jax.ShapeDtypeStruct((NBLK, M), jnp.float32),
        grid=(NBLK,),
        in_specs=[
            pl.BlockSpec((1, M, NTAP), lambda n: (n, 0, 0)),
            pl.BlockSpec((NTAP, C), lambda n: (0, 0)),
            pl.BlockSpec((1, C), lambda n: (0, 0)),
            pl.BlockSpec((3, KH, KW * C, C), lambda n: (0, 0, 0, 0)),
            pl.BlockSpec((3, C), lambda n: (0, 0)),
            pl.BlockSpec((1, C), lambda n: (0, 0)),
            pl.BlockSpec(memory_space=pltpu.MemorySpace.SMEM),     # b5 scalar
        ],
        out_specs=pl.BlockSpec((1, M), lambda n: (n, 0)),
        scratch_shapes=[
            pltpu.VMEM((NB, H + 2, W + 2, C), jnp.float32),        # act halo buf
            pltpu.VMEM((NB, H + 2, W, KW * C), jnp.bfloat16),      # dx-folded
        ],
        compiler_params=pltpu.CompilerParams(
            dimension_semantics=("parallel",)),   # v7x: one TC per batch elem
    )(x_col, w1_r, b1_r, w234, b234, w5_r, b5_r)

    return out.reshape(N, 1, H, W)                                 # NCHW


def dqn_forward(x_nchw, params):
    return dqn_forward_impl(
        x_nchw, params, block_batch=_block_batch_for_device(x_nchw.shape[0]))


def init_params(key):
    """Deterministic parameter init matching the DQN layer shapes (HWIO)."""
    shapes = [
        (3, 3, 1, 64),
        (3, 3, 64, 64),
        (3, 3, 64, 64),
        (3, 3, 64, 64),
        (1, 1, 64, 1),
    ]
    params = []
    for shp in shapes:
        key, kw, kb = jax.random.split(key, 3)
        fan_in = shp[0] * shp[1] * shp[2]
        bound = 1.0 / jnp.sqrt(jnp.float32(fan_in))
        w = jax.random.uniform(kw, shp, jnp.float32, -bound, bound)
        b = jax.random.uniform(kb, (shp[3],), jnp.float32, -bound, bound)
        params.append((w, b))
    return params


def dqn_forward_ref(x_nchw, params):
    """Pure-JAX f32 reference using lax.conv for a correctness check."""
    x = jnp.transpose(x_nchw, (0, 2, 3, 1))
    dn = ("NHWC", "HWIO", "NHWC")
    for i, (w, b) in enumerate(params):
        x = jax.lax.conv_general_dilated(
            x, w, window_strides=(1, 1), padding="SAME",
            dimension_numbers=dn) + b
        if i != len(params) - 1:
            x = jnp.maximum(x, 0.0)
    return jnp.transpose(x, (0, 3, 1, 2))


if __name__ == "__main__":
    key = jax.random.PRNGKey(0)
    kx, kp = jax.random.split(key)

    # Small input consistent with the module: N=2, C=1, H=W=16 (NCHW).
    x = jax.random.normal(kx, (2, 1, 16, 16), jnp.float32)
    params = init_params(kp)

    out = dqn_forward(x, params)
    out = jax.block_until_ready(out)

    ref = dqn_forward_ref(x, params)
    assert out.shape == (2, 1, 16, 16)
    # bf16 MXU operands (f32 accumulation) -> relaxed tolerance vs f32 ref.
    assert jnp.allclose(out, ref, atol=2e-2, rtol=2e-2), "mismatch vs reference"

    print("KERNEL_OK")
</pallas_src>

<mosaic_0001>
module attributes {stable_mosaic.version = 11 : i64} {
  func.func @dqn_fused_kernel(%arg0: i32, %arg1: memref<1x512x9xbf16, #tpu.memory_space<vmem>>, %arg2: memref<9x64xbf16, #tpu.memory_space<vmem>>, %arg3: memref<1x64xf32, #tpu.memory_space<vmem>>, %arg4: memref<3x3x192x64xbf16, #tpu.memory_space<vmem>>, %arg5: memref<3x64xf32, #tpu.memory_space<vmem>>, %arg6: memref<1x64xbf16, #tpu.memory_space<vmem>>, %arg7: memref<1xf32, #tpu.memory_space<smem>>, %arg8: memref<1x512xf32, #tpu.memory_space<vmem>>, %arg9: memref<2x18x18x64xf32, #tpu.memory_space<vmem>>, %arg10: memref<2x18x16x192xbf16, #tpu.memory_space<vmem>>) attributes {dimension_semantics = [#tpu.dimension_semantics<parallel>], iteration_bounds = array<i64: 1>, scalar_prefetch = 0 : i64, scratch_operands = 2 : i64, tpu.core_type = #tpu.core_type<tc>, window_params = [{transform_indices = @transform_0, window_bounds = array<i64: 1, 512, 9>}, {pipeline_mode = #tpu.pipeline_mode<synchronous>, transform_indices = @transform_1, window_bounds = array<i64: 9, 64>}, {pipeline_mode = #tpu.pipeline_mode<synchronous>, transform_indices = @transform_2, window_bounds = array<i64: 1, 64>}, {pipeline_mode = #tpu.pipeline_mode<synchronous>, transform_indices = @transform_3, window_bounds = array<i64: 3, 3, 192, 64>}, {pipeline_mode = #tpu.pipeline_mode<synchronous>, transform_indices = @transform_4, window_bounds = array<i64: 3, 64>}, {pipeline_mode = #tpu.pipeline_mode<synchronous>, transform_indices = @transform_5, window_bounds = array<i64: 1, 64>}, {transform_indices = @transform_6, window_bounds = array<i64: 1>}, {transform_indices = @transform_7, window_bounds = array<i64: 1, 512>}]} {
    %cst = arith.constant 0.000000e+00 : f32
    %0 = vector.broadcast %cst : f32 to vector<2x1x18x64xf32>
    %c0 = arith.constant 0 : index
    %c0_0 = arith.constant 0 : index
    %c0_1 = arith.constant 0 : index
    %c0_2 = arith.constant 0 : index
    %1 = vector.load %arg9[%c0, %c0_0, %c0_1, %c0_2] : memref<2x18x18x64xf32, #tpu.memory_space<vmem>>, vector<2x1x18x64xf32>
    tpu.vector_store %arg9[%c0, %c0_0, %c0_1, %c0_2], %0 {strides = array<i32>} : memref<2x18x18x64xf32, #tpu.memory_space<vmem>>, vector<2x1x18x64xf32>,
    %cst_3 = arith.constant 0.000000e+00 : f32
    %2 = vector.broadcast %cst_3 : f32 to vector<2x1x18x64xf32>
    %c0_4 = arith.constant 0 : index
    %c17 = arith.constant 17 : index
    %c0_5 = arith.constant 0 : index
    %c0_6 = arith.constant 0 : index
    %3 = vector.load %arg9[%c0_4, %c17, %c0_5, %c0_6] : memref<2x18x18x64xf32, #tpu.memory_space<vmem>>, vector<2x1x18x64xf32>
    tpu.vector_store %arg9[%c0_4, %c17, %c0_5, %c0_6], %2 {strides = array<i32>} : memref<2x18x18x64xf32, #tpu.memory_space<vmem>>, vector<2x1x18x64xf32>,
    %cst_7 = arith.constant 0.000000e+00 : f32
    %4 = vector.broadcast %cst_7 : f32 to vector<2x18x1x64xf32>
    %c0_8 = arith.constant 0 : index
    %c0_9 = arith.constant 0 : index
    %c0_10 = arith.constant 0 : index
    %c0_11 = arith.constant 0 : index
    %5 = vector.load %arg9[%c0_8, %c0_9, %c0_10, %c0_11] : memref<2x18x18x64xf32, #tpu.memory_space<vmem>>, vector<2x18x1x64xf32>
    tpu.vector_store %arg9[%c0_8, %c0_9, %c0_10, %c0_11], %4 {strides = array<i32>} : memref<2x18x18x64xf32, #tpu.memory_space<vmem>>, vector<2x18x1x64xf32>,
    %cst_12 = arith.constant 0.000000e+00 : f32
    %6 = vector.broadcast %cst_12 : f32 to vector<2x18x1x64xf32>
    %c0_13 = arith.constant 0 : index
    %c0_14 = arith.constant 0 : index
    %c17_15 = arith.constant 17 : index
    %c0_16 = arith.constant 0 : index
    %7 = vector.load %arg9[%c0_13, %c0_14, %c17_15, %c0_16] : memref<2x18x18x64xf32, #tpu.memory_space<vmem>>, vector<2x18x1x64xf32>
    tpu.vector_store %arg9[%c0_13, %c0_14, %c17_15, %c0_16], %6 {strides = array<i32>} : memref<2x18x18x64xf32, #tpu.memory_space<vmem>>, vector<2x18x1x64xf32>,
    %c0_17 = arith.constant 0 : index
    %c0_18 = arith.constant 0 : index
    %c0_19 = arith.constant 0 : index
    %8 = vector.load %arg1[%c0_17, %c0_18, %c0_19] : memref<1x512x9xbf16, #tpu.memory_space<vmem>>, vector<1x512x9xbf16>
    %9 = vector.shape_cast %8 : vector<1x512x9xbf16> to vector<512x9xbf16>
    %c0_20 = arith.constant 0 : index
    %c0_21 = arith.constant 0 : index
    %10 = vector.load %arg2[%c0_20, %c0_21] : memref<9x64xbf16, #tpu.memory_space<vmem>>, vector<9x64xbf16>
    %cst_22 = arith.constant dense<0.000000e+00> : vector<512x64xf32>
    %11 = tpu.matmul %9, %10, %cst_22 {dimension_numbers = #tpu.dot_dimension_numbers<[1], [0], [0], [1], [0, 0, 1, 1], [], []>} : vector<512x9xbf16>, vector<9x64xbf16>, vector<512x64xf32> -> vector<512x64xf32>
    %c0_23 = arith.constant 0 : index
    %c0_24 = arith.constant 0 : index
    %12 = vector.load %arg3[%c0_23, %c0_24] : memref<1x64xf32, #tpu.memory_space<vmem>>, vector<1x64xf32>
    %13 = vector.shape_cast %12 : vector<1x64xf32> to vector<64xf32>
    %14 = vector.shape_cast %13 : vector<64xf32> to vector<1x64xf32>
    %15 = vector.broadcast %14 : vector<1x64xf32> to vector<512x64xf32>
    %16 = arith.addf %11, %15 : vector<512x64xf32>
    %cst_25 = arith.constant 0.000000e+00 : f32
    %17 = vector.broadcast %cst_25 : f32 to vector<512x64xf32>
    %18 = arith.maximumf %16, %17 : vector<512x64xf32>
    %19 = vector.shape_cast %18 : vector<512x64xf32> to vector<2x16x16x64xf32>
    %c0_26 = arith.constant 0 : index
    %c1 = arith.constant 1 : index
    %c1_27 = arith.constant 1 : index
    %c0_28 = arith.constant 0 : index
    %20 = vector.load %arg9[%c0_26, %c1, %c1_27, %c0_28] : memref<2x18x18x64xf32, #tpu.memory_space<vmem>>, vector<2x16x16x64xf32>
    tpu.vector_store %arg9[%c0_26, %c1, %c1_27, %c0_28], %19 {strides = array<i32>} : memref<2x18x18x64xf32, #tpu.memory_space<vmem>>, vector<2x16x16x64xf32>,
    %c0_29 = arith.constant 0 : index
    %c0_30 = arith.constant 0 : index
    %c0_31 = arith.constant 0 : index
    %c0_32 = arith.constant 0 : index
    %21 = vector.load %arg9[%c0_29, %c0_30, %c0_31, %c0_32] : memref<2x18x18x64xf32, #tpu.memory_space<vmem>>, vector<2x18x16x64xf32>
    %22 = arith.truncf %21 : vector<2x18x16x64xf32> to vector<2x18x16x64xbf16>
    %c0_33 = arith.constant 0 : index
    %c0_34 = arith.constant 0 : index
    %c0_35 = arith.constant 0 : index
    %c0_36 = arith.constant 0 : index
    %23 = vector.load %arg10[%c0_33, %c0_34, %c0_35, %c0_36] : memref<2x18x16x192xbf16, #tpu.memory_space<vmem>>, vector<2x18x16x64xbf16>
    tpu.vector_store %arg10[%c0_33, %c0_34, %c0_35, %c0_36], %22 {strides = array<i32>} : memref<2x18x16x192xbf16, #tpu.memory_space<vmem>>, vector<2x18x16x64xbf16>,
    %c0_37 = arith.constant 0 : index
    %c0_38 = arith.constant 0 : index
    %c1_39 = arith.constant 1 : index
    %c0_40 = arith.constant 0 : index
    %24 = vector.load %arg9[%c0_37, %c0_38, %c1_39, %c0_40] : memref<2x18x18x64xf32, #tpu.memory_space<vmem>>, vector<2x18x16x64xf32>
    %25 = arith.truncf %24 : vector<2x18x16x64xf32> to vector<2x18x16x64xbf16>
    %c0_41 = arith.constant 0 : index
    %c0_42 = arith.constant 0 : index
    %c0_43 = arith.constant 0 : index
    %c64 = arith.constant 64 : index
    %26 = vector.load %arg10[%c0_41, %c0_42, %c0_43, %c64] : memref<2x18x16x192xbf16, #tpu.memory_space<vmem>>, vector<2x18x16x64xbf16>
    tpu.vector_store %arg10[%c0_41, %c0_42, %c0_43, %c64], %25 {strides = array<i32>} : memref<2x18x16x192xbf16, #tpu.memory_space<vmem>>, vector<2x18x16x64xbf16>,
    %c0_44 = arith.constant 0 : index
    %c0_45 = arith.constant 0 : index
    %c2 = arith.constant 2 : index
    %c0_46 = arith.constant 0 : index
    %27 = vector.load %arg9[%c0_44, %c0_45, %c2, %c0_46] : memref<2x18x18x64xf32, #tpu.memory_space<vmem>>, vector<2x18x16x64xf32>
    %28 = arith.truncf %27 : vector<2x18x16x64xf32> to vector<2x18x16x64xbf16>
    %c0_47 = arith.constant 0 : index
    %c0_48 = arith.constant 0 : index
    %c0_49 = arith.constant 0 : index
    %c128 = arith.constant 128 : index
    %29 = vector.load %arg10[%c0_47, %c0_48, %c0_49, %c128] : memref<2x18x16x192xbf16, #tpu.memory_space<vmem>>, vector<2x18x16x64xbf16>
    tpu.vector_store %arg10[%c0_47, %c0_48, %c0_49, %c128], %28 {strides = array<i32>} : memref<2x18x16x192xbf16, #tpu.memory_space<vmem>>, vector<2x18x16x64xbf16>,
    %c0_50 = arith.constant 0 : index
    %c0_51 = arith.constant 0 : index
    %c0_52 = arith.constant 0 : index
    %c0_53 = arith.constant 0 : index
    %30 = vector.load %arg10[%c0_50, %c0_51, %c0_52, %c0_53] : memref<2x18x16x192xbf16, #tpu.memory_space<vmem>>, vector<2x16x16x192xbf16>
    %31 = vector.shape_cast %30 : vector<2x16x16x192xbf16> to vector<512x192xbf16>
    %c0_54 = arith.constant 0 : index
    %c0_55 = arith.constant 0 : index
    %c0_56 = arith.constant 0 : index
    %c0_57 = arith.constant 0 : index
    %32 = vector.load %arg4[%c0_54, %c0_55, %c0_56, %c0_57] : memref<3x3x192x64xbf16, #tpu.memory_space<vmem>>, vector<1x1x192x64xbf16>
    %33 = vector.shape_cast %32 : vector<1x1x192x64xbf16> to vector<192x64xbf16>
    %cst_58 = arith.constant dense<0.000000e+00> : vector<512x64xf32>
    %34 = tpu.matmul %31, %33, %cst_58 {dimension_numbers = #tpu.dot_dimension_numbers<[1], [0], [0], [1], [0, 0, 1, 1], [], []>} : vector<512x192xbf16>, vector<192x64xbf16>, vector<512x64xf32> -> vector<512x64xf32>
    %c0_59 = arith.constant 0 : index
    %c1_60 = arith.constant 1 : index
    %c0_61 = arith.constant 0 : index
    %c0_62 = arith.constant 0 : index
    %35 = vector.load %arg10[%c0_59, %c1_60, %c0_61, %c0_62] : memref<2x18x16x192xbf16, #tpu.memory_space<vmem>>, vector<2x16x16x192xbf16>
    %36 = vector.shape_cast %35 : vector<2x16x16x192xbf16> to vector<512x192xbf16>
    %c0_63 = arith.constant 0 : index
    %c1_64 = arith.constant 1 : index
    %c0_65 = arith.constant 0 : index
    %c0_66 = arith.constant 0 : index
    %37 = vector.load %arg4[%c0_63, %c1_64, %c0_65, %c0_66] : memref<3x3x192x64xbf16, #tpu.memory_space<vmem>>, vector<1x1x192x64xbf16>
    %38 = vector.shape_cast %37 : vector<1x1x192x64xbf16> to vector<192x64xbf16>
    %cst_67 = arith.constant dense<0.000000e+00> : vector<512x64xf32>
    %39 = tpu.matmul %36, %38, %cst_67 {dimension_numbers = #tpu.dot_dimension_numbers<[1], [0], [0], [1], [0, 0, 1, 1], [], []>} : vector<512x192xbf16>, vector<192x64xbf16>, vector<512x64xf32> -> vector<512x64xf32>
    %40 = arith.addf %34, %39 : vector<512x64xf32>
    %c0_68 = arith.constant 0 : index
    %c2_69 = arith.constant 2 : index
    %c0_70 = arith.constant 0 : index
    %c0_71 = arith.constant 0 : index
    %41 = vector.load %arg10[%c0_68, %c2_69, %c0_70, %c0_71] : memref<2x18x16x192xbf16, #tpu.memory_space<vmem>>, vector<2x16x16x192xbf16>
    %42 = vector.shape_cast %41 : vector<2x16x16x192xbf16> to vector<512x192xbf16>
    %c0_72 = arith.constant 0 : index
    %c2_73 = arith.constant 2 : index
    %c0_74 = arith.constant 0 : index
    %c0_75 = arith.constant 0 : index
    %43 = vector.load %arg4[%c0_72, %c2_73, %c0_74, %c0_75] : memref<3x3x192x64xbf16, #tpu.memory_space<vmem>>, vector<1x1x192x64xbf16>
    %44 = vector.shape_cast %43 : vector<1x1x192x64xbf16> to vector<192x64xbf16>
    %cst_76 = arith.constant dense<0.000000e+00> : vector<512x64xf32>
    %45 = tpu.matmul %42, %44, %cst_76 {dimension_numbers = #tpu.dot_dimension_numbers<[1], [0], [0], [1], [0, 0, 1, 1], [], []>} : vector<512x192xbf16>, vector<192x64xbf16>, vector<512x64xf32> -> vector<512x64xf32>
    %46 = arith.addf %40, %45 : vector<512x64xf32>
    %c0_77 = arith.constant 0 : index
    %c0_78 = arith.constant 0 : index
    %47 = vector.load %arg5[%c0_77, %c0_78] : memref<3x64xf32, #tpu.memory_space<vmem>>, vector<1x64xf32>
    %48 = vector.shape_cast %47 : vector<1x64xf32> to vector<64xf32>
    %49 = vector.shape_cast %48 : vector<64xf32> to vector<1x64xf32>
    %50 = vector.broadcast %49 : vector<1x64xf32> to vector<512x64xf32>
    %51 = arith.addf %46, %50 : vector<512x64xf32>
    %cst_79 = arith.constant 0.000000e+00 : f32
    %52 = vector.broadcast %cst_79 : f32 to vector<512x64xf32>
    %53 = arith.maximumf %51, %52 : vector<512x64xf32>
    %54 = vector.shape_cast %53 : vector<512x64xf32> to vector<2x16x16x64xf32>
    %c0_80 = arith.constant 0 : index
    %c1_81 = arith.constant 1 : index
    %c1_82 = arith.constant 1 : index
    %c0_83 = arith.constant 0 : index
    %55 = vector.load %arg9[%c0_80, %c1_81, %c1_82, %c0_83] : memref<2x18x18x64xf32, #tpu.memory_space<vmem>>, vector<2x16x16x64xf32>
    tpu.vector_store %arg9[%c0_80, %c1_81, %c1_82, %c0_83], %54 {strides = array<i32>} : memref<2x18x18x64xf32, #tpu.memory_space<vmem>>, vector<2x16x16x64xf32>,
    %c0_84 = arith.constant 0 : index
    %c0_85 = arith.constant 0 : index
    %c0_86 = arith.constant 0 : index
    %c0_87 = arith.constant 0 : index
    %56 = vector.load %arg9[%c0_84, %c0_85, %c0_86, %c0_87] : memref<2x18x18x64xf32, #tpu.memory_space<vmem>>, vector<2x18x16x64xf32>
    %57 = arith.truncf %56 : vector<2x18x16x64xf32> to vector<2x18x16x64xbf16>
    %c0_88 = arith.constant 0 : index
    %c0_89 = arith.constant 0 : index
    %c0_90 = arith.constant 0 : index
    %c0_91 = arith.constant 0 : index
    %58 = vector.load %arg10[%c0_88, %c0_89, %c0_90, %c0_91] : memref<2x18x16x192xbf16, #tpu.memory_space<vmem>>, vector<2x18x16x64xbf16>
    tpu.vector_store %arg10[%c0_88, %c0_89, %c0_90, %c0_91], %57 {strides = array<i32>} : memref<2x18x16x192xbf16, #tpu.memory_space<vmem>>, vector<2x18x16x64xbf16>,
    %c0_92 = arith.constant 0 : index
    %c0_93 = arith.constant 0 : index
    %c1_94 = arith.constant 1 : index
    %c0_95 = arith.constant 0 : index
    %59 = vector.load %arg9[%c0_92, %c0_93, %c1_94, %c0_95] : memref<2x18x18x64xf32, #tpu.memory_space<vmem>>, vector<2x18x16x64xf32>
    %60 = arith.truncf %59 : vector<2x18x16x64xf32> to vector<2x18x16x64xbf16>
    %c0_96 = arith.constant 0 : index
    %c0_97 = arith.constant 0 : index
    %c0_98 = arith.constant 0 : index
    %c64_99 = arith.constant 64 : index
    %61 = vector.load %arg10[%c0_96, %c0_97, %c0_98, %c64_99] : memref<2x18x16x192xbf16, #tpu.memory_space<vmem>>, vector<2x18x16x64xbf16>
    tpu.vector_store %arg10[%c0_96, %c0_97, %c0_98, %c64_99], %60 {strides = array<i32>} : memref<2x18x16x192xbf16, #tpu.memory_space<vmem>>, vector<2x18x16x64xbf16>,
    %c0_100 = arith.constant 0 : index
    %c0_101 = arith.constant 0 : index
    %c2_102 = arith.constant 2 : index
    %c0_103 = arith.constant 0 : index
    %62 = vector.load %arg9[%c0_100, %c0_101, %c2_102, %c0_103] : memref<2x18x18x64xf32, #tpu.memory_space<vmem>>, vector<2x18x16x64xf32>
    %63 = arith.truncf %62 : vector<2x18x16x64xf32> to vector<2x18x16x64xbf16>
    %c0_104 = arith.constant 0 : index
    %c0_105 = arith.constant 0 : index
    %c0_106 = arith.constant 0 : index
    %c128_107 = arith.constant 128 : index
    %64 = vector.load %arg10[%c0_104, %c0_105, %c0_106, %c128_107] : memref<2x18x16x192xbf16, #tpu.memory_space<vmem>>, vector<2x18x16x64xbf16>
    tpu.vector_store %arg10[%c0_104, %c0_105, %c0_106, %c128_107], %63 {strides = array<i32>} : memref<2x18x16x192xbf16, #tpu.memory_space<vmem>>, vector<2x18x16x64xbf16>,
    %c0_108 = arith.constant 0 : index
    %c0_109 = arith.constant 0 : index
    %c0_110 = arith.constant 0 : index
    %c0_111 = arith.constant 0 : index
    %65 = vector.load %arg10[%c0_108, %c0_109, %c0_110, %c0_111] : memref<2x18x16x192xbf16, #tpu.memory_space<vmem>>, vector<2x16x16x192xbf16>
    %66 = vector.shape_cast %65 : vector<2x16x16x192xbf16> to vector<512x192xbf16>
    %c1_112 = arith.constant 1 : index
    %c0_113 = arith.constant 0 : index
    %c0_114 = arith.constant 0 : index
    %c0_115 = arith.constant 0 : index
    %67 = vector.load %arg4[%c1_112, %c0_113, %c0_114, %c0_115] : memref<3x3x192x64xbf16, #tpu.memory_space<vmem>>, vector<1x1x192x64xbf16>
    %68 = vector.shape_cast %67 : vector<1x1x192x64xbf16> to vector<192x64xbf16>
    %cst_116 = arith.constant dense<0.000000e+00> : vector<512x64xf32>
    %69 = tpu.matmul %66, %68, %cst_116 {dimension_numbers = #tpu.dot_dimension_numbers<[1], [0], [0], [1], [0, 0, 1, 1], [], []>} : vector<512x192xbf16>, vector<192x64xbf16>, vector<512x64xf32> -> vector<512x64xf32>
    %c0_117 = arith.constant 0 : index
    %c1_118 = arith.constant 1 : index
    %c0_119 = arith.constant 0 : index
    %c0_120 = arith.constant 0 : index
    %70 = vector.load %arg10[%c0_117, %c1_118, %c0_119, %c0_120] : memref<2x18x16x192xbf16, #tpu.memory_space<vmem>>, vector<2x16x16x192xbf16>
    %71 = vector.shape_cast %70 : vector<2x16x16x192xbf16> to vector<512x192xbf16>
    %c1_121 = arith.constant 1 : index
    %c1_122 = arith.constant 1 : index
    %c0_123 = arith.constant 0 : index
    %c0_124 = arith.constant 0 : index
    %72 = vector.load %arg4[%c1_121, %c1_122, %c0_123, %c0_124] : memref<3x3x192x64xbf16, #tpu.memory_space<vmem>>, vector<1x1x192x64xbf16>
    %73 = vector.shape_cast %72 : vector<1x1x192x64xbf16> to vector<192x64xbf16>
    %cst_125 = arith.constant dense<0.000000e+00> : vector<512x64xf32>
    %74 = tpu.matmul %71, %73, %cst_125 {dimension_numbers = #tpu.dot_dimension_numbers<[1], [0], [0], [1], [0, 0, 1, 1], [], []>} : vector<512x192xbf16>, vector<192x64xbf16>, vector<512x64xf32> -> vector<512x64xf32>
    %75 = arith.addf %69, %74 : vector<512x64xf32>
    %c0_126 = arith.constant 0 : index
    %c2_127 = arith.constant 2 : index
    %c0_128 = arith.constant 0 : index
    %c0_129 = arith.constant 0 : index
    %76 = vector.load %arg10[%c0_126, %c2_127, %c0_128, %c0_129] : memref<2x18x16x192xbf16, #tpu.memory_space<vmem>>, vector<2x16x16x192xbf16>
    %77 = vector.shape_cast %76 : vector<2x16x16x192xbf16> to vector<512x192xbf16>
    %c1_130 = arith.constant 1 : index
    %c2_131 = arith.constant 2 : index
    %c0_132 = arith.constant 0 : index
    %c0_133 = arith.constant 0 : index
    %78 = vector.load %arg4[%c1_130, %c2_131, %c0_132, %c0_133] : memref<3x3x192x64xbf16, #tpu.memory_space<vmem>>, vector<1x1x192x64xbf16>
    %79 = vector.shape_cast %78 : vector<1x1x192x64xbf16> to vector<192x64xbf16>
    %cst_134 = arith.constant dense<0.000000e+00> : vector<512x64xf32>
    %80 = tpu.matmul %77, %79, %cst_134 {dimension_numbers = #tpu.dot_dimension_numbers<[1], [0], [0], [1], [0, 0, 1, 1], [], []>} : vector<512x192xbf16>, vector<192x64xbf16>, vector<512x64xf32> -> vector<512x64xf32>
    %81 = arith.addf %75, %80 : vector<512x64xf32>
    %c1_135 = arith.constant 1 : index
    %c0_136 = arith.constant 0 : index
    %82 = vector.load %arg5[%c1_135, %c0_136] : memref<3x64xf32, #tpu.memory_space<vmem>>, vector<1x64xf32>
    %83 = vector.shape_cast %82 : vector<1x64xf32> to vector<64xf32>
    %84 = vector.shape_cast %83 : vector<64xf32> to vector<1x64xf32>
    %85 = vector.broadcast %84 : vector<1x64xf32> to vector<512x64xf32>
    %86 = arith.addf %81, %85 : vector<512x64xf32>
    %cst_137 = arith.constant 0.000000e+00 : f32
    %87 = vector.broadcast %cst_137 : f32 to vector<512x64xf32>
    %88 = arith.maximumf %86, %87 : vector<512x64xf32>
    %89 = vector.shape_cast %88 : vector<512x64xf32> to vector<2x16x16x64xf32>
    %c0_138 = arith.constant 0 : index
    %c1_139 = arith.constant 1 : index
    %c1_140 = arith.constant 1 : index
    %c0_141 = arith.constant 0 : index
    %90 = vector.load %arg9[%c0_138, %c1_139, %c1_140, %c0_141] : memref<2x18x18x64xf32, #tpu.memory_space<vmem>>, vector<2x16x16x64xf32>
    tpu.vector_store %arg9[%c0_138, %c1_139, %c1_140, %c0_141], %89 {strides = array<i32>} : memref<2x18x18x64xf32, #tpu.memory_space<vmem>>, vector<2x16x16x64xf32>,
    %c0_142 = arith.constant 0 : index
    %c0_143 = arith.constant 0 : index
    %c0_144 = arith.constant 0 : index
    %c0_145 = arith.constant 0 : index
    %91 = vector.load %arg9[%c0_142, %c0_143, %c0_144, %c0_145] : memref<2x18x18x64xf32, #tpu.memory_space<vmem>>, vector<2x18x16x64xf32>
    %92 = arith.truncf %91 : vector<2x18x16x64xf32> to vector<2x18x16x64xbf16>
    %c0_146 = arith.constant 0 : index
    %c0_147 = arith.constant 0 : index
    %c0_148 = arith.constant 0 : index
    %c0_149 = arith.constant 0 : index
    %93 = vector.load %arg10[%c0_146, %c0_147, %c0_148, %c0_149] : memref<2x18x16x192xbf16, #tpu.memory_space<vmem>>, vector<2x18x16x64xbf16>
    tpu.vector_store %arg10[%c0_146, %c0_147, %c0_148, %c0_149], %92 {strides = array<i32>} : memref<2x18x16x192xbf16, #tpu.memory_space<vmem>>, vector<2x18x16x64xbf16>,
    %c0_150 = arith.constant 0 : index
    %c0_151 = arith.constant 0 : index
    %c1_152 = arith.constant 1 : index
    %c0_153 = arith.constant 0 : index
    %94 = vector.load %arg9[%c0_150, %c0_151, %c1_152, %c0_153] : memref<2x18x18x64xf32, #tpu.memory_space<vmem>>, vector<2x18x16x64xf32>
    %95 = arith.truncf %94 : vector<2x18x16x64xf32> to vector<2x18x16x64xbf16>
    %c0_154 = arith.constant 0 : index
    %c0_155 = arith.constant 0 : index
    %c0_156 = arith.constant 0 : index
    %c64_157 = arith.constant 64 : index
    %96 = vector.load %arg10[%c0_154, %c0_155, %c0_156, %c64_157] : memref<2x18x16x192xbf16, #tpu.memory_space<vmem>>, vector<2x18x16x64xbf16>
    tpu.vector_store %arg10[%c0_154, %c0_155, %c0_156, %c64_157], %95 {strides = array<i32>} : memref<2x18x16x192xbf16, #tpu.memory_space<vmem>>, vector<2x18x16x64xbf16>,
    %c0_158 = arith.constant 0 : index
    %c0_159 = arith.constant 0 : index
    %c2_160 = arith.constant 2 : index
    %c0_161 = arith.constant 0 : index
    %97 = vector.load %arg9[%c0_158, %c0_159, %c2_160, %c0_161] : memref<2x18x18x64xf32, #tpu.memory_space<vmem>>, vector<2x18x16x64xf32>
    %98 = arith.truncf %97 : vector<2x18x16x64xf32> to vector<2x18x16x64xbf16>
    %c0_162 = arith.constant 0 : index
    %c0_163 = arith.constant 0 : index
    %c0_164 = arith.constant 0 : index
    %c128_165 = arith.constant 128 : index
    %99 = vector.load %arg10[%c0_162, %c0_163, %c0_164, %c128_165] : memref<2x18x16x192xbf16, #tpu.memory_space<vmem>>, vector<2x18x16x64xbf16>
    tpu.vector_store %arg10[%c0_162, %c0_163, %c0_164, %c128_165], %98 {strides = array<i32>} : memref<2x18x16x192xbf16, #tpu.memory_space<vmem>>, vector<2x18x16x64xbf16>,
    %c0_166 = arith.constant 0 : index
    %c0_167 = arith.constant 0 : index
    %c0_168 = arith.constant 0 : index
    %c0_169 = arith.constant 0 : index
    %100 = vector.load %arg10[%c0_166, %c0_167, %c0_168, %c0_169] : memref<2x18x16x192xbf16, #tpu.memory_space<vmem>>, vector<2x16x16x192xbf16>
    %101 = vector.shape_cast %100 : vector<2x16x16x192xbf16> to vector<512x192xbf16>
    %c2_170 = arith.constant 2 : index
    %c0_171 = arith.constant 0 : index
    %c0_172 = arith.constant 0 : index
    %c0_173 = arith.constant 0 : index
    %102 = vector.load %arg4[%c2_170, %c0_171, %c0_172, %c0_173] : memref<3x3x192x64xbf16, #tpu.memory_space<vmem>>, vector<1x1x192x64xbf16>
    %103 = vector.shape_cast %102 : vector<1x1x192x64xbf16> to vector<192x64xbf16>
    %cst_174 = arith.constant dense<0.000000e+00> : vector<512x64xf32>
    %104 = tpu.matmul %101, %103, %cst_174 {dimension_numbers = #tpu.dot_dimension_numbers<[1], [0], [0], [1], [0, 0, 1, 1], [], []>} : vector<512x192xbf16>, vector<192x64xbf16>, vector<512x64xf32> -> vector<512x64xf32>
    %c0_175 = arith.constant 0 : index
    %c1_176 = arith.constant 1 : index
    %c0_177 = arith.constant 0 : index
    %c0_178 = arith.constant 0 : index
    %105 = vector.load %arg10[%c0_175, %c1_176, %c0_177, %c0_178] : memref<2x18x16x192xbf16, #tpu.memory_space<vmem>>, vector<2x16x16x192xbf16>
    %106 = vector.shape_cast %105 : vector<2x16x16x192xbf16> to vector<512x192xbf16>
    %c2_179 = arith.constant 2 : index
    %c1_180 = arith.constant 1 : index
    %c0_181 = arith.constant 0 : index
    %c0_182 = arith.constant 0 : index
    %107 = vector.load %arg4[%c2_179, %c1_180, %c0_181, %c0_182] : memref<3x3x192x64xbf16, #tpu.memory_space<vmem>>, vector<1x1x192x64xbf16>
    %108 = vector.shape_cast %107 : vector<1x1x192x64xbf16> to vector<192x64xbf16>
    %cst_183 = arith.constant dense<0.000000e+00> : vector<512x64xf32>
    %109 = tpu.matmul %106, %108, %cst_183 {dimension_numbers = #tpu.dot_dimension_numbers<[1], [0], [0], [1], [0, 0, 1, 1], [], []>} : vector<512x192xbf16>, vector<192x64xbf16>, vector<512x64xf32> -> vector<512x64xf32>
    %110 = arith.addf %104, %109 : vector<512x64xf32>
    %c0_184 = arith.constant 0 : index
    %c2_185 = arith.constant 2 : index
    %c0_186 = arith.constant 0 : index
    %c0_187 = arith.constant 0 : index
    %111 = vector.load %arg10[%c0_184, %c2_185, %c0_186, %c0_187] : memref<2x18x16x192xbf16, #tpu.memory_space<vmem>>, vector<2x16x16x192xbf16>
    %112 = vector.shape_cast %111 : vector<2x16x16x192xbf16> to vector<512x192xbf16>
    %c2_188 = arith.constant 2 : index
    %c2_189 = arith.constant 2 : index
    %c0_190 = arith.constant 0 : index
    %c0_191 = arith.constant 0 : index
    %113 = vector.load %arg4[%c2_188, %c2_189, %c0_190, %c0_191] : memref<3x3x192x64xbf16, #tpu.memory_space<vmem>>, vector<1x1x192x64xbf16>
    %114 = vector.shape_cast %113 : vector<1x1x192x64xbf16> to vector<192x64xbf16>
    %cst_192 = arith.constant dense<0.000000e+00> : vector<512x64xf32>
    %115 = tpu.matmul %112, %114, %cst_192 {dimension_numbers = #tpu.dot_dimension_numbers<[1], [0], [0], [1], [0, 0, 1, 1], [], []>} : vector<512x192xbf16>, vector<192x64xbf16>, vector<512x64xf32> -> vector<512x64xf32>
    %116 = arith.addf %110, %115 : vector<512x64xf32>
    %c2_193 = arith.constant 2 : index
    %c0_194 = arith.constant 0 : index
    %117 = vector.load %arg5[%c2_193, %c0_194] : memref<3x64xf32, #tpu.memory_space<vmem>>, vector<1x64xf32>
    %118 = vector.shape_cast %117 : vector<1x64xf32> to vector<64xf32>
    %119 = vector.shape_cast %118 : vector<64xf32> to vector<1x64xf32>
    %120 = vector.broadcast %119 : vector<1x64xf32> to vector<512x64xf32>
    %121 = arith.addf %116, %120 : vector<512x64xf32>
    %cst_195 = arith.constant 0.000000e+00 : f32
    %122 = vector.broadcast %cst_195 : f32 to vector<512x64xf32>
    %123 = arith.maximumf %121, %122 : vector<512x64xf32>
    %c0_196 = arith.constant 0 : index
    %c0_197 = arith.constant 0 : index
    %124 = vector.load %arg6[%c0_196, %c0_197] : memref<1x64xbf16, #tpu.memory_space<vmem>>, vector<1x64xbf16>
    %125 = arith.truncf %123 : vector<512x64xf32> to vector<512x64xbf16>
    %cst_198 = arith.constant dense<0.000000e+00> : vector<1x512xf32>
    %126 = tpu.matmul %124, %125, %cst_198 {dimension_numbers = #tpu.dot_dimension_numbers<[1], [1], [0], [0], [0, 0, 1, 0], [], []>} : vector<1x64xbf16>, vector<512x64xbf16>, vector<1x512xf32> -> vector<1x512xf32>
    %c0_199 = arith.constant 0 : index
    %127 = memref.load %arg7[%c0_199] : memref<1xf32, #tpu.memory_space<smem>>
    %128 = vector.broadcast %127 : f32 to vector<1x512xf32>
    %129 = arith.addf %126, %128 : vector<1x512xf32>
    %c0_200 = arith.constant 0 : index
    %c0_201 = arith.constant 0 : index
    %130 = vector.load %arg8[%c0_200, %c0_201] : memref<1x512xf32, #tpu.memory_space<vmem>>, vector<1x512xf32>
    tpu.vector_store %arg8[%c0_200, %c0_201], %129 {strides = array<i32>} : memref<1x512xf32, #tpu.memory_space<vmem>>, vector<1x512xf32>,
    return
  }
  func.func @transform_0(%arg0: i32) -> (i32, i32, i32) {
    %c0_i32 = arith.constant 0 : i32
    %c0_i32_0 = arith.constant 0 : i32
    %c0_i32_1 = arith.constant 0 : i32
    return %arg0, %c0_i32, %c0_i32_0 : i32, i32, i32
  }
  func.func @transform_1(%arg0: i32) -> (i32, i32) {
    %c0_i32 = arith.constant 0 : i32
    %c0_i32_0 = arith.constant 0 : i32
    %c0_i32_1 = arith.constant 0 : i32
    return %c0_i32, %c0_i32_0 : i32, i32
  }
  func.func @transform_2(%arg0: i32) -> (i32, i32) {
    %c0_i32 = arith.constant 0 : i32
    %c0_i32_0 = arith.constant 0 : i32
    %c0_i32_1 = arith.constant 0 : i32
    return %c0_i32, %c0_i32_0 : i32, i32
  }
  func.func @transform_3(%arg0: i32) -> (i32, i32, i32, i32) {
    %c0_i32 = arith.constant 0 : i32
    %c0_i32_0 = arith.constant 0 : i32
    %c0_i32_1 = arith.constant 0 : i32
    %c0_i32_2 = arith.constant 0 : i32
    %c0_i32_3 = arith.constant 0 : i32
    return %c0_i32, %c0_i32_0, %c0_i32_1, %c0_i32_2 : i32, i32, i32, i32
  }
  func.func @transform_4(%arg0: i32) -> (i32, i32) {
    %c0_i32 = arith.constant 0 : i32
    %c0_i32_0 = arith.constant 0 : i32
    %c0_i32_1 = arith.constant 0 : i32
    return %c0_i32, %c0_i32_0 : i32, i32
  }
  func.func @transform_5(%arg0: i32) -> (i32, i32) {
    %c0_i32 = arith.constant 0 : i32
    %c0_i32_0 = arith.constant 0 : i32
    %c0_i32_1 = arith.constant 0 : i32
    return %c0_i32, %c0_i32_0 : i32, i32
  }
  func.func @transform_6(%arg0: i32) -> i32 {
    %c0_i32 = arith.constant 0 : i32
    %c0_i32_0 = arith.constant 0 : i32
    return %c0_i32 : i32
  }
  func.func @transform_7(%arg0: i32) -> (i32, i32) {
    %c0_i32 = arith.constant 0 : i32
    %c0_i32_0 = arith.constant 0 : i32
    return %arg0, %c0_i32 : i32, i32
  }
}

</mosaic_0001>

<bundles_post_ra>
// kernel: dqn_forward_impl.1
= control target key start
LH: loop header
LB: loop body
LE: loop exit
PB: predicated region body
PF: predicated region fallthrough
CT: control target
= control target key end

     0   :  { %vm451_vm0 = vcmask 1043456   ;;  %vm452_vm1 = vcmask 1044480   ;;  %vm354_vm2 = vcmask 72704   ;;  %v17007_v1 = vmov 65535   ;;  %s17010_s19 = smov 64   ;;  %s20733_s1 = inlined_call_operand.vmem [shape: bf16[9,64], index: 1, kind: input, shape index: {}]   ;;  %s20734_s0 = inlined_call_operand.vmem [shape: bf16[1,512,9], index: 0, kind: input, shape index: {}]   ;;  %s20735_s2 = inlined_call_operand.vmem [shape: f32[1,64], index: 2, kind: input, shape index: {}]   ;;  %s20736_s3 = inlined_call_operand.vmem [shape: bf16[3,3,192,64], index: 3, kind: input, shape index: {}]   ;;  %s20737_s4 = inlined_call_operand.vmem [shape: f32[3,64], index: 4, kind: input, shape index: {}]   ;;  %s20738_s5 = inlined_call_operand.vmem [shape: bf16[1,64], index: 5, kind: input, shape index: {}]   ;;  %s20739_s6 = inlined_call_operand.<no memory space> [shape: f32[1], index: 6, kind: input, shape index: {}]   ;;  %s20740_s7 = inlined_call_operand.vmem [shape: f32[1,512], index: 7, kind: output, shape index: {}]  }
   0x1   :  { %v16389_v0 = vld [vmem:[%s20733_s1] sm:$0x1f]   ;;  %v453_v2 = vsel %vm451_vm0, 4294967295, %v17007_v1  ;;  %v16391_v6 = vld [vmem:[%s20734_s0 + $0x8] sm:$0xff]   ;;  %v16392_v7 = vld [vmem:[%s20734_s0 + $0x10] sm:$0xff]   ;;  %vm28_vm3 = vcmask 523264  }
   0x2   :  { %v16390_v3 = vld [vmem:[%s20734_s0] sm:$0xff]   ;;  %v454_v4 = vsel %vm452_vm1, %v453_v2, 0  ;;  %v16393_v8 = vld [vmem:[%s20734_s0 + $0x18] sm:$0xff]   ;;  %v16395_v10 = vld [vmem:[%s20734_s0 + $0x28] sm:$0xff]   ;;  %vm43_vm4 = vcmask 516096   ;;  %v17008_v26 = vmov 0.0  }
   0x3   :  { %v456_v5 = vand.u32 %v16389_v0, %v454_v4  ;;  %16280 = vmatprep.mubr.msk.bf16.mxu0 %vm354_vm2, %v16390_v3  ;;  %v16394_v9 = vld [vmem:[%s20734_s0 + $0x20] sm:$0xff]   ;;  %v16396_v11 = vld [vmem:[%s20734_s0 + $0x30] sm:$0xff]   ;;  %v16397_v12 = vld [vmem:[%s20734_s0 + $0x38] sm:$0xff]   ;;  %82 = vst.msk [vmem:[#allocation2 + $0x41] sm:$0x1] %vm43_vm4, %v17008_v26  ;;  %v20741_v39 = vmov 0  }
   0x4   :  { %v16398_v13 = vld [vmem:[%s20734_s0 + $0x40] sm:$0xff]   ;;  %v16399_v14 = vld [vmem:[%s20734_s0 + $0x48] sm:$0xff]   ;;  %v16400_v15 = vld [vmem:[%s20734_s0 + $0x50] sm:$0xff]   ;;  %29 = vst.msk [vmem:[#allocation2] sm:$0xff] %vm28_vm3, %v17008_v26  ;;  %16344 = vmatprep.subr.bf16.mxu1 %v20741_v39  ;;  %vm1236_vm5 = vcmask 519168   ;;  %vm31_vm6 = vcmask 517120  }
   0x5   :  { %16278 = vmatprep.subr.bf16.mxu0 %v456_v5  ;;  %v16401_v16 = vld [vmem:[%s20734_s0 + $0x58] sm:$0xff]   ;;  %v16402_v17 = vld [vmem:[%s20734_s0 + $0x60] sm:$0xff]   ;;  %v16403_v18 = vld [vmem:[%s20734_s0 + $0x68] sm:$0xff]   ;;  %30 = vst.msk [vmem:[#allocation2 + $0x8] sm:$0xff] %vm28_vm3, %v17008_v26  ;;  %vm1813_vm7 = vcmask 1043968  }
   0x6   :  { %16279 = vmatpush3.bf16.msra.mxu0 %v456_v5  ;;  %v16404_v19 = vld [vmem:[%s20734_s0 + $0x70] sm:$0xff]   ;;  %v16405_v20 = vld [vmem:[%s20734_s0 + $0x78] sm:$0xff]   ;;  %v16406_v21 = vld [vmem:[%s20734_s0 + $0x80] sm:$0xff]   ;;  %33 = vst.msk [vmem:[#allocation2 + $0x1b0] sm:$0xff] %vm28_vm3, %v17008_v26 }
   0x7   :  { %v16407_v22 = vld [vmem:[%s20734_s0 + $0x88] sm:$0xff]   ;;  %v16408_v23 = vld [vmem:[%s20734_s0 + $0x90] sm:$0xff]   ;;  %v17134_v24 = vld [vmem:[%s20734_s0 + $0x98] sm:$0xff]   ;;  %34 = vst.msk [vmem:[#allocation2 + $0x1b8] sm:$0xff] %vm28_vm3, %v17008_v26  ;;  %2952 = vmatprep.subr.bf16.mxu0 %v20741_v39 }
   0x8   :  { %v17139_v25 = vld [vmem:[%s20734_s0 + $0xa0] sm:$0xff]   ;;  %37 = vst.msk [vmem:[#allocation2 + $0x198] sm:$0xff] %vm28_vm3, %v17008_v26  ;;  %38 = vst.msk [vmem:[#allocation2 + $0x1a0] sm:$0xff] %vm28_vm3, %v17008_v26  ;;  %v16411_v27 = vld [vmem:[%s20734_s0 + $0xa8] sm:$0xff]  }
   0x9   :  { %16281 = vmatmul.mubr.msk.bf16.vlgmr.msra.gmra.mxu0 %vm354_vm2, %v16391_v6  ;;  %40 = vst.msk [vmem:[#allocation2 + $0x348] sm:$0xff] %vm28_vm3, %v17008_v26  ;;  %41 = vst.msk [vmem:[#allocation2 + $0x350] sm:$0xff] %vm28_vm3, %v17008_v26  ;;  %v16412_v28 = vld [vmem:[%s20734_s0 + $0xb0] sm:$0xff]   ;;  %v16413_v29 = vld [vmem:[%s20734_s0 + $0xb8] sm:$0xff]  }
   0xa   :  { %16284 = vmatprep.mubr.msk.bf16.mxu0 %vm354_vm2, %v16392_v7  ;;  %45 = vst.msk [vmem:[#allocation2 + $0x18] sm:$0x1] %vm43_vm4, %v17008_v26  ;;  %46 = vst.msk [vmem:[#allocation2 + $0x30] sm:$0x1] %vm43_vm4, %v17008_v26  ;;  %v16414_v30 = vld [vmem:[%s20734_s0 + $0xc0] sm:$0xff]   ;;  %v16415_v31 = vld [vmem:[%s20734_s0 + $0xc8] sm:$0xff]  }
   0xb   :  { %47 = vst.msk [vmem:[#allocation2 + $0x48] sm:$0x1] %vm43_vm4, %v17008_v26  ;;  %48 = vst.msk [vmem:[#allocation2 + $0x60] sm:$0x1] %vm43_vm4, %v17008_v26  ;;  %v16416_v32 = vld [vmem:[%s20734_s0 + $0xd0] sm:$0xff]   ;;  %v16417_v33 = vld [vmem:[%s20734_s0 + $0xd8] sm:$0xff]  }
   0xc   :  { %49 = vst.msk [vmem:[#allocation2 + $0x78] sm:$0x1] %vm43_vm4, %v17008_v26  ;;  %50 = vst.msk [vmem:[#allocation2 + $0x90] sm:$0x1] %vm43_vm4, %v17008_v26  ;;  %v16418_v34 = vld [vmem:[%s20734_s0 + $0xe0] sm:$0xff]   ;;  %v16419_v35 = vld [vmem:[%s20734_s0 + $0xe8] sm:$0xff]  }
   0xd   :  { %51 = vst.msk [vmem:[#allocation2 + $0xa8] sm:$0x1] %vm43_vm4, %v17008_v26  ;;  %52 = vst.msk [vmem:[#allocation2 + $0xc0] sm:$0x1] %vm43_vm4, %v17008_v26  ;;  %v16420_v36 = vld [vmem:[%s20734_s0 + $0xf0] sm:$0xff]   ;;  %v16421_v37 = vld [vmem:[%s20734_s0 + $0xf8] sm:$0xff]  }
   0xe   :  { %53 = vst.msk [vmem:[#allocation2 + $0xd8] sm:$0x1] %vm43_vm4, %v17008_v26  ;;  %54 = vst.msk [vmem:[#allocation2 + $0xf0] sm:$0x1] %vm43_vm4, %v17008_v26  ;;  %v16422_v38 = vld [vmem:[%s20736_s3 + $0x98] sm:$0xff]   ;;  %v16423_v41 = vld [vmem:[%s20736_s3 + $0x90] sm:$0xff]  }
   0xf   :  { %55 = vst.msk [vmem:[#allocation2 + $0x108] sm:$0x1] %vm43_vm4, %v17008_v26  ;;  %56 = vst.msk [vmem:[#allocation2 + $0x120] sm:$0x1] %vm43_vm4, %v17008_v26  ;;  %v17349_v40 = vld [vmem:[%s20735_s2] ss:$0 sm:$0xff]  ;;  %16356 = vmatpush1.bf16.msra.mxu1 %v16422_v38  ;;  %2953 = vmatpush1.bf16.msra.mxu0 %v16422_v38 }
  0x10   :  { %57 = vst.msk [vmem:[#allocation2 + $0x138] sm:$0x1] %vm43_vm4, %v17008_v26  ;;  %58 = vst.msk [vmem:[#allocation2 + $0x150] sm:$0x1] %vm43_vm4, %v17008_v26  ;;  %16345 = vmatprep.subr.bf16.mxu1 %v20741_v39  ;;  %2954 = vmatprep.subr.bf16.mxu0 %v20741_v39  ;;  %v16424_v45 = vld [vmem:[%s20736_s3 + $0x88] sm:$0xff]   ;;  %v16425_v52 = vld [vmem:[%s20736_s3 + $0x80] sm:$0xff]  }
  0x11   :  { %16285 = vmatmul.mubr.msk.bf16.gmra.mxu0 %vm354_vm2, %v16393_v8  ;;  %59 = vst.msk [vmem:[#allocation2 + $0x168] sm:$0x1] %vm43_vm4, %v17008_v26  ;;  %60 = vst.msk [vmem:[#allocation2 + $0x180] sm:$0x1] %vm43_vm4, %v17008_v26  ;;  %v16426_v59 = vld [vmem:[%s20736_s3 + $0x78] sm:$0xff]   ;;  %v16427_v4 = vld [vmem:[%s20736_s3 + $0x70] sm:$0xff]  }
  0x12   :  { %16288 = vmatprep.mubr.msk.bf16.mxu0 %vm354_vm2, %v16394_v9  ;;  %63 = vst.msk [vmem:[#allocation2 + $0x1c8] sm:$0x1] %vm43_vm4, %v17008_v26  ;;  %64 = vst.msk [vmem:[#allocation2 + $0x1e0] sm:$0x1] %vm43_vm4, %v17008_v26 }
  0x13   :  { %65 = vst.msk [vmem:[#allocation2 + $0x1f8] sm:$0x1] %vm43_vm4, %v17008_v26  ;;  %66 = vst.msk [vmem:[#allocation2 + $0x210] sm:$0x1] %vm43_vm4, %v17008_v26  ;;  %16357 = vmatpush1.bf16.msra.mxu1 %v16423_v41  ;;  %2955 = vmatpush1.bf16.msra.mxu0 %v16423_v41 }
  0x14   :  { %67 = vst.msk [vmem:[#allocation2 + $0x228] sm:$0x1] %vm43_vm4, %v17008_v26  ;;  %68 = vst.msk [vmem:[#allocation2 + $0x240] sm:$0x1] %vm43_vm4, %v17008_v26  ;;  %16346 = vmatprep.subr.bf16.mxu1 %v20741_v39  ;;  %2956 = vmatprep.subr.bf16.mxu0 %v20741_v39 }
  0x15   :  { %69 = vst.msk [vmem:[#allocation2 + $0x258] sm:$0x1] %vm43_vm4, %v17008_v26  ;;  %70 = vst.msk [vmem:[#allocation2 + $0x270] sm:$0x1] %vm43_vm4, %v17008_v26 }
  0x16   :  { %71 = vst.msk [vmem:[#allocation2 + $0x288] sm:$0x1] %vm43_vm4, %v17008_v26  ;;  %72 = vst.msk [vmem:[#allocation2 + $0x2a0] sm:$0x1] %vm43_vm4, %v17008_v26 }
  0x17   :  { %73 = vst.msk [vmem:[#allocation2 + $0x2b8] sm:$0x1] %vm43_vm4, %v17008_v26  ;;  %74 = vst.msk [vmem:[#allocation2 + $0x2d0] sm:$0x1] %vm43_vm4, %v17008_v26  ;;  %16358 = vmatpush1.bf16.msra.mxu1 %v16424_v45  ;;  %2957 = vmatpush1.bf16.msra.mxu0 %v16424_v45 }
  0x18   :  { %75 = vst.msk [vmem:[#allocation2 + $0x2e8] sm:$0x1] %vm43_vm4, %v17008_v26  ;;  %76 = vst.msk [vmem:[#allocation2 + $0x300] sm:$0x1] %vm43_vm4, %v17008_v26  ;;  %16347 = vmatprep.subr.bf16.mxu1 %v20741_v39  ;;  %2958 = vmatprep.subr.bf16.mxu0 %v20741_v39 }
  0x19   :  { %16289 = vmatmul.mubr.msk.bf16.gmra.mxu0 %vm354_vm2, %v16395_v10  ;;  %77 = vst.msk [vmem:[#allocation2 + $0x318] sm:$0x1] %vm43_vm4, %v17008_v26  ;;  %78 = vst.msk [vmem:[#allocation2 + $0x330] sm:$0x1] %vm43_vm4, %v17008_v26 }
  0x1a   :  { %16292 = vmatprep.mubr.msk.bf16.mxu0 %vm354_vm2, %v16396_v11  ;;  %81 = vst.msk [vmem:[#allocation2 + $0x29] sm:$0x1] %vm43_vm4, %v17008_v26  ;;  %83 = vst.msk [vmem:[#allocation2 + $0x59] sm:$0x1] %vm43_vm4, %v17008_v26 }
  0x1b   :  { %84 = vst.msk [vmem:[#allocation2 + $0x71] sm:$0x1] %vm43_vm4, %v17008_v26  ;;  %85 = vst.msk [vmem:[#allocation2 + $0x89] sm:$0x1] %vm43_vm4, %v17008_v26  ;;  %16359 = vmatpush1.bf16.msra.mxu1 %v16425_v52  ;;  %2959 = vmatpush1.bf16.msra.mxu0 %v16425_v52 }
  0x1c   :  { %86 = vst.msk [vmem:[#allocation2 + $0xa1] sm:$0x1] %vm43_vm4, %v17008_v26  ;;  %87 = vst.msk [vmem:[#allocation2 + $0xb9] sm:$0x1] %vm43_vm4, %v17008_v26  ;;  %16348 = vmatprep.subr.bf16.mxu1 %v20741_v39  ;;  %2960 = vmatprep.subr.bf16.mxu0 %v20741_v39 }
  0x1d   :  { %88 = vst.msk [vmem:[#allocation2 + $0xd1] sm:$0x1] %vm43_vm4, %v17008_v26  ;;  %89 = vst.msk [vmem:[#allocation2 + $0xe9] sm:$0x1] %vm43_vm4, %v17008_v26 }
  0x1e   :  { %90 = vst.msk [vmem:[#allocation2 + $0x101] sm:$0x1] %vm43_vm4, %v17008_v26  ;;  %91 = vst.msk [vmem:[#allocation2 + $0x119] sm:$0x1] %vm43_vm4, %v17008_v26 }
  0x1f   :  { %92 = vst.msk [vmem:[#allocation2 + $0x131] sm:$0x1] %vm43_vm4, %v17008_v26  ;;  %93 = vst.msk [vmem:[#allocation2 + $0x149] sm:$0x1] %vm43_vm4, %v17008_v26  ;;  %16360 = vmatpush1.bf16.msra.mxu1 %v16426_v59  ;;  %2961 = vmatpush1.bf16.msra.mxu0 %v16426_v59 }
  0x20   :  { %94 = vst.msk [vmem:[#allocation2 + $0x161] sm:$0x1] %vm43_vm4, %v17008_v26  ;;  %95 = vst.msk [vmem:[#allocation2 + $0x179] sm:$0x1] %vm43_vm4, %v17008_v26  ;;  %16349 = vmatprep.subr.bf16.mxu1 %v20741_v39  ;;  %2962 = vmatprep.subr.bf16.mxu0 %v20741_v39 }
  0x21   :  { %16293 = vmatmul.mubr.msk.bf16.gmra.mxu0 %vm354_vm2, %v16397_v12  ;;  %96 = vst.msk [vmem:[#allocation2 + $0x191] sm:$0x1] %vm43_vm4, %v17008_v26  ;;  %99 = vst.msk [vmem:[#allocation2 + $0x1d9] sm:$0x1] %vm43_vm4, %v17008_v26 }
  0x22   :  { %16296 = vmatprep.mubr.msk.bf16.mxu0 %vm354_vm2, %v16398_v13  ;;  %100 = vst.msk [vmem:[#allocation2 + $0x1f1] sm:$0x1] %vm43_vm4, %v17008_v26  ;;  %101 = vst.msk [vmem:[#allocation2 + $0x209] sm:$0x1] %vm43_vm4, %v17008_v26 }
  0x23   :  { %102 = vst.msk [vmem:[#allocation2 + $0x221] sm:$0x1] %vm43_vm4, %v17008_v26  ;;  %103 = vst.msk [vmem:[#allocation2 + $0x239] sm:$0x1] %vm43_vm4, %v17008_v26  ;;  %16361 = vmatpush1.bf16.msra.mxu1 %v16427_v4  ;;  %2963 = vmatpush1.bf16.msra.mxu0 %v16427_v4 }
  0x24   :  { %104 = vst.msk [vmem:[#allocation2 + $0x251] sm:$0x1] %vm43_vm4, %v17008_v26  ;;  %105 = vst.msk [vmem:[#allocation2 + $0x269] sm:$0x1] %vm43_vm4, %v17008_v26  ;;  %16350 = vmatprep.subr.bf16.mxu1 %v20741_v39  ;;  %2964 = vmatprep.subr.bf16.mxu0 %v20741_v39 }
  0x25   :  { %106 = vst.msk [vmem:[#allocation2 + $0x281] sm:$0x1] %vm43_vm4, %v17008_v26  ;;  %107 = vst.msk [vmem:[#allocation2 + $0x299] sm:$0x1] %vm43_vm4, %v17008_v26 }
  0x26   :  { %108 = vst.msk [vmem:[#allocation2 + $0x2b1] sm:$0x1] %vm43_vm4, %v17008_v26  ;;  %109 = vst.msk [vmem:[#allocation2 + $0x2c9] sm:$0x1] %vm43_vm4, %v17008_v26 }
  0x27   :  { %110 = vst.msk [vmem:[#allocation2 + $0x2e1] sm:$0x1] %vm43_vm4, %v17008_v26  ;;  %111 = vst.msk [vmem:[#allocation2 + $0x2f9] sm:$0x1] %vm43_vm4, %v17008_v26 }
  0x28   :  { %112 = vst.msk [vmem:[#allocation2 + $0x311] sm:$0x1] %vm43_vm4, %v17008_v26  ;;  %113 = vst.msk [vmem:[#allocation2 + $0x329] sm:$0x1] %vm43_vm4, %v17008_v26 }
  0x29   :  { %16297 = vmatmul.mubr.msk.bf16.gmra.mxu0 %vm354_vm2, %v16399_v14  ;;  %114 = vst.msk [vmem:[#allocation2 + $0x341] sm:$0x1] %vm43_vm4, %v17008_v26  ;;  %44 = vst.msk [vmem:[#allocation2] sm:$0x1] %vm43_vm4, %v17008_v26 }
  0x2a   :  { %16300 = vmatprep.mubr.msk.bf16.mxu0 %vm354_vm2, %v16400_v15  ;;  %61 = vst.msk [vmem:[#allocation2 + $0x198] sm:$0x1] %vm43_vm4, %v17008_v26  ;;  %62 = vst.msk [vmem:[#allocation2 + $0x1b0] sm:$0x1] %vm43_vm4, %v17008_v26 }
  0x2b   :  { %79 = vst.msk [vmem:[#allocation2 + $0x348] sm:$0x1] %vm43_vm4, %v17008_v26 }
  0x2c   :  { %32 = vst.msk [vmem:[#allocation2 + $0x10] sm:$0x3] %vm31_vm6, %v17008_v26  ;;  %35 = vst.msk [vmem:[#allocation2 + $0x1c0] sm:$0x3] %vm31_vm6, %v17008_v26 }
  0x2d   :  { %39 = vst.msk [vmem:[#allocation2 + $0x1a8] sm:$0x3] %vm31_vm6, %v17008_v26  ;;  %42 = vst.msk [vmem:[#allocation2 + $0x358] sm:$0x3] %vm31_vm6, %v17008_v26 }
  0x2e   :  { %80 = vst.msk [vmem:[#allocation2 + $0x11] sm:$0x1] %vm43_vm4, %v17008_v26  ;;  %97 = vst.msk [vmem:[#allocation2 + $0x1a9] sm:$0x1] %vm43_vm4, %v17008_v26 }
  0x2f   :  { %98 = vst.msk [vmem:[#allocation2 + $0x1c1] sm:$0x1] %vm43_vm4, %v17008_v26  ;;  %115 = vst.msk [vmem:[#allocation2 + $0x359] sm:$0x1] %vm43_vm4, %v17008_v26 }
  0x31   :  { %16301 = vmatmul.mubr.msk.bf16.gmra.mxu0 %vm354_vm2, %v16401_v16 }
  0x32   :  { %16304 = vmatprep.mubr.msk.bf16.mxu0 %vm354_vm2, %v16402_v17 }
  0x39   :  { %16305 = vmatmul.mubr.msk.bf16.gmra.mxu0 %vm354_vm2, %v16403_v18 }
  0x3a   :  { %16308 = vmatprep.mubr.msk.bf16.mxu0 %vm354_vm2, %v16404_v19 }
  0x41   :  { %16309 = vmatmul.mubr.msk.bf16.gmra.mxu0 %vm354_vm2, %v16405_v20 }
  0x42   :  { %16312 = vmatprep.mubr.msk.bf16.mxu0 %vm354_vm2, %v16406_v21 }
  0x49   :  { %16313 = vmatmul.mubr.msk.bf16.gmra.mxu0 %vm354_vm2, %v16407_v22 }
  0x4a   :  { %16316 = vmatprep.mubr.msk.bf16.mxu0 %vm354_vm2, %v16408_v23 }
  0x51   :  { %16317 = vmatmul.mubr.msk.bf16.gmra.mxu0 %vm354_vm2, %v17134_v24 }
  0x52   :  { %16320 = vmatprep.mubr.msk.bf16.mxu0 %vm354_vm2, %v17139_v25  ;;  %v16428_v25 = vld [vmem:[%s20736_s3 + $0x68] sm:$0xff]  }
  0x53   :  { %16362 = vmatpush1.bf16.msra.mxu1 %v16428_v25  ;;  %2965 = vmatpush1.bf16.msra.mxu0 %v16428_v25 }
  0x54   :  { %16351 = vmatprep.subr.bf16.mxu1 %v20741_v39  ;;  %2966 = vmatprep.subr.bf16.mxu0 %v20741_v39 }
  0x59   :  { %16321 = vmatmul.mubr.msk.bf16.gmra.mxu0 %vm354_vm2, %v16411_v27 }
  0x5a   :  { %16324 = vmatprep.mubr.msk.bf16.mxu0 %vm354_vm2, %v16412_v28 }
  0x61   :  { %16325 = vmatmul.mubr.msk.bf16.gmra.mxu0 %vm354_vm2, %v16413_v29 }
  0x62   :  { %16328 = vmatprep.mubr.msk.bf16.mxu0 %vm354_vm2, %v16414_v30 }
  0x69   :  { %16329 = vmatmul.mubr.msk.bf16.gmra.mxu0 %vm354_vm2, %v16415_v31 }
  0x6a   :  { %16332 = vmatprep.mubr.msk.bf16.mxu0 %vm354_vm2, %v16416_v32 }
  0x71   :  { %16333 = vmatmul.mubr.msk.bf16.gmra.mxu0 %vm354_vm2, %v16417_v33 }
  0x72   :  { %16336 = vmatprep.mubr.msk.bf16.mxu0 %vm354_vm2, %v16418_v34 }
  0x79   :  { %16337 = vmatmul.mubr.msk.bf16.gmra.mxu0 %vm354_vm2, %v16419_v35  ;;  %v16429_v35 = vld [vmem:[%s20736_s3 + $0x60] sm:$0xff]  }
  0x7a   :  { %16340 = vmatprep.mubr.msk.bf16.mxu0 %vm354_vm2, %v16420_v36  ;;  %16363 = vmatpush1.bf16.msra.mxu1 %v16429_v35 }
  0x7b   :  { %2967 = vmatpush1.bf16.msra.mxu0 %v16429_v35  ;;  %16352 = vmatprep.subr.bf16.mxu1 %v20741_v39 }
  0x7c   :  { %2976 = vmatprep.subr.bf16.mxu0 %v20741_v39 }
  0x81   :  { %16341 = vmatmul.mubr.msk.bf16.gmra.mxu0 %vm354_vm2, %v16421_v37 }
  0xc9   :  { %v16282_v42 = vpop.f32.mrf.mxu0 }
  0xca   :  { %v501_v43 = vadd.f32 %v16282_v42, %v17349_v40 }
  0xcb   :  { %v492_v44 = vpop.f32.mrf.mxu0 }
  0xcc   :  { %v749_v46 = vmax.f32 %v501_v43, 0.0  ;;  %v493_v47 = vadd.f32 %v17349_v40, %v492_v44 }
  0xcd   :  { %v16283_v48 = vpop.f32.mrf.mxu0 }
  0xce   :  { %814 = vst.msk [vmem:[#allocation2 + $0x31] sm:$0xff] %vm28_vm3, %v749_v46  ;;  %v747_v49 = vmax.f32 %v493_v47, 0.0  ;;  %v504_v50 = vadd.f32 %v16283_v48, %v17349_v40 }
  0xcf   :  { %v495_v51 = vpop.f32.mrf.mxu0 }
  0xd0   :  { %812 = vst.msk [vmem:[#allocation2 + $0x19] sm:$0xff] %vm28_vm3, %v747_v49  ;;  %v750_v53 = vmax.f32 %v504_v50, 0.0  ;;  %v496_v54 = vadd.f32 %v17349_v40, %v495_v51 }
  0xd1   :  { %v16286_v55 = vpop.f32.mrf.mxu0 }
  0xd2   :  { %815 = vst.msk [vmem:[#allocation2 + $0x39] sm:$0xff] %vm28_vm3, %v750_v53  ;;  %v748_v56 = vmax.f32 %v496_v54, 0.0  ;;  %v517_v57 = vadd.f32 %v16286_v55, %v17349_v40 }
  0xd3   :  { %v508_v58 = vpop.f32.mrf.mxu0 }
  0xd4   :  { %813 = vst.msk [vmem:[#allocation2 + $0x21] sm:$0xff] %vm28_vm3, %v748_v56  ;;  %v753_v60 = vmax.f32 %v517_v57, 0.0  ;;  %v509_v61 = vadd.f32 %v17349_v40, %v508_v58  ;;  %v16430_v58 = vld [vmem:[%s20736_s3 + $0xb8] sm:$0xff]  }
  0xd5   :  { %v16287_v62 = vpop.f32.mrf.mxu0  ;;  %v880_v63 = vld [vmem:[#allocation2 + $0x30] sm:$0xff]  ;;  %16364 = vmatpush2.bf16.msra.mxu1 %v16430_v58  ;;  %2977 = vmatpush2.bf16.msra.mxu0 %v16430_v58 }
  0xd6   :  { %818 = vst.msk [vmem:[#allocation2 + $0x61] sm:$0xff] %vm28_vm3, %v753_v60  ;;  %v751_v0 = vmax.f32 %v509_v61, 0.0  ;;  %v520_v1 = vadd.f32 %v16287_v62, %v17349_v40  ;;  %v15565_v2 = vpack.c.bf16 %v880_v63, %v880_v63  ;;  %16353 = vmatprep.subr.bf16.mxu1 %v20741_v39  ;;  %2978 = vmatprep.subr.bf16.mxu0 %v20741_v39 }
  0xd7   :  { %v511_v3 = vpop.f32.mrf.mxu0  ;;  %v878_v5 = vld [vmem:[#allocation2 + $0x18] sm:$0xff] }
  0xd8   :  { %816 = vst.msk [vmem:[#allocation2 + $0x49] sm:$0xff] %vm28_vm3, %v751_v0  ;;  %v754_v6 = vmax.f32 %v520_v1, 0.0  ;;  %v512_v7 = vadd.f32 %v17349_v40, %v511_v3  ;;  %v15563_v8 = vpack.c.bf16 %v878_v5, %v878_v5  ;;  %v16431_v3 = vld [vmem:[%s20736_s3 + $0xb0] sm:$0xff]  }
  0xd9   :  { %1241 = vst.msk [vmem:[#allocation3 + $0x20] sm:$0xf] %vm1236_vm5, %v15565_v2  ;;  %v1890_v9 = vld [vmem:[#allocation2 + $0x32] sm:$0xff]  ;;  %v1891_v10 = vld [vmem:[#allocation2 + $0x3a] sm:$0xff]  ;;  %v16290_v11 = vpop.f32.mrf.mxu0  ;;  %16365 = vmatpush2.bf16.msra.mxu1 %v16431_v3  ;;  %2979 = vmatpush2.bf16.msra.mxu0 %v16431_v3 }
  0xda   :  { %v15709_v12 = vpack.c.bf16 %v1890_v9, %v1890_v9  ;;  %v15710_v13 = vpack.c.bf16 %v1891_v10, %v1891_v10  ;;  %819 = vst.msk [vmem:[#allocation2 + $0x69] sm:$0xff] %vm28_vm3, %v754_v6  ;;  %v752_v14 = vmax.f32 %v512_v7, 0.0  ;;  %v533_v15 = vadd.f32 %v16290_v11, %v17349_v40  ;;  %v881_v16 = vld [vmem:[#allocation2 + $0x38] sm:$0xff]  ;;  %16354 = vmatprep.subr.bf16.mxu1 %v20741_v39 }
  0xdb   :  { %1239 = vst.msk [vmem:[#allocation3 + $0x10] sm:$0xf] %vm1236_vm5, %v15563_v8  ;;  %v1888_v17 = vld [vmem:[#allocation2 + $0x1a] sm:$0xff]  ;;  %v1889_v18 = vld [vmem:[#allocation2 + $0x22] sm:$0xff]  ;;  %v524_v19 = vpop.f32.mrf.mxu0  ;;  %v15566_v20 = vpack.c.bf16 %v881_v16, %v881_v16  ;;  %2980 = vmatprep.subr.bf16.mxu0 %v20741_v39 }
  0xdc   :  { %2250 = vst.msk [vmem:[#allocation3 + $0x24] sm:$0xf] %vm1236_vm5, %v15709_v12  ;;  %2251 = vst.msk [vmem:[#allocation3 + $0x2c] sm:$0xf] %vm1236_vm5, %v15710_v13  ;;  %v15707_v21 = vpack.c.bf16 %v1888_v17, %v1888_v17  ;;  %v15708_v22 = vpack.c.bf16 %v1889_v18, %v1889_v18  ;;  %v757_v23 = vmax.f32 %v533_v15, 0.0  ;;  %v525_v24 = vadd.f32 %v17349_v40, %v524_v19  ;;  %v879_v27 = vld [vmem:[#allocation2 + $0x20] sm:$0xff] }
  0xdd   :  { %817 = vst.msk [vmem:[#allocation2 + $0x51] sm:$0xff] %vm28_vm3, %v752_v14  ;;  %v16291_v28 = vpop.f32.mrf.mxu0  ;;  %v15564_v29 = vpack.c.bf16 %v879_v27, %v879_v27  ;;  %v884_v30 = vld [vmem:[#allocation2 + $0x60] sm:$0xff] }
  0xde   :  { %1242 = vst.msk [vmem:[#allocation3 + $0x28] sm:$0xf] %vm1236_vm5, %v15566_v20  ;;  %2248 = vst.msk [vmem:[#allocation3 + $0x14] sm:$0xf] %vm1236_vm5, %v15707_v21  ;;  %v755_v31 = vmax.f32 %v525_v24, 0.0  ;;  %v536_v32 = vadd.f32 %v16291_v28, %v17349_v40  ;;  %v15569_v33 = vpack.c.bf16 %v884_v30, %v884_v30  ;;  %v16432_v24 = vld [vmem:[%s20736_s3 + $0xa8] sm:$0xff]  }
  0xdf   :  { %2249 = vst.msk [vmem:[#allocation3 + $0x1c] sm:$0xf] %vm1236_vm5, %v15708_v22  ;;  %v527_v34 = vpop.f32.mrf.mxu0  ;;  %1240 = vst.msk [vmem:[#allocation3 + $0x18] sm:$0xf] %vm1236_vm5, %v15564_v29  ;;  %v882_v36 = vld [vmem:[#allocation2 + $0x48] sm:$0xff]  ;;  %16366 = vmatpush2.bf16.msra.mxu1 %v16432_v24  ;;  %2981 = vmatpush2.bf16.msra.mxu0 %v16432_v24 }
  0xe0   :  { %822 = vst.msk [vmem:[#allocation2 + $0x91] sm:$0xff] %vm28_vm3, %v757_v23  ;;  %820 = vst.msk [vmem:[#allocation2 + $0x79] sm:$0xff] %vm28_vm3, %v755_v31  ;;  %v758_v37 = vmax.f32 %v536_v32, 0.0  ;;  %v528_v38 = vadd.f32 %v17349_v40, %v527_v34  ;;  %v15567_v41 = vpack.c.bf16 %v882_v36, %v882_v36  ;;  %16355 = vmatprep.subr.bf16.mxu1 %v20741_v39  ;;  %2982 = vmatprep.subr.bf16.mxu0 %v20741_v39 }
  0xe1   :  { %1245 = vst.msk [vmem:[#allocation3 + $0x40] sm:$0xf] %vm1236_vm5, %v15569_v33  ;;  %v1894_v42 = vld [vmem:[#allocation2 + $0x62] sm:$0xff]  ;;  %v1895_v43 = vld [vmem:[#allocation2 + $0x6a] sm:$0xff]  ;;  %v16294_v44 = vpop.f32.mrf.mxu0 }
  0xe2   :  { %v15713_v45 = vpack.c.bf16 %v1894_v42, %v1894_v42  ;;  %v15714_v46 = vpack.c.bf16 %v1895_v43, %v1895_v43  ;;  %823 = vst.msk [vmem:[#allocation2 + $0x99] sm:$0xff] %vm28_vm3, %v758_v37  ;;  %v756_v47 = vmax.f32 %v528_v38, 0.0  ;;  %v549_v48 = vadd.f32 %v16294_v44, %v17349_v40  ;;  %v885_v49 = vld [vmem:[#allocation2 + $0x68] sm:$0xff]  ;;  %v16433_v38 = vld [vmem:[%s20736_s3 + $0xa0] sm:$0xff]  }
  0xe3   :  { %1243 = vst.msk [vmem:[#allocation3 + $0x30] sm:$0xf] %vm1236_vm5, %v15567_v41  ;;  %v540_v52 = vpop.f32.mrf.mxu0  ;;  %v15570_v53 = vpack.c.bf16 %v885_v49, %v885_v49  ;;  %16367 = vmatpush2.bf16.msra.mxu1 %v16433_v38  ;;  %2983 = vmatpush2.bf16.msra.mxu0 %v16433_v38 }
  0xe4   :  { %v1892_v50 = vld [vmem:[#allocation2 + $0x4a] sm:$0xff]  ;;  %v1893_v51 = vld [vmem:[#allocation2 + $0x52] sm:$0xff]  ;;  %2254 = vst.msk [vmem:[#allocation3 + $0x44] sm:$0xf] %vm1236_vm5, %v15713_v45  ;;  %2255 = vst.msk [vmem:[#allocation3 + $0x4c] sm:$0xf] %vm1236_vm5, %v15714_v46  ;;  %v541_v57 = vadd.f32 %v17349_v40, %v540_v52  ;;  %4532 = vmatprep.subr.bf16.mxu1 %v20741_v39  ;;  %3697 = vmatprep.subr.bf16.mxu0 %v20741_v39 }
  0xe5   :  { %v15711_v54 = vpack.c.bf16 %v1892_v50, %v1892_v50  ;;  %v15712_v55 = vpack.c.bf16 %v1893_v51, %v1893_v51  ;;  %821 = vst.msk [vmem:[#allocation2 + $0x81] sm:$0xff] %vm28_vm3, %v756_v47  ;;  %v761_v56 = vmax.f32 %v549_v48, 0.0  ;;  %v883_v59 = vld [vmem:[#allocation2 + $0x50] sm:$0xff]  ;;  %v16295_v60 = vpop.f32.mrf.mxu0 }
  0xe6   :  { %v15568_v61 = vpack.c.bf16 %v883_v59, %v883_v59  ;;  %1246 = vst.msk [vmem:[#allocation3 + $0x48] sm:$0xf] %vm1236_vm5, %v15570_v53  ;;  %v759_v63 = vmax.f32 %v541_v57, 0.0  ;;  %v552_v0 = vadd.f32 %v16295_v60, %v17349_v40 }
  0xe7   :  { %v888_v62 = vld [vmem:[#allocation2 + $0x90] sm:$0xff]  ;;  %2252 = vst.msk [vmem:[#allocation3 + $0x34] sm:$0xf] %vm1236_vm5, %v15711_v54  ;;  %2253 = vst.msk [vmem:[#allocation3 + $0x3c] sm:$0xf] %vm1236_vm5, %v15712_v55  ;;  %v543_v2 = vpop.f32.mrf.mxu0  ;;  %v886_v4 = vld [vmem:[#allocation2 + $0x78] sm:$0xff] }
  0xe8   :  { %826 = vst.msk [vmem:[#allocation2 + $0xc1] sm:$0xff] %vm28_vm3, %v761_v56  ;;  %v15573_v1 = vpack.c.bf16 %v888_v62, %v888_v62  ;;  %824 = vst.msk [vmem:[#allocation2 + $0xa9] sm:$0xff] %vm28_vm3, %v759_v63  ;;  %v762_v5 = vmax.f32 %v552_v0, 0.0  ;;  %v544_v6 = vadd.f32 %v17349_v40, %v543_v2  ;;  %v15571_v7 = vpack.c.bf16 %v886_v4, %v886_v4 }
  0xe9   :  { %1244 = vst.msk [vmem:[#allocation3 + $0x38] sm:$0xf] %vm1236_vm5, %v15568_v61  ;;  %v1898_v8 = vld [vmem:[#allocation2 + $0x92] sm:$0xff]  ;;  %v1899_v9 = vld [vmem:[#allocation2 + $0x9a] sm:$0xff]  ;;  %v16298_v10 = vpop.f32.mrf.mxu0 }
  0xea   :  { %1249 = vst.msk [vmem:[#allocation3 + $0x60] sm:$0xf] %vm1236_vm5, %v15573_v1  ;;  %v15717_v11 = vpack.c.bf16 %v1898_v8, %v1898_v8  ;;  %v15718_v12 = vpack.c.bf16 %v1899_v9, %v1899_v9  ;;  %v760_v13 = vmax.f32 %v544_v6, 0.0  ;;  %v565_v14 = vadd.f32 %v16298_v10, %v17349_v40  ;;  %1247 = vst.msk [vmem:[#allocation3 + $0x50] sm:$0xf] %vm1236_vm5, %v15571_v7  ;;  %v889_v15 = vld [vmem:[#allocation2 + $0x98] sm:$0xff] }
  0xeb   :  { %827 = vst.msk [vmem:[#allocation2 + $0xc9] sm:$0xff] %vm28_vm3, %v762_v5  ;;  %v556_v18 = vpop.f32.mrf.mxu0  ;;  %v15574_v19 = vpack.c.bf16 %v889_v15, %v889_v15 }
  0xec   :  { %v1896_v16 = vld [vmem:[#allocation2 + $0x7a] sm:$0xff]  ;;  %v1897_v17 = vld [vmem:[#allocation2 + $0x82] sm:$0xff]  ;;  %2258 = vst.msk [vmem:[#allocation3 + $0x64] sm:$0xf] %vm1236_vm5, %v15717_v11  ;;  %2259 = vst.msk [vmem:[#allocation3 + $0x6c] sm:$0xf] %vm1236_vm5, %v15718_v12  ;;  %v557_v23 = vadd.f32 %v17349_v40, %v556_v18 }
  0xed   :  { %v15715_v20 = vpack.c.bf16 %v1896_v16, %v1896_v16  ;;  %v15716_v21 = vpack.c.bf16 %v1897_v17, %v1897_v17  ;;  %825 = vst.msk [vmem:[#allocation2 + $0xb1] sm:$0xff] %vm28_vm3, %v760_v13  ;;  %v765_v22 = vmax.f32 %v565_v14, 0.0  ;;  %v887_v25 = vld [vmem:[#allocation2 + $0x80] sm:$0xff]  ;;  %v16299_v27 = vpop.f32.mrf.mxu0 }
  0xee   :  { %v15572_v30 = vpack.c.bf16 %v887_v25, %v887_v25  ;;  %1250 = vst.msk [vmem:[#allocation3 + $0x68] sm:$0xf] %vm1236_vm5, %v15574_v19  ;;  %v763_v31 = vmax.f32 %v557_v23, 0.0  ;;  %v568_v32 = vadd.f32 %v16299_v27, %v17349_v40 }
  0xef   :  { %v1325_v28 = vld [vmem:[#allocation2 + $0xc1] sm:$0xff]  ;;  %2256 = vst.msk [vmem:[#allocation3 + $0x54] sm:$0xf] %vm1236_vm5, %v15715_v20  ;;  %2257 = vst.msk [vmem:[#allocation3 + $0x5c] sm:$0xf] %vm1236_vm5, %v15716_v21  ;;  %v559_v35 = vpop.f32.mrf.mxu0  ;;  %v1323_v36 = vld [vmem:[#allocation2 + $0xa9] sm:$0xff] }
  0xf0   :  { %v892_v29 = vld [vmem:[#allocation2 + $0xc0] sm:$0xff]  ;;  %830 = vst.msk [vmem:[#allocation2 + $0xf1] sm:$0xff] %vm28_vm3, %v765_v22  ;;  %v15649_v33 = vpack.c.bf16 %v1325_v28, %v1325_v28  ;;  %v890_v37 = vld [vmem:[#allocation2 + $0xa8] sm:$0xff]  ;;  %828 = vst.msk [vmem:[#allocation2 + $0xd9] sm:$0xff] %vm28_vm3, %v763_v31  ;;  %v766_v41 = vmax.f32 %v568_v32, 0.0  ;;  %v560_v42 = vadd.f32 %v17349_v40, %v559_v35  ;;  %v15647_v43 = vpack.c.bf16 %v1323_v36, %v1323_v36 }
  0xf1   :  { %v15577_v34 = vpack.c.bf16 %v892_v29, %v892_v29  ;;  %1248 = vst.msk [vmem:[#allocation3 + $0x58] sm:$0xf] %vm1236_vm5, %v15572_v30  ;;  %v15575_v44 = vpack.c.bf16 %v890_v37, %v890_v37  ;;  %v16302_v47 = vpop.f32.mrf.mxu0 }
  0xf2   :  { %1629 = vrot.lane.b32.xlu1 %v15649_v33, %s17010_s19  ;;  %v1902_v45 = vld [vmem:[#allocation2 + $0xc2] sm:$0xff]  ;;  %v1903_v46 = vld [vmem:[#allocation2 + $0xca] sm:$0xff]  ;;  %831 = vst.msk [vmem:[#allocation2 + $0xf9] sm:$0xff] %vm28_vm3, %v766_v41  ;;  %v764_v50 = vmax.f32 %v560_v42, 0.0  ;;  %v581_v51 = vadd.f32 %v16302_v47, %v17349_v40  ;;  %1625 = vrot.lane.b32.xlu0 %v15647_v43, %s17010_s19 }
  0xf3   :  { %1253 = vst.msk [vmem:[#allocation3 + $0x80] sm:$0xf] %vm1236_vm5, %v15577_v34  ;;  %v1326_v26 = vld [vmem:[#allocation2 + $0xc9] sm:$0xff]  ;;  %v15721_v48 = vpack.c.bf16 %v1902_v45, %v1902_v45  ;;  %v15722_v49 = vpack.c.bf16 %v1903_v46, %v1903_v46  ;;  %1251 = vst.msk [vmem:[#allocation3 + $0x70] sm:$0xf] %vm1236_vm5, %v15575_v44  ;;  %v572_v55 = vpop.f32.mrf.mxu0 }
  0xf4   :  { %v893_v52 = vld [vmem:[#allocation2 + $0xc8] sm:$0xff]  ;;  %v1901_v54 = vld [vmem:[#allocation2 + $0xb2] sm:$0xff]  ;;  %v15650_v56 = vpack.c.bf16 %v1326_v26, %v1326_v26  ;;  %829 = vst.msk [vmem:[#allocation2 + $0xe1] sm:$0xff] %vm28_vm3, %v764_v50  ;;  %v769_v61 = vmax.f32 %v581_v51, 0.0  ;;  %v573_v62 = vadd.f32 %v17349_v40, %v572_v55 }
  0xf5   :  { %v1900_v53 = vld [vmem:[#allocation2 + $0xaa] sm:$0xff]  ;;  %v15578_v58 = vpack.c.bf16 %v893_v52, %v893_v52  ;;  %2262 = vst.msk [vmem:[#allocation3 + $0x84] sm:$0xf] %vm1236_vm5, %v15721_v48  ;;  %2263 = vst.msk [vmem:[#allocation3 + $0x8c] sm:$0xf] %vm1236_vm5, %v15722_v49  ;;  %v15720_v60 = vpack.c.bf16 %v1901_v54, %v1901_v54  ;;  %v16303_v0 = vpop.f32.mrf.mxu0 }
  0xf6   :  { %v1324_v57 = vld [vmem:[#allocation2 + $0xb1] sm:$0xff]  ;;  %v15719_v59 = vpack.c.bf16 %v1900_v53, %v1900_v53  ;;  %1631 = vrot.lane.b32.xlu1 %v15650_v56, %s17010_s19  ;;  %834 = vst.msk [vmem:[#allocation2 + $0x121] sm:$0xff] %vm28_vm3, %v769_v61  ;;  %v767_v4 = vmax.f32 %v573_v62, 0.0  ;;  %v584_v5 = vadd.f32 %v16303_v0, %v17349_v40 }
  0xf7   :  { %v891_v63 = vld [vmem:[#allocation2 + $0xb0] sm:$0xff]  ;;  %v15648_v1 = vpack.c.bf16 %v1324_v57, %v1324_v57  ;;  %1254 = vst.msk [vmem:[#allocation3 + $0x88] sm:$0xf] %vm1236_vm5, %v15578_v58  ;;  %2261 = vst.msk [vmem:[#allocation3 + $0x7c] sm:$0xf] %vm1236_vm5, %v15720_v60  ;;  %v575_v7 = vpop.f32.mrf.mxu0  ;;  %v1327_v8 = vld [vmem:[#allocation2 + $0xd9] sm:$0xff] }
  0xf8   :  { %v15576_v2 = vpack.c.bf16 %v891_v63, %v891_v63  ;;  %v896_v3 = vld [vmem:[#allocation2 + $0xf0] sm:$0xff]  ;;  %2260 = vst.msk [vmem:[#allocation3 + $0x74] sm:$0xf] %vm1236_vm5, %v15719_v59  ;;  %v894_v9 = vld [vmem:[#allocation2 + $0xd8] sm:$0xff]  ;;  %v770_v10 = vmax.f32 %v584_v5, 0.0  ;;  %v576_v11 = vadd.f32 %v17349_v40, %v575_v7  ;;  %v15651_v12 = vpack.c.bf16 %v1327_v8, %v1327_v8 }
  0xf9   :  { %v15581_v6 = vpack.c.bf16 %v896_v3, %v896_v3  ;;  %1627 = vrot.lane.b32.xlu0 %v15648_v1, %s17010_s19  ;;  %832 = vst.msk [vmem:[#allocation2 + $0x109] sm:$0xff] %vm28_vm3, %v767_v4  ;;  %v1329_v13 = vld [vmem:[#allocation2 + $0xf1] sm:$0xff]  ;;  %v15579_v14 = vpack.c.bf16 %v894_v9, %v894_v9  ;;  %v1907_v16 = vld [vmem:[#allocation2 + $0xfa] sm:$0xff]  ;;  %v16306_v17 = vpop.f32.mrf.mxu0 }
  0xfa   :  { %1252 = vst.msk [vmem:[#allocation3 + $0x78] sm:$0xf] %vm1236_vm5, %v15576_v2  ;;  %v1906_v15 = vld [vmem:[#allocation2 + $0xf2] sm:$0xff]  ;;  %v15726_v19 = vpack.c.bf16 %v1907_v16, %v1907_v16  ;;  %v768_v20 = vmax.f32 %v576_v11, 0.0  ;;  %v597_v21 = vadd.f32 %v16306_v17, %v17349_v40  ;;  %v15653_v28 = vpack.c.bf16 %v1329_v13, %v1329_v13 }
  0xfb   :  { %1257 = vst.msk [vmem:[#allocation3 + $0xa0] sm:$0xf] %vm1236_vm5, %v15581_v6  ;;  %v15725_v18 = vpack.c.bf16 %v1906_v15, %v1906_v15  ;;  %1255 = vst.msk [vmem:[#allocation3 + $0x90] sm:$0xf] %vm1236_vm5, %v15579_v14  ;;  %v897_v22 = vld [vmem:[#allocation2 + $0xf8] sm:$0xff]  ;;  %v1905_v24 = vld [vmem:[#allocation2 + $0xe2] sm:$0xff]  ;;  %v588_v25 = vpop.f32.mrf.mxu0 }
  0xfc   :  { %835 = vst.msk [vmem:[#allocation2 + $0x129] sm:$0xff] %vm28_vm3, %v770_v10  ;;  %v1904_v23 = vld [vmem:[#allocation2 + $0xda] sm:$0xff]  ;;  %v15582_v29 = vpack.c.bf16 %v897_v22, %v897_v22  ;;  %v15724_v31 = vpack.c.bf16 %v1905_v24, %v1905_v24  ;;  %833 = vst.msk [vmem:[#allocation2 + $0x111] sm:$0xff] %vm28_vm3, %v768_v20  ;;  %v773_v32 = vmax.f32 %v597_v21, 0.0  ;;  %v589_v33 = vadd.f32 %v17349_v40, %v588_v25 }
  0xfd   :  { %1633 = vrot.lane.b32.xlu0 %v15651_v12, %s17010_s19  ;;  %v1328_v27 = vld [vmem:[#allocation2 + $0xe1] sm:$0xff]  ;;  %2266 = vst.msk [vmem:[#allocation3 + $0xa4] sm:$0xf] %vm1236_vm5, %v15725_v18  ;;  %2267 = vst.msk [vmem:[#allocation3 + $0xac] sm:$0xf] %vm1236_vm5, %v15726_v19  ;;  %v15723_v30 = vpack.c.bf16 %v1904_v23, %v1904_v23  ;;  %v16307_v35 = vpop.f32.mrf.mxu0  ;;  %v1330_v43 = vld [vmem:[#allocation2 + $0xf9] sm:$0xff] }
  0xfe   :  { %v895_v34 = vld [vmem:[#allocation2 + $0xe0] sm:$0xff]  ;;  %v15652_v36 = vpack.c.bf16 %v1328_v27, %v1328_v27  ;;  %1258 = vst.msk [vmem:[#allocation3 + $0xa8] sm:$0xf] %vm1236_vm5, %v15582_v29  ;;  %2265 = vst.msk [vmem:[#allocation3 + $0x9c] sm:$0xf] %vm1236_vm5, %v15724_v31  ;;  %v771_v41 = vmax.f32 %v589_v33, 0.0  ;;  %v600_v42 = vadd.f32 %v16307_v35, %v17349_v40  ;;  %v15654_v55 = vpack.c.bf16 %v1330_v43, %v1330_v43 }
  0xff   :  { %v15580_v37 = vpack.c.bf16 %v895_v34, %v895_v34  ;;  %v900_v38 = vld [vmem:[#allocation2 + $0x120] sm:$0xff]  ;;  %2264 = vst.msk [vmem:[#allocation3 + $0x94] sm:$0xf] %vm1236_vm5, %v15723_v30  ;;  %v591_v45 = vpop.f32.mrf.mxu0 }
 0x100   :  { %838 = vst.msk [vmem:[#allocation2 + $0x151] sm:$0xff] %vm28_vm3, %v773_v32  ;;  %v15585_v44 = vpack.c.bf16 %v900_v38, %v900_v38  ;;  %1635 = vrot.lane.b32.xlu1 %v15652_v36, %s17010_s19  ;;  %v1331_v46 = vld [vmem:[#allocation2 + $0x109] sm:$0xff]  ;;  %836 = vst.msk [vmem:[#allocation2 + $0x139] sm:$0xff] %vm28_vm3, %v771_v41  ;;  %v774_v26 = vmax.f32 %v600_v42, 0.0  ;;  %v592_v48 = vadd.f32 %v17349_v40, %v591_v45  ;;  %v1333_v50 = vld [vmem:[#allocation2 + $0x121] sm:$0xff] }
 0x101   :  { %1637 = vrot.lane.b32.xlu0 %v15653_v28, %s17010_s19  ;;  %1256 = vst.msk [vmem:[#allocation3 + $0x98] sm:$0xf] %vm1236_vm5, %v15580_v37  ;;  %v898_v47 = vld [vmem:[#allocation2 + $0x108] sm:$0xff]  ;;  %v15655_v49 = vpack.c.bf16 %v1331_v46, %v1331_v46  ;;  %v16310_v54 = vpop.f32.mrf.mxu0  ;;  %v15657_v2 = vpack.c.bf16 %v1333_v50, %v1333_v50 }
 0x102   :  { %v15583_v51 = vpack.c.bf16 %v898_v47, %v898_v47  ;;  %1261 = vst.msk [vmem:[#allocation3 + $0xc0] sm:$0xf] %vm1236_vm5, %v15585_v44  ;;  %v772_v58 = vmax.f32 %v592_v48, 0.0  ;;  %v613_v59 = vadd.f32 %v16310_v54, %v17349_v40 }
 0x103   :  { %v1910_v52 = vld [vmem:[#allocation2 + $0x122] sm:$0xff]  ;;  %v1911_v53 = vld [vmem:[#allocation2 + $0x12a] sm:$0xff]  ;;  %839 = vst.msk [vmem:[#allocation2 + $0x159] sm:$0xff] %vm28_vm3, %v774_v26  ;;  %v1909_v63 = vld [vmem:[#allocation2 + $0x112] sm:$0xff]  ;;  %v604_v0 = vpop.f32.mrf.mxu0 }
 0x104   :  { %v15729_v56 = vpack.c.bf16 %v1910_v52, %v1910_v52  ;;  %v15730_v57 = vpack.c.bf16 %v1911_v53, %v1911_v53  ;;  %v1334_v60 = vld [vmem:[#allocation2 + $0x129] sm:$0xff]  ;;  %1259 = vst.msk [vmem:[#allocation3 + $0xb0] sm:$0xf] %vm1236_vm5, %v15583_v51  ;;  %1639 = vrot.lane.b32.xlu1 %v15654_v55, %s17010_s19  ;;  %v1332_v1 = vld [vmem:[#allocation2 + $0x111] sm:$0xff]  ;;  %v15728_v5 = vpack.c.bf16 %v1909_v63, %v1909_v63  ;;  %v777_v6 = vmax.f32 %v613_v59, 0.0 }
 0x105   :  { %v901_v61 = vld [vmem:[#allocation2 + $0x128] sm:$0xff]  ;;  %1641 = vrot.lane.b32.xlu0 %v15655_v49, %s17010_s19  ;;  %837 = vst.msk [vmem:[#allocation2 + $0x141] sm:$0xff] %vm28_vm3, %v772_v58  ;;  %v605_v7 = vadd.f32 %v17349_v40, %v604_v0  ;;  %v899_v8 = vld [vmem:[#allocation2 + $0x110] sm:$0xff]  ;;  %v16311_v9 = vpop.f32.mrf.mxu0  ;;  %v15656_v10 = vpack.c.bf16 %v1332_v1, %v1332_v1  ;;  %v15658_v17 = vpack.c.bf16 %v1334_v60, %v1334_v60  ;;  %v17558_v52 = vld [vmem:[%s20735_s2] ss:$0 sm:$0xff] }
 0x106   :  { %v1908_v62 = vld [vmem:[#allocation2 + $0x10a] sm:$0xff]  ;;  %v15586_v3 = vpack.c.bf16 %v901_v61, %v901_v61  ;;  %2270 = vst.msk [vmem:[#allocation3 + $0xc4] sm:$0xf] %vm1236_vm5, %v15729_v56  ;;  %2271 = vst.msk [vmem:[#allocation3 + $0xcc] sm:$0xf] %vm1236_vm5, %v15730_v57  ;;  %v15584_v11 = vpack.c.bf16 %v899_v8, %v899_v8  ;;  %v616_v14 = vadd.f32 %v16311_v9, %v17349_v40 }
 0x107   :  { %v15727_v4 = vpack.c.bf16 %v1908_v62, %v1908_v62  ;;  %v904_v12 = vld [vmem:[#allocation2 + $0x150] sm:$0xff]  ;;  %2269 = vst.msk [vmem:[#allocation3 + $0xbc] sm:$0xf] %vm1236_vm5, %v15728_v5  ;;  %v775_v13 = vmax.f32 %v605_v7, 0.0  ;;  %v607_v16 = vpop.f32.mrf.mxu0  ;;  %v1335_v18 = vld [vmem:[#allocation2 + $0x139] sm:$0xff] }
 0x108   :  { %1262 = vst.msk [vmem:[#allocation3 + $0xc8] sm:$0xf] %vm1236_vm5, %v15586_v3  ;;  %v15589_v15 = vpack.c.bf16 %v904_v12, %v904_v12  ;;  %1643 = vrot.lane.b32.xlu1 %v15656_v10, %s17010_s19  ;;  %1260 = vst.msk [vmem:[#allocation3 + $0xb8] sm:$0xf] %vm1236_vm5, %v15584_v11  ;;  %v902_v19 = vld [vmem:[#allocation2 + $0x138] sm:$0xff]  ;;  %v778_v20 = vmax.f32 %v616_v14, 0.0  ;;  %v608_v21 = vadd.f32 %v17349_v40, %v607_v16 }
 0x109   :  { %2268 = vst.msk [vmem:[#allocation3 + $0xb4] sm:$0xf] %vm1236_vm5, %v15727_v4  ;;  %1645 = vrot.lane.b32.xlu0 %v15657_v2, %s17010_s19  ;;  %v15659_v22 = vpack.c.bf16 %v1335_v18, %v1335_v18  ;;  %v1337_v23 = vld [vmem:[#allocation2 + $0x151] sm:$0xff]  ;;  %v15587_v24 = vpack.c.bf16 %v902_v19, %v902_v19  ;;  %v16314_v28 = vpop.f32.mrf.mxu0 }
 0x10a   :  { %842 = vst.msk [vmem:[#allocation2 + $0x181] sm:$0xff] %vm28_vm3, %v777_v6  ;;  %840 = vst.msk [vmem:[#allocation2 + $0x169] sm:$0xff] %vm28_vm3, %v775_v13  ;;  %v1914_v25 = vld [vmem:[#allocation2 + $0x152] sm:$0xff]  ;;  %v1915_v27 = vld [vmem:[#allocation2 + $0x15a] sm:$0xff]  ;;  %v776_v31 = vmax.f32 %v608_v21, 0.0  ;;  %v629_v32 = vadd.f32 %v16314_v28, %v17349_v40  ;;  %v15661_v41 = vpack.c.bf16 %v1337_v23, %v1337_v23 }
 0x10b   :  { %1265 = vst.msk [vmem:[#allocation3 + $0xe0] sm:$0xf] %vm1236_vm5, %v15589_v15  ;;  %v15733_v29 = vpack.c.bf16 %v1914_v25, %v1914_v25  ;;  %v15734_v30 = vpack.c.bf16 %v1915_v27, %v1915_v27  ;;  %v1338_v33 = vld [vmem:[#allocation2 + $0x159] sm:$0xff]  ;;  %1263 = vst.msk [vmem:[#allocation3 + $0xd0] sm:$0xf] %vm1236_vm5, %v15587_v24  ;;  %v620_v37 = vpop.f32.mrf.mxu0 }
 0x10c   :  { %843 = vst.msk [vmem:[#allocation2 + $0x189] sm:$0xff] %vm28_vm3, %v778_v20  ;;  %v905_v34 = vld [vmem:[#allocation2 + $0x158] sm:$0xff]  ;;  %v1913_v36 = vld [vmem:[#allocation2 + $0x142] sm:$0xff]  ;;  %1647 = vrot.lane.b32.xlu1 %v15658_v17, %s17010_s19  ;;  %841 = vst.msk [vmem:[#allocation2 + $0x171] sm:$0xff] %vm28_vm3, %v776_v31  ;;  %v781_v45 = vmax.f32 %v629_v32, 0.0  ;;  %v621_v46 = vadd.f32 %v17349_v40, %v620_v37  ;;  %v15662_v55 = vpack.c.bf16 %v1338_v33, %v1338_v33 }
 0x10d   :  { %v1912_v35 = vld [vmem:[#allocation2 + $0x13a] sm:$0xff]  ;;  %1649 = vrot.lane.b32.xlu0 %v15659_v22, %s17010_s19  ;;  %v15590_v42 = vpack.c.bf16 %v905_v34, %v905_v34  ;;  %2274 = vst.msk [vmem:[#allocation3 + $0xe4] sm:$0xf] %vm1236_vm5, %v15733_v29  ;;  %2275 = vst.msk [vmem:[#allocation3 + $0xec] sm:$0xf] %vm1236_vm5, %v15734_v30  ;;  %v15732_v44 = vpack.c.bf16 %v1913_v36, %v1913_v36  ;;  %v16315_v26 = vpop.f32.mrf.mxu0 }
 0x10e   :  { %v1336_v38 = vld [vmem:[#allocation2 + $0x141] sm:$0xff]  ;;  %v15731_v43 = vpack.c.bf16 %v1912_v35, %v1912_v35  ;;  %846 = vst.msk [vmem:[#allocation2 + $0x1e1] sm:$0xff] %vm28_vm3, %v781_v45  ;;  %v779_v51 = vmax.f32 %v621_v46, 0.0  ;;  %v632_v40 = vadd.f32 %v17558_v52, %v16315_v26 }
 0x10f   :  { %v903_v47 = vld [vmem:[#allocation2 + $0x140] sm:$0xff]  ;;  %v15660_v48 = vpack.c.bf16 %v1336_v38, %v1336_v38  ;;  %1266 = vst.msk [vmem:[#allocation3 + $0xe8] sm:$0xf] %vm1236_vm5, %v15590_v42  ;;  %2273 = vst.msk [vmem:[#allocation3 + $0xdc] sm:$0xf] %vm1236_vm5, %v15732_v44  ;;  %v623_v54 = vpop.f32.mrf.mxu0 }
 0x110   :  { %v15588_v49 = vpack.c.bf16 %v903_v47, %v903_v47  ;;  %2272 = vst.msk [vmem:[#allocation3 + $0xd4] sm:$0xf] %vm1236_vm5, %v15731_v43  ;;  %v782_v58 = vmax.f32 %v632_v40, 0.0  ;;  %v624_v59 = vadd.f32 %v17558_v52, %v623_v54 }
 0x111   :  { %v908_v50 = vld [vmem:[#allocation2 + $0x180] sm:$0xff]  ;;  %1651 = vrot.lane.b32.xlu1 %v15660_v48, %s17010_s19  ;;  %1653 = vrot.lane.b32.xlu0 %v15661_v41, %s17010_s19  ;;  %v1339_v56 = vld [vmem:[#allocation2 + $0x169] sm:$0xff]  ;;  %844 = vst.msk [vmem:[#allocation2 + $0x1c9] sm:$0xff] %vm28_vm3, %v779_v51  ;;  %v16318_v1 = vpop.f32.mrf.mxu0 }
 0x112   :  { %v15593_v53 = vpack.c.bf16 %v908_v50, %v908_v50  ;;  %1264 = vst.msk [vmem:[#allocation3 + $0xd8] sm:$0xf] %vm1236_vm5, %v15588_v49  ;;  %v906_v57 = vld [vmem:[#allocation2 + $0x168] sm:$0xff]  ;;  %v15663_v60 = vpack.c.bf16 %v1339_v56, %v1339_v56  ;;  %v780_v4 = vmax.f32 %v624_v59, 0.0  ;;  %v645_v5 = vadd.f32 %v17558_v52, %v16318_v1 }
 0x113   :  { %v1341_v61 = vld [vmem:[#allocation2 + $0x181] sm:$0xff]  ;;  %v15591_v62 = vpack.c.bf16 %v906_v57, %v906_v57  ;;  %v1919_v0 = vld [vmem:[#allocation2 + $0x18a] sm:$0xff]  ;;  %847 = vst.msk [vmem:[#allocation2 + $0x1e9] sm:$0xff] %vm28_vm3, %v782_v58  ;;  %v1917_v9 = vld [vmem:[#allocation2 + $0x172] sm:$0xff]  ;;  %v636_v10 = vpop.f32.mrf.mxu0 }
 0x114   :  { %1269 = vst.msk [vmem:[#allocation3 + $0x100] sm:$0xf] %vm1236_vm5, %v15593_v53  ;;  %v1918_v63 = vld [vmem:[#allocation2 + $0x182] sm:$0xff]  ;;  %v15738_v3 = vpack.c.bf16 %v1919_v0, %v1919_v0  ;;  %v1916_v8 = vld [vmem:[#allocation2 + $0x16a] sm:$0xff]  ;;  %v15665_v12 = vpack.c.bf16 %v1341_v61, %v1341_v61  ;;  %v15736_v15 = vpack.c.bf16 %v1917_v9, %v1917_v9  ;;  %v785_v16 = vmax.f32 %v645_v5, 0.0 }
 0x115   :  { %v15737_v2 = vpack.c.bf16 %v1918_v63, %v1918_v63  ;;  %v1342_v6 = vld [vmem:[#allocation2 + $0x189] sm:$0xff]  ;;  %1267 = vst.msk [vmem:[#allocation3 + $0xf0] sm:$0xf] %vm1236_vm5, %v15591_v62  ;;  %1655 = vrot.lane.b32.xlu1 %v15662_v55, %s17010_s19  ;;  %1657 = vrot.lane.b32.xlu0 %v15663_v60, %s17010_s19  ;;  %v1340_v11 = vld [vmem:[#allocation2 + $0x171] sm:$0xff]  ;;  %v15735_v14 = vpack.c.bf16 %v1916_v8, %v1916_v8  ;;  %v16319_v19 = vpop.f32.mrf.mxu0  ;;  %v916_v22 = vld [vmem:[#allocation2 + $0x1e0] sm:$0xff] }
 0x116   :  { %v909_v7 = vld [vmem:[#allocation2 + $0x188] sm:$0xff]  ;;  %2279 = vst.msk [vmem:[#allocation3 + $0x10c] sm:$0xf] %vm1236_vm5, %v15738_v3  ;;  %v637_v17 = vadd.f32 %v17558_v52, %v636_v10  ;;  %v907_v18 = vld [vmem:[#allocation2 + $0x170] sm:$0xff]  ;;  %v15664_v20 = vpack.c.bf16 %v1340_v11, %v1340_v11  ;;  %2277 = vst.msk [vmem:[#allocation3 + $0xfc] sm:$0xf] %vm1236_vm5, %v15736_v15  ;;  %v648_v24 = vadd.f32 %v17558_v52, %v16319_v19 }
 0x117   :  { %v15594_v13 = vpack.c.bf16 %v909_v7, %v909_v7  ;;  %2278 = vst.msk [vmem:[#allocation3 + $0x104] sm:$0xf] %vm1236_vm5, %v15737_v2  ;;  %v15592_v21 = vpack.c.bf16 %v907_v18, %v907_v18  ;;  %2276 = vst.msk [vmem:[#allocation3 + $0xf4] sm:$0xf] %vm1236_vm5, %v15735_v14  ;;  %v15601_v25 = vpack.c.bf16 %v916_v22, %v916_v22  ;;  %v639_v27 = vpop.f32.mrf.mxu0  ;;  %v1349_v34 = vld [vmem:[#allocation2 + $0x1e1] sm:$0xff] }
 0x118   :  { %845 = vst.msk [vmem:[#allocation2 + $0x1d1] sm:$0xff] %vm28_vm3, %v780_v4  ;;  %850 = vst.msk [vmem:[#allocation2 + $0x211] sm:$0xff] %vm28_vm3, %v785_v16  ;;  %v783_v23 = vmax.f32 %v637_v17, 0.0  ;;  %v15666_v28 = vpack.c.bf16 %v1342_v6, %v1342_v6  ;;  %v1347_v29 = vld [vmem:[#allocation2 + $0x1c9] sm:$0xff]  ;;  %v786_v31 = vmax.f32 %v648_v24, 0.0  ;;  %v640_v32 = vadd.f32 %v17558_v52, %v639_v27 }
 0x119   :  { %1270 = vst.msk [vmem:[#allocation3 + $0x108] sm:$0xf] %vm1236_vm5, %v15594_v13  ;;  %1659 = vrot.lane.b32.xlu1 %v15664_v20, %s17010_s19  ;;  %1661 = vrot.lane.b32.xlu0 %v15665_v12, %s17010_s19  ;;  %1268 = vst.msk [vmem:[#allocation3 + $0xf8] sm:$0xf] %vm1236_vm5, %v15592_v21  ;;  %v914_v30 = vld [vmem:[#allocation2 + $0x1c8] sm:$0xff]  ;;  %v15671_v33 = vpack.c.bf16 %v1347_v29, %v1347_v29  ;;  %v16322_v38 = vpop.f32.mrf.mxu0  ;;  %v15673_v50 = vpack.c.bf16 %v1349_v34, %v1349_v34 }
 0x11a   :  { %848 = vst.msk [vmem:[#allocation2 + $0x1f9] sm:$0xff] %vm28_vm3, %v783_v23  ;;  %v15599_v35 = vpack.c.bf16 %v914_v30, %v914_v30  ;;  %v1926_v36 = vld [vmem:[#allocation2 + $0x1e2] sm:$0xff]  ;;  %v1927_v37 = vld [vmem:[#allocation2 + $0x1ea] sm:$0xff]  ;;  %851 = vst.msk [vmem:[#allocation2 + $0x219] sm:$0xff] %vm28_vm3, %v786_v31  ;;  %v784_v43 = vmax.f32 %v640_v32, 0.0  ;;  %v661_v44 = vadd.f32 %v17558_v52, %v16322_v38 }
 0x11b   :  { %1277 = vst.msk [vmem:[#allocation3 + $0x140] sm:$0xf] %vm1236_vm5, %v15601_v25  ;;  %v15745_v41 = vpack.c.bf16 %v1926_v36, %v1926_v36  ;;  %v15746_v42 = vpack.c.bf16 %v1927_v37, %v1927_v37  ;;  %v1350_v45 = vld [vmem:[#allocation2 + $0x1e9] sm:$0xff]  ;;  %v652_v48 = vpop.f32.mrf.mxu0 }
 0x11c   :  { %1275 = vst.msk [vmem:[#allocation3 + $0x130] sm:$0xf] %vm1236_vm5, %v15599_v35  ;;  %v917_v46 = vld [vmem:[#allocation2 + $0x1e8] sm:$0xff]  ;;  %v789_v54 = vmax.f32 %v661_v44, 0.0  ;;  %v653_v55 = vadd.f32 %v17558_v52, %v652_v48  ;;  %v15674_v1 = vpack.c.bf16 %v1350_v45, %v1350_v45 }
 0x11d   :  { %1663 = vrot.lane.b32.xlu1 %v15666_v28, %s17010_s19  ;;  %1673 = vrot.lane.b32.xlu0 %v15671_v33, %s17010_s19  ;;  %v15602_v51 = vpack.c.bf16 %v917_v46, %v917_v46  ;;  %2286 = vst.msk [vmem:[#allocation3 + $0x144] sm:$0xf] %vm1236_vm5, %v15745_v41  ;;  %2287 = vst.msk [vmem:[#allocation3 + $0x14c] sm:$0xf] %vm1236_vm5, %v15746_v42  ;;  %v16323_v57 = vpop.f32.mrf.mxu0 }
 0x11e   :  { %849 = vst.msk [vmem:[#allocation2 + $0x201] sm:$0xff] %vm28_vm3, %v784_v43  ;;  %854 = vst.msk [vmem:[#allocation2 + $0x241] sm:$0xff] %vm28_vm3, %v789_v54  ;;  %v787_v61 = vmax.f32 %v653_v55, 0.0  ;;  %v664_v62 = vadd.f32 %v17558_v52, %v16323_v57 }
 0x11f   :  { %v1924_v47 = vld [vmem:[#allocation2 + $0x1ca] sm:$0xff]  ;;  %v1925_v26 = vld [vmem:[#allocation2 + $0x1d2] sm:$0xff]  ;;  %1278 = vst.msk [vmem:[#allocation3 + $0x148] sm:$0xf] %vm1236_vm5, %v15602_v51  ;;  %v655_v0 = vpop.f32.mrf.mxu0 }
 0x120   :  { %v1348_v49 = vld [vmem:[#allocation2 + $0x1d1] sm:$0xff]  ;;  %v15743_v40 = vpack.c.bf16 %v1924_v47, %v1924_v47  ;;  %v15744_v53 = vpack.c.bf16 %v1925_v26, %v1925_v26  ;;  %852 = vst.msk [vmem:[#allocation2 + $0x229] sm:$0xff] %vm28_vm3, %v787_v61  ;;  %v790_v4 = vmax.f32 %v664_v62, 0.0  ;;  %v656_v5 = vadd.f32 %v17558_v52, %v655_v0 }
 0x121   :  { %v915_v56 = vld [vmem:[#allocation2 + $0x1d0] sm:$0xff]  ;;  %v15672_v58 = vpack.c.bf16 %v1348_v49, %v1348_v49  ;;  %1677 = vrot.lane.b32.xlu0 %v15673_v50, %s17010_s19  ;;  %v1351_v2 = vld [vmem:[#allocation2 + $0x1f9] sm:$0xff]  ;;  %v16326_v11 = vpop.f32.mrf.mxu0 }
 0x122   :  { %v15600_v59 = vpack.c.bf16 %v915_v56, %v915_v56  ;;  %v920_v60 = vld [vmem:[#allocation2 + $0x210] sm:$0xff]  ;;  %2284 = vst.msk [vmem:[#allocation3 + $0x134] sm:$0xf] %vm1236_vm5, %v15743_v40  ;;  %2285 = vst.msk [vmem:[#allocation3 + $0x13c] sm:$0xf] %vm1236_vm5, %v15744_v53  ;;  %v918_v3 = vld [vmem:[#allocation2 + $0x1f8] sm:$0xff]  ;;  %v15675_v6 = vpack.c.bf16 %v1351_v2, %v1351_v2  ;;  %v677_v15 = vadd.f32 %v17558_v52, %v16326_v11 }
 0x123   :  { %v15605_v63 = vpack.c.bf16 %v920_v60, %v920_v60  ;;  %1675 = vrot.lane.b32.xlu1 %v15672_v58, %s17010_s19  ;;  %v1353_v7 = vld [vmem:[#allocation2 + $0x211] sm:$0xff]  ;;  %v15603_v8 = vpack.c.bf16 %v918_v3, %v918_v3  ;;  %v1931_v10 = vld [vmem:[#allocation2 + $0x21a] sm:$0xff]  ;;  %855 = vst.msk [vmem:[#allocation2 + $0x249] sm:$0xff] %vm28_vm3, %v790_v4  ;;  %v788_v14 = vmax.f32 %v656_v5, 0.0  ;;  %v668_v20 = vpop.f32.mrf.mxu0 }
 0x124   :  { %1276 = vst.msk [vmem:[#allocation3 + $0x138] sm:$0xf] %vm1236_vm5, %v15600_v59  ;;  %v1930_v9 = vld [vmem:[#allocation2 + $0x212] sm:$0xff]  ;;  %v15750_v13 = vpack.c.bf16 %v1931_v10, %v1931_v10  ;;  %v15677_v22 = vpack.c.bf16 %v1353_v7, %v1353_v7  ;;  %v793_v27 = vmax.f32 %v677_v15, 0.0  ;;  %v669_v28 = vadd.f32 %v17558_v52, %v668_v20 }
 0x125   :  { %1281 = vst.msk [vmem:[#allocation3 + $0x160] sm:$0xf] %vm1236_vm5, %v15605_v63  ;;  %v15749_v12 = vpack.c.bf16 %v1930_v9, %v1930_v9  ;;  %v1354_v16 = vld [vmem:[#allocation2 + $0x219] sm:$0xff]  ;;  %1279 = vst.msk [vmem:[#allocation3 + $0x150] sm:$0xf] %vm1236_vm5, %v15603_v8  ;;  %v1929_v19 = vld [vmem:[#allocation2 + $0x202] sm:$0xff]  ;;  %1681 = vrot.lane.b32.xlu0 %v15675_v6, %s17010_s19  ;;  %v16327_v30 = vpop.f32.mrf.mxu0 }
 0x126   :  { %v921_v17 = vld [vmem:[#allocation2 + $0x218] sm:$0xff]  ;;  %v1352_v21 = vld [vmem:[#allocation2 + $0x201] sm:$0xff]  ;;  %2291 = vst.msk [vmem:[#allocation3 + $0x16c] sm:$0xf] %vm1236_vm5, %v15750_v13  ;;  %v15748_v25 = vpack.c.bf16 %v1929_v19, %v1929_v19  ;;  %v791_v34 = vmax.f32 %v669_v28, 0.0  ;;  %v680_v35 = vadd.f32 %v17558_v52, %v16327_v30  ;;  %v15678_v38 = vpack.c.bf16 %v1354_v16, %v1354_v16 }
 0x127   :  { %v1928_v18 = vld [vmem:[#allocation2 + $0x1fa] sm:$0xff]  ;;  %1679 = vrot.lane.b32.xlu1 %v15674_v1, %s17010_s19  ;;  %v15606_v23 = vpack.c.bf16 %v921_v17, %v921_v17  ;;  %2290 = vst.msk [vmem:[#allocation3 + $0x164] sm:$0xf] %vm1236_vm5, %v15749_v12  ;;  %v15676_v31 = vpack.c.bf16 %v1352_v21, %v1352_v21  ;;  %v671_v37 = vpop.f32.mrf.mxu0  ;;  %v1355_v41 = vld [vmem:[#allocation2 + $0x229] sm:$0xff] }
 0x128   :  { %v15747_v24 = vpack.c.bf16 %v1928_v18, %v1928_v18  ;;  %853 = vst.msk [vmem:[#allocation2 + $0x231] sm:$0xff] %vm28_vm3, %v788_v14  ;;  %v919_v29 = vld [vmem:[#allocation2 + $0x200] sm:$0xff]  ;;  %858 = vst.msk [vmem:[#allocation2 + $0x271] sm:$0xff] %vm28_vm3, %v793_v27  ;;  %v922_v42 = vld [vmem:[#allocation2 + $0x228] sm:$0xff]  ;;  %v794_v43 = vmax.f32 %v680_v35, 0.0  ;;  %v672_v44 = vadd.f32 %v17558_v52, %v671_v37  ;;  %v15679_v45 = vpack.c.bf16 %v1355_v41, %v1355_v41 }
 0x129   :  { %v15604_v32 = vpack.c.bf16 %v919_v29, %v919_v29  ;;  %1282 = vst.msk [vmem:[#allocation3 + $0x168] sm:$0xf] %vm1236_vm5, %v15606_v23  ;;  %v924_v33 = vld [vmem:[#allocation2 + $0x240] sm:$0xff]  ;;  %2289 = vst.msk [vmem:[#allocation3 + $0x15c] sm:$0xf] %vm1236_vm5, %v15748_v25  ;;  %1685 = vrot.lane.b32.xlu0 %v15677_v22, %s17010_s19  ;;  %v15607_v47 = vpack.c.bf16 %v922_v42, %v922_v42  ;;  %v16330_v49 = vpop.f32.mrf.mxu0 }
 0x12a   :  { %2288 = vst.msk [vmem:[#allocation3 + $0x154] sm:$0xf] %vm1236_vm5, %v15747_v24  ;;  %v15609_v36 = vpack.c.bf16 %v924_v33, %v924_v33  ;;  %v1357_v46 = vld [vmem:[#allocation2 + $0x241] sm:$0xff]  ;;  %v1935_v48 = vld [vmem:[#allocation2 + $0x24a] sm:$0xff]  ;;  %v792_v40 = vmax.f32 %v672_v44, 0.0  ;;  %v693_v53 = vadd.f32 %v17558_v52, %v16330_v49 }
 0x12b   :  { %1683 = vrot.lane.b32.xlu1 %v15676_v31, %s17010_s19  ;;  %1280 = vst.msk [vmem:[#allocation3 + $0x158] sm:$0xf] %vm1236_vm5, %v15604_v32  ;;  %v1934_v26 = vld [vmem:[#allocation2 + $0x242] sm:$0xff]  ;;  %v15754_v51 = vpack.c.bf16 %v1935_v48, %v1935_v48  ;;  %1283 = vst.msk [vmem:[#allocation3 + $0x170] sm:$0xf] %vm1236_vm5, %v15607_v47  ;;  %v684_v58 = vpop.f32.mrf.mxu0  ;;  %v15681_v60 = vpack.c.bf16 %v1357_v46, %v1357_v46 }
 0x12c   :  { %856 = vst.msk [vmem:[#allocation2 + $0x259] sm:$0xff] %vm28_vm3, %v791_v34  ;;  %v15753_v50 = vpack.c.bf16 %v1934_v26, %v1934_v26  ;;  %859 = vst.msk [vmem:[#allocation2 + $0x279] sm:$0xff] %vm28_vm3, %v794_v43  ;;  %v1358_v54 = vld [vmem:[#allocation2 + $0x249] sm:$0xff]  ;;  %v797_v0 = vmax.f32 %v693_v53, 0.0  ;;  %v685_v1 = vadd.f32 %v17558_v52, %v684_v58 }
 0x12d   :  { %1285 = vst.msk [vmem:[#allocation3 + $0x180] sm:$0xf] %vm1236_vm5, %v15609_v36  ;;  %v925_v55 = vld [vmem:[#allocation2 + $0x248] sm:$0xff]  ;;  %1689 = vrot.lane.b32.xlu0 %v15679_v45, %s17010_s19  ;;  %2295 = vst.msk [vmem:[#allocation3 + $0x18c] sm:$0xf] %vm1236_vm5, %v15754_v51  ;;  %v16331_v3 = vpop.f32.mrf.mxu0  ;;  %v15682_v11 = vpack.c.bf16 %v1358_v54, %v1358_v54 }
 0x12e   :  { %v15610_v61 = vpack.c.bf16 %v925_v55, %v925_v55  ;;  %2294 = vst.msk [vmem:[#allocation3 + $0x184] sm:$0xf] %vm1236_vm5, %v15753_v50  ;;  %v795_v7 = vmax.f32 %v685_v1, 0.0  ;;  %v696_v8 = vadd.f32 %v17558_v52, %v16331_v3 }
 0x12f   :  { %v1932_v56 = vld [vmem:[#allocation2 + $0x22a] sm:$0xff]  ;;  %v1933_v57 = vld [vmem:[#allocation2 + $0x232] sm:$0xff]  ;;  %1687 = vrot.lane.b32.xlu1 %v15678_v38, %s17010_s19  ;;  %857 = vst.msk [vmem:[#allocation2 + $0x261] sm:$0xff] %vm28_vm3, %v792_v40  ;;  %862 = vst.msk [vmem:[#allocation2 + $0x2a1] sm:$0xff] %vm28_vm3, %v797_v0  ;;  %v687_v10 = vpop.f32.mrf.mxu0 }
 0x130   :  { %v1356_v59 = vld [vmem:[#allocation2 + $0x231] sm:$0xff]  ;;  %v15751_v62 = vpack.c.bf16 %v1932_v56, %v1932_v56  ;;  %v15752_v63 = vpack.c.bf16 %v1933_v57, %v1933_v57  ;;  %1286 = vst.msk [vmem:[#allocation3 + $0x188] sm:$0xf] %vm1236_vm5, %v15610_v61  ;;  %v798_v14 = vmax.f32 %v696_v8, 0.0  ;;  %v688_v15 = vadd.f32 %v17558_v52, %v687_v10 }
 0x131   :  { %v923_v2 = vld [vmem:[#allocation2 + $0x230] sm:$0xff]  ;;  %v15680_v4 = vpack.c.bf16 %v1356_v59, %v1356_v59  ;;  %1693 = vrot.lane.b32.xlu0 %v15681_v60, %s17010_s19  ;;  %860 = vst.msk [vmem:[#allocation2 + $0x289] sm:$0xff] %vm28_vm3, %v795_v7  ;;  %v16334_v21 = vpop.f32.mrf.mxu0 }
 0x132   :  { %v15608_v5 = vpack.c.bf16 %v923_v2, %v923_v2  ;;  %v928_v6 = vld [vmem:[#allocation2 + $0x270] sm:$0xff]  ;;  %2292 = vst.msk [vmem:[#allocation3 + $0x174] sm:$0xf] %vm1236_vm5, %v15751_v62  ;;  %2293 = vst.msk [vmem:[#allocation3 + $0x17c] sm:$0xf] %vm1236_vm5, %v15752_v63  ;;  %v796_v24 = vmax.f32 %v688_v15, 0.0  ;;  %v709_v25 = vadd.f32 %v17558_v52, %v16334_v21 }
 0x133   :  { %v15613_v9 = vpack.c.bf16 %v928_v6, %v928_v6  ;;  %1691 = vrot.lane.b32.xlu1 %v15680_v4, %s17010_s19  ;;  %v1359_v12 = vld [vmem:[#allocation2 + $0x259] sm:$0xff]  ;;  %v1361_v17 = vld [vmem:[#allocation2 + $0x271] sm:$0xff]  ;;  %863 = vst.msk [vmem:[#allocation2 + $0x2a9] sm:$0xff] %vm28_vm3, %v798_v14  ;;  %v700_v33 = vpop.f32.mrf.mxu0 }
 0x134   :  { %1284 = vst.msk [vmem:[#allocation3 + $0x178] sm:$0xf] %vm1236_vm5, %v15608_v5  ;;  %v926_v13 = vld [vmem:[#allocation2 + $0x258] sm:$0xff]  ;;  %v15683_v16 = vpack.c.bf16 %v1359_v12, %v1359_v12  ;;  %v15685_v32 = vpack.c.bf16 %v1361_v17, %v1361_v17  ;;  %v801_v37 = vmax.f32 %v709_v25, 0.0  ;;  %v701_v42 = vadd.f32 %v17558_v52, %v700_v33 }
 0x135   :  { %v15611_v18 = vpack.c.bf16 %v926_v13, %v926_v13  ;;  %1289 = vst.msk [vmem:[#allocation3 + $0x1a0] sm:$0xf] %vm1236_vm5, %v15613_v9  ;;  %v1938_v19 = vld [vmem:[#allocation2 + $0x272] sm:$0xff]  ;;  %v1939_v20 = vld [vmem:[#allocation2 + $0x27a] sm:$0xff]  ;;  %v16335_v43 = vpop.f32.mrf.mxu0 }
 0x136   :  { %v15757_v22 = vpack.c.bf16 %v1938_v19, %v1938_v19  ;;  %v15758_v23 = vpack.c.bf16 %v1939_v20, %v1939_v20  ;;  %v1362_v27 = vld [vmem:[#allocation2 + $0x279] sm:$0xff]  ;;  %v1937_v30 = vld [vmem:[#allocation2 + $0x262] sm:$0xff]  ;;  %1697 = vrot.lane.b32.xlu0 %v15683_v16, %s17010_s19  ;;  %861 = vst.msk [vmem:[#allocation2 + $0x291] sm:$0xff] %vm28_vm3, %v796_v24  ;;  %866 = vst.msk [vmem:[#allocation2 + $0x2d1] sm:$0xff] %vm28_vm3, %v801_v37  ;;  %v712_v46 = vadd.f32 %v17558_v52, %v16335_v43 }
 0x137   :  { %1287 = vst.msk [vmem:[#allocation3 + $0x190] sm:$0xf] %vm1236_vm5, %v15611_v18  ;;  %v929_v28 = vld [vmem:[#allocation2 + $0x278] sm:$0xff]  ;;  %1695 = vrot.lane.b32.xlu1 %v15682_v11, %s17010_s19  ;;  %v1360_v31 = vld [vmem:[#allocation2 + $0x261] sm:$0xff]  ;;  %v15756_v36 = vpack.c.bf16 %v1937_v30, %v1937_v30  ;;  %v799_v26 = vmax.f32 %v701_v42, 0.0  ;;  %v15686_v48 = vpack.c.bf16 %v1362_v27, %v1362_v27  ;;  %v703_v50 = vpop.f32.mrf.mxu0 }
 0x138   :  { %v1936_v29 = vld [vmem:[#allocation2 + $0x25a] sm:$0xff]  ;;  %v15614_v34 = vpack.c.bf16 %v929_v28, %v929_v28  ;;  %2298 = vst.msk [vmem:[#allocation3 + $0x1a4] sm:$0xf] %vm1236_vm5, %v15757_v22  ;;  %2299 = vst.msk [vmem:[#allocation3 + $0x1ac] sm:$0xf] %vm1236_vm5, %v15758_v23  ;;  %v15684_v38 = vpack.c.bf16 %v1360_v31, %v1360_v31  ;;  %v1363_v49 = vld [vmem:[#allocation2 + $0x289] sm:$0xff]  ;;  %v704_v54 = vadd.f32 %v17558_v52, %v703_v50 }
 0x139   :  { %v15755_v35 = vpack.c.bf16 %v1936_v29, %v1936_v29  ;;  %v927_v41 = vld [vmem:[#allocation2 + $0x260] sm:$0xff]  ;;  %2297 = vst.msk [vmem:[#allocation3 + $0x19c] sm:$0xf] %vm1236_vm5, %v15756_v36  ;;  %v930_v51 = vld [vmem:[#allocation2 + $0x288] sm:$0xff]  ;;  %v802_v40 = vmax.f32 %v712_v46, 0.0  ;;  %v15687_v53 = vpack.c.bf16 %v1363_v49, %v1363_v49  ;;  %v16338_v59 = vpop.f32.mrf.mxu0 }
 0x13a   :  { %v15612_v44 = vpack.c.bf16 %v927_v41, %v927_v41  ;;  %1290 = vst.msk [vmem:[#allocation3 + $0x1a8] sm:$0xf] %vm1236_vm5, %v15614_v34  ;;  %v932_v45 = vld [vmem:[#allocation2 + $0x2a0] sm:$0xff]  ;;  %1701 = vrot.lane.b32.xlu0 %v15685_v32, %s17010_s19  ;;  %v15615_v56 = vpack.c.bf16 %v930_v51, %v930_v51  ;;  %v1943_v58 = vld [vmem:[#allocation2 + $0x2aa] sm:$0xff]  ;;  %v800_v62 = vmax.f32 %v704_v54, 0.0  ;;  %v725_v5 = vadd.f32 %v17558_v52, %v16338_v59 }
 0x13b   :  { %2296 = vst.msk [vmem:[#allocation3 + $0x194] sm:$0xf] %vm1236_vm5, %v15755_v35  ;;  %v15617_v47 = vpack.c.bf16 %v932_v45, %v932_v45  ;;  %1699 = vrot.lane.b32.xlu1 %v15684_v38, %s17010_s19  ;;  %v1365_v55 = vld [vmem:[#allocation2 + $0x2a1] sm:$0xff]  ;;  %v15762_v61 = vpack.c.bf16 %v1943_v58, %v1943_v58  ;;  %v1366_v63 = vld [vmem:[#allocation2 + $0x2a9] sm:$0xff]  ;;  %v716_v6 = vpop.f32.mrf.mxu0  ;;  %v1311_v17 = vld [vmem:[#allocation2 + $0x19] sm:$0xff] }
 0x13c   :  { %1288 = vst.msk [vmem:[#allocation3 + $0x198] sm:$0xf] %vm1236_vm5, %v15612_v44  ;;  %v1942_v57 = vld [vmem:[#allocation2 + $0x2a2] sm:$0xff]  ;;  %1291 = vst.msk [vmem:[#allocation3 + $0x1b0] sm:$0xf] %vm1236_vm5, %v15615_v56  ;;  %v15689_v4 = vpack.c.bf16 %v1365_v55, %v1365_v55  ;;  %v717_v11 = vadd.f32 %v17558_v52, %v716_v6  ;;  %v805_v13 = vmax.f32 %v725_v5, 0.0  ;;  %v15690_v21 = vpack.c.bf16 %v1366_v63, %v1366_v63 }
 0x13d   :  { %1293 = vst.msk [vmem:[#allocation3 + $0x1c0] sm:$0xf] %vm1236_vm5, %v15617_v47  ;;  %v15761_v60 = vpack.c.bf16 %v1942_v57, %v1942_v57  ;;  %v933_v0 = vld [vmem:[#allocation2 + $0x2a8] sm:$0xff]  ;;  %v1941_v2 = vld [vmem:[#allocation2 + $0x292] sm:$0xff]  ;;  %2303 = vst.msk [vmem:[#allocation3 + $0x1cc] sm:$0xf] %vm1236_vm5, %v15762_v61  ;;  %v16339_v14 = vpop.f32.mrf.mxu0  ;;  %v15635_v30 = vpack.c.bf16 %v1311_v17, %v1311_v17 }
 0x13e   :  { %864 = vst.msk [vmem:[#allocation2 + $0x2b9] sm:$0xff] %vm28_vm3, %v799_v26  ;;  %867 = vst.msk [vmem:[#allocation2 + $0x2d9] sm:$0xff] %vm28_vm3, %v802_v40  ;;  %v1940_v1 = vld [vmem:[#allocation2 + $0x28a] sm:$0xff]  ;;  %1705 = vrot.lane.b32.xlu0 %v15687_v53, %s17010_s19  ;;  %v15618_v7 = vpack.c.bf16 %v933_v0, %v933_v0  ;;  %v15760_v9 = vpack.c.bf16 %v1941_v2, %v1941_v2  ;;  %v803_v18 = vmax.f32 %v717_v11, 0.0  ;;  %v1312_v31 = vld [vmem:[#allocation2 + $0x21] sm:$0xff] }
 0x13f   :  { %1703 = vrot.lane.b32.xlu1 %v15686_v48, %s17010_s19  ;;  %v1364_v3 = vld [vmem:[#allocation2 + $0x291] sm:$0xff]  ;;  %2302 = vst.msk [vmem:[#allocation3 + $0x1c4] sm:$0xf] %vm1236_vm5, %v15761_v60  ;;  %v15759_v8 = vpack.c.bf16 %v1940_v1, %v1940_v1  ;;  %v728_v19 = vadd.f32 %v17558_v52, %v16339_v14  ;;  %v719_v22 = vpop.f32.mrf.mxu0  ;;  %v15636_v50 = vpack.c.bf16 %v1312_v31, %v1312_v31  ;;  %v1314_v5 = vld [vmem:[#allocation2 + $0x39] sm:$0xff] }
 0x140   :  { %865 = vst.msk [vmem:[#allocation2 + $0x2c1] sm:$0xff] %vm28_vm3, %v800_v62  ;;  %v15688_v10 = vpack.c.bf16 %v1364_v3, %v1364_v3  ;;  %v931_v12 = vld [vmem:[#allocation2 + $0x290] sm:$0xff]  ;;  %870 = vst.msk [vmem:[#allocation2 + $0x301] sm:$0xff] %vm28_vm3, %v805_v13  ;;  %v720_v25 = vadd.f32 %v17558_v52, %v719_v22  ;;  %v15638_v17 = vpack.c.bf16 %v1314_v5, %v1314_v5 }
 0x141   :  { %v15616_v15 = vpack.c.bf16 %v931_v12, %v931_v12  ;;  %1294 = vst.msk [vmem:[#allocation3 + $0x1c8] sm:$0xf] %vm1236_vm5, %v15618_v7  ;;  %v936_v16 = vld [vmem:[#allocation2 + $0x2d0] sm:$0xff]  ;;  %2300 = vst.msk [vmem:[#allocation3 + $0x1b4] sm:$0xf] %vm1236_vm5, %v15759_v8  ;;  %v806_v24 = vmax.f32 %v728_v19, 0.0  ;;  %v16342_v32 = vpop.f32.mrf.mxu0 }
 0x142   :  { %2301 = vst.msk [vmem:[#allocation3 + $0x1bc] sm:$0xf] %vm1236_vm5, %v15760_v9  ;;  %v15621_v20 = vpack.c.bf16 %v936_v16, %v936_v16  ;;  %1709 = vrot.lane.b32.xlu0 %v15689_v4, %s17010_s19  ;;  %v804_v36 = vmax.f32 %v720_v25, 0.0  ;;  %v741_v43 = vadd.f32 %v17558_v52, %v16342_v32  ;;  %v1313_v54 = vld [vmem:[#allocation2 + $0x31] sm:$0xff]  ;;  %v1315_v19 = vld [vmem:[#allocation2 + $0x49] sm:$0xff] }
 0x143   :  { %1707 = vrot.lane.b32.xlu1 %v15688_v10, %s17010_s19  ;;  %1292 = vst.msk [vmem:[#allocation3 + $0x1b8] sm:$0xf] %vm1236_vm5, %v15616_v15  ;;  %v732_v44 = vpop.f32.mrf.mxu0  ;;  %v1369_v62 = vld [vmem:[#allocation2 + $0x2d1] sm:$0xff]  ;;  %v15637_v4 = vpack.c.bf16 %v1313_v54, %v1313_v54 }
 0x144   :  { %868 = vst.msk [vmem:[#allocation2 + $0x2e9] sm:$0xff] %vm28_vm3, %v803_v18  ;;  %871 = vst.msk [vmem:[#allocation2 + $0x309] sm:$0xff] %vm28_vm3, %v806_v24  ;;  %v733_v48 = vadd.f32 %v17558_v52, %v732_v44  ;;  %v809_v51 = vmax.f32 %v741_v43, 0.0  ;;  %v15693_v11 = vpack.c.bf16 %v1369_v62, %v1369_v62 }
 0x145   :  { %v1367_v23 = vld [vmem:[#allocation2 + $0x2b9] sm:$0xff]  ;;  %1297 = vst.msk [vmem:[#allocation3 + $0x1e0] sm:$0xf] %vm1236_vm5, %v15621_v20  ;;  %v16343_v40 = vpop.f32.mrf.mxu0 }
 0x146   :  { %v934_v27 = vld [vmem:[#allocation2 + $0x2b8] sm:$0xff]  ;;  %1601 = vrot.lane.b32.xlu0 %v15635_v30, %s17010_s19  ;;  %v15691_v42 = vpack.c.bf16 %v1367_v23, %v1367_v23  ;;  %869 = vst.msk [vmem:[#allocation2 + $0x2f1] sm:$0xff] %vm28_vm3, %v804_v36  ;;  %v807_v55 = vmax.f32 %v733_v48, 0.0  ;;  %v744_v56 = vadd.f32 %v17558_v52, %v16343_v40  ;;  %874 = vst.msk [vmem:[#allocation2 + $0x331] sm:$0xff] %vm28_vm3, %v809_v51 }
 0x147   :  { %v1946_v28 = vld [vmem:[#allocation2 + $0x2d2] sm:$0xff]  ;;  %v1947_v29 = vld [vmem:[#allocation2 + $0x2da] sm:$0xff]  ;;  %v15619_v33 = vpack.c.bf16 %v934_v27, %v934_v27  ;;  %v1945_v41 = vld [vmem:[#allocation2 + $0x2c2] sm:$0xff]  ;;  %1711 = vrot.lane.b32.xlu1 %v15690_v21, %s17010_s19  ;;  %v735_v59 = vpop.f32.mrf.mxu0  ;;  %v15639_v27 = vpack.c.bf16 %v1315_v19, %v1315_v19 }
 0x148   :  { %v15765_v34 = vpack.c.bf16 %v1946_v28, %v1946_v28  ;;  %v15766_v35 = vpack.c.bf16 %v1947_v29, %v1947_v29  ;;  %v937_v37 = vld [vmem:[#allocation2 + $0x2d8] sm:$0xff]  ;;  %v15764_v47 = vpack.c.bf16 %v1945_v41, %v1945_v41  ;;  %v1368_v26 = vld [vmem:[#allocation2 + $0x2c1] sm:$0xff]  ;;  %872 = vst.msk [vmem:[#allocation2 + $0x319] sm:$0xff] %vm28_vm3, %v807_v55  ;;  %v810_v63 = vmax.f32 %v744_v56, 0.0 }
 0x149   :  { %v1944_v38 = vld [vmem:[#allocation2 + $0x2ba] sm:$0xff]  ;;  %1295 = vst.msk [vmem:[#allocation3 + $0x1d0] sm:$0xf] %vm1236_vm5, %v15619_v33  ;;  %v15622_v45 = vpack.c.bf16 %v937_v37, %v937_v37  ;;  %v15692_v58 = vpack.c.bf16 %v1368_v26, %v1368_v26  ;;  %v736_v0 = vadd.f32 %v17558_v52, %v735_v59  ;;  %v1316_v28 = vld [vmem:[#allocation2 + $0x51] sm:$0xff]  ;;  %v1318_v26 = vld [vmem:[#allocation2 + $0x69] sm:$0xff] }
 0x14a   :  { %2306 = vst.msk [vmem:[#allocation3 + $0x1e4] sm:$0xf] %vm1236_vm5, %v15765_v34  ;;  %2307 = vst.msk [vmem:[#allocation3 + $0x1ec] sm:$0xf] %vm1236_vm5, %v15766_v35  ;;  %v15763_v46 = vpack.c.bf16 %v1944_v38, %v1944_v38  ;;  %v935_v49 = vld [vmem:[#allocation2 + $0x2c0] sm:$0xff]  ;;  %1713 = vrot.lane.b32.xlu0 %v15691_v42, %s17010_s19  ;;  %v15642_v40 = vpack.c.bf16 %v1318_v26, %v1318_v26 }
 0x14b   :  { %v15620_v53 = vpack.c.bf16 %v935_v49, %v935_v49  ;;  %1298 = vst.msk [vmem:[#allocation3 + $0x1e8] sm:$0xf] %vm1236_vm5, %v15622_v45  ;;  %2305 = vst.msk [vmem:[#allocation3 + $0x1dc] sm:$0xf] %vm1236_vm5, %v15764_v47  ;;  %v940_v57 = vld [vmem:[#allocation2 + $0x300] sm:$0xff]  ;;  %1603 = vrot.lane.b32.xlu1 %v15636_v50, %s17010_s19  ;;  %v938_v60 = vld [vmem:[#allocation2 + $0x2e8] sm:$0xff]  ;;  %v15640_v45 = vpack.c.bf16 %v1316_v28, %v1316_v28 }
 0x14c   :  { %2304 = vst.msk [vmem:[#allocation3 + $0x1d4] sm:$0xf] %vm1236_vm5, %v15763_v46  ;;  %v15625_v61 = vpack.c.bf16 %v940_v57, %v940_v57  ;;  %v15623_v1 = vpack.c.bf16 %v938_v60, %v938_v60  ;;  %v1950_v2 = vld [vmem:[#allocation2 + $0x302] sm:$0xff]  ;;  %v1951_v3 = vld [vmem:[#allocation2 + $0x30a] sm:$0xff]  ;;  %v808_v8 = vmax.f32 %v736_v0, 0.0  ;;  %v1370_v15 = vld [vmem:[#allocation2 + $0x2d9] sm:$0xff] }
 0x14d   :  { %1296 = vst.msk [vmem:[#allocation3 + $0x1d8] sm:$0xf] %vm1236_vm5, %v15620_v53  ;;  %v15769_v6 = vpack.c.bf16 %v1950_v2, %v1950_v2  ;;  %v15770_v7 = vpack.c.bf16 %v1951_v3, %v1951_v3  ;;  %v941_v9 = vld [vmem:[#allocation2 + $0x308] sm:$0xff]  ;;  %v1949_v10 = vld [vmem:[#allocation2 + $0x2f2] sm:$0xff]  ;;  %v15694_v21 = vpack.c.bf16 %v1370_v15, %v1370_v15  ;;  %v876_v3 = vld [vmem:[#allocation2] sm:$0xff] }
 0x14e   :  { %1301 = vst.msk [vmem:[#allocation3 + $0x200] sm:$0xf] %vm1236_vm5, %v15625_v61  ;;  %1299 = vst.msk [vmem:[#allocation3 + $0x1f0] sm:$0xf] %vm1236_vm5, %v15623_v1  ;;  %1605 = vrot.lane.b32.xlu0 %v15637_v4, %s17010_s19  ;;  %v1948_v52 = vld [vmem:[#allocation2 + $0x2ea] sm:$0xff]  ;;  %v15626_v12 = vpack.c.bf16 %v941_v9, %v941_v9  ;;  %v15768_v14 = vpack.c.bf16 %v1949_v10, %v1949_v10  ;;  %v1317_v41 = vld [vmem:[#allocation2 + $0x61] sm:$0xff] }
 0x14f   :  { %875 = vst.msk [vmem:[#allocation2 + $0x339] sm:$0xff] %vm28_vm3, %v810_v63  ;;  %1715 = vrot.lane.b32.xlu1 %v15692_v58, %s17010_s19  ;;  %v15767_v13 = vpack.c.bf16 %v1948_v52, %v1948_v52  ;;  %873 = vst.msk [vmem:[#allocation2 + $0x321] sm:$0xff] %vm28_vm3, %v808_v8  ;;  %v939_v16 = vld [vmem:[#allocation2 + $0x2f0] sm:$0xff]  ;;  %v942_v22 = vld [vmem:[#allocation2 + $0x318] sm:$0xff]  ;;  %v15641_v49 = vpack.c.bf16 %v1317_v41, %v1317_v41 }
 0x150   :  { %2310 = vst.msk [vmem:[#allocation3 + $0x204] sm:$0xf] %vm1236_vm5, %v15769_v6  ;;  %2311 = vst.msk [vmem:[#allocation3 + $0x20c] sm:$0xf] %vm1236_vm5, %v15770_v7  ;;  %v15624_v18 = vpack.c.bf16 %v939_v16, %v939_v16  ;;  %v944_v20 = vld [vmem:[#allocation2 + $0x330] sm:$0xff]  ;;  %v15627_v25 = vpack.c.bf16 %v942_v22, %v942_v22  ;;  %v1373_v48 = vld [vmem:[#allocation2 + $0x301] sm:$0xff]  ;;  %v17744_v7 = vpack.c.bf16 %v876_v3, %v876_v3 }
 0x151   :  { %1302 = vst.msk [vmem:[#allocation3 + $0x208] sm:$0xf] %vm1236_vm5, %v15626_v12  ;;  %2308 = vst.msk [vmem:[#allocation3 + $0x1f4] sm:$0xf] %vm1236_vm5, %v15767_v13  ;;  %v15629_v23 = vpack.c.bf16 %v944_v20, %v944_v20  ;;  %v1371_v24 = vld [vmem:[#allocation2 + $0x2e9] sm:$0xff]  ;;  %v1372_v38 = vld [vmem:[#allocation2 + $0x2f1] sm:$0xff]  ;;  %v15697_v50 = vpack.c.bf16 %v1373_v48, %v1373_v48 }
 0x152   :  { %2309 = vst.msk [vmem:[#allocation3 + $0x1fc] sm:$0xf] %vm1236_vm5, %v15768_v14  ;;  %1717 = vrot.lane.b32.xlu0 %v15693_v11, %s17010_s19  ;;  %1300 = vst.msk [vmem:[#allocation3 + $0x1f8] sm:$0xf] %vm1236_vm5, %v15624_v18  ;;  %v15695_v34 = vpack.c.bf16 %v1371_v24, %v1371_v24  ;;  %v15696_v47 = vpack.c.bf16 %v1372_v38, %v1372_v38  ;;  %v1374_v51 = vld [vmem:[#allocation2 + $0x309] sm:$0xff]  ;;  %v1319_v53 = vld [vmem:[#allocation2 + $0x79] sm:$0xff] }
 0x153   :  { %1607 = vrot.lane.b32.xlu1 %v15638_v17, %s17010_s19  ;;  %1305 = vst.msk [vmem:[#allocation3 + $0x220] sm:$0xf] %vm1236_vm5, %v15629_v23  ;;  %1303 = vst.msk [vmem:[#allocation3 + $0x210] sm:$0xf] %vm1236_vm5, %v15627_v25  ;;  %v15698_v54 = vpack.c.bf16 %v1374_v51, %v1374_v51  ;;  %v1375_v55 = vld [vmem:[#allocation2 + $0x319] sm:$0xff]  ;;  %v15643_v56 = vpack.c.bf16 %v1319_v53, %v1319_v53  ;;  %v1320_v58 = vld [vmem:[#allocation2 + $0x81] sm:$0xff] }
 0x154   :  { %v15699_v59 = vpack.c.bf16 %v1375_v55, %v1375_v55  ;;  %v15644_v62 = vpack.c.bf16 %v1320_v58, %v1320_v58  ;;  %v1321_v63 = vld [vmem:[#allocation2 + $0x91] sm:$0xff]  ;;  %v877_v1 = vld [vmem:[#allocation2 + $0x8] sm:$0xff]  ;;  %1237 = vst.msk [vmem:[#allocation3] sm:$0xf] %vm1236_vm5, %v17744_v7  ;;  %v1322_v12 = vld [vmem:[#allocation2 + $0x99] sm:$0xff] }
 0x155   :  { %v1887_v2 = vld [vmem:[#allocation2 + $0xa] sm:$0xff]  ;;  %v17742_v5 = vpack.c.bf16 %v877_v1, %v877_v1  ;;  %v1886_v8 = vld [vmem:[#allocation2 + $0x2] sm:$0xff]  ;;  %v15645_v11 = vpack.c.bf16 %v1321_v63, %v1321_v63  ;;  %v15646_v16 = vpack.c.bf16 %v1322_v12, %v1322_v12  ;;  %v1343_v22 = vld [vmem:[#allocation2 + $0x199] sm:$0xff] }
 0x156   :  { %v1954_v29 = vld [vmem:[#allocation2 + $0x332] sm:$0xff]  ;;  %v1955_v30 = vld [vmem:[#allocation2 + $0x33a] sm:$0xff]  ;;  %1609 = vrot.lane.b32.xlu0 %v15639_v27, %s17010_s19  ;;  %v1953_v36 = vld [vmem:[#allocation2 + $0x322] sm:$0xff]  ;;  %v15706_v6 = vpack.c.bf16 %v1887_v2, %v1887_v2  ;;  %v15705_v52 = vpack.c.bf16 %v1886_v8, %v1886_v8 }
 0x157   :  { %v15773_v31 = vpack.c.bf16 %v1954_v29, %v1954_v29  ;;  %v15774_v32 = vpack.c.bf16 %v1955_v30, %v1955_v30  ;;  %v945_v33 = vld [vmem:[#allocation2 + $0x338] sm:$0xff]  ;;  %1719 = vrot.lane.b32.xlu1 %v15694_v21, %s17010_s19  ;;  %v15772_v43 = vpack.c.bf16 %v1953_v36, %v1953_v36  ;;  %v943_v44 = vld [vmem:[#allocation2 + $0x320] sm:$0xff]  ;;  %1238 = vst.msk [vmem:[#allocation3 + $0x8] sm:$0xf] %vm1236_vm5, %v17742_v5  ;;  %v1310_v20 = vld [vmem:[#allocation2 + $0x9] sm:$0xff] }
 0x158   :  { %v1952_v35 = vld [vmem:[#allocation2 + $0x31a] sm:$0xff]  ;;  %v15630_v37 = vpack.c.bf16 %v945_v33, %v945_v33  ;;  %v15628_v46 = vpack.c.bf16 %v943_v44, %v943_v44  ;;  %v1377_v9 = vld [vmem:[#allocation2 + $0x331] sm:$0xff]  ;;  %2247 = vst.msk [vmem:[#allocation3 + $0xc] sm:$0xf] %vm1236_vm5, %v15706_v6  ;;  %2246 = vst.msk [vmem:[#allocation3 + $0x4] sm:$0xf] %vm1236_vm5, %v15705_v52  ;;  %v15634_v30 = vpack.c.bf16 %v1310_v20, %v1310_v20 }
 0x159   :  { %2314 = vst.msk [vmem:[#allocation3 + $0x224] sm:$0xf] %vm1236_vm5, %v15773_v31  ;;  %2315 = vst.msk [vmem:[#allocation3 + $0x22c] sm:$0xf] %vm1236_vm5, %v15774_v32  ;;  %v15771_v42 = vpack.c.bf16 %v1952_v35, %v1952_v35  ;;  %v1376_v60 = vld [vmem:[#allocation2 + $0x321] sm:$0xff]  ;;  %v15701_v13 = vpack.c.bf16 %v1377_v9, %v1377_v9  ;;  %v1378_v14 = vld [vmem:[#allocation2 + $0x339] sm:$0xff]  ;;  %v15667_v32 = vpack.c.bf16 %v1343_v22, %v1343_v22 }
 0x15a   :  { %1306 = vst.msk [vmem:[#allocation3 + $0x228] sm:$0xf] %vm1236_vm5, %v15630_v37  ;;  %2313 = vst.msk [vmem:[#allocation3 + $0x21c] sm:$0xf] %vm1236_vm5, %v15772_v43  ;;  %1721 = vrot.lane.b32.xlu0 %v15695_v34, %s17010_s19  ;;  %v15700_v0 = vpack.c.bf16 %v1376_v60, %v1376_v60  ;;  %v1309_v17 = vld [vmem:[#allocation2 + $0x1] sm:$0xff]  ;;  %v15702_v18 = vpack.c.bf16 %v1378_v14, %v1378_v14  ;;  %v16494_v35 = vld [vmem:[%s20736_s3 + $0xf8] sm:$0xff]  }
 0x15b   :  { %2312 = vst.msk [vmem:[#allocation3 + $0x214] sm:$0xf] %vm1236_vm5, %v15771_v42  ;;  %1611 = vrot.lane.b32.xlu1 %v15640_v45, %s17010_s19  ;;  %1304 = vst.msk [vmem:[#allocation3 + $0x218] sm:$0xf] %vm1236_vm5, %v15628_v46  ;;  %v15633_v21 = vpack.c.bf16 %v1309_v17, %v1309_v17  ;;  %v16434_v27 = vld [vmem:[#allocation3 + $0x74] ss:$8 sps:$4 sm:$0xff]  }
 0x15c   :  { %14066 = vmatprep.mubr.msk.bf16.mxu1 %vm28_vm3, %v16434_v27  ;;  %v16436_v29 = vld [vmem:[#allocation3 + $0x84] ss:$8 sps:$4 sm:$0xff]   ;;  %v1345_v36 = vld [vmem:[#allocation2 + $0x1b1] sm:$0xff]  ;;  %v1346_v41 = vld [vmem:[#allocation2 + $0x1b9] sm:$0xff] }
 0x15d   :  { %v1344_v31 = vld [vmem:[#allocation2 + $0x1a1] sm:$0xff]  ;;  %v15669_v42 = vpack.c.bf16 %v1345_v36, %v1345_v36  ;;  %v15670_v26 = vpack.c.bf16 %v1346_v41, %v1346_v41  ;;  %v16503_v58 = vld [vmem:[%s20736_s3 + $0xf0] sm:$0xff]  }
 0x15e   :  { %1613 = vrot.lane.b32.xlu0 %v15641_v49, %s17010_s19  ;;  %v15668_v38 = vpack.c.bf16 %v1344_v31, %v1344_v31  ;;  %v16440_v55 = vld [vmem:[#allocation3 + $0xa4] ss:$8 sps:$4 sm:$0xff]  }
 0x15f   :  { %1723 = vrot.lane.b32.xlu1 %v15696_v47, %s17010_s19  ;;  %v16438_v47 = vld [vmem:[#allocation3 + $0x94] ss:$8 sps:$4 sm:$0xff]   ;;  %v16444_v52 = vld [vmem:[#allocation3 + $0xc4] ss:$8 sps:$4 sm:$0xff]  }
 0x160   :  { %v16510_v12 = vld [vmem:[%s20736_s3 + $0xe8] sm:$0xff]  }
 0x162   :  { %1725 = vrot.lane.b32.xlu0 %v15697_v50, %s17010_s19 }
 0x163   :  { %1615 = vrot.lane.b32.xlu1 %v15642_v40, %s17010_s19 }
 0x164   :  { %v1630_v57 = vpop.permute.xlu1 %1629  ;;  %v1626_v61 = vpop.permute.xlu0 %1625 }
 0x165   :  { %1830 = vst.msk [vmem:[#allocation3 + $0x80] sm:$0xf] %vm1813_vm7, %v1630_v57  ;;  %1828 = vst.msk [vmem:[#allocation3 + $0x70] sm:$0xf] %vm1813_vm7, %v1626_v61 }
 0x166   :  { %1617 = vrot.lane.b32.xlu0 %v15643_v56, %s17010_s19 }
 0x167   :  { %1727 = vrot.lane.b32.xlu1 %v15698_v54, %s17010_s19 }
 0x168   :  { %v1632_v4 = vpop.permute.xlu1 %1631 }
 0x169   :  { %1831 = vst.msk [vmem:[#allocation3 + $0x88] sm:$0xf] %vm1813_vm7, %v1632_v4 }
 0x16a   :  { %1729 = vrot.lane.b32.xlu0 %v15699_v59, %s17010_s19 }
 0x16b   :  { %1619 = vrot.lane.b32.xlu1 %v15644_v62, %s17010_s19  ;;  %v1628_v10 = vpop.permute.xlu0 %1627 }
 0x16c   :  { %1829 = vst.msk [vmem:[#allocation3 + $0x78] sm:$0xf] %vm1813_vm7, %v1628_v10  ;;  %v2419_v19 = vld [vmem:[#allocation3 + $0x70] sm:$0xff]  ;;  %v2421_v43 = vld [vmem:[#allocation3 + $0x80] sm:$0xff] }
 0x16e   :  { %1621 = vrot.lane.b32.xlu0 %v15645_v11, %s17010_s19 }
 0x16f   :  { %1731 = vrot.lane.b32.xlu1 %v15700_v0, %s17010_s19  ;;  %v1634_v15 = vpop.permute.xlu0 %1633  ;;  %v16442_v0 = vld [vmem:[#allocation3 + $0xb4] ss:$8 sps:$4 sm:$0xff]  }
 0x170   :  { %1832 = vst.msk [vmem:[#allocation3 + $0x90] sm:$0xf] %vm1813_vm7, %v1634_v15  ;;  %v2422_v37 = vld [vmem:[#allocation3 + $0x88] sm:$0xff] }
 0x171   :  { %v13998_v46 = vcombine.low %v2421_v43, %v2422_v37  ;;  %v16528_v43 = vld [vmem:[%s20736_s3 + $0xc8] sm:$0xff]  }
 0x172   :  { %1733 = vrot.lane.b32.xlu0 %v15701_v13, %s17010_s19  ;;  %v1636_v23 = vpop.permute.xlu1 %1635 }
 0x173   :  { %1623 = vrot.lane.b32.xlu1 %v15646_v16, %s17010_s19  ;;  %v1638_v24 = vpop.permute.xlu0 %1637  ;;  %v2420_v25 = vld [vmem:[#allocation3 + $0x78] sm:$0xff]  ;;  %1833 = vst.msk [vmem:[#allocation3 + $0x98] sm:$0xf] %vm1813_vm7, %v1636_v23 }
 0x174   :  { %1834 = vst.msk [vmem:[#allocation3 + $0xa0] sm:$0xf] %vm1813_vm7, %v1638_v24  ;;  %v13996_v28 = vcombine.low %v2419_v19, %v2420_v25 }
 0x176   :  { %3033 = vmatmul.mubr.bf16.vlgmr.msra.gmra.mxu1 %v13996_v28  ;;  %1597 = vrot.lane.b32.xlu0 %v15633_v21, %s17010_s19  ;;  %v1640_v33 = vpop.permute.xlu1 %1639  ;;  %v16514_v21 = vld [vmem:[%s20736_s3 + $0xe0] sm:$0xff]  }
 0x177   :  { %1735 = vrot.lane.b32.xlu1 %v15702_v18, %s17010_s19  ;;  %v1642_v34 = vpop.permute.xlu0 %1641  ;;  %14067 = vmatprep.mubr.msk.bf16.mxu1 %vm28_vm3, %v16436_v29  ;;  %1835 = vst.msk [vmem:[#allocation3 + $0xa8] sm:$0xf] %vm1813_vm7, %v1640_v33  ;;  %v2423_v51 = vld [vmem:[#allocation3 + $0x90] sm:$0xff]  ;;  %v16448_v28 = vld [vmem:[#allocation3 + $0xe4] ss:$8 sps:$4 sm:$0xff]   ;;  %v16520_v29 = vld [vmem:[%s20736_s3 + $0xd8] sm:$0xff]  }
 0x178   :  { %1836 = vst.msk [vmem:[#allocation3 + $0xb0] sm:$0xf] %vm1813_vm7, %v1642_v34  ;;  %4533 = vmatpush1.bf16.msra.mxu1 %v16494_v35  ;;  %v16446_v18 = vld [vmem:[#allocation3 + $0xd4] ss:$8 sps:$4 sm:$0xff]  }
 0x179   :  { %4534 = vmatprep.subr.bf16.mxu1 %v20741_v39 }
 0x17a   :  { %1665 = vrot.lane.b32.xlu0 %v15667_v32, %s17010_s19  ;;  %v1644_v44 = vpop.permute.xlu1 %1643  ;;  %v2424_v50 = vld [vmem:[#allocation3 + $0x98] sm:$0xff]  ;;  %v16521_v32 = vld [vmem:[%s20736_s3 + $0xd0] sm:$0xff]  }
 0x17b   :  { %1599 = vrot.lane.b32.xlu1 %v15634_v30, %s17010_s19  ;;  %v1646_v45 = vpop.permute.xlu0 %1645  ;;  %1837 = vst.msk [vmem:[#allocation3 + $0xb8] sm:$0xf] %vm1813_vm7, %v1644_v44  ;;  %v14000_v54 = vcombine.low %v2423_v51, %v2424_v50  ;;  %v2425_v60 = vld [vmem:[#allocation3 + $0xa0] sm:$0xff] }
 0x17c   :  { %1838 = vst.msk [vmem:[#allocation3 + $0xc0] sm:$0xf] %vm1813_vm7, %v1646_v45  ;;  %4535 = vmatpush1.bf16.msra.mxu1 %v16503_v58 }
 0x17d   :  { %4536 = vmatprep.subr.bf16.mxu1 %v20741_v39 }
 0x17e   :  { %3041 = vmatmul.mubr.bf16.gmra.mxu1 %v13998_v46  ;;  %1669 = vrot.lane.b32.xlu0 %v15669_v42, %s17010_s19  ;;  %v1648_v48 = vpop.permute.xlu1 %1647  ;;  %v2426_v59 = vld [vmem:[#allocation3 + $0xa8] sm:$0xff] }
 0x17f   :  { %1667 = vrot.lane.b32.xlu1 %v15668_v38, %s17010_s19  ;;  %v1650_v49 = vpop.permute.xlu0 %1649  ;;  %14068 = vmatprep.mubr.msk.bf16.mxu1 %vm28_vm3, %v16438_v47  ;;  %1839 = vst.msk [vmem:[#allocation3 + $0xc8] sm:$0xf] %vm1813_vm7, %v1648_v48  ;;  %v14002_v63 = vcombine.low %v2425_v60, %v2426_v59  ;;  %v2427_v4 = vld [vmem:[#allocation3 + $0xb0] sm:$0xff] }
 0x180   :  { %1840 = vst.msk [vmem:[#allocation3 + $0xd0] sm:$0xf] %vm1813_vm7, %v1650_v49  ;;  %4537 = vmatpush1.bf16.msra.mxu1 %v16510_v12  ;;  %v16450_v38 = vld [vmem:[#allocation3 + $0xf4] ss:$8 sps:$4 sm:$0xff]   ;;  %v16452_v49 = vld [vmem:[#allocation3 + $0x104] ss:$8 sps:$4 sm:$0xff]  }
 0x181   :  { %4538 = vmatprep.subr.bf16.mxu1 %v20741_v39  ;;  %v16454_v59 = vld [vmem:[#allocation3 + $0x134] ss:$8 sps:$4 sm:$0xff]  }
 0x182   :  { %v2428_v3 = vld [vmem:[#allocation3 + $0xb8] sm:$0xff] }
 0x183   :  { %1671 = vrot.lane.b32.xlu1 %v15670_v26, %s17010_s19  ;;  %v1652_v40 = vpop.permute.xlu1 %1651  ;;  %v1654_v53 = vpop.permute.xlu0 %1653  ;;  %v14004_v9 = vcombine.low %v2427_v4, %v2428_v3  ;;  %v2429_v14 = vld [vmem:[#allocation3 + $0xc0] sm:$0xff] }
 0x184   :  { %1841 = vst.msk [vmem:[#allocation3 + $0xd8] sm:$0xf] %vm1813_vm7, %v1652_v40  ;;  %1842 = vst.msk [vmem:[#allocation3 + $0xe0] sm:$0xf] %vm1813_vm7, %v1654_v53  ;;  %4539 = vmatpush1.bf16.msra.mxu1 %v16514_v21  ;;  %v16529_v26 = vld [vmem:[%s20736_s3 + $0xc0] sm:$0xff]   ;;  %v16536_v40 = vld [vmem:[%s20736_s3 + $0x118] sm:$0xff]  }
 0x185   :  { %4540 = vmatprep.subr.bf16.mxu1 %v20741_v39 }
 0x186   :  { %3049 = vmatmul.mubr.bf16.gmra.mxu1 %v14000_v54  ;;  %v2430_v13 = vld [vmem:[#allocation3 + $0xc8] sm:$0xff] }
 0x187   :  { %v1656_v56 = vpop.permute.xlu1 %1655  ;;  %v1658_v57 = vpop.permute.xlu0 %1657  ;;  %14069 = vmatprep.mubr.msk.bf16.mxu1 %vm28_vm3, %v16440_v55  ;;  %v14006_v17 = vcombine.low %v2429_v14, %v2430_v13  ;;  %v2431_v23 = vld [vmem:[#allocation3 + $0xd0] sm:$0xff] }
 0x188   :  { %1843 = vst.msk [vmem:[#allocation3 + $0xe8] sm:$0xf] %vm1813_vm7, %v1656_v56  ;;  %1844 = vst.msk [vmem:[#allocation3 + $0xf0] sm:$0xf] %vm1813_vm7, %v1658_v57  ;;  %4541 = vmatpush1.bf16.msra.mxu1 %v16520_v29  ;;  %v16537_v57 = vld [vmem:[%s20736_s3 + $0x110] sm:$0xff]   ;;  %v16467_v29 = vld [vmem:[%s20736_s3 + $0x20] sm:$0xff]  }
 0x189   :  { %4542 = vmatprep.subr.bf16.mxu1 %v20741_v39  ;;  %v16461_v14 = vld [vmem:[%s20736_s3 + $0x30] sm:$0xff]  }
 0x18b   :  { %v1660_v61 = vpop.permute.xlu1 %1659  ;;  %v1662_v62 = vpop.permute.xlu0 %1661  ;;  %v2432_v22 = vld [vmem:[#allocation3 + $0xd8] sm:$0xff]  ;;  %v2433_v34 = vld [vmem:[#allocation3 + $0xe0] sm:$0xff] }
 0x18c   :  { %1845 = vst.msk [vmem:[#allocation3 + $0xf8] sm:$0xf] %vm1813_vm7, %v1660_v61  ;;  %1846 = vst.msk [vmem:[#allocation3 + $0x100] sm:$0xf] %vm1813_vm7, %v1662_v62  ;;  %v14008_v27 = vcombine.low %v2431_v23, %v2432_v22  ;;  %4543 = vmatpush1.bf16.msra.mxu1 %v16521_v32  ;;  %v16542_v62 = vld [vmem:[%s20736_s3 + $0x108] sm:$0xff]  }
 0x18d   :  { %4544 = vmatprep.subr.bf16.mxu1 %v20741_v39  ;;  %v17887_v22 = vld [vmem:[#allocation3 + $0x24] ss:$8 sps:$4 sm:$0xff]  }
 0x18e   :  { %3057 = vmatmul.mubr.bf16.gmra.mxu1 %v14002_v63 }
 0x18f   :  { %v1664_v1 = vpop.permute.xlu1 %1663  ;;  %v1674_v2 = vpop.permute.xlu0 %1673  ;;  %14070 = vmatprep.mubr.msk.bf16.mxu1 %vm28_vm3, %v16442_v0  ;;  %v2434_v33 = vld [vmem:[#allocation3 + $0xe8] sm:$0xff]  ;;  %v2435_v45 = vld [vmem:[#allocation3 + $0xf0] sm:$0xff] }
 0x190   :  { %1847 = vst.msk [vmem:[#allocation3 + $0x108] sm:$0xf] %vm1813_vm7, %v1664_v1  ;;  %1852 = vst.msk [vmem:[#allocation3 + $0x130] sm:$0xf] %vm1813_vm7, %v1674_v2  ;;  %v14010_v37 = vcombine.low %v2433_v34, %v2434_v33  ;;  %4545 = vmatpush1.bf16.msra.mxu1 %v16528_v43  ;;  %v16460_v2 = vld [vmem:[%s20736_s3 + $0x38] sm:$0xff]  }
 0x191   :  { %4546 = vmatprep.subr.bf16.mxu1 %v20741_v39  ;;  %v16472_v33 = vld [vmem:[%s20736_s3 + $0x18] sm:$0xff]  }
 0x193   :  { %v1678_v8 = vpop.permute.xlu0 %1677  ;;  %v2436_v44 = vld [vmem:[#allocation3 + $0xf8] sm:$0xff]  ;;  %v2437_v54 = vld [vmem:[#allocation3 + $0x100] sm:$0xff] }
 0x194   :  { %1854 = vst.msk [vmem:[#allocation3 + $0x140] sm:$0xf] %vm1813_vm7, %v1678_v8  ;;  %v14012_v48 = vcombine.low %v2435_v45, %v2436_v44  ;;  %4547 = vmatpush1.bf16.msra.mxu1 %v16529_v26  ;;  %v17863_v8 = vld [vmem:[#allocation3 + $0x14] ss:$8 sps:$4 sm:$0xff]  }
 0x195   :  { %v1676_v6 = vpop.permute.xlu1 %1675  ;;  %4556 = vmatprep.subr.bf16.mxu1 %v20741_v39  ;;  %14060 = vmatprep.mubr.msk.bf16.mxu0 %vm28_vm3, %v17863_v8  ;;  %v16473_v45 = vld [vmem:[%s20736_s3 + $0x10] sm:$0xff]  }
 0x196   :  { %1853 = vst.msk [vmem:[#allocation3 + $0x138] sm:$0xf] %vm1813_vm7, %v1676_v6  ;;  %3065 = vmatmul.mubr.bf16.gmra.mxu1 %v14004_v9 }
 0x197   :  { %v1682_v11 = vpop.permute.xlu0 %1681  ;;  %14071 = vmatprep.mubr.msk.bf16.mxu1 %vm28_vm3, %v16444_v52  ;;  %v2438_v53 = vld [vmem:[#allocation3 + $0x108] sm:$0xff]  ;;  %v2439_v0 = vld [vmem:[#allocation3 + $0x130] sm:$0xff] }
 0x198   :  { %1856 = vst.msk [vmem:[#allocation3 + $0x150] sm:$0xf] %vm1813_vm7, %v1682_v11  ;;  %4557 = vmatpush2.bf16.msra.mxu1 %v16536_v40  ;;  %v14014_v58 = vcombine.low %v2437_v54, %v2438_v53  ;;  %v16458_v11 = vld [vmem:[#allocation3 + $0x144] ss:$8 sps:$4 sm:$0xff]  }
 0x199   :  { %v1680_v10 = vpop.permute.xlu1 %1679  ;;  %4558 = vmatprep.subr.bf16.mxu1 %v20741_v39  ;;  %v17927_v40 = vld [vmem:[#allocation3 + $0x44] ss:$8 sps:$4 sm:$0xff]  }
 0x19a   :  { %1855 = vst.msk [vmem:[#allocation3 + $0x148] sm:$0xf] %vm1813_vm7, %v1680_v10  ;;  %v16543_v10 = vld [vmem:[%s20736_s3 + $0x100] sm:$0xff]  }
 0x19b   :  { %v1686_v16 = vpop.permute.xlu0 %1685 }
 0x19c   :  { %1858 = vst.msk [vmem:[#allocation3 + $0x160] sm:$0xf] %vm1813_vm7, %v1686_v16  ;;  %4559 = vmatpush2.bf16.msra.mxu1 %v16537_v57  ;;  %v2441_v16 = vld [vmem:[#allocation3 + $0x140] sm:$0xff] }
 0x19d   :  { %v1684_v15 = vpop.permute.xlu1 %1683  ;;  %4560 = vmatprep.subr.bf16.mxu1 %v20741_v39  ;;  %v2440_v63 = vld [vmem:[#allocation3 + $0x138] sm:$0xff] }
 0x19e   :  { %1857 = vst.msk [vmem:[#allocation3 + $0x158] sm:$0xf] %vm1813_vm7, %v1684_v15  ;;  %3073 = vmatmul.mubr.bf16.gmra.mxu1 %v14006_v17  ;;  %v14016_v9 = vcombine.low %v2439_v0, %v2440_v63 }
 0x19f   :  { %v1690_v20 = vpop.permute.xlu0 %1689  ;;  %14072 = vmatprep.mubr.msk.bf16.mxu1 %vm28_vm3, %v16446_v18  ;;  %v16466_v18 = vld [vmem:[%s20736_s3 + $0x28] sm:$0xff]  }
 0x1a0   :  { %1860 = vst.msk [vmem:[#allocation3 + $0x170] sm:$0xf] %vm1813_vm7, %v1690_v20  ;;  %4561 = vmatpush2.bf16.msra.mxu1 %v16542_v62  ;;  %v16484_v62 = vld [vmem:[%s20736_s3 + $0x58] sm:$0xff]  }
 0x1a1   :  { %v1688_v19 = vpop.permute.xlu1 %1687  ;;  %4562 = vmatprep.subr.bf16.mxu1 %v20741_v39  ;;  %v2442_v15 = vld [vmem:[#allocation3 + $0x148] sm:$0xff] }
 0x1a2   :  { %1859 = vst.msk [vmem:[#allocation3 + $0x168] sm:$0xf] %vm1813_vm7, %v1688_v19  ;;  %v14018_v23 = vcombine.low %v2441_v16, %v2442_v15 }
 0x1a3   :  { %v1694_v25 = vpop.permute.xlu0 %1693 }
 0x1a4   :  { %1862 = vst.msk [vmem:[#allocation3 + $0x180] sm:$0xf] %vm1813_vm7, %v1694_v25  ;;  %4563 = vmatpush2.bf16.msra.mxu1 %v16543_v10  ;;  %v16464_v25 = vld [vmem:[#allocation3 + $0x154] ss:$8 sps:$4 sm:$0xff]   ;;  %v1921_v10 = vld [vmem:[#allocation2 + $0x1a2] sm:$0xff] }
 0x1a5   :  { %v1692_v24 = vpop.permute.xlu1 %1691  ;;  %7901 = vmatprep.subr.bf16.mxu1 %v20741_v39  ;;  %v15740_v15 = vpack.c.bf16 %v1921_v10, %v1921_v10 }
 0x1a6   :  { %1861 = vst.msk [vmem:[#allocation3 + $0x178] sm:$0xf] %vm1813_vm7, %v1692_v24  ;;  %3081 = vmatmul.mubr.bf16.gmra.mxu1 %v14008_v27 }
 0x1a7   :  { %14073 = vmatprep.mubr.msk.bf16.mxu1 %vm28_vm3, %v16448_v28  ;;  %2281 = vst.msk [vmem:[#allocation3 + $0x11c] sm:$0xf] %vm1236_vm5, %v15740_v15  ;;  %v18111_v15 = vld [vmem:[#allocation3 + $0x80] ss:$8 sps:$4 sm:$0xff]  }
 0x1a8   :  { %v1698_v31 = vpop.permute.xlu0 %1697 }
 0x1a9   :  { %v1696_v30 = vpop.permute.xlu1 %1695  ;;  %1864 = vst.msk [vmem:[#allocation3 + $0x190] sm:$0xf] %vm1813_vm7, %v1698_v31  ;;  %v2443_v31 = vld [vmem:[#allocation3 + $0x150] sm:$0xff] }
 0x1aa   :  { %1863 = vst.msk [vmem:[#allocation3 + $0x188] sm:$0xf] %vm1813_vm7, %v1696_v30  ;;  %v2444_v30 = vld [vmem:[#allocation3 + $0x158] sm:$0xff] }
 0x1ac   :  { %v1702_v36 = vpop.permute.xlu0 %1701 }
 0x1ad   :  { %v1700_v35 = vpop.permute.xlu1 %1699  ;;  %1866 = vst.msk [vmem:[#allocation3 + $0x1a0] sm:$0xf] %vm1813_vm7, %v1702_v36 }
 0x1ae   :  { %1865 = vst.msk [vmem:[#allocation3 + $0x198] sm:$0xf] %vm1813_vm7, %v1700_v35  ;;  %3089 = vmatmul.mubr.bf16.gmra.mxu1 %v14010_v37  ;;  %v17907_v37 = vld [vmem:[#allocation3 + $0x34] ss:$8 sps:$4 sm:$0xff]  }
 0x1af   :  { %14074 = vmatprep.mubr.msk.bf16.mxu1 %vm28_vm3, %v16450_v38  ;;  %v14020_v38 = vcombine.low %v2443_v31, %v2444_v30  ;;  %v17976_v30 = vld [vmem:[#allocation3 + $0x64] ss:$8 sps:$4 sm:$0xff]  }
 0x1b0   :  { %v1706_v42 = vpop.permute.xlu0 %1705 }
 0x1b1   :  { %v1704_v41 = vpop.permute.xlu1 %1703  ;;  %1868 = vst.msk [vmem:[#allocation3 + $0x1b0] sm:$0xf] %vm1813_vm7, %v1706_v42  ;;  %v16470_v42 = vld [vmem:[#allocation3 + $0x164] ss:$8 sps:$4 sm:$0xff]  }
 0x1b2   :  { %1867 = vst.msk [vmem:[#allocation3 + $0x1a8] sm:$0xf] %vm1813_vm7, %v1704_v41 }
 0x1b4   :  { %v1710_v47 = vpop.permute.xlu0 %1709 }
 0x1b5   :  { %v1708_v46 = vpop.permute.xlu1 %1707  ;;  %1870 = vst.msk [vmem:[#allocation3 + $0x1c0] sm:$0xf] %vm1813_vm7, %v1710_v47  ;;  %v2445_v47 = vld [vmem:[#allocation3 + $0x160] sm:$0xff] }
 0x1b6   :  { %1869 = vst.msk [vmem:[#allocation3 + $0x1b8] sm:$0xf] %vm1813_vm7, %v1708_v46  ;;  %3097 = vmatmul.mubr.bf16.gmra.mxu1 %v14012_v48  ;;  %v2446_v46 = vld [vmem:[#allocation3 + $0x168] sm:$0xff] }
 0x1b7   :  { %14075 = vmatprep.mubr.msk.bf16.mxu1 %vm28_vm3, %v16452_v49  ;;  %v16478_v48 = vld [vmem:[%s20736_s3 + $0x8] sm:$0xff]   ;;  %v14022_v53 = vcombine.low %v2445_v47, %v2446_v46 }
 0x1b8   :  { %v1602_v51 = vpop.permute.xlu0 %1601 }
 0x1b9   :  { %v1712_v50 = vpop.permute.xlu1 %1711  ;;  %1816 = vst.msk [vmem:[#allocation3 + $0x10] sm:$0xf] %vm1813_vm7, %v1602_v51 }
 0x1ba   :  { %1871 = vst.msk [vmem:[#allocation3 + $0x1c8] sm:$0xf] %vm1813_vm7, %v1712_v50 }
 0x1bc   :  { %v1714_v56 = vpop.permute.xlu0 %1713 }
 0x1bd   :  { %v1604_v55 = vpop.permute.xlu1 %1603  ;;  %1872 = vst.msk [vmem:[#allocation3 + $0x1d0] sm:$0xf] %vm1813_vm7, %v1714_v56 }
 0x1be   :  { %1817 = vst.msk [vmem:[#allocation3 + $0x18] sm:$0xf] %vm1813_vm7, %v1604_v55  ;;  %3105 = vmatmul.mubr.bf16.gmra.mxu1 %v14014_v58  ;;  %v16476_v55 = vld [vmem:[#allocation3 + $0x174] ss:$8 sps:$4 sm:$0xff]   ;;  %v16479_v58 = vld [vmem:[%s20736_s3] sm:$0xff]  }
 0x1bf   :  { %14076 = vmatprep.mubr.msk.bf16.mxu1 %vm28_vm3, %v16454_v59  ;;  %v2448_v59 = vld [vmem:[#allocation3 + $0x178] sm:$0xff] }
 0x1c0   :  { %v1606_v61 = vpop.permute.xlu0 %1605  ;;  %v2407_v1 = vld [vmem:[#allocation3 + $0x10] sm:$0xff] }
 0x1c1   :  { %v1716_v60 = vpop.permute.xlu1 %1715  ;;  %1818 = vst.msk [vmem:[#allocation3 + $0x20] sm:$0xf] %vm1813_vm7, %v1606_v61 }
 0x1c2   :  { %1873 = vst.msk [vmem:[#allocation3 + $0x1d8] sm:$0xf] %vm1813_vm7, %v1716_v60  ;;  %v2447_v60 = vld [vmem:[#allocation3 + $0x170] sm:$0xff] }
 0x1c4   :  { %v1718_v4 = vpop.permute.xlu0 %1717 }
 0x1c5   :  { %v1608_v3 = vpop.permute.xlu1 %1607  ;;  %v2408_v6 = vld [vmem:[#allocation3 + $0x18] sm:$0xff]  ;;  %1874 = vst.msk [vmem:[#allocation3 + $0x1e0] sm:$0xf] %vm1813_vm7, %v1718_v4 }
 0x1c6   :  { %1819 = vst.msk [vmem:[#allocation3 + $0x28] sm:$0xf] %vm1813_vm7, %v1608_v3  ;;  %v17867_v52 = vcombine.low %v2407_v1, %v2408_v6  ;;  %3113 = vmatmul.mubr.bf16.gmra.mxu1 %v14016_v9  ;;  %v14024_v3 = vcombine.low %v2447_v60, %v2448_v59  ;;  %v17956_v6 = vld [vmem:[#allocation3 + $0x184] ss:$8 sps:$4 sm:$0xff]   ;;  %v18055_v60 = vld [vmem:[#allocation3 + $0x1d4] ss:$8 sps:$4 sm:$0xff]  }
 0x1c7   :  { %14077 = vmatprep.mubr.msk.bf16.mxu1 %vm28_vm3, %v16458_v11  ;;  %v911_v9 = vld [vmem:[#allocation2 + $0x1a0] sm:$0xff]  ;;  %v910_v11 = vld [vmem:[#allocation2 + $0x198] sm:$0xff] }
 0x1c8   :  { %2985 = vmatmul.mubr.bf16.vlgmr.msra.gmra.mxu0 %v17867_v52  ;;  %v1610_v13 = vpop.permute.xlu0 %1609  ;;  %v2409_v17 = vld [vmem:[#allocation3 + $0x20] sm:$0xff]  ;;  %v15595_v16 = vpack.c.bf16 %v910_v11, %v910_v11  ;;  %v18097_v11 = vld [vmem:[#allocation3 + $0x70] ss:$8 sps:$4 sm:$0xff]  }
 0x1c9   :  { %v1720_v12 = vpop.permute.xlu1 %1719  ;;  %3698 = vmatpush1.bf16.msra.mxu0 %v16460_v2  ;;  %1820 = vst.msk [vmem:[#allocation3 + $0x30] sm:$0xf] %vm1813_vm7, %v1610_v13  ;;  %14061 = vmatprep.mubr.msk.bf16.mxu0 %vm28_vm3, %v17887_v22  ;;  %v17947_v2 = vld [vmem:[#allocation3 + $0x54] ss:$8 sps:$4 sm:$0xff]   ;;  %v18045_v59 = vld [vmem:[#allocation3 + $0x1c4] ss:$8 sps:$4 sm:$0xff]  }
 0x1ca   :  { %1875 = vst.msk [vmem:[#allocation3 + $0x1e8] sm:$0xf] %vm1813_vm7, %v1720_v12  ;;  %3699 = vmatprep.subr.bf16.mxu0 %v20741_v39  ;;  %v16485_v13 = vld [vmem:[%s20736_s3 + $0x50] sm:$0xff]  }
 0x1cb   :  { %1271 = vst.msk [vmem:[#allocation3 + $0x110] sm:$0xf] %vm1236_vm5, %v15595_v16 }
 0x1cc   :  { %v1722_v20 = vpop.permute.xlu0 %1721 }
 0x1cd   :  { %v1612_v19 = vpop.permute.xlu1 %1611  ;;  %3700 = vmatpush1.bf16.msra.mxu0 %v16461_v14  ;;  %v2410_v21 = vld [vmem:[#allocation3 + $0x28] sm:$0xff]  ;;  %1876 = vst.msk [vmem:[#allocation3 + $0x1f0] sm:$0xf] %vm1813_vm7, %v1722_v20  ;;  %v17964_v14 = vpack.c.bf16 %v911_v9, %v911_v9  ;;  %v18088_v9 = vld [vmem:[#allocation3 + $0x74] ss:$8 sps:$4 sm:$0xff]  }
 0x1ce   :  { %1821 = vst.msk [vmem:[#allocation3 + $0x38] sm:$0xf] %vm1813_vm7, %v1612_v19  ;;  %v17891_v24 = vcombine.low %v2409_v17, %v2410_v21  ;;  %3701 = vmatprep.subr.bf16.mxu0 %v20741_v39  ;;  %3121 = vmatmul.mubr.bf16.gmra.mxu1 %v14018_v23  ;;  %v2449_v19 = vld [vmem:[#allocation3 + $0x180] sm:$0xff]  ;;  %v2450_v20 = vld [vmem:[#allocation3 + $0x188] sm:$0xff] }
 0x1cf   :  { %14078 = vmatprep.mubr.msk.bf16.mxu1 %vm28_vm3, %v16464_v25  ;;  %v16491_v21 = vld [vmem:[%s20736_s3 + $0x48] sm:$0xff]   ;;  %1272 = vst.msk [vmem:[#allocation3 + $0x118] sm:$0xf] %vm1236_vm5, %v17964_v14  ;;  %v913_v25 = vld [vmem:[#allocation2 + $0x1b8] sm:$0xff] }
 0x1d0   :  { %2993 = vmatmul.mubr.bf16.gmra.mxu0 %v17891_v24  ;;  %v1614_v28 = vpop.permute.xlu0 %1613  ;;  %v2411_v32 = vld [vmem:[#allocation3 + $0x30] sm:$0xff] }
 0x1d1   :  { %v1724_v27 = vpop.permute.xlu1 %1723  ;;  %3702 = vmatpush1.bf16.msra.mxu0 %v16466_v18  ;;  %1822 = vst.msk [vmem:[#allocation3 + $0x40] sm:$0xf] %vm1813_vm7, %v1614_v28  ;;  %14062 = vmatprep.mubr.msk.bf16.mxu0 %vm28_vm3, %v17907_v37  ;;  %v1920_v18 = vld [vmem:[#allocation2 + $0x19a] sm:$0xff]  ;;  %v912_v28 = vld [vmem:[#allocation2 + $0x1b0] sm:$0xff] }
 0x1d2   :  { %1877 = vst.msk [vmem:[#allocation3 + $0x1f8] sm:$0xf] %vm1813_vm7, %v1724_v27  ;;  %3703 = vmatprep.subr.bf16.mxu0 %v20741_v39  ;;  %v15739_v23 = vpack.c.bf16 %v1920_v18, %v1920_v18  ;;  %v1923_v27 = vld [vmem:[#allocation2 + $0x1ba] sm:$0xff] }
 0x1d3   :  { %v18116_v18 = vld [vmem:[#allocation3 + $0x94] ss:$8 sps:$4 sm:$0xff]  }
 0x1d4   :  { %v1726_v35 = vpop.permute.xlu0 %1725  ;;  %2280 = vst.msk [vmem:[#allocation3 + $0x114] sm:$0xf] %vm1236_vm5, %v15739_v23 }
 0x1d5   :  { %v1616_v34 = vpop.permute.xlu1 %1615  ;;  %3704 = vmatpush1.bf16.msra.mxu0 %v16467_v29  ;;  %v2412_v36 = vld [vmem:[#allocation3 + $0x38] sm:$0xff]  ;;  %1878 = vst.msk [vmem:[#allocation3 + $0x200] sm:$0xf] %vm1813_vm7, %v1726_v35  ;;  %v17982_v35 = vcombine.low %v2449_v19, %v2450_v20 }
 0x1d6   :  { %1823 = vst.msk [vmem:[#allocation3 + $0x48] sm:$0xf] %vm1813_vm7, %v1616_v34  ;;  %v17911_v41 = vcombine.low %v2411_v32, %v2412_v36  ;;  %3705 = vmatprep.subr.bf16.mxu0 %v20741_v39  ;;  %3129 = vmatmul.mubr.bf16.gmra.mxu1 %v14020_v38  ;;  %v15598_v32 = vpack.c.bf16 %v913_v25, %v913_v25  ;;  %v1922_v38 = vld [vmem:[#allocation2 + $0x1b2] sm:$0xff] }
 0x1d7   :  { %14079 = vmatprep.mubr.msk.bf16.mxu1 %vm28_vm3, %v16470_v42  ;;  %v15597_v34 = vpack.c.bf16 %v912_v28, %v912_v28  ;;  %v17987_v42 = vld [vmem:[#allocation3 + $0x194] ss:$8 sps:$4 sm:$0xff]   ;;  %v18124_v25 = vld [vmem:[#allocation3 + $0x90] ss:$8 sps:$4 sm:$0xff]   ;;  %v18128_v28 = vld [vmem:[#allocation3 + $0xa4] ss:$8 sps:$4 sm:$0xff]  }
 0x1d8   :  { %3001 = vmatmul.mubr.bf16.gmra.mxu0 %v17911_v41  ;;  %v1618_v44 = vpop.permute.xlu0 %1617  ;;  %v2413_v26 = vld [vmem:[#allocation3 + $0x40] sm:$0xff]  ;;  %1274 = vst.msk [vmem:[#allocation3 + $0x128] sm:$0xf] %vm1236_vm5, %v15598_v32 }
 0x1d9   :  { %v1728_v43 = vpop.permute.xlu1 %1727  ;;  %3706 = vmatpush1.bf16.msra.mxu0 %v16472_v33  ;;  %1824 = vst.msk [vmem:[#allocation3 + $0x50] sm:$0xf] %vm1813_vm7, %v1618_v44  ;;  %14063 = vmatprep.mubr.msk.bf16.mxu0 %vm28_vm3, %v17927_v40  ;;  %v15742_v33 = vpack.c.bf16 %v1923_v27, %v1923_v27  ;;  %v16492_v44 = vld [vmem:[%s20736_s3 + $0x40] sm:$0xff]  }
 0x1da   :  { %1879 = vst.msk [vmem:[#allocation3 + $0x208] sm:$0xf] %vm1813_vm7, %v1728_v43  ;;  %3707 = vmatprep.subr.bf16.mxu0 %v20741_v39  ;;  %v15741_v43 = vpack.c.bf16 %v1922_v38, %v1922_v38 }
 0x1db   :  { %2283 = vst.msk [vmem:[#allocation3 + $0x12c] sm:$0xf] %vm1236_vm5, %v15742_v33  ;;  %1273 = vst.msk [vmem:[#allocation3 + $0x120] sm:$0xf] %vm1236_vm5, %v15597_v34  ;;  %v1379_v33 = vld [vmem:[#allocation2 + $0x349] sm:$0xff] }
 0x1dc   :  { %v1730_v50 = vpop.permute.xlu0 %1729  ;;  %2282 = vst.msk [vmem:[#allocation3 + $0x124] sm:$0xf] %vm1236_vm5, %v15741_v43 }
 0x1dd   :  { %v1620_v49 = vpop.permute.xlu1 %1619  ;;  %3708 = vmatpush1.bf16.msra.mxu0 %v16473_v45  ;;  %v2414_v51 = vld [vmem:[#allocation3 + $0x48] sm:$0xff]  ;;  %1880 = vst.msk [vmem:[#allocation3 + $0x210] sm:$0xf] %vm1813_vm7, %v1730_v50  ;;  %v18008_v50 = vld [vmem:[#allocation3 + $0x190] ss:$8 sps:$4 sm:$0xff]  }
 0x1de   :  { %1825 = vst.msk [vmem:[#allocation3 + $0x58] sm:$0xf] %vm1813_vm7, %v1620_v49  ;;  %v17931_v54 = vcombine.low %v2413_v26, %v2414_v51  ;;  %3709 = vmatprep.subr.bf16.mxu0 %v20741_v39  ;;  %3137 = vmatmul.mubr.bf16.gmra.mxu1 %v14022_v53 }
 0x1df   :  { %14080 = vmatprep.mubr.msk.bf16.mxu1 %vm28_vm3, %v16476_v55  ;;  %v18014_v55 = vld [vmem:[#allocation3 + $0x1a4] ss:$8 sps:$4 sm:$0xff]  }
 0x1e0   :  { %3009 = vmatmul.mubr.bf16.gmra.mxu0 %v17931_v54  ;;  %v1622_v57 = vpop.permute.xlu0 %1621  ;;  %v2415_v61 = vld [vmem:[#allocation3 + $0x50] sm:$0xff] }
 0x1e1   :  { %v1732_v56 = vpop.permute.xlu1 %1731  ;;  %3710 = vmatpush1.bf16.msra.mxu0 %v16478_v48  ;;  %1826 = vst.msk [vmem:[#allocation3 + $0x60] sm:$0xf] %vm1813_vm7, %v1622_v57  ;;  %14064 = vmatprep.mubr.msk.bf16.mxu0 %vm28_vm3, %v17947_v2  ;;  %v18032_v57 = vld [vmem:[#allocation3 + $0x1a0] ss:$8 sps:$4 sm:$0xff]  }
 0x1e2   :  { %1881 = vst.msk [vmem:[#allocation3 + $0x218] sm:$0xf] %vm1813_vm7, %v1732_v56  ;;  %3711 = vmatprep.subr.bf16.mxu0 %v20741_v39  ;;  %v18095_v10 = vld [vmem:[#allocation3 + $0x200] ss:$8 sps:$4 sm:$0xff]  }
 0x1e4   :  { %v1734_v0 = vpop.permute.xlu0 %1733 }
 0x1e5   :  { %v1624_v63 = vpop.permute.xlu1 %1623  ;;  %3712 = vmatpush1.bf16.msra.mxu0 %v16479_v58  ;;  %v2416_v1 = vld [vmem:[#allocation3 + $0x58] sm:$0xff]  ;;  %1882 = vst.msk [vmem:[#allocation3 + $0x220] sm:$0xf] %vm1813_vm7, %v1734_v0 }
 0x1e6   :  { %1827 = vst.msk [vmem:[#allocation3 + $0x68] sm:$0xf] %vm1813_vm7, %v1624_v63  ;;  %v17951_v4 = vcombine.low %v2415_v61, %v2416_v1  ;;  %3721 = vmatprep.subr.bf16.mxu0 %v20741_v39  ;;  %3145 = vmatmul.mubr.bf16.gmra.mxu1 %v14024_v3  ;;  %v18035_v58 = vld [vmem:[#allocation3 + $0x1b4] ss:$8 sps:$4 sm:$0xff]   ;;  %v18063_v61 = vld [vmem:[#allocation3 + $0x1d0] ss:$8 sps:$4 sm:$0xff]  }
 0x1e7   :  { %14081 = vmatprep.mubr.msk.bf16.mxu1 %vm28_vm3, %v17956_v6  ;;  %v18073_v63 = vld [vmem:[#allocation3 + $0x1e0] ss:$8 sps:$4 sm:$0xff]   ;;  %v18075_v0 = vld [vmem:[#allocation3 + $0x1f4] ss:$8 sps:$4 sm:$0xff]   ;;  %v18083_v1 = vld [vmem:[#allocation3 + $0x1f0] ss:$8 sps:$4 sm:$0xff]  }
 0x1e8   :  { %3017 = vmatmul.mubr.bf16.gmra.mxu0 %v17951_v4  ;;  %v1598_v17 = vpop.permute.xlu0 %1597  ;;  %v18085_v3 = vld [vmem:[#allocation3 + $0x204] ss:$8 sps:$4 sm:$0xff]  }
 0x1e9   :  { %v1736_v12 = vpop.permute.xlu1 %1735  ;;  %3722 = vmatpush2.bf16.msra.mxu0 %v16484_v62  ;;  %1814 = vst.msk [vmem:[#allocation3] sm:$0xf] %vm1813_vm7, %v1598_v17  ;;  %14065 = vmatprep.mubr.msk.bf16.mxu0 %vm28_vm3, %v17976_v30  ;;  %v18065_v62 = vld [vmem:[#allocation3 + $0x1e4] ss:$8 sps:$4 sm:$0xff]  }
 0x1ea   :  { %1883 = vst.msk [vmem:[#allocation3 + $0x228] sm:$0xf] %vm1813_vm7, %v1736_v12  ;;  %3723 = vmatprep.subr.bf16.mxu0 %v20741_v39  ;;  %v18099_v12 = vld [vmem:[#allocation3 + $0x214] ss:$8 sps:$4 sm:$0xff]  }
 0x1ec   :  { %v1666_v36 = vpop.permute.xlu0 %1665 }
 0x1ed   :  { %v1600_v29 = vpop.permute.xlu1 %1599  ;;  %3724 = vmatpush2.bf16.msra.mxu0 %v16485_v13  ;;  %v17978_v31 = vld [vmem:[#allocation3 + $0x60] ss:$8 sps:$4 sm:$0xff]   ;;  %1848 = vst.msk [vmem:[#allocation3 + $0x110] sm:$0xf] %vm1813_vm7, %v1666_v36  ;;  %v18102_v13 = vld [vmem:[#allocation3 + $0x84] ss:$8 sps:$4 sm:$0xff]   ;;  %v15703_v36 = vpack.c.bf16 %v1379_v33, %v1379_v33 }
 0x1ee   :  { %1815 = vst.msk [vmem:[#allocation3 + $0x8] sm:$0xf] %vm1813_vm7, %v1600_v29  ;;  %3725 = vmatprep.subr.bf16.mxu0 %v20741_v39  ;;  %3153 = vmatmul.mubr.bf16.gmra.mxu1 %v17982_v35 }
 0x1ef   :  { %14082 = vmatprep.mubr.msk.bf16.mxu1 %vm28_vm3, %v17987_v42  ;;  %1737 = vrot.lane.b32.xlu0 %v15703_v36, %s17010_s19 }
 0x1f0   :  { %3025 = vmatmul.mubr.bf16.gmra.mxu0 %v17978_v31  ;;  %v2318_v46 = vld [vmem:[#allocation3] sm:$0xff]  ;;  %v1670_v47 = vpop.permute.xlu0 %1669 }
 0x1f1   :  { %3726 = vmatpush2.bf16.msra.mxu0 %v16491_v21  ;;  %v1668_v45 = vpop.permute.xlu1 %1667  ;;  %5442 = vst.msk [vmem:[#allocation3] sm:$0xf] %vm1236_vm5, %v17744_v7  ;;  %v16538_v23 = vld [vmem:[#allocation3 + $0x220] ss:$8 sps:$4 sm:$0xff]  }
 0x1f2   :  { %3727 = vmatprep.subr.bf16.mxu0 %v20741_v39  ;;  %1849 = vst.msk [vmem:[#allocation3 + $0x118] sm:$0xf] %vm1813_vm7, %v1668_v45  ;;  %1850 = vst.msk [vmem:[#allocation3 + $0x120] sm:$0xf] %vm1813_vm7, %v1670_v47 }
 0x1f4   :  { %v18010_v53 = vld [vmem:[#allocation3 + $0x110] sm:$0xff] }
 0x1f5   :  { %v2319_v26 = vld [vmem:[#allocation3 + $0x8] sm:$0xff]  ;;  %3728 = vmatpush2.bf16.msra.mxu0 %v16492_v44  ;;  %v1672_v48 = vpop.permute.xlu1 %1671  ;;  %5476 = vst.msk [vmem:[#allocation3 + $0x110] sm:$0xf] %vm1236_vm5, %v15595_v16 }
 0x1f6   :  { %5443 = vst.msk [vmem:[#allocation3 + $0x8] sm:$0xf] %vm1236_vm5, %v17742_v5  ;;  %v14093_v49 = vcombine.high %v2318_v46, %v2319_v26  ;;  %v14092_v51 = vcombine.low %v2318_v46, %v2319_v26  ;;  %7156 = vmatprep.subr.bf16.mxu0 %v20741_v39  ;;  %3161 = vmatmul.mubr.bf16.gmra.mxu1 %v18008_v50  ;;  %v16532_v16 = vld [vmem:[#allocation3 + $0x224] ss:$8 sps:$4 sm:$0xff]   ;;  %v18139_v44 = vld [vmem:[#allocation3 + $0xa0] ss:$8 sps:$4 sm:$0xff]  }
 0x1f7   :  { %1851 = vst.msk [vmem:[#allocation3 + $0x128] sm:$0xf] %vm1813_vm7, %v1672_v48  ;;  %14083 = vmatprep.mubr.msk.bf16.mxu1 %vm28_vm3, %v18014_v55  ;;  %v18153_v48 = vld [vmem:[#allocation3 + $0xb0] ss:$8 sps:$4 sm:$0xff]  }
 0x1f8   :  { %14168 = vmatprep.mubr.msk.bf16.mxu0 %vm28_vm3, %v14093_v49 }
 0x1f9   :  { %3730 = vmatmul.mubr.bf16.vlgmr.msra.gmra.mxu0 %v14092_v51  ;;  %v18021_v5 = vld [vmem:[#allocation3 + $0x118] sm:$0xff]  ;;  %v18027_v7 = vld [vmem:[#allocation3 + $0x120] sm:$0xff] }
 0x1fa   :  { %14169 = vmatprep.mubr.msk.bf16.mxu0 %vm28_vm3, %v17863_v8  ;;  %5477 = vst.msk [vmem:[#allocation3 + $0x118] sm:$0xf] %vm1236_vm5, %v17964_v14  ;;  %5478 = vst.msk [vmem:[#allocation3 + $0x120] sm:$0xf] %vm1236_vm5, %v15597_v34  ;;  %v18043_v8 = vld [vmem:[#allocation3 + $0x1b0] ss:$8 sps:$4 sm:$0xff]  }
 0x1fb   :  { %v18109_v14 = vld [vmem:[#allocation3 + $0x210] ss:$8 sps:$4 sm:$0xff]  }
 0x1fe   :  { %v18030_v56 = vld [vmem:[#allocation3 + $0x128] sm:$0xff]  ;;  %3169 = vmatmul.mubr.bf16.gmra.mxu1 %v18032_v57 }
 0x1ff   :  { %5479 = vst.msk [vmem:[#allocation3 + $0x128] sm:$0xf] %vm1236_vm5, %v15598_v32  ;;  %14084 = vmatprep.mubr.msk.bf16.mxu1 %vm28_vm3, %v18035_v58  ;;  %v1380_v32 = vld [vmem:[#allocation2 + $0x351] sm:$0xff] }
 0x200   :  { %v15704_v34 = vpack.c.bf16 %v1380_v32, %v1380_v32  ;;  %v18181_v32 = vld [vmem:[#allocation3 + $0xd0] ss:$8 sps:$4 sm:$0xff]  }
 0x201   :  { %3738 = vmatmul.mubr.bf16.gmra.mxu0 %v17867_v52  ;;  %v18053_v52 = vld [vmem:[#allocation3 + $0x1c0] ss:$8 sps:$4 sm:$0xff]  }
 0x202   :  { %14170 = vmatprep.mubr.msk.bf16.mxu0 %vm28_vm3, %v17887_v22  ;;  %1739 = vrot.lane.b32.xlu1 %v15704_v34, %s17010_s19  ;;  %v2347_v34 = vld [vmem:[#allocation3 + $0xe8] sm:$0xff] }
 0x206   :  { %3177 = vmatmul.mubr.bf16.gmra.mxu1 %v18043_v8 }
 0x207   :  { %14085 = vmatprep.mubr.msk.bf16.mxu1 %vm28_vm3, %v18045_v59 }
 0x209   :  { %3746 = vmatmul.mubr.bf16.gmra.mxu0 %v17891_v24 }
 0x20a   :  { %14171 = vmatprep.mubr.msk.bf16.mxu0 %vm28_vm3, %v17907_v37 }
 0x20e   :  { %3185 = vmatmul.mubr.bf16.gmra.mxu1 %v18053_v52 }
 0x20f   :  { %14086 = vmatprep.mubr.msk.bf16.mxu1 %vm28_vm3, %v18055_v60 }
 0x211   :  { %3754 = vmatmul.mubr.bf16.gmra.mxu0 %v17911_v41 }
 0x212   :  { %14172 = vmatprep.mubr.msk.bf16.mxu0 %vm28_vm3, %v17927_v40 }
 0x216   :  { %3193 = vmatmul.mubr.bf16.gmra.mxu1 %v18063_v61 }
 0x217   :  { %14087 = vmatprep.mubr.msk.bf16.mxu1 %vm28_vm3, %v18065_v62 }
 0x219   :  { %3762 = vmatmul.mubr.bf16.gmra.mxu0 %v17931_v54 }
 0x21a   :  { %14173 = vmatprep.mubr.msk.bf16.mxu0 %vm28_vm3, %v17947_v2 }
 0x21e   :  { %3201 = vmatmul.mubr.bf16.gmra.mxu1 %v18073_v63 }
 0x21f   :  { %14088 = vmatprep.mubr.msk.bf16.mxu1 %vm28_vm3, %v18075_v0 }
 0x221   :  { %3770 = vmatmul.mubr.bf16.gmra.mxu0 %v17951_v4 }
 0x222   :  { %14174 = vmatprep.mubr.msk.bf16.mxu0 %vm28_vm3, %v17976_v30 }
 0x226   :  { %3209 = vmatmul.mubr.bf16.gmra.mxu1 %v18083_v1 }
 0x227   :  { %14089 = vmatprep.mubr.msk.bf16.mxu1 %vm28_vm3, %v18085_v3 }
 0x229   :  { %3778 = vmatmul.mubr.bf16.gmra.mxu0 %v17978_v31 }
 0x22a   :  { %14175 = vmatprep.mubr.msk.bf16.mxu0 %vm28_vm3, %v18088_v9 }
 0x22e   :  { %3217 = vmatmul.mubr.bf16.gmra.mxu1 %v18095_v10 }
 0x22f   :  { %14090 = vmatprep.mubr.msk.bf16.mxu1 %vm28_vm3, %v18099_v12 }
 0x231   :  { %3786 = vmatmul.mubr.bf16.gmra.mxu0 %v18097_v11 }
 0x232   :  { %14176 = vmatprep.mubr.msk.bf16.mxu0 %vm28_vm3, %v18102_v13 }
 0x236   :  { %v18113_v17 = vpop.f32.mrf.mxu1  ;;  %3225 = vmatmul.mubr.bf16.gmra.mxu1 %v18109_v14 }
 0x237   :  { %14091 = vmatprep.mubr.msk.bf16.mxu1 %vm28_vm3, %v16532_v16 }
 0x238   :  { %v3036_v19 = vpop.f32.mrf.mxu1 }
 0x239   :  { %3794 = vmatmul.mubr.bf16.gmra.mxu0 %v18111_v15  ;;  %v18167_v19 = vld [vmem:[#allocation3 + $0xc0] ss:$8 sps:$4 sm:$0xff]  }
 0x23a   :  { %14177 = vmatprep.mubr.msk.bf16.mxu0 %vm28_vm3, %v18116_v18  ;;  %v18122_v20 = vpop.f32.mrf.mxu1 }
 0x23c   :  { %v3039_v21 = vpop.f32.mrf.mxu1 }
 0x23e   :  { %v18126_v27 = vpop.f32.mrf.mxu1  ;;  %3233 = vmatmul.mubr.bf16.gmra.mxu1 %v16538_v23 }
 0x23f   :  { %14300 = vmatprep.mubr.msk.bf16.mxu1 %vm28_vm3, %v17887_v22  ;;  %v18144_v22 = vld [vmem:[#allocation3 + $0xb4] ss:$8 sps:$4 sm:$0xff]  }
 0x240   :  { %v3044_v29 = vpop.f32.mrf.mxu1 }
 0x241   :  { %3802 = vmatmul.mubr.bf16.gmra.mxu0 %v18124_v25 }
 0x242   :  { %14178 = vmatprep.mubr.msk.bf16.mxu0 %vm28_vm3, %v18128_v28  ;;  %v18135_v38 = vpop.f32.mrf.mxu1 }
 0x244   :  { %v3047_v43 = vpop.f32.mrf.mxu1 }
 0x245   :  { %v2346_v43 = vld [vmem:[#allocation3 + $0xe0] sm:$0xff] }
 0x246   :  { %v18141_v45 = vpop.f32.mrf.mxu1  ;;  %4565 = vmatmul.mubr.bf16.vlgmr.msra.gmra.mxu1 %v17891_v24  ;;  %v18158_v24 = vld [vmem:[#allocation3 + $0xc4] ss:$8 sps:$4 sm:$0xff]  }
 0x247   :  { %14301 = vmatprep.mubr.msk.bf16.mxu1 %vm28_vm3, %v17907_v37 }
 0x248   :  { %v3052_v46 = vpop.f32.mrf.mxu1 }
 0x249   :  { %3810 = vmatmul.mubr.bf16.gmra.mxu0 %v18139_v44 }
 0x24a   :  { %14179 = vmatprep.mubr.msk.bf16.mxu0 %vm28_vm3, %v18144_v22  ;;  %v18151_v47 = vpop.f32.mrf.mxu1 }
 0x24c   :  { %v3055_v26 = vpop.f32.mrf.mxu1 }
 0x24d   :  { %v18195_v26 = vcombine.low %v2346_v43, %v2347_v34  ;;  %v14125_v34 = vcombine.high %v18027_v7, %v18030_v56 }
 0x24e   :  { %v18155_v49 = vpop.f32.mrf.mxu1  ;;  %4573 = vmatmul.mubr.bf16.gmra.mxu1 %v17911_v41  ;;  %v18172_v41 = vld [vmem:[#allocation3 + $0xd4] ss:$8 sps:$4 sm:$0xff]  }
 0x24f   :  { %14302 = vmatprep.mubr.msk.bf16.mxu1 %vm28_vm3, %v17927_v40 }
 0x250   :  { %v3060_v37 = vpop.f32.mrf.mxu1 }
 0x251   :  { %3818 = vmatmul.mubr.bf16.gmra.mxu0 %v18153_v48 }
 0x252   :  { %14180 = vmatprep.mubr.msk.bf16.mxu0 %vm28_vm3, %v18158_v24  ;;  %v18165_v51 = vpop.f32.mrf.mxu1 }
 0x254   :  { %v3063_v16 = vpop.f32.mrf.mxu1 }
 0x255   :  { %v2349_v16 = vld [vmem:[#allocation3 + $0xf8] sm:$0xff] }
 0x256   :  { %v18169_v21 = vpop.f32.mrf.mxu1  ;;  %4581 = vmatmul.mubr.bf16.gmra.mxu1 %v17931_v54  ;;  %v18186_v54 = vld [vmem:[#allocation3 + $0xe4] ss:$8 sps:$4 sm:$0xff]  }
 0x257   :  { %14303 = vmatprep.mubr.msk.bf16.mxu1 %vm28_vm3, %v17947_v2 }
 0x258   :  { %v3068_v40 = vpop.f32.mrf.mxu1 }
 0x259   :  { %3826 = vmatmul.mubr.bf16.gmra.mxu0 %v18167_v19 }
 0x25a   :  { %14181 = vmatprep.mubr.msk.bf16.mxu0 %vm28_vm3, %v18172_v41  ;;  %v18179_v23 = vpop.f32.mrf.mxu1 }
 0x25c   :  { %v3071_v29 = vpop.f32.mrf.mxu1 }
 0x25d   :  { %v2348_v29 = vld [vmem:[#allocation3 + $0xf0] sm:$0xff] }
 0x25e   :  { %v18183_v33 = vpop.f32.mrf.mxu1  ;;  %4589 = vmatmul.mubr.bf16.gmra.mxu1 %v17951_v4  ;;  %v18200_v4 = vld [vmem:[#allocation3 + $0xf4] ss:$8 sps:$4 sm:$0xff]  }
 0x25f   :  { %14304 = vmatprep.mubr.msk.bf16.mxu1 %vm28_vm3, %v17976_v30 }
 0x260   :  { %v3076_v2 = vpop.f32.mrf.mxu1 }
 0x261   :  { %3834 = vmatmul.mubr.bf16.gmra.mxu0 %v18181_v32 }
 0x262   :  { %14182 = vmatprep.mubr.msk.bf16.mxu0 %vm28_vm3, %v18186_v54  ;;  %v18193_v36 = vpop.f32.mrf.mxu1 }
 0x263   :  { %20743 = vst [vmem:[#allocation5_spill] sm:$0xff] %v18193_v36 }
 0x264   :  { %v3079_v46 = vpop.f32.mrf.mxu1 }
 0x266   :  { %v18197_v37 = vpop.f32.mrf.mxu1  ;;  %4597 = vmatmul.mubr.bf16.gmra.mxu1 %v17978_v31  ;;  %v18211_v31 = vcombine.low %v2348_v29, %v2349_v16  ;;  %v16558_v29 = vld [vmem:[#allocation3 + $0x134] ss:$8 sps:$4 sm:$0xff]  }
 0x267   :  { %20744 = vst [vmem:[#allocation6_spill] sm:$0xff] %v18197_v37  ;;  %14305 = vmatprep.mubr.msk.bf16.mxu1 %vm28_vm3, %v18088_v9  ;;  %v1956_v37 = vld [vmem:[#allocation2 + $0x34a] sm:$0xff] }
 0x268   :  { %v3084_v30 = vpop.f32.mrf.mxu1 }
 0x269   :  { %3842 = vmatmul.mubr.bf16.gmra.mxu0 %v18195_v26  ;;  %v14124_v30 = vcombine.low %v18027_v7, %v18030_v56  ;;  %v18235_v7 = vld [vmem:[#allocation3 + $0x144] ss:$8 sps:$4 sm:$0xff]  }
 0x26a   :  { %14183 = vmatprep.mubr.msk.bf16.mxu0 %vm28_vm3, %v18200_v4  ;;  %v18207_v40 = vpop.f32.mrf.mxu1 }
 0x26b   :  { %20745 = vst [vmem:[#allocation7_spill] sm:$0xff] %v18207_v40  ;;  %v1957_v40 = vld [vmem:[#allocation2 + $0x352] sm:$0xff] }
 0x26c   :  { %v3087_v2 = vpop.f32.mrf.mxu1  ;;  %v15776_v36 = vpack.c.bf16 %v1957_v40, %v1957_v40 }
 0x26e   :  { %v18213_v43 = vpop.f32.mrf.mxu1  ;;  %4605 = vmatmul.mubr.bf16.gmra.mxu1 %v18097_v11  ;;  %2317 = vst.msk [vmem:[#allocation3 + $0x23c] sm:$0xf] %vm1236_vm5, %v15776_v36  ;;  %v14254_v36 = vcombine.low %v18010_v53, %v18021_v5 }
 0x26f   :  { %20746 = vst [vmem:[#allocation8_spill] sm:$0xff] %v18213_v43  ;;  %14306 = vmatprep.mubr.msk.bf16.mxu1 %vm28_vm3, %v18102_v13 }
 0x270   :  { %v3092_v9 = vpop.f32.mrf.mxu1 }
 0x271   :  { %3850 = vmatmul.mubr.bf16.gmra.mxu0 %v18211_v31  ;;  %v16560_v9 = vld [vmem:[#allocation3 + $0x130] ss:$8 sps:$4 sm:$0xff]  }
 0x272   :  { %14184 = vmatprep.mubr.msk.bf16.mxu0 %vm28_vm3, %v14125_v34  ;;  %v18220_v46 = vpop.f32.mrf.mxu1 }
 0x273   :  { %20747 = vst [vmem:[#allocation9_spill] sm:$0xff] %v18220_v46 }
 0x274   :  { %v3095_v2 = vpop.f32.mrf.mxu1 }
 0x276   :  { %v18224_v16 = vpop.f32.mrf.mxu1  ;;  %4613 = vmatmul.mubr.bf16.gmra.mxu1 %v18111_v15 }
 0x277   :  { %20748 = vst [vmem:[#allocation10_spill] sm:$0xff] %v18224_v16  ;;  %14307 = vmatprep.mubr.msk.bf16.mxu1 %vm28_vm3, %v18116_v18  ;;  %v18297_v16 = vld [vmem:[#allocation3 + $0x170] ss:$8 sps:$4 sm:$0xff]  }
 0x278   :  { %v3100_v11 = vpop.f32.mrf.mxu1 }
 0x279   :  { %3858 = vmatmul.mubr.bf16.gmra.mxu0 %v14124_v30  ;;  %v18243_v30 = vld [vmem:[#allocation3 + $0x140] ss:$8 sps:$4 sm:$0xff]  }
 0x27a   :  { %14185 = vmatprep.mubr.msk.bf16.mxu0 %vm28_vm3, %v16558_v29  ;;  %v18230_v13 = vpop.f32.mrf.mxu1 }
 0x27b   :  { %20749 = vst [vmem:[#allocation11_spill] sm:$0xff] %v18230_v13 }
 0x27c   :  { %v3103_v34 = vpop.f32.mrf.mxu1 }
 0x27e   :  { %v18232_v39 = vpop.f32.mrf.mxu1  ;;  %4621 = vmatmul.mubr.bf16.gmra.mxu1 %v18124_v25  ;;  %v18250_v25 = vld [vmem:[#allocation3 + $0x154] ss:$8 sps:$4 sm:$0xff]  }
 0x27f   :  { %20750 = vst [vmem:[#allocation12_spill] sm:$0xff] %v18232_v39  ;;  %14308 = vmatprep.mubr.msk.bf16.mxu1 %vm28_vm3, %v18128_v28  ;;  %v18279_v39 = vld [vmem:[#allocation3 + $0x160] ss:$8 sps:$4 sm:$0xff]  }
 0x280   :  { %v3108_v56 = vpop.f32.mrf.mxu1 }
 0x281   :  { %3866 = vmatmul.mubr.bf16.gmra.mxu0 %v16560_v9 }
 0x282   :  { %14186 = vmatprep.mubr.msk.bf16.mxu0 %vm28_vm3, %v18235_v7  ;;  %v18241_v15 = vpop.f32.mrf.mxu1 }
 0x283   :  { %20751 = vst [vmem:[#allocation13_spill] sm:$0xff] %v18241_v15 }
 0x284   :  { %v3111_v18 = vpop.f32.mrf.mxu1 }
 0x286   :  { %v18247_v29 = vpop.f32.mrf.mxu1  ;;  %4629 = vmatmul.mubr.bf16.gmra.mxu1 %v18139_v44 }
 0x287   :  { %20752 = vst [vmem:[#allocation14_spill] sm:$0xff] %v18247_v29  ;;  %14309 = vmatprep.mubr.msk.bf16.mxu1 %vm28_vm3, %v18144_v22  ;;  %v18261_v29 = vld [vmem:[#allocation3 + $0x150] ss:$8 sps:$4 sm:$0xff]   ;;  %v18268_v22 = vld [vmem:[#allocation3 + $0x164] ss:$8 sps:$4 sm:$0xff]  }
 0x288   :  { %v18245_v2 = vpop.f32.mrf.mxu0  ;;  %v3116_v11 = vpop.f32.mrf.mxu1 }
 0x289   :  { %3874 = vmatmul.mubr.bf16.gmra.mxu0 %v18243_v30 }
 0x28a   :  { %14187 = vmatprep.mubr.msk.bf16.mxu0 %vm28_vm3, %v18250_v25  ;;  %v2988_v28 = vpop.f32.mrf.mxu0  ;;  %v18259_v9 = vpop.f32.mrf.mxu1 }
 0x28b   :  { %20753 = vst [vmem:[#allocation15_spill] sm:$0xff] %v18259_v9 }
 0x28c   :  { %v18257_v34 = vpop.f32.mrf.mxu0  ;;  %v3119_v18 = vpop.f32.mrf.mxu1 }
 0x28e   :  { %v2991_v56 = vpop.f32.mrf.mxu0  ;;  %v18265_v15 = vpop.f32.mrf.mxu1  ;;  %4637 = vmatmul.mubr.bf16.gmra.mxu1 %v18153_v48 }
 0x28f   :  { %20754 = vst [vmem:[#allocation16_spill] sm:$0xff] %v18265_v15  ;;  %14310 = vmatprep.mubr.msk.bf16.mxu1 %vm28_vm3, %v18158_v24  ;;  %v18286_v24 = vld [vmem:[#allocation3 + $0x174] ss:$8 sps:$4 sm:$0xff]  }
 0x290   :  { %v18263_v44 = vpop.f32.mrf.mxu0  ;;  %v3124_v11 = vpop.f32.mrf.mxu1 }
 0x291   :  { %3882 = vmatmul.mubr.bf16.gmra.mxu0 %v18261_v29 }
 0x292   :  { %14188 = vmatprep.mubr.msk.bf16.mxu0 %vm28_vm3, %v18268_v22  ;;  %v2996_v28 = vpop.f32.mrf.mxu0  ;;  %v18277_v18 = vpop.f32.mrf.mxu1 }
 0x293   :  { %20755 = vst [vmem:[#allocation17_spill] sm:$0xff] %v18277_v18 }
 0x294   :  { %v18275_v56 = vpop.f32.mrf.mxu0  ;;  %v3127_v15 = vpop.f32.mrf.mxu1 }
 0x296   :  { %v2999_v9 = vpop.f32.mrf.mxu0  ;;  %v18283_v13 = vpop.f32.mrf.mxu1  ;;  %4645 = vmatmul.mubr.bf16.gmra.mxu1 %v18167_v19 }
 0x297   :  { %20756 = vst [vmem:[#allocation18_spill] sm:$0xff] %v18283_v13  ;;  %14311 = vmatprep.mubr.msk.bf16.mxu1 %vm28_vm3, %v18172_v41 }
 0x298   :  { %v18281_v48 = vpop.f32.mrf.mxu0  ;;  %v3132_v15 = vpop.f32.mrf.mxu1 }
 0x299   :  { %3890 = vmatmul.mubr.bf16.gmra.mxu0 %v18279_v39  ;;  %v16596_v15 = vld [vmem:[%s20736_s3 + $0x1b8] sm:$0xff]  }
 0x29a   :  { %14189 = vmatprep.mubr.msk.bf16.mxu0 %vm28_vm3, %v18286_v24  ;;  %v3004_v9 = vpop.f32.mrf.mxu0  ;;  %v18295_v11 = vpop.f32.mrf.mxu1  ;;  %7157 = vmatpush1.bf16.msra.mxu0 %v16596_v15 }
 0x29b   :  { %20757 = vst [vmem:[#allocation19_spill] sm:$0xff] %v18295_v11 }
 0x29c   :  { %v18293_v28 = vpop.f32.mrf.mxu0  ;;  %v3135_v13 = vpop.f32.mrf.mxu1 }
 0x29e   :  { %v3007_v18 = vpop.f32.mrf.mxu0  ;;  %v18301_v46 = vpop.f32.mrf.mxu1  ;;  %4653 = vmatmul.mubr.bf16.gmra.mxu1 %v18181_v32 }
 0x29f   :  { %20758 = vst [vmem:[#allocation20_spill] sm:$0xff] %v18301_v46  ;;  %14312 = vmatprep.mubr.msk.bf16.mxu1 %vm28_vm3, %v18186_v54 }
 0x2a0   :  { %v18299_v19 = vpop.f32.mrf.mxu0  ;;  %v3140_v9 = vpop.f32.mrf.mxu1 }
 0x2a1   :  { %3898 = vmatmul.mubr.bf16.gmra.mxu0 %v18297_v16 }
 0x2a2   :  { %14190 = vmatprep.mubr.msk.bf16.mxu0 %vm28_vm3, %v17956_v6  ;;  %v3012_v41 = vpop.f32.mrf.mxu0  ;;  %v18311_v13 = vpop.f32.mrf.mxu1  ;;  %v20761_v6 = vmov 0  }
 0x2a3   :  { %20759 = vst [vmem:[#allocation21_spill] sm:$0xff] %v18311_v13  ;;  %7158 = vmatprep.subr.bf16.mxu0 %v20761_v6 }
 0x2a4   :  { %v18309_v18 = vpop.f32.mrf.mxu0  ;;  %v3143_v32 = vpop.f32.mrf.mxu1 }
 0x2a6   :  { %v3015_v46 = vpop.f32.mrf.mxu0  ;;  %v18318_v43 = vpop.f32.mrf.mxu1  ;;  %4661 = vmatmul.mubr.bf16.gmra.mxu1 %v18195_v26 }
 0x2a7   :  { %20760 = vst [vmem:[#allocation22_spill] sm:$0xff] %v18318_v43  ;;  %14313 = vmatprep.mubr.msk.bf16.mxu1 %vm28_vm3, %v18200_v4  ;;  %v16573_v43 = vld [vmem:[#allocation3 + $0x104] ss:$8 sps:$4 sm:$0xff]  }
 0x2a8   :  { %v18316_v11 = vpop.f32.mrf.mxu0  ;;  %v3148_v46 = vpop.f32.mrf.mxu1 }
 0x2a9   :  { %3906 = vmatmul.mubr.bf16.gmra.mxu0 %v17982_v35  ;;  %v14255_v46 = vcombine.high %v18010_v53, %v18021_v5 }
 0x2aa   :  { %14191 = vmatprep.mubr.msk.bf16.mxu0 %vm28_vm3, %v17987_v42  ;;  %v3020_v54 = vpop.f32.mrf.mxu0  ;;  %v18329_v9 = vpop.f32.mrf.mxu1 }
 0x2ab   :  { %20762 = vst [vmem:[#allocation23_spill] sm:$0xff] %v18329_v9  ;;  %v16575_v9 = vld [vmem:[#allocation3 + $0x100] ss:$8 sps:$4 sm:$0xff]  }
 0x2ac   :  { %v18327_v41 = vpop.f32.mrf.mxu0  ;;  %v3151_v32 = vpop.f32.mrf.mxu1 }
 0x2ad   :  { %v946_v32 = vld [vmem:[#allocation2 + $0x348] sm:$0xff] }
 0x2ae   :  { %v3023_v15 = vpop.f32.mrf.mxu0  ;;  %v18333_v13 = vpop.f32.mrf.mxu1  ;;  %4669 = vmatmul.mubr.bf16.gmra.mxu1 %v18211_v31 }
 0x2af   :  { %20763 = vst [vmem:[#allocation24_spill] sm:$0xff] %v18333_v13  ;;  %14314 = vmatprep.mubr.msk.bf16.mxu1 %vm28_vm3, %v16573_v43  ;;  %v947_v15 = vld [vmem:[#allocation2 + $0x350] sm:$0xff]  ;;  %v15631_v43 = vpack.c.bf16 %v946_v32, %v946_v32 }
 0x2b0   :  { %v18331_v26 = vpop.f32.mrf.mxu0  ;;  %v3156_v42 = vpop.f32.mrf.mxu1 }
 0x2b1   :  { %3914 = vmatmul.mubr.bf16.gmra.mxu0 %v18008_v50  ;;  %v15632_v50 = vpack.c.bf16 %v947_v15, %v947_v15  ;;  %v1740_v42 = vpop.permute.xlu1 %1739  ;;  %1307 = vst.msk [vmem:[#allocation3 + $0x230] sm:$0xf] %vm1236_vm5, %v15631_v43  ;;  %v16603_v15 = vld [vmem:[%s20736_s3 + $0x1b0] sm:$0xff]  }
 0x2b2   :  { %14192 = vmatprep.mubr.msk.bf16.mxu0 %vm28_vm3, %v18014_v55  ;;  %v3028_v35 = vpop.f32.mrf.mxu0  ;;  %v18342_v54 = vpop.f32.mrf.mxu1  ;;  %v15775_v55 = vpack.c.bf16 %v1956_v37, %v1956_v37  ;;  %7159 = vmatpush1.bf16.msra.mxu0 %v16603_v15 }
 0x2b3   :  { %20764 = vst [vmem:[#allocation25_spill] sm:$0xff] %v18342_v54  ;;  %1308 = vst.msk [vmem:[#allocation3 + $0x238] sm:$0xf] %vm1236_vm5, %v15632_v50  ;;  %v1738_v37 = vpop.permute.xlu0 %1737  ;;  %7160 = vmatprep.subr.bf16.mxu0 %v20761_v6 }
 0x2b4   :  { %v18340_v4 = vpop.f32.mrf.mxu0  ;;  %v3159_v31 = vpop.f32.mrf.mxu1  ;;  %1885 = vst.msk [vmem:[#allocation3 + $0x238] sm:$0xf] %vm1813_vm7, %v1740_v42  ;;  %1884 = vst.msk [vmem:[#allocation3 + $0x230] sm:$0xf] %vm1813_vm7, %v1738_v37 }
 0x2b5   :  { %2316 = vst.msk [vmem:[#allocation3 + $0x234] sm:$0xf] %vm1236_vm5, %v15775_v55 }
 0x2b6   :  { %v3031_v13 = vpop.f32.mrf.mxu0  ;;  %v18346_v35 = vpop.f32.mrf.mxu1  ;;  %4677 = vmatmul.mubr.bf16.gmra.mxu1 %v16575_v9 }
 0x2b7   :  { %14315 = vmatprep.mubr.msk.bf16.mxu1 %vm28_vm3, %v14255_v46 }
 0x2b8   :  { %v3164_v13 = vpop.f32.mrf.mxu1 }
 0x2b9   :  { %v3731_v54 = vpop.f32.mrf.mxu0  ;;  %3922 = vmatmul.mubr.bf16.gmra.mxu0 %v18032_v57 }
 0x2ba   :  { %v18356_v40 = vadd.f32 %v3731_v54, %v18245_v2  ;;  %14193 = vmatprep.mubr.msk.bf16.mxu0 %vm28_vm3, %v18035_v58  ;;  %v18361_v57 = vpop.f32.mrf.mxu1 }
 0x2bb   :  { %v3733_v9 = vpop.f32.mrf.mxu0  ;;  %v18373_v31 = vld [vmem:[#allocation3 + $0x238] sm:$0xff] }
 0x2bc   :  { %v3167_v54 = vpop.f32.mrf.mxu1  ;;  %5513 = vst.msk [vmem:[#allocation3 + $0x238] sm:$0xf] %vm1236_vm5, %v15632_v50  ;;  %v18380_v53 = vld [vmem:[#allocation3 + $0x230] sm:$0xff] }
 0x2bd   :  { %v3734_v46 = vpop.f32.mrf.mxu0  ;;  %5512 = vst.msk [vmem:[#allocation3 + $0x230] sm:$0xf] %vm1236_vm5, %v15631_v43 }
 0x2be   :  { %v18369_v2 = vadd.f32 %v3734_v46, %v18257_v34  ;;  %v18371_v58 = vpop.f32.mrf.mxu1  ;;  %4685 = vmatmul.mubr.bf16.gmra.mxu1 %v14254_v36 }
 0x2bf   :  { %v3736_v32 = vpop.f32.mrf.mxu0  ;;  %14316 = vmatprep.mubr.msk.bf16.mxu1 %vm28_vm3, %v18235_v7 }
 0x2c0   :  { %v3172_v34 = vpop.f32.mrf.mxu1 }
 0x2c1   :  { %v3739_v55 = vpop.f32.mrf.mxu0  ;;  %3930 = vmatmul.mubr.bf16.gmra.mxu0 %v18043_v8 }
 0x2c2   :  { %v18383_v5 = vadd.f32 %v3739_v55, %v18263_v44  ;;  %14194 = vmatprep.mubr.msk.bf16.mxu0 %vm28_vm3, %v18045_v59  ;;  %v18388_v37 = vpop.f32.mrf.mxu1 }
 0x2c3   :  { %v3741_v42 = vpop.f32.mrf.mxu0 }
 0x2c4   :  { %v3175_v7 = vpop.f32.mrf.mxu1 }
 0x2c5   :  { %v3742_v8 = vpop.f32.mrf.mxu0 }
 0x2c6   :  { %v18391_v13 = vadd.f32 %v3742_v8, %v18275_v56  ;;  %v18393_v9 = vpop.f32.mrf.mxu1  ;;  %4693 = vmatmul.mubr.bf16.gmra.mxu1 %v18243_v30 }
 0x2c7   :  { %v3744_v50 = vpop.f32.mrf.mxu0  ;;  %14317 = vmatprep.mubr.msk.bf16.mxu1 %vm28_vm3, %v18250_v25 }
 0x2c8   :  { %v3180_v56 = vpop.f32.mrf.mxu1 }
 0x2c9   :  { %v3747_v44 = vpop.f32.mrf.mxu0  ;;  %3938 = vmatmul.mubr.bf16.gmra.mxu0 %v18053_v52 }
 0x2ca   :  { %v18400_v59 = vadd.f32 %v3747_v44, %v18281_v48  ;;  %14195 = vmatprep.mubr.msk.bf16.mxu0 %vm28_vm3, %v18055_v60  ;;  %v18404_v36 = vpop.f32.mrf.mxu1 }
 0x2cb   :  { %v3749_v43 = vpop.f32.mrf.mxu0 }
 0x2cc   :  { %v3183_v30 = vpop.f32.mrf.mxu1 }
 0x2cd   :  { %v3750_v46 = vpop.f32.mrf.mxu0 }
 0x2ce   :  { %v18407_v15 = vadd.f32 %v3750_v46, %v18293_v28  ;;  %v18409_v52 = vpop.f32.mrf.mxu1  ;;  %4701 = vmatmul.mubr.bf16.gmra.mxu1 %v18261_v29  ;;  %v16604_v29 = vld [vmem:[%s20736_s3 + $0x1a8] sm:$0xff]  }
 0x2cf   :  { %v3752_v54 = vpop.f32.mrf.mxu0  ;;  %14318 = vmatprep.mubr.msk.bf16.mxu1 %vm28_vm3, %v18268_v22  ;;  %7161 = vmatpush1.bf16.msra.mxu0 %v16604_v29 }
 0x2d0   :  { %v3188_v48 = vpop.f32.mrf.mxu1  ;;  %7162 = vmatprep.subr.bf16.mxu0 %v20761_v6 }
 0x2d1   :  { %v3755_v25 = vpop.f32.mrf.mxu0  ;;  %3946 = vmatmul.mubr.bf16.gmra.mxu0 %v18063_v61 }
 0x2d2   :  { %v18416_v60 = vadd.f32 %v3755_v25, %v18299_v19  ;;  %14196 = vmatprep.mubr.msk.bf16.mxu0 %vm28_vm3, %v18065_v62  ;;  %v18420_v32 = vpop.f32.mrf.mxu1  ;;  %v16578_v25 = vld [vmem:[#allocation3 + $0x180] ss:$8 sps:$4 sm:$0xff]  }
 0x2d3   :  { %v3757_v28 = vpop.f32.mrf.mxu0 }
 0x2d4   :  { %v3191_v34 = vpop.f32.mrf.mxu1 }
 0x2d5   :  { %v3758_v55 = vpop.f32.mrf.mxu0 }
 0x2d6   :  { %v18426_v61 = vadd.f32 %v3758_v55, %v18309_v18  ;;  %v18428_v19 = vpop.f32.mrf.mxu1  ;;  %4709 = vmatmul.mubr.bf16.gmra.mxu1 %v18279_v39 }
 0x2d7   :  { %v3760_v22 = vpop.f32.mrf.mxu0  ;;  %14319 = vmatprep.mubr.msk.bf16.mxu1 %vm28_vm3, %v18286_v24 }
 0x2d8   :  { %v3196_v18 = vpop.f32.mrf.mxu1 }
 0x2d9   :  { %v3763_v62 = vpop.f32.mrf.mxu0  ;;  %3954 = vmatmul.mubr.bf16.gmra.mxu0 %v18073_v63  ;;  %v16576_v63 = vld [vmem:[#allocation3 + $0x184] ss:$8 sps:$4 sm:$0xff]  }
 0x2da   :  { %v18436_v42 = vadd.f32 %v3763_v62, %v18316_v11  ;;  %14197 = vmatprep.mubr.msk.bf16.mxu0 %vm28_vm3, %v18075_v0  ;;  %v18440_v7 = vpop.f32.mrf.mxu1  ;;  %v16581_v62 = vld [vmem:[#allocation3 + $0x190] ss:$8 sps:$4 sm:$0xff]  }
 0x2db   :  { %v3765_v8 = vpop.f32.mrf.mxu0 }
 0x2dc   :  { %v3199_v44 = vpop.f32.mrf.mxu1  ;;  %v16582_v8 = vld [vmem:[#allocation3 + $0x1a4] ss:$8 sps:$4 sm:$0xff]  }
 0x2dd   :  { %v3766_v50 = vpop.f32.mrf.mxu0 }
 0x2de   :  { %v18443_v39 = vadd.f32 %v3766_v50, %v18327_v41  ;;  %v18445_v43 = vpop.f32.mrf.mxu1  ;;  %4717 = vmatmul.mubr.bf16.gmra.mxu1 %v18297_v16  ;;  %v16605_v16 = vld [vmem:[%s20736_s3 + $0x1a0] sm:$0xff]  }
 0x2df   :  { %v3768_v56 = vpop.f32.mrf.mxu0  ;;  %20765 = vst [vmem:[#allocation26_spill] sm:$0xff] %v18445_v43  ;;  %14320 = vmatprep.mubr.msk.bf16.mxu1 %vm28_vm3, %v16576_v63  ;;  %7163 = vmatpush1.bf16.msra.mxu0 %v16605_v16 }
 0x2e0   :  { %v3204_v11 = vpop.f32.mrf.mxu1  ;;  %7164 = vmatprep.subr.bf16.mxu0 %v20761_v6 }
 0x2e1   :  { %v3771_v24 = vpop.f32.mrf.mxu0  ;;  %3962 = vmatmul.mubr.bf16.gmra.mxu0 %v18083_v1  ;;  %v16584_v11 = vld [vmem:[#allocation3 + $0x1a0] ss:$8 sps:$4 sm:$0xff]  }
 0x2e2   :  { %v18451_v0 = vadd.f32 %v3771_v24, %v18331_v26  ;;  %14198 = vmatprep.mubr.msk.bf16.mxu0 %vm28_vm3, %v18085_v3  ;;  %v18455_v46 = vpop.f32.mrf.mxu1  ;;  %v16579_v26 = vld [vmem:[#allocation3 + $0x194] ss:$8 sps:$4 sm:$0xff]  }
 0x2e3   :  { %v3773_v41 = vpop.f32.mrf.mxu0  ;;  %20766 = vst [vmem:[#allocation27_spill] sm:$0xff] %v18455_v46  ;;  %v4041_v46 = vld [vmem:[#allocation3 + $0x1f0] sm:$0xff] }
 0x2e4   :  { %v3207_v1 = vpop.f32.mrf.mxu1 }
 0x2e5   :  { %v3774_v30 = vpop.f32.mrf.mxu0 }
 0x2e6   :  { %v18461_v54 = vadd.f32 %v3774_v30, %v18340_v4  ;;  %v18463_v28 = vpop.f32.mrf.mxu1  ;;  %4725 = vmatmul.mubr.bf16.gmra.mxu1 %v16578_v25  ;;  %v16585_v30 = vld [vmem:[#allocation3 + $0x1b4] ss:$8 sps:$4 sm:$0xff]  }
 0x2e7   :  { %v3776_v48 = vpop.f32.mrf.mxu0  ;;  %20767 = vst [vmem:[#allocation28_spill] sm:$0xff] %v18463_v28  ;;  %14321 = vmatprep.mubr.msk.bf16.mxu1 %vm28_vm3, %v16579_v26 }
 0x2e8   :  { %v3212_v4 = vpop.f32.mrf.mxu1 }
 0x2e9   :  { %v18466_v3 = vpop.f32.mrf.mxu0  ;;  %3970 = vmatmul.mubr.bf16.gmra.mxu0 %v18095_v10  ;;  %v16606_v4 = vld [vmem:[%s20736_s3 + $0x198] sm:$0xff]  }
 0x2ea   :  { %14199 = vmatprep.mubr.msk.bf16.mxu0 %vm28_vm3, %v18099_v12  ;;  %v18472_v29 = vpop.f32.mrf.mxu1  ;;  %7165 = vmatpush1.bf16.msra.mxu0 %v16606_v4  ;;  %v16608_v4 = vld [vmem:[%s20736_s3 + $0x188] sm:$0xff]  }
 0x2eb   :  { %v3781_v55 = vpop.f32.mrf.mxu0  ;;  %20768 = vst [vmem:[#allocation29_spill] sm:$0xff] %v18472_v29  ;;  %7166 = vmatprep.subr.bf16.mxu0 %v20761_v6 }
 0x2ec   :  { %v3215_v22 = vpop.f32.mrf.mxu1 }
 0x2ed   :  { %v18474_v34 = vpop.f32.mrf.mxu0  ;;  %v16587_v22 = vld [vmem:[#allocation3 + $0x1b0] ss:$8 sps:$4 sm:$0xff]  }
 0x2ee   :  { %v18476_v50 = vpop.f32.mrf.mxu1  ;;  %4733 = vmatmul.mubr.bf16.gmra.mxu1 %v16581_v62 }
 0x2ef   :  { %v3784_v18 = vpop.f32.mrf.mxu0  ;;  %20769 = vst [vmem:[#allocation30_spill] sm:$0xff] %v18476_v50  ;;  %14322 = vmatprep.mubr.msk.bf16.mxu1 %vm28_vm3, %v16582_v8 }
 0x2f0   :  { %v3220_v10 = vpop.f32.mrf.mxu1  ;;  %v16588_v18 = vld [vmem:[#allocation3 + $0x1c4] ss:$8 sps:$4 sm:$0xff]  }
 0x2f1   :  { %v18478_v44 = vpop.f32.mrf.mxu0  ;;  %3978 = vmatmul.mubr.bf16.gmra.mxu0 %v18109_v14 }
 0x2f2   :  { %v18482_v56 = vpop.f32.mrf.mxu1 }
 0x2f3   :  { %v3789_v12 = vpop.f32.mrf.mxu0  ;;  %20770 = vst [vmem:[#allocation31_spill] sm:$0xff] %v18482_v56 }
 0x2f4   :  { %v3223_v24 = vpop.f32.mrf.mxu1  ;;  %v16607_v12 = vld [vmem:[%s20736_s3 + $0x190] sm:$0xff]  }
 0x2f5   :  { %v18484_v63 = vpop.f32.mrf.mxu0  ;;  %7167 = vmatpush1.bf16.msra.mxu0 %v16607_v12  ;;  %v18518_v12 = vld [vmem:[%s20737_s4] ss:$0 sm:$0xff] }
 0x2f6   :  { %v18486_v16 = vpop.f32.mrf.mxu1  ;;  %4741 = vmatmul.mubr.bf16.gmra.mxu1 %v16584_v11  ;;  %v4036_v11 = vld [vmem:[#allocation3 + $0x1c8] sm:$0xff]  ;;  %7168 = vmatprep.subr.bf16.mxu0 %v20761_v6 }
 0x2f7   :  { %v3792_v41 = vpop.f32.mrf.mxu0  ;;  %20771 = vst [vmem:[#allocation32_spill] sm:$0xff] %v18486_v16  ;;  %14323 = vmatprep.mubr.msk.bf16.mxu1 %vm28_vm3, %v16585_v30 }
 0x2f8   :  { %v3228_v14 = vpop.f32.mrf.mxu1 }
 0x2f9   :  { %v18488_v1 = vpop.f32.mrf.mxu0  ;;  %v4035_v14 = vld [vmem:[#allocation3 + $0x1c0] sm:$0xff]  ;;  %7169 = vmatpush1.bf16.msra.mxu0 %v16608_v4 }
 0x2fa   :  { %v18491_v48 = vpop.f32.mrf.mxu1  ;;  %7170 = vmatprep.subr.bf16.mxu0 %v20761_v6 }
 0x2fb   :  { %v3797_v25 = vpop.f32.mrf.mxu0  ;;  %20772 = vst [vmem:[#allocation33_spill] sm:$0xff] %v18491_v48  ;;  %v4037_v48 = vld [vmem:[#allocation3 + $0x1d0] sm:$0xff] }
 0x2fc   :  { %v3231_v55 = vpop.f32.mrf.mxu1 }
 0x2fd   :  { %v18493_v26 = vpop.f32.mrf.mxu0 }
 0x2fe   :  { %v18498_v8 = vpop.f32.mrf.mxu1  ;;  %4749 = vmatmul.mubr.bf16.gmra.mxu1 %v16587_v22  ;;  %v14272_v22 = vcombine.low %v4035_v14, %v4036_v11  ;;  %v16609_v11 = vld [vmem:[%s20736_s3 + $0x180] sm:$0xff]  }
 0x2ff   :  { %v3800_v62 = vpop.f32.mrf.mxu0  ;;  %20773 = vst [vmem:[#allocation34_spill] sm:$0xff] %v18498_v8  ;;  %14324 = vmatprep.mubr.msk.bf16.mxu1 %vm28_vm3, %v16588_v18  ;;  %v16590_v18 = vld [vmem:[#allocation3 + $0x1d4] ss:$8 sps:$4 sm:$0xff]   ;;  %7171 = vmatpush1.bf16.msra.mxu0 %v16609_v11 }
 0x300   :  { %v3236_v24 = vpop.f32.mrf.mxu1  ;;  %7180 = vmatprep.subr.bf16.mxu0 %v20761_v6 }
 0x301   :  { %v18501_v10 = vpop.f32.mrf.mxu0 }
 0x302   :  { %v18507_v30 = vpop.f32.mrf.mxu1 }
 0x303   :  { %v3805_v41 = vpop.f32.mrf.mxu0  ;;  %20774 = vst [vmem:[#allocation35_spill] sm:$0xff] %v18507_v30 }
 0x304   :  { %v3239_v55 = vpop.f32.mrf.mxu1 }
 0x305   :  { %v18510_v25 = vpop.f32.mrf.mxu0  ;;  %v4038_v55 = vld [vmem:[#allocation3 + $0x1d8] sm:$0xff] }
 0x306   :  { %v4566_v24 = vpop.f32.mrf.mxu1  ;;  %4757 = vmatmul.mubr.bf16.gmra.mxu1 %v14272_v22 }
 0x307   :  { %v3808_v62 = vpop.f32.mrf.mxu0  ;;  %v4821_v30 = vadd.f32 %v4566_v24, %v18356_v40  ;;  %14325 = vmatprep.mubr.msk.bf16.mxu1 %vm28_vm3, %v16590_v18  ;;  %v16610_v18 = vld [vmem:[%s20736_s3 + $0x1d8] sm:$0xff]  }
 0x308   :  { %v4568_v14 = vpop.f32.mrf.mxu1  ;;  %7181 = vmatpush2.bf16.msra.mxu0 %v16610_v18 }
 0x309   :  { %v18521_v41 = vpop.f32.mrf.mxu0  ;;  %v4890_v4 = vadd.f32 %v18518_v12, %v4821_v30  ;;  %v14274_v14 = vcombine.low %v4037_v48, %v4038_v55  ;;  %7182 = vmatprep.subr.bf16.mxu0 %v20761_v6  ;;  %v16611_v48 = vld [vmem:[%s20736_s3 + $0x1d0] sm:$0xff]  }
 0x30a   :  { %v4569_v8 = vpop.f32.mrf.mxu1 }
 0x30b   :  { %v3813_v62 = vpop.f32.mrf.mxu0  ;;  %v4954_v22 = vmax.f32 %v4890_v4, 0.0  ;;  %v4822_v40 = vadd.f32 %v4569_v8, %v18369_v2 }
 0x30c   :  { %v4571_v24 = vpop.f32.mrf.mxu1  ;;  %v16592_v62 = vld [vmem:[#allocation3 + $0x1e4] ss:$8 sps:$4 sm:$0xff]   ;;  %7183 = vmatpush2.bf16.msra.mxu0 %v16611_v48 }
 0x30d   :  { %v18530_v16 = vpop.f32.mrf.mxu0  ;;  %5018 = vst.msk [vmem:[#allocation2 + $0x19] sm:$0xff] %vm28_vm3, %v4954_v22  ;;  %v4891_v30 = vadd.f32 %v18518_v12, %v4822_v40  ;;  %v4040_v22 = vld [vmem:[#allocation3 + $0x1e8] sm:$0xff]  ;;  %7184 = vmatprep.subr.bf16.mxu0 %v20761_v6 }
 0x30e   :  { %v4574_v56 = vpop.f32.mrf.mxu1  ;;  %4765 = vmatmul.mubr.bf16.gmra.mxu1 %v14274_v14  ;;  %v4039_v14 = vld [vmem:[#allocation3 + $0x1e0] sm:$0xff] }
 0x30f   :  { %v3816_v11 = vpop.f32.mrf.mxu0  ;;  %v4955_v4 = vmax.f32 %v4891_v30, 0.0  ;;  %v4823_v2 = vadd.f32 %v4574_v56, %v18383_v5  ;;  %14326 = vmatprep.mubr.msk.bf16.mxu1 %vm28_vm3, %v16592_v62  ;;  %v16612_v30 = vld [vmem:[%s20736_s3 + $0x1c8] sm:$0xff]   ;;  %v14276_v62 = vcombine.low %v4039_v14, %v4040_v22 }
 0x310   :  { %v4576_v8 = vpop.f32.mrf.mxu1  ;;  %7185 = vmatpush2.bf16.msra.mxu0 %v16612_v30 }
 0x311   :  { %v18539_v50 = vpop.f32.mrf.mxu0  ;;  %5019 = vst.msk [vmem:[#allocation2 + $0x21] sm:$0xff] %vm28_vm3, %v4955_v4  ;;  %v4892_v55 = vadd.f32 %v18518_v12, %v4823_v2  ;;  %7186 = vmatprep.subr.bf16.mxu0 %v20761_v6 }
 0x312   :  { %v4577_v18 = vpop.f32.mrf.mxu1 }
 0x313   :  { %v3821_v40 = vpop.f32.mrf.mxu0  ;;  %v4956_v24 = vmax.f32 %v4892_v55, 0.0  ;;  %v4824_v56 = vadd.f32 %v4577_v18, %v18391_v13 }
 0x314   :  { %v4579_v11 = vpop.f32.mrf.mxu1  ;;  %v5516_v4 = vld [vmem:[#allocation2 + $0x19] sm:$0xff] }
 0x315   :  { %v18549_v5 = vpop.f32.mrf.mxu0  ;;  %v5084_v2 = vld [vmem:[#allocation2 + $0x18] sm:$0xff]  ;;  %5020 = vst.msk [vmem:[#allocation2 + $0x31] sm:$0xff] %vm28_vm3, %v4956_v24  ;;  %v4893_v48 = vadd.f32 %v18518_v12, %v4824_v56  ;;  %v15851_v55 = vpack.c.bf16 %v5516_v4, %v5516_v4  ;;  %v16613_v24 = vld [vmem:[%s20736_s3 + $0x1c0] sm:$0xff]  }
 0x316   :  { %v16594_v40 = vld [vmem:[#allocation3 + $0x1f4] ss:$8 sps:$4 sm:$0xff]   ;;  %v15779_v29 = vpack.c.bf16 %v5084_v2, %v5084_v2  ;;  %v4582_v28 = vpop.f32.mrf.mxu1  ;;  %4773 = vmatmul.mubr.bf16.gmra.mxu1 %v14276_v62  ;;  %7187 = vmatpush2.bf16.msra.mxu0 %v16613_v24 }
 0x317   :  { %v3824_v8 = vpop.f32.mrf.mxu0  ;;  %v4957_v13 = vmax.f32 %v4893_v48, 0.0  ;;  %v4825_v22 = vadd.f32 %v4582_v28, %v18400_v59  ;;  %14327 = vmatprep.mubr.msk.bf16.mxu1 %vm28_vm3, %v16594_v40  ;;  %5806 = vrot.lane.b32.xlu0 %v15851_v55, %s17010_s19  ;;  %v4042_v4 = vld [vmem:[#allocation3 + $0x1f8] sm:$0xff] }
 0x318   :  { %5444 = vst.msk [vmem:[#allocation3 + $0x10] sm:$0xf] %vm1236_vm5, %v15779_v29  ;;  %v6092_v14 = vld [vmem:[#allocation2 + $0x1a] sm:$0xff]  ;;  %v4584_v56 = vpop.f32.mrf.mxu1  ;;  %v6093_v48 = vld [vmem:[#allocation2 + $0x22] sm:$0xff]  ;;  %8735 = vmatprep.subr.bf16.mxu0 %v20761_v6 }
 0x319   :  { %v18558_v18 = vpop.f32.mrf.mxu0  ;;  %v5517_v30 = vld [vmem:[#allocation2 + $0x21] sm:$0xff]  ;;  %5021 = vst.msk [vmem:[#allocation2 + $0x39] sm:$0xff] %vm28_vm3, %v4957_v13  ;;  %v4894_v62 = vadd.f32 %v18518_v12, %v4825_v22  ;;  %v15923_v8 = vpack.c.bf16 %v6092_v14, %v6092_v14  ;;  %v15924_v40 = vpack.c.bf16 %v6093_v48, %v6093_v48  ;;  %v14278_v22 = vcombine.low %v4041_v46, %v4042_v4 }
 0x31a   :  { %v5085_v11 = vld [vmem:[#allocation2 + $0x20] sm:$0xff]  ;;  %v15852_v28 = vpack.c.bf16 %v5517_v30, %v5517_v30  ;;  %v4585_v29 = vpop.f32.mrf.mxu1 }
 0x31b   :  { %v3829_v59 = vpop.f32.mrf.mxu0  ;;  %v15780_v2 = vpack.c.bf16 %v5085_v11, %v5085_v11  ;;  %v4958_v55 = vmax.f32 %v4894_v62, 0.0  ;;  %v4826_v43 = vadd.f32 %v4585_v29, %v18407_v15  ;;  %6452 = vst.msk [vmem:[#allocation3 + $0x14] sm:$0xf] %vm1236_vm5, %v15923_v8  ;;  %6453 = vst.msk [vmem:[#allocation3 + $0x1c] sm:$0xf] %vm1236_vm5, %v15924_v40 }
 0x31c   :  { %5808 = vrot.lane.b32.xlu1 %v15852_v28, %s17010_s19  ;;  %v4587_v13 = vpop.f32.mrf.mxu1  ;;  %v5518_v24 = vld [vmem:[#allocation2 + $0x31] sm:$0xff]  ;;  %v16597_v62 = vld [vmem:[#allocation3 + $0x204] ss:$8 sps:$4 sm:$0xff]  }
 0x31d   :  { %v18570_v56 = vpop.f32.mrf.mxu0  ;;  %5445 = vst.msk [vmem:[#allocation3 + $0x18] sm:$0xf] %vm1236_vm5, %v15780_v2  ;;  %v5086_v14 = vld [vmem:[#allocation2 + $0x30] sm:$0xff]  ;;  %v4895_v30 = vadd.f32 %v18518_v12, %v4826_v43  ;;  %v15853_v59 = vpack.c.bf16 %v5518_v24, %v5518_v24 }
 0x31e   :  { %5022 = vst.msk [vmem:[#allocation2 + $0x49] sm:$0xff] %vm28_vm3, %v4958_v55  ;;  %v15781_v15 = vpack.c.bf16 %v5086_v14, %v5086_v14  ;;  %v4590_v48 = vpop.f32.mrf.mxu1  ;;  %4781 = vmatmul.mubr.bf16.gmra.mxu1 %v14278_v22  ;;  %v4044_v22 = vld [vmem:[#allocation3 + $0x208] sm:$0xff] }
 0x31f   :  { %v3832_v11 = vpop.f32.mrf.mxu0  ;;  %v4959_v28 = vmax.f32 %v4895_v30, 0.0  ;;  %v4827_v8 = vadd.f32 %v4590_v48, %v18416_v60  ;;  %14328 = vmatprep.mubr.msk.bf16.mxu1 %vm28_vm3, %v16597_v62  ;;  %5810 = vrot.lane.b32.xlu0 %v15853_v59, %s17010_s19  ;;  %v4043_v59 = vld [vmem:[#allocation3 + $0x200] sm:$0xff] }
 0x320   :  { %5446 = vst.msk [vmem:[#allocation3 + $0x20] sm:$0xf] %vm1236_vm5, %v15781_v15  ;;  %v6094_v46 = vld [vmem:[#allocation2 + $0x32] sm:$0xff]  ;;  %v6095_v4 = vld [vmem:[#allocation2 + $0x3a] sm:$0xff]  ;;  %v4592_v43 = vpop.f32.mrf.mxu1 }
 0x321   :  { %v18579_v2 = vpop.f32.mrf.mxu0  ;;  %v5519_v29 = vld [vmem:[#allocation2 + $0x39] sm:$0xff]  ;;  %v15925_v40 = vpack.c.bf16 %v6094_v46, %v6094_v46  ;;  %v15926_v55 = vpack.c.bf16 %v6095_v4, %v6095_v4  ;;  %5023 = vst.msk [vmem:[#allocation2 + $0x51] sm:$0xff] %vm28_vm3, %v4959_v28  ;;  %v4896_v13 = vadd.f32 %v18518_v12, %v4827_v8  ;;  %v14280_v8 = vcombine.low %v4043_v59, %v4044_v22 }
 0x322   :  { %v15854_v14 = vpack.c.bf16 %v5519_v29, %v5519_v29  ;;  %v5087_v60 = vld [vmem:[#allocation2 + $0x38] sm:$0xff]  ;;  %v4593_v30 = vpop.f32.mrf.mxu1 }
 0x323   :  { %v3837_v24 = vpop.f32.mrf.mxu0  ;;  %v15782_v11 = vpack.c.bf16 %v5087_v60, %v5087_v60  ;;  %6454 = vst.msk [vmem:[#allocation3 + $0x24] sm:$0xf] %vm1236_vm5, %v15925_v40  ;;  %6455 = vst.msk [vmem:[#allocation3 + $0x2c] sm:$0xf] %vm1236_vm5, %v15926_v55  ;;  %v4960_v62 = vmax.f32 %v4896_v13, 0.0  ;;  %v4828_v48 = vadd.f32 %v4593_v30, %v18426_v61 }
 0x324   :  { %5812 = vrot.lane.b32.xlu1 %v15854_v14, %s17010_s19  ;;  %v4595_v28 = vpop.f32.mrf.mxu1  ;;  %v16599_v40 = vld [vmem:[#allocation3 + $0x214] ss:$8 sps:$4 sm:$0xff]  }
 0x325   :  { %v18589_v15 = vpop.f32.mrf.mxu0  ;;  %v5520_v46 = vld [vmem:[#allocation2 + $0x49] sm:$0xff]  ;;  %5447 = vst.msk [vmem:[#allocation3 + $0x28] sm:$0xf] %vm1236_vm5, %v15782_v11  ;;  %v4897_v43 = vadd.f32 %v18518_v12, %v4828_v48 }
 0x326   :  { %v5088_v4 = vld [vmem:[#allocation2 + $0x48] sm:$0xff]  ;;  %5024 = vst.msk [vmem:[#allocation2 + $0x61] sm:$0xff] %vm28_vm3, %v4960_v62  ;;  %v15855_v55 = vpack.c.bf16 %v5520_v46, %v5520_v46  ;;  %v4598_v24 = vpop.f32.mrf.mxu1  ;;  %4789 = vmatmul.mubr.bf16.gmra.mxu1 %v14280_v8  ;;  %v4046_v8 = vld [vmem:[#allocation3 + $0x218] sm:$0xff] }
 0x327   :  { %v3840_v29 = vpop.f32.mrf.mxu0  ;;  %v15783_v13 = vpack.c.bf16 %v5088_v4, %v5088_v4  ;;  %v4961_v60 = vmax.f32 %v4897_v43, 0.0  ;;  %v4829_v14 = vadd.f32 %v4598_v24, %v18436_v42  ;;  %14329 = vmatprep.mubr.msk.bf16.mxu1 %vm28_vm3, %v16599_v40 }
 0x328   :  { %5814 = vrot.lane.b32.xlu0 %v15855_v55, %s17010_s19  ;;  %v6096_v22 = vld [vmem:[#allocation2 + $0x4a] sm:$0xff]  ;;  %v6097_v30 = vld [vmem:[#allocation2 + $0x52] sm:$0xff]  ;;  %v4600_v11 = vpop.f32.mrf.mxu1 }
 0x329   :  { %v18596_v61 = vpop.f32.mrf.mxu0  ;;  %5448 = vst.msk [vmem:[#allocation3 + $0x30] sm:$0xf] %vm1236_vm5, %v15783_v13  ;;  %v5521_v62 = vld [vmem:[#allocation2 + $0x51] sm:$0xff]  ;;  %v15927_v59 = vpack.c.bf16 %v6096_v22, %v6096_v22  ;;  %v15928_v48 = vpack.c.bf16 %v6097_v30, %v6097_v30  ;;  %v4898_v28 = vadd.f32 %v18518_v12, %v4829_v14 }
 0x32a   :  { %5025 = vst.msk [vmem:[#allocation2 + $0x69] sm:$0xff] %vm28_vm3, %v4961_v60  ;;  %v15856_v4 = vpack.c.bf16 %v5521_v62, %v5521_v62  ;;  %v5089_v42 = vld [vmem:[#allocation2 + $0x50] sm:$0xff]  ;;  %v4601_v43 = vpop.f32.mrf.mxu1 }
 0x32b   :  { %v3845_v46 = vpop.f32.mrf.mxu0  ;;  %v15784_v29 = vpack.c.bf16 %v5089_v42, %v5089_v42  ;;  %6456 = vst.msk [vmem:[#allocation3 + $0x34] sm:$0xf] %vm1236_vm5, %v15927_v59  ;;  %6457 = vst.msk [vmem:[#allocation3 + $0x3c] sm:$0xf] %vm1236_vm5, %v15928_v48  ;;  %v4962_v40 = vmax.f32 %v4898_v28, 0.0  ;;  %v4045_v55 = vld [vmem:[#allocation3 + $0x210] sm:$0xff]  ;;  %v4830_v24 = vadd.f32 %v4601_v43, %v18443_v39 }
 0x32c   :  { %5816 = vrot.lane.b32.xlu1 %v15856_v4, %s17010_s19  ;;  %v4603_v60 = vpop.f32.mrf.mxu1  ;;  %v14282_v14 = vcombine.low %v4045_v55, %v4046_v8  ;;  %v16601_v59 = vld [vmem:[#allocation3 + $0x224] ss:$8 sps:$4 sm:$0xff]  }
 0x32d   :  { %v18606_v13 = vpop.f32.mrf.mxu0  ;;  %v5522_v22 = vld [vmem:[#allocation2 + $0x61] sm:$0xff]  ;;  %5449 = vst.msk [vmem:[#allocation3 + $0x38] sm:$0xf] %vm1236_vm5, %v15784_v29  ;;  %v4899_v11 = vadd.f32 %v18518_v12, %v4830_v24 }
 0x32e   :  { %v5090_v30 = vld [vmem:[#allocation2 + $0x60] sm:$0xff]  ;;  %5026 = vst.msk [vmem:[#allocation2 + $0x79] sm:$0xff] %vm28_vm3, %v4962_v40  ;;  %v15857_v48 = vpack.c.bf16 %v5522_v22, %v5522_v22  ;;  %v4606_v46 = vpop.f32.mrf.mxu1  ;;  %4797 = vmatmul.mubr.bf16.gmra.mxu1 %v14282_v14  ;;  %v4048_v14 = vld [vmem:[#allocation3 + $0x228] sm:$0xff] }
 0x32f   :  { %v3848_v62 = vpop.f32.mrf.mxu0  ;;  %v15785_v28 = vpack.c.bf16 %v5090_v30, %v5090_v30  ;;  %v4963_v42 = vmax.f32 %v4899_v11, 0.0  ;;  %v4831_v4 = vadd.f32 %v4606_v46, %v18451_v0  ;;  %14330 = vmatprep.mubr.msk.bf16.mxu1 %vm28_vm3, %v16601_v59 }
 0x330   :  { %5818 = vrot.lane.b32.xlu0 %v15857_v48, %s17010_s19  ;;  %v4608_v29 = vpop.f32.mrf.mxu1  ;;  %v4047_v48 = vld [vmem:[#allocation3 + $0x220] sm:$0xff] }
 0x331   :  { %v18613_v39 = vpop.f32.mrf.mxu0  ;;  %5450 = vst.msk [vmem:[#allocation3 + $0x40] sm:$0xf] %vm1236_vm5, %v15785_v28  ;;  %v6098_v8 = vld [vmem:[#allocation2 + $0x62] sm:$0xff]  ;;  %v6099_v43 = vld [vmem:[#allocation2 + $0x6a] sm:$0xff]  ;;  %v4900_v60 = vadd.f32 %v18518_v12, %v4831_v4 }
 0x332   :  { %v5523_v40 = vld [vmem:[#allocation2 + $0x69] sm:$0xff]  ;;  %v15929_v55 = vpack.c.bf16 %v6098_v8, %v6098_v8  ;;  %v15930_v24 = vpack.c.bf16 %v6099_v43, %v6099_v43  ;;  %5027 = vst.msk [vmem:[#allocation2 + $0x81] sm:$0xff] %vm28_vm3, %v4963_v42  ;;  %v4609_v11 = vpop.f32.mrf.mxu1  ;;  %v14287_v42 = vcombine.high %v18380_v53, %v18373_v31  ;;  %v14284_v8 = vcombine.low %v4047_v48, %v4048_v14 }
 0x333   :  { %v3853_v22 = vpop.f32.mrf.mxu0  ;;  %v15858_v30 = vpack.c.bf16 %v5523_v40, %v5523_v40  ;;  %v5091_v0 = vld [vmem:[#allocation2 + $0x68] sm:$0xff]  ;;  %v4964_v59 = vmax.f32 %v4900_v60, 0.0  ;;  %v4832_v28 = vadd.f32 %v4609_v11, %v18461_v54  ;;  %v3780_v40 = vadd.f32 %v18466_v3, %v18113_v17 }
 0x334   :  { %v15786_v62 = vpack.c.bf16 %v5091_v0, %v5091_v0  ;;  %6458 = vst.msk [vmem:[#allocation3 + $0x44] sm:$0xf] %vm1236_vm5, %v15929_v55  ;;  %6459 = vst.msk [vmem:[#allocation3 + $0x4c] sm:$0xf] %vm1236_vm5, %v15930_v24  ;;  %v4611_v4 = vpop.f32.mrf.mxu1  ;;  %v3783_v17 = vadd.f32 %v18474_v34, %v18122_v20 }
 0x335   :  { %v18624_v46 = vpop.f32.mrf.mxu0  ;;  %5820 = vrot.lane.b32.xlu1 %v15858_v30, %s17010_s19  ;;  %v5524_v43 = vld [vmem:[#allocation2 + $0x79] sm:$0xff]  ;;  %5028 = vst.msk [vmem:[#allocation2 + $0x91] sm:$0xff] %vm28_vm3, %v4964_v59  ;;  %v4901_v54 = vadd.f32 %v18518_v12, %v4832_v28 }
 0x336   :  { %5451 = vst.msk [vmem:[#allocation3 + $0x48] sm:$0xf] %vm1236_vm5, %v15786_v62  ;;  %v5092_v29 = vld [vmem:[#allocation2 + $0x78] sm:$0xff]  ;;  %v15859_v24 = vpack.c.bf16 %v5524_v43, %v5524_v43  ;;  %v4614_v22 = vpop.f32.mrf.mxu1  ;;  %4805 = vmatmul.mubr.bf16.gmra.mxu1 %v14284_v8 }
 0x337   :  { %v3856_v55 = vpop.f32.mrf.mxu0  ;;  %v15787_v60 = vpack.c.bf16 %v5092_v29, %v5092_v29  ;;  %v4965_v30 = vmax.f32 %v4901_v54, 0.0  ;;  %v4833_v14 = vadd.f32 %v4614_v22, %v3780_v40  ;;  %14331 = vmatprep.mubr.msk.bf16.mxu1 %vm28_vm3, %v14287_v42  ;;  %v14286_v42 = vcombine.low %v18380_v53, %v18373_v31 }
 0x338   :  { %5822 = vrot.lane.b32.xlu0 %v15859_v24, %s17010_s19  ;;  %v4616_v62 = vpop.f32.mrf.mxu1 }
 0x339   :  { %v18634_v0 = vpop.f32.mrf.mxu0  ;;  %5452 = vst.msk [vmem:[#allocation3 + $0x50] sm:$0xf] %vm1236_vm5, %v15787_v60  ;;  %v6100_v3 = vld [vmem:[#allocation2 + $0x7a] sm:$0xff]  ;;  %v6101_v11 = vld [vmem:[#allocation2 + $0x82] sm:$0xff]  ;;  %v4902_v4 = vadd.f32 %v18518_v12, %v4833_v14 }
 0x33a   :  { %v5525_v59 = vld [vmem:[#allocation2 + $0x81] sm:$0xff]  ;;  %v15931_v48 = vpack.c.bf16 %v6100_v3, %v6100_v3  ;;  %v15932_v28 = vpack.c.bf16 %v6101_v11, %v6101_v11  ;;  %5029 = vst.msk [vmem:[#allocation2 + $0x99] sm:$0xff] %vm28_vm3, %v4965_v30  ;;  %v4617_v40 = vpop.f32.mrf.mxu1  ;;  %v3788_v30 = vadd.f32 %v18478_v44, %v18126_v27  ;;  %v3791_v27 = vadd.f32 %v18484_v63, %v18135_v38 }
 0x33b   :  { %v3861_v8 = vpop.f32.mrf.mxu0  ;;  %v15860_v43 = vpack.c.bf16 %v5525_v59, %v5525_v59  ;;  %v5093_v29 = vld [vmem:[#allocation2 + $0x80] sm:$0xff]  ;;  %v4966_v20 = vmax.f32 %v4902_v4, 0.0  ;;  %v4834_v55 = vadd.f32 %v4617_v40, %v3783_v17 }
 0x33c   :  { %v15788_v54 = vpack.c.bf16 %v5093_v29, %v5093_v29  ;;  %6460 = vst.msk [vmem:[#allocation3 + $0x54] sm:$0xf] %vm1236_vm5, %v15931_v48  ;;  %6461 = vst.msk [vmem:[#allocation3 + $0x5c] sm:$0xf] %vm1236_vm5, %v15932_v28  ;;  %v4619_v24 = vpop.f32.mrf.mxu1  ;;  %v5526_v60 = vld [vmem:[#allocation2 + $0x91] sm:$0xff] }
 0x33d   :  { %v18647_v34 = vpop.f32.mrf.mxu0  ;;  %5824 = vrot.lane.b32.xlu1 %v15860_v43, %s17010_s19  ;;  %v5094_v22 = vld [vmem:[#allocation2 + $0x90] sm:$0xff]  ;;  %5030 = vst.msk [vmem:[#allocation2 + $0xa9] sm:$0xff] %vm28_vm3, %v4966_v20  ;;  %v4903_v31 = vadd.f32 %v18518_v12, %v4834_v55  ;;  %v15861_v14 = vpack.c.bf16 %v5526_v60, %v5526_v60 }
 0x33e   :  { %5453 = vst.msk [vmem:[#allocation3 + $0x58] sm:$0xf] %vm1236_vm5, %v15788_v54  ;;  %v15789_v3 = vpack.c.bf16 %v5094_v22, %v5094_v22  ;;  %v4622_v11 = vpop.f32.mrf.mxu1  ;;  %4813 = vmatmul.mubr.bf16.gmra.mxu1 %v14286_v42 }
 0x33f   :  { %v3864_v53 = vpop.f32.mrf.mxu0  ;;  %v4967_v17 = vmax.f32 %v4903_v31, 0.0  ;;  %v4835_v59 = vadd.f32 %v4622_v11, %v3788_v30  ;;  %5826 = vrot.lane.b32.xlu0 %v15861_v14, %s17010_s19  ;;  %v3796_v31 = vadd.f32 %v18488_v1, %v18141_v45 }
 0x340   :  { %5454 = vst.msk [vmem:[#allocation3 + $0x60] sm:$0xf] %vm1236_vm5, %v15789_v3  ;;  %v4624_v28 = vpop.f32.mrf.mxu1 }
 0x341   :  { %v18655_v62 = vpop.f32.mrf.mxu0  ;;  %v6102_v44 = vld [vmem:[#allocation2 + $0x92] sm:$0xff]  ;;  %v6103_v48 = vld [vmem:[#allocation2 + $0x9a] sm:$0xff]  ;;  %5031 = vst.msk [vmem:[#allocation2 + $0xb1] sm:$0xff] %vm28_vm3, %v4967_v17  ;;  %v4904_v29 = vadd.f32 %v18518_v12, %v4835_v59 }
 0x342   :  { %v5527_v4 = vld [vmem:[#allocation2 + $0x99] sm:$0xff]  ;;  %v15933_v8 = vpack.c.bf16 %v6102_v44, %v6102_v44  ;;  %v15934_v43 = vpack.c.bf16 %v6103_v48, %v6103_v48  ;;  %v4625_v20 = vpop.f32.mrf.mxu1  ;;  %v3799_v48 = vadd.f32 %v18493_v26, %v18151_v47 }
 0x343   :  { %v3869_v40 = vpop.f32.mrf.mxu0  ;;  %v15862_v42 = vpack.c.bf16 %v5527_v4, %v5527_v4  ;;  %v5095_v54 = vld [vmem:[#allocation2 + $0x98] sm:$0xff]  ;;  %v4968_v38 = vmax.f32 %v4904_v29, 0.0  ;;  %v4836_v24 = vadd.f32 %v4625_v20, %v3791_v27 }
 0x344   :  { %v15790_v55 = vpack.c.bf16 %v5095_v54, %v5095_v54  ;;  %6462 = vst.msk [vmem:[#allocation3 + $0x64] sm:$0xf] %vm1236_vm5, %v15933_v8  ;;  %6463 = vst.msk [vmem:[#allocation3 + $0x6c] sm:$0xf] %vm1236_vm5, %v15934_v43  ;;  %v4627_v60 = vpop.f32.mrf.mxu1  ;;  %v5528_v22 = vld [vmem:[#allocation2 + $0xa9] sm:$0xff] }
 0x345   :  { %v18665_v63 = vpop.f32.mrf.mxu0  ;;  %5828 = vrot.lane.b32.xlu1 %v15862_v42, %s17010_s19  ;;  %v5096_v30 = vld [vmem:[#allocation2 + $0xa8] sm:$0xff]  ;;  %5032 = vst.msk [vmem:[#allocation2 + $0xc1] sm:$0xff] %vm28_vm3, %v4968_v38  ;;  %v4905_v53 = vadd.f32 %v18518_v12, %v4836_v24  ;;  %v15863_v3 = vpack.c.bf16 %v5528_v22, %v5528_v22 }
 0x346   :  { %5455 = vst.msk [vmem:[#allocation3 + $0x68] sm:$0xf] %vm1236_vm5, %v15790_v55  ;;  %v15791_v11 = vpack.c.bf16 %v5096_v30, %v5096_v30  ;;  %v4630_v17 = vpop.f32.mrf.mxu1  ;;  %v3804_v30 = vadd.f32 %v18501_v10, %v18155_v49 }
 0x347   :  { %v3872_v14 = vpop.f32.mrf.mxu0  ;;  %v4969_v59 = vmax.f32 %v4905_v53, 0.0  ;;  %v4837_v44 = vadd.f32 %v4630_v17, %v3796_v31  ;;  %5830 = vrot.lane.b32.xlu0 %v15863_v3, %s17010_s19 }
 0x348   :  { %5456 = vst.msk [vmem:[#allocation3 + $0x70] sm:$0xf] %vm1236_vm5, %v15791_v11  ;;  %v6104_v45 = vld [vmem:[#allocation2 + $0xaa] sm:$0xff]  ;;  %v6105_v1 = vld [vmem:[#allocation2 + $0xb2] sm:$0xff]  ;;  %v4632_v28 = vpop.f32.mrf.mxu1 }
 0x349   :  { %v18673_v27 = vpop.f32.mrf.mxu0  ;;  %v5529_v4 = vld [vmem:[#allocation2 + $0xb1] sm:$0xff]  ;;  %v15935_v8 = vpack.c.bf16 %v6104_v45, %v6104_v45  ;;  %v15936_v43 = vpack.c.bf16 %v6105_v1, %v6105_v1  ;;  %5033 = vst.msk [vmem:[#allocation2 + $0xc9] sm:$0xff] %vm28_vm3, %v4969_v59  ;;  %v4906_v29 = vadd.f32 %v18518_v12, %v4837_v44 }
 0x34a   :  { %v15864_v42 = vpack.c.bf16 %v5529_v4, %v5529_v4  ;;  %v5097_v54 = vld [vmem:[#allocation2 + $0xb0] sm:$0xff]  ;;  %v4633_v20 = vpop.f32.mrf.mxu1 }
 0x34b   :  { %v3877_v40 = vpop.f32.mrf.mxu0  ;;  %v15792_v55 = vpack.c.bf16 %v5097_v54, %v5097_v54  ;;  %6464 = vst.msk [vmem:[#allocation3 + $0x74] sm:$0xf] %vm1236_vm5, %v15935_v8  ;;  %6465 = vst.msk [vmem:[#allocation3 + $0x7c] sm:$0xf] %vm1236_vm5, %v15936_v43  ;;  %v4970_v47 = vmax.f32 %v4906_v29, 0.0  ;;  %v4838_v38 = vadd.f32 %v4633_v20, %v3799_v48  ;;  %v3807_v48 = vadd.f32 %v18510_v25, %v18165_v51 }
 0x34c   :  { %5832 = vrot.lane.b32.xlu1 %v15864_v42, %s17010_s19  ;;  %v4635_v24 = vpop.f32.mrf.mxu1  ;;  %v5530_v60 = vld [vmem:[#allocation2 + $0xc1] sm:$0xff] }
 0x34d   :  { %v18683_v26 = vpop.f32.mrf.mxu0  ;;  %5457 = vst.msk [vmem:[#allocation3 + $0x78] sm:$0xf] %vm1236_vm5, %v15792_v55  ;;  %v5098_v22 = vld [vmem:[#allocation2 + $0xc0] sm:$0xff]  ;;  %v4907_v31 = vadd.f32 %v18518_v12, %v4838_v38  ;;  %v15865_v14 = vpack.c.bf16 %v5530_v60, %v5530_v60  ;;  %v3812_v24 = vadd.f32 %v18521_v41, %v18169_v21 }
 0x34e   :  { %5034 = vst.msk [vmem:[#allocation2 + $0xd9] sm:$0xff] %vm28_vm3, %v4970_v47  ;;  %v15793_v3 = vpack.c.bf16 %v5098_v22, %v5098_v22  ;;  %v4638_v11 = vpop.f32.mrf.mxu1 }
 0x34f   :  { %v3880_v53 = vpop.f32.mrf.mxu0  ;;  %v4971_v17 = vmax.f32 %v4907_v31, 0.0  ;;  %v4839_v44 = vadd.f32 %v4638_v11, %v3804_v30  ;;  %5834 = vrot.lane.b32.xlu0 %v15865_v14, %s17010_s19 }
 0x350   :  { %5458 = vst.msk [vmem:[#allocation3 + $0x80] sm:$0xf] %vm1236_vm5, %v15793_v3  ;;  %v6106_v49 = vld [vmem:[#allocation2 + $0xc2] sm:$0xff]  ;;  %v6107_v10 = vld [vmem:[#allocation2 + $0xca] sm:$0xff]  ;;  %v4640_v45 = vpop.f32.mrf.mxu1 }
 0x351   :  { %v18691_v59 = vpop.f32.mrf.mxu0  ;;  %v5531_v1 = vld [vmem:[#allocation2 + $0xc9] sm:$0xff]  ;;  %v15937_v28 = vpack.c.bf16 %v6106_v49, %v6106_v49  ;;  %v15938_v4 = vpack.c.bf16 %v6107_v10, %v6107_v10  ;;  %5035 = vst.msk [vmem:[#allocation2 + $0xe1] sm:$0xff] %vm28_vm3, %v4971_v17  ;;  %v4908_v8 = vadd.f32 %v18518_v12, %v4839_v44  ;;  %v3815_v17 = vadd.f32 %v18530_v16, %v18179_v23 }
 0x352   :  { %v15866_v29 = vpack.c.bf16 %v5531_v1, %v5531_v1  ;;  %v5099_v40 = vld [vmem:[#allocation2 + $0xc8] sm:$0xff]  ;;  %v4641_v42 = vpop.f32.mrf.mxu1 }
 0x353   :  { %v3885_v43 = vpop.f32.mrf.mxu0  ;;  %v15794_v54 = vpack.c.bf16 %v5099_v40, %v5099_v40  ;;  %6466 = vst.msk [vmem:[#allocation3 + $0x84] sm:$0xf] %vm1236_vm5, %v15937_v28  ;;  %6467 = vst.msk [vmem:[#allocation3 + $0x8c] sm:$0xf] %vm1236_vm5, %v15938_v4  ;;  %v4972_v51 = vmax.f32 %v4908_v8, 0.0  ;;  %v4840_v20 = vadd.f32 %v4641_v42, %v3807_v48 }
 0x354   :  { %5836 = vrot.lane.b32.xlu1 %v15866_v29, %s17010_s19  ;;  %v4643_v55 = vpop.f32.mrf.mxu1 }
 0x355   :  { %v18701_v25 = vpop.f32.mrf.mxu0  ;;  %v5532_v47 = vld [vmem:[#allocation2 + $0xd9] sm:$0xff]  ;;  %5459 = vst.msk [vmem:[#allocation3 + $0x88] sm:$0xf] %vm1236_vm5, %v15794_v54  ;;  %v4909_v60 = vadd.f32 %v18518_v12, %v4840_v20 }
 0x356   :  { %v5100_v38 = vld [vmem:[#allocation2 + $0xd8] sm:$0xff]  ;;  %5036 = vst.msk [vmem:[#allocation2 + $0xf1] sm:$0xff] %vm28_vm3, %v4972_v51  ;;  %v15867_v30 = vpack.c.bf16 %v5532_v47, %v5532_v47  ;;  %v4646_v53 = vpop.f32.mrf.mxu1  ;;  %v3820_v51 = vadd.f32 %v18539_v50, %v18183_v33 }
 0x357   :  { %v3888_v22 = vpop.f32.mrf.mxu0  ;;  %v15795_v31 = vpack.c.bf16 %v5100_v38, %v5100_v38  ;;  %v4973_v14 = vmax.f32 %v4909_v60, 0.0  ;;  %v4841_v11 = vadd.f32 %v4646_v53, %v3812_v24 }
 0x358   :  { %5838 = vrot.lane.b32.xlu0 %v15867_v30, %s17010_s19  ;;  %v6108_v21 = vld [vmem:[#allocation2 + $0xda] sm:$0xff]  ;;  %v6109_v41 = vld [vmem:[#allocation2 + $0xe2] sm:$0xff]  ;;  %v4648_v44 = vpop.f32.mrf.mxu1 }
 0x359   :  { %v18709_v3 = vpop.f32.mrf.mxu0  ;;  %5460 = vst.msk [vmem:[#allocation3 + $0x90] sm:$0xf] %vm1236_vm5, %v15795_v31  ;;  %v5533_v48 = vld [vmem:[#allocation2 + $0xe1] sm:$0xff]  ;;  %v15939_v49 = vpack.c.bf16 %v6108_v21, %v6108_v21  ;;  %v15940_v10 = vpack.c.bf16 %v6109_v41, %v6109_v41  ;;  %v4910_v45 = vadd.f32 %v18518_v12, %v4841_v11 }
 0x35a   :  { %5037 = vst.msk [vmem:[#allocation2 + $0xf9] sm:$0xff] %vm28_vm3, %v4973_v14  ;;  %v15868_v28 = vpack.c.bf16 %v5533_v48, %v5533_v48  ;;  %v5101_v4 = vld [vmem:[#allocation2 + $0xe0] sm:$0xff]  ;;  %v4649_v8 = vpop.f32.mrf.mxu1 }
 0x35b   :  { %v3893_v1 = vpop.f32.mrf.mxu0  ;;  %v15796_v43 = vpack.c.bf16 %v5101_v4, %v5101_v4  ;;  %6468 = vst.msk [vmem:[#allocation3 + $0x94] sm:$0xf] %vm1236_vm5, %v15939_v49  ;;  %6469 = vst.msk [vmem:[#allocation3 + $0x9c] sm:$0xf] %vm1236_vm5, %v15940_v10  ;;  %v4974_v23 = vmax.f32 %v4910_v45, 0.0  ;;  %v4842_v29 = vadd.f32 %v4649_v8, %v3815_v17  ;;  %v20775_v31 = vld [vmem:[#allocation5_spill] sm:$0xff] }
 0x35c   :  { %5840 = vrot.lane.b32.xlu1 %v15868_v28, %s17010_s19  ;;  %v4651_v40 = vpop.f32.mrf.mxu1  ;;  %v3823_v53 = vadd.f32 %v18549_v5, %v20775_v31 }
 0x35d   :  { %v18719_v16 = vpop.f32.mrf.mxu0  ;;  %v5534_v42 = vld [vmem:[#allocation2 + $0xf1] sm:$0xff]  ;;  %5461 = vst.msk [vmem:[#allocation3 + $0x98] sm:$0xf] %vm1236_vm5, %v15796_v43  ;;  %v4911_v20 = vadd.f32 %v18518_v12, %v4842_v29 }
 0x35e   :  { %v5102_v54 = vld [vmem:[#allocation2 + $0xf0] sm:$0xff]  ;;  %5038 = vst.msk [vmem:[#allocation2 + $0x109] sm:$0xff] %vm28_vm3, %v4974_v23  ;;  %v15869_v47 = vpack.c.bf16 %v5534_v42, %v5534_v42  ;;  %v4654_v24 = vpop.f32.mrf.mxu1  ;;  %v20776_v23 = vld [vmem:[#allocation6_spill] sm:$0xff] }
 0x35f   :  { %v3896_v55 = vpop.f32.mrf.mxu0  ;;  %v15797_v38 = vpack.c.bf16 %v5102_v54, %v5102_v54  ;;  %v4975_v60 = vmax.f32 %v4911_v20, 0.0  ;;  %v4843_v30 = vadd.f32 %v4654_v24, %v3820_v51  ;;  %v3828_v29 = vadd.f32 %v18558_v18, %v20776_v23  ;;  %v20777_v24 = vld [vmem:[#allocation7_spill] sm:$0xff] }
 0x360   :  { %5842 = vrot.lane.b32.xlu0 %v15869_v47, %s17010_s19  ;;  %v4656_v14 = vpop.f32.mrf.mxu1 }
 0x361   :  { %v18727_v22 = vpop.f32.mrf.mxu0  ;;  %5462 = vst.msk [vmem:[#allocation3 + $0xa0] sm:$0xf] %vm1236_vm5, %v15797_v38  ;;  %v6110_v33 = vld [vmem:[#allocation2 + $0xf2] sm:$0xff]  ;;  %v6111_v50 = vld [vmem:[#allocation2 + $0xfa] sm:$0xff]  ;;  %v4912_v41 = vadd.f32 %v18518_v12, %v4843_v30 }
 0x362   :  { %v5535_v11 = vld [vmem:[#allocation2 + $0xf9] sm:$0xff]  ;;  %v15941_v17 = vpack.c.bf16 %v6110_v33, %v6110_v33  ;;  %v15942_v21 = vpack.c.bf16 %v6111_v50, %v6111_v50  ;;  %5039 = vst.msk [vmem:[#allocation2 + $0x111] sm:$0xff] %vm28_vm3, %v4975_v60  ;;  %v4657_v10 = vpop.f32.mrf.mxu1  ;;  %v3831_v60 = vadd.f32 %v18570_v56, %v20777_v24 }
 0x363   :  { %v3901_v44 = vpop.f32.mrf.mxu0  ;;  %v15870_v48 = vpack.c.bf16 %v5535_v11, %v5535_v11  ;;  %v5103_v49 = vld [vmem:[#allocation2 + $0xf8] sm:$0xff]  ;;  %v4976_v5 = vmax.f32 %v4912_v41, 0.0  ;;  %v4844_v28 = vadd.f32 %v4657_v10, %v3823_v53 }
 0x364   :  { %v15798_v45 = vpack.c.bf16 %v5103_v49, %v5103_v49  ;;  %6470 = vst.msk [vmem:[#allocation3 + $0xa4] sm:$0xf] %vm1236_vm5, %v15941_v17  ;;  %6471 = vst.msk [vmem:[#allocation3 + $0xac] sm:$0xf] %vm1236_vm5, %v15942_v21  ;;  %v4659_v4 = vpop.f32.mrf.mxu1 }
 0x365   :  { %v18737_v1 = vpop.f32.mrf.mxu0  ;;  %5844 = vrot.lane.b32.xlu1 %v15870_v48, %s17010_s19  ;;  %v5536_v8 = vld [vmem:[#allocation2 + $0x109] sm:$0xff]  ;;  %5040 = vst.msk [vmem:[#allocation2 + $0x121] sm:$0xff] %vm28_vm3, %v4976_v5  ;;  %v4913_v40 = vadd.f32 %v18518_v12, %v4844_v28  ;;  %v20778_v28 = vld [vmem:[#allocation8_spill] sm:$0xff] }
 0x366   :  { %5463 = vst.msk [vmem:[#allocation3 + $0xa8] sm:$0xf] %vm1236_vm5, %v15798_v45  ;;  %v5104_v43 = vld [vmem:[#allocation2 + $0x108] sm:$0xff]  ;;  %v15871_v54 = vpack.c.bf16 %v5536_v8, %v5536_v8  ;;  %v4662_v20 = vpop.f32.mrf.mxu1  ;;  %v3836_v4 = vadd.f32 %v18579_v2, %v20778_v28 }
 0x367   :  { %v3904_v42 = vpop.f32.mrf.mxu0  ;;  %v15799_v51 = vpack.c.bf16 %v5104_v43, %v5104_v43  ;;  %v4977_v55 = vmax.f32 %v4913_v40, 0.0  ;;  %v4845_v38 = vadd.f32 %v4662_v20, %v3828_v29  ;;  %v20779_v20 = vld [vmem:[#allocation9_spill] sm:$0xff] }
 0x368   :  { %5846 = vrot.lane.b32.xlu0 %v15871_v54, %s17010_s19  ;;  %v4664_v31 = vpop.f32.mrf.mxu1 }
 0x369   :  { %v18745_v47 = vpop.f32.mrf.mxu0  ;;  %5464 = vst.msk [vmem:[#allocation3 + $0xb0] sm:$0xf] %vm1236_vm5, %v15799_v51  ;;  %v6112_v18 = vld [vmem:[#allocation2 + $0x10a] sm:$0xff]  ;;  %v6113_v30 = vld [vmem:[#allocation2 + $0x112] sm:$0xff]  ;;  %v4914_v14 = vadd.f32 %v18518_v12, %v4845_v38 }
 0x36a   :  { %v5537_v53 = vld [vmem:[#allocation2 + $0x111] sm:$0xff]  ;;  %v15943_v33 = vpack.c.bf16 %v6112_v18, %v6112_v18  ;;  %v15944_v50 = vpack.c.bf16 %v6113_v30, %v6113_v30  ;;  %5041 = vst.msk [vmem:[#allocation2 + $0x129] sm:$0xff] %vm28_vm3, %v4977_v55  ;;  %v4665_v41 = vpop.f32.mrf.mxu1  ;;  %v3839_v55 = vadd.f32 %v18589_v15, %v20779_v20 }
 0x36b   :  { %v3909_v11 = vpop.f32.mrf.mxu0  ;;  %v15872_v17 = vpack.c.bf16 %v5537_v53, %v5537_v53  ;;  %v5105_v21 = vld [vmem:[#allocation2 + $0x110] sm:$0xff]  ;;  %v4978_v56 = vmax.f32 %v4914_v14, 0.0  ;;  %v4846_v49 = vadd.f32 %v4665_v41, %v3831_v60 }
 0x36c   :  { %v15800_v44 = vpack.c.bf16 %v5105_v21, %v5105_v21  ;;  %6472 = vst.msk [vmem:[#allocation3 + $0xb4] sm:$0xf] %vm1236_vm5, %v15943_v33  ;;  %6473 = vst.msk [vmem:[#allocation3 + $0xbc] sm:$0xf] %vm1236_vm5, %v15944_v50  ;;  %v4667_v10 = vpop.f32.mrf.mxu1  ;;  %v5538_v45 = vld [vmem:[#allocation2 + $0x121] sm:$0xff] }
 0x36d   :  { %v18755_v48 = vpop.f32.mrf.mxu0  ;;  %5848 = vrot.lane.b32.xlu1 %v15872_v17, %s17010_s19  ;;  %v5106_v5 = vld [vmem:[#allocation2 + $0x120] sm:$0xff]  ;;  %5042 = vst.msk [vmem:[#allocation2 + $0x139] sm:$0xff] %vm28_vm3, %v4978_v56  ;;  %v4915_v8 = vadd.f32 %v18518_v12, %v4846_v49  ;;  %v15873_v23 = vpack.c.bf16 %v5538_v45, %v5538_v45  ;;  %v20780_v49 = vld [vmem:[#allocation10_spill] sm:$0xff] }
 0x36e   :  { %5465 = vst.msk [vmem:[#allocation3 + $0xb8] sm:$0xf] %vm1236_vm5, %v15800_v44  ;;  %v15801_v29 = vpack.c.bf16 %v5106_v5, %v5106_v5  ;;  %v4670_v40 = vpop.f32.mrf.mxu1  ;;  %v3844_v10 = vadd.f32 %v18596_v61, %v20780_v49 }
 0x36f   :  { %v3912_v43 = vpop.f32.mrf.mxu0  ;;  %v4979_v42 = vmax.f32 %v4915_v8, 0.0  ;;  %v4847_v51 = vadd.f32 %v4670_v40, %v3836_v4  ;;  %5850 = vrot.lane.b32.xlu0 %v15873_v23, %s17010_s19  ;;  %v20781_v40 = vld [vmem:[#allocation11_spill] sm:$0xff] }
 0x370   :  { %5466 = vst.msk [vmem:[#allocation3 + $0xc0] sm:$0xf] %vm1236_vm5, %v15801_v29  ;;  %v4672_v24 = vpop.f32.mrf.mxu1 }
 0x371   :  { %v18763_v54 = vpop.f32.mrf.mxu0  ;;  %v6114_v2 = vld [vmem:[#allocation2 + $0x122] sm:$0xff]  ;;  %v6115_v38 = vld [vmem:[#allocation2 + $0x12a] sm:$0xff]  ;;  %5043 = vst.msk [vmem:[#allocation2 + $0x141] sm:$0xff] %vm28_vm3, %v4979_v42  ;;  %v4916_v31 = vadd.f32 %v18518_v12, %v4847_v51  ;;  %v3847_v42 = vadd.f32 %v18606_v13, %v20781_v40 }
 0x372   :  { %v5539_v60 = vld [vmem:[#allocation2 + $0x129] sm:$0xff]  ;;  %v15945_v18 = vpack.c.bf16 %v6114_v2, %v6114_v2  ;;  %v15946_v30 = vpack.c.bf16 %v6115_v38, %v6115_v38  ;;  %v4673_v14 = vpop.f32.mrf.mxu1  ;;  %v18791_v38 = vld [vmem:[%s20737_s4] ss:$0 sm:$0xff] }
 0x373   :  { %v3917_v53 = vpop.f32.mrf.mxu0  ;;  %v15874_v33 = vpack.c.bf16 %v5539_v60, %v5539_v60  ;;  %v5107_v50 = vld [vmem:[#allocation2 + $0x128] sm:$0xff]  ;;  %v4980_v15 = vmax.f32 %v4916_v31, 0.0  ;;  %v4848_v21 = vadd.f32 %v4673_v14, %v3839_v55 }
 0x374   :  { %v15802_v11 = vpack.c.bf16 %v5107_v50, %v5107_v50  ;;  %6474 = vst.msk [vmem:[#allocation3 + $0xc4] sm:$0xf] %vm1236_vm5, %v15945_v18  ;;  %6475 = vst.msk [vmem:[#allocation3 + $0xcc] sm:$0xf] %vm1236_vm5, %v15946_v30  ;;  %v4675_v41 = vpop.f32.mrf.mxu1  ;;  %v5540_v44 = vld [vmem:[#allocation2 + $0x139] sm:$0xff] }
 0x375   :  { %v18773_v17 = vpop.f32.mrf.mxu0  ;;  %5852 = vrot.lane.b32.xlu1 %v15874_v33, %s17010_s19  ;;  %v5108_v56 = vld [vmem:[#allocation2 + $0x138] sm:$0xff]  ;;  %5044 = vst.msk [vmem:[#allocation2 + $0x151] sm:$0xff] %vm28_vm3, %v4980_v15  ;;  %v4917_v45 = vadd.f32 %v18518_v12, %v4848_v21  ;;  %v15875_v28 = vpack.c.bf16 %v5540_v44, %v5540_v44 }
 0x376   :  { %5467 = vst.msk [vmem:[#allocation3 + $0xc8] sm:$0xf] %vm1236_vm5, %v15802_v11  ;;  %v15803_v4 = vpack.c.bf16 %v5108_v56, %v5108_v56  ;;  %v4678_v8 = vpop.f32.mrf.mxu1  ;;  %v20782_v21 = vld [vmem:[#allocation12_spill] sm:$0xff] }
 0x377   :  { %v3920_v5 = vpop.f32.mrf.mxu0  ;;  %v4981_v43 = vmax.f32 %v4917_v45, 0.0  ;;  %v4849_v29 = vadd.f32 %v4678_v8, %v3844_v10  ;;  %5854 = vrot.lane.b32.xlu0 %v15875_v28, %s17010_s19  ;;  %v3852_v41 = vadd.f32 %v18613_v39, %v20782_v21  ;;  %v20783_v8 = vld [vmem:[#allocation13_spill] sm:$0xff] }
 0x378   :  { %5468 = vst.msk [vmem:[#allocation3 + $0xd0] sm:$0xf] %vm1236_vm5, %v15803_v4  ;;  %v6116_v61 = vld [vmem:[#allocation2 + $0x13a] sm:$0xff]  ;;  %v6117_v51 = vld [vmem:[#allocation2 + $0x142] sm:$0xff]  ;;  %v4680_v20 = vpop.f32.mrf.mxu1 }
 0x379   :  { %v18781_v23 = vpop.f32.mrf.mxu0  ;;  %v5541_v55 = vld [vmem:[#allocation2 + $0x141] sm:$0xff]  ;;  %v15947_v12 = vpack.c.bf16 %v6116_v61, %v6116_v61  ;;  %v15948_v2 = vpack.c.bf16 %v6117_v51, %v6117_v51  ;;  %5045 = vst.msk [vmem:[#allocation2 + $0x159] sm:$0xff] %vm28_vm3, %v4981_v43  ;;  %v4918_v24 = vadd.f32 %v18791_v38, %v4849_v29  ;;  %v3855_v43 = vadd.f32 %v18624_v46, %v20783_v8 }
 0x37a   :  { %v15876_v18 = vpack.c.bf16 %v5541_v55, %v5541_v55  ;;  %v5109_v30 = vld [vmem:[#allocation2 + $0x140] sm:$0xff]  ;;  %v4681_v31 = vpop.f32.mrf.mxu1 }
 0x37b   :  { %v3925_v60 = vpop.f32.mrf.mxu0  ;;  %v15804_v13 = vpack.c.bf16 %v5109_v30, %v5109_v30  ;;  %6476 = vst.msk [vmem:[#allocation3 + $0xd4] sm:$0xf] %vm1236_vm5, %v15947_v12  ;;  %6477 = vst.msk [vmem:[#allocation3 + $0xdc] sm:$0xf] %vm1236_vm5, %v15948_v2  ;;  %v4982_v53 = vmax.f32 %v4918_v24, 0.0  ;;  %v4850_v50 = vadd.f32 %v4681_v31, %v3847_v42 }
 0x37c   :  { %5856 = vrot.lane.b32.xlu1 %v15876_v18, %s17010_s19  ;;  %v4683_v14 = vpop.f32.mrf.mxu1  ;;  %v5542_v11 = vld [vmem:[#allocation2 + $0x151] sm:$0xff] }
 0x37d   :  { %v18796_v33 = vpop.f32.mrf.mxu0  ;;  %5469 = vst.msk [vmem:[#allocation3 + $0xd8] sm:$0xf] %vm1236_vm5, %v15804_v13  ;;  %v5110_v15 = vld [vmem:[#allocation2 + $0x150] sm:$0xff]  ;;  %v4919_v44 = vadd.f32 %v18791_v38, %v4850_v50  ;;  %v15877_v49 = vpack.c.bf16 %v5542_v11, %v5542_v11  ;;  %v20784_v50 = vld [vmem:[#allocation14_spill] sm:$0xff] }
 0x37e   :  { %5046 = vst.msk [vmem:[#allocation2 + $0x169] sm:$0xff] %vm28_vm3, %v4982_v53  ;;  %v15805_v10 = vpack.c.bf16 %v5110_v15, %v5110_v15  ;;  %v4686_v45 = vpop.f32.mrf.mxu1  ;;  %v3860_v14 = vadd.f32 %v18634_v0, %v20784_v50 }
 0x37f   :  { %v3928_v56 = vpop.f32.mrf.mxu0  ;;  %v4983_v5 = vmax.f32 %v4919_v44, 0.0  ;;  %v4851_v4 = vadd.f32 %v4686_v45, %v3852_v41  ;;  %5858 = vrot.lane.b32.xlu0 %v15877_v49, %s17010_s19  ;;  %v20785_v45 = vld [vmem:[#allocation15_spill] sm:$0xff] }
 0x380   :  { %5470 = vst.msk [vmem:[#allocation3 + $0xe0] sm:$0xf] %vm1236_vm5, %v15805_v10  ;;  %v6118_v39 = vld [vmem:[#allocation2 + $0x152] sm:$0xff]  ;;  %v6119_v29 = vld [vmem:[#allocation2 + $0x15a] sm:$0xff]  ;;  %v4688_v40 = vpop.f32.mrf.mxu1 }
 0x381   :  { %v18804_v28 = vpop.f32.mrf.mxu0  ;;  %v5543_v42 = vld [vmem:[#allocation2 + $0x159] sm:$0xff]  ;;  %v15949_v61 = vpack.c.bf16 %v6118_v39, %v6118_v39  ;;  %v15950_v51 = vpack.c.bf16 %v6119_v29, %v6119_v29  ;;  %5047 = vst.msk [vmem:[#allocation2 + $0x171] sm:$0xff] %vm28_vm3, %v4983_v5  ;;  %v4920_v20 = vadd.f32 %v18791_v38, %v4851_v4  ;;  %v3863_v5 = vadd.f32 %v18647_v34, %v20785_v45 }
 0x382   :  { %v15878_v12 = vpack.c.bf16 %v5543_v42, %v5543_v42  ;;  %v5111_v2 = vld [vmem:[#allocation2 + $0x158] sm:$0xff]  ;;  %v4689_v24 = vpop.f32.mrf.mxu1 }
 0x383   :  { %v3933_v55 = vpop.f32.mrf.mxu0  ;;  %v15806_v60 = vpack.c.bf16 %v5111_v2, %v5111_v2  ;;  %6478 = vst.msk [vmem:[#allocation3 + $0xe4] sm:$0xf] %vm1236_vm5, %v15949_v61  ;;  %6479 = vst.msk [vmem:[#allocation3 + $0xec] sm:$0xf] %vm1236_vm5, %v15950_v51  ;;  %v4984_v46 = vmax.f32 %v4920_v20, 0.0  ;;  %v4852_v30 = vadd.f32 %v4689_v24, %v3855_v43 }
 0x384   :  { %5860 = vrot.lane.b32.xlu1 %v15878_v12, %s17010_s19  ;;  %v4691_v31 = vpop.f32.mrf.mxu1 }
 0x385   :  { %v18814_v18 = vpop.f32.mrf.mxu0  ;;  %v5544_v13 = vld [vmem:[#allocation2 + $0x169] sm:$0xff]  ;;  %5471 = vst.msk [vmem:[#allocation3 + $0xe8] sm:$0xf] %vm1236_vm5, %v15806_v60  ;;  %v4921_v11 = vadd.f32 %v18791_v38, %v4852_v30  ;;  %v20786_v31 = vld [vmem:[#allocation16_spill] sm:$0xff] }
 0x386   :  { %v5112_v53 = vld [vmem:[#allocation2 + $0x168] sm:$0xff]  ;;  %5048 = vst.msk [vmem:[#allocation2 + $0x181] sm:$0xff] %vm28_vm3, %v4984_v46  ;;  %v15879_v21 = vpack.c.bf16 %v5544_v13, %v5544_v13  ;;  %v4694_v44 = vpop.f32.mrf.mxu1  ;;  %v3868_v13 = vadd.f32 %v18655_v62, %v20786_v31  ;;  %v20787_v62 = vld [vmem:[#allocation17_spill] sm:$0xff] }
 0x387   :  { %v3936_v15 = vpop.f32.mrf.mxu0  ;;  %v15807_v41 = vpack.c.bf16 %v5112_v53, %v5112_v53  ;;  %v4985_v56 = vmax.f32 %v4921_v11, 0.0  ;;  %v4853_v10 = vadd.f32 %v4694_v44, %v3860_v14 }
 0x388   :  { %5862 = vrot.lane.b32.xlu0 %v15879_v21, %s17010_s19  ;;  %v6120_v0 = vld [vmem:[#allocation2 + $0x16a] sm:$0xff]  ;;  %v6121_v4 = vld [vmem:[#allocation2 + $0x172] sm:$0xff]  ;;  %v4696_v8 = vpop.f32.mrf.mxu1 }
 0x389   :  { %v18822_v49 = vpop.f32.mrf.mxu0  ;;  %5472 = vst.msk [vmem:[#allocation3 + $0xf0] sm:$0xf] %vm1236_vm5, %v15807_v41  ;;  %v5545_v43 = vld [vmem:[#allocation2 + $0x171] sm:$0xff]  ;;  %v15951_v39 = vpack.c.bf16 %v6120_v0, %v6120_v0  ;;  %v15952_v29 = vpack.c.bf16 %v6121_v4, %v6121_v4  ;;  %v4922_v40 = vadd.f32 %v18791_v38, %v4853_v10  ;;  %v5807_v61 = vpop.permute.xlu0 %5806  ;;  %v3871_v10 = vadd.f32 %v18665_v63, %v20787_v62 }
 0x38a   :  { %5049 = vst.msk [vmem:[#allocation2 + $0x189] sm:$0xff] %vm28_vm3, %v4985_v56  ;;  %v15880_v51 = vpack.c.bf16 %v5545_v43, %v5545_v43  ;;  %v5113_v20 = vld [vmem:[#allocation2 + $0x170] sm:$0xff]  ;;  %v4697_v55 = vpop.f32.mrf.mxu1 }
 0x38b   :  { %v3941_v42 = vpop.f32.mrf.mxu0  ;;  %6020 = vst.msk [vmem:[#allocation3 + $0x10] sm:$0xf] %vm1813_vm7, %v5807_v61  ;;  %v15808_v12 = vpack.c.bf16 %v5113_v20, %v5113_v20  ;;  %v4986_v34 = vmax.f32 %v4922_v40, 0.0  ;;  %v4854_v24 = vadd.f32 %v4697_v55, %v3863_v5 }
 0x38c   :  { %6480 = vst.msk [vmem:[#allocation3 + $0xf4] sm:$0xf] %vm1236_vm5, %v15951_v39  ;;  %6481 = vst.msk [vmem:[#allocation3 + $0xfc] sm:$0xf] %vm1236_vm5, %v15952_v29  ;;  %5864 = vrot.lane.b32.xlu1 %v15880_v51, %s17010_s19  ;;  %v4699_v60 = vpop.f32.mrf.mxu1 }
 0x38d   :  { %v18833_v2 = vpop.f32.mrf.mxu0  ;;  %v5546_v46 = vld [vmem:[#allocation2 + $0x181] sm:$0xff]  ;;  %5473 = vst.msk [vmem:[#allocation3 + $0xf8] sm:$0xf] %vm1236_vm5, %v15808_v12  ;;  %v4923_v53 = vadd.f32 %v18791_v38, %v4854_v24 }
 0x38e   :  { %v5114_v30 = vld [vmem:[#allocation2 + $0x180] sm:$0xff]  ;;  %5050 = vst.msk [vmem:[#allocation2 + $0x1c9] sm:$0xff] %vm28_vm3, %v4986_v34  ;;  %v5809_v14 = vpop.permute.xlu1 %5808  ;;  %v15881_v11 = vpack.c.bf16 %v5546_v46, %v5546_v46  ;;  %v4702_v21 = vpop.f32.mrf.mxu1  ;;  %v20788_v46 = vld [vmem:[#allocation18_spill] sm:$0xff] }
 0x38f   :  { %v3944_v50 = vpop.f32.mrf.mxu0  ;;  %v15809_v15 = vpack.c.bf16 %v5114_v30, %v5114_v30  ;;  %6021 = vst.msk [vmem:[#allocation3 + $0x18] sm:$0xf] %vm1813_vm7, %v5809_v14  ;;  %v4987_v41 = vmax.f32 %v4923_v53, 0.0  ;;  %v4855_v56 = vadd.f32 %v4702_v21, %v3868_v13  ;;  %v3876_v30 = vadd.f32 %v18673_v27, %v20788_v46  ;;  %v16614_v14 = vld [vmem:[#allocation3 + $0x14] ss:$8 sps:$4 sm:$0xff]  }
 0x390   :  { %5866 = vrot.lane.b32.xlu0 %v15881_v11, %s17010_s19  ;;  %v4704_v5 = vpop.f32.mrf.mxu1  ;;  %14673 = vmatprep.mubr.msk.bf16.mxu0 %vm28_vm3, %v16614_v14 }
 0x391   :  { %v18842_v44 = vpop.f32.mrf.mxu0  ;;  %5474 = vst.msk [vmem:[#allocation3 + $0x100] sm:$0xf] %vm1236_vm5, %v15809_v15  ;;  %v6122_v45 = vld [vmem:[#allocation2 + $0x182] sm:$0xff]  ;;  %v4924_v8 = vadd.f32 %v18791_v38, %v4855_v56  ;;  %v5811_v39 = vpop.permute.xlu0 %5810  ;;  %v6123_v42 = vld [vmem:[#allocation2 + $0x18a] sm:$0xff] }
 0x392   :  { %v5547_v0 = vld [vmem:[#allocation2 + $0x189] sm:$0xff]  ;;  %5051 = vst.msk [vmem:[#allocation2 + $0x1d1] sm:$0xff] %vm28_vm3, %v4987_v41  ;;  %v15953_v61 = vpack.c.bf16 %v6122_v45, %v6122_v45  ;;  %v4705_v51 = vpop.f32.mrf.mxu1  ;;  %v15954_v20 = vpack.c.bf16 %v6123_v42, %v6123_v42  ;;  %v16647_v41 = vld [vmem:[%s20736_s3 + $0x158] sm:$0xff]  }
 0x393   :  { %v5115_v4 = vld [vmem:[#allocation2 + $0x188] sm:$0xff]  ;;  %v3949_v43 = vpop.f32.mrf.mxu0  ;;  %v15882_v29 = vpack.c.bf16 %v5547_v0, %v5547_v0  ;;  %6022 = vst.msk [vmem:[#allocation3 + $0x20] sm:$0xf] %vm1813_vm7, %v5811_v39  ;;  %v4988_v55 = vmax.f32 %v4924_v8, 0.0  ;;  %v4856_v12 = vadd.f32 %v4705_v51, %v3871_v10  ;;  %v16650_v10 = vld [vmem:[%s20736_s3 + $0x218] sm:$0xff]   ;;  %v20789_v45 = vld [vmem:[#allocation19_spill] sm:$0xff]  ;;  %7902 = vmatpush1.bf16.msra.mxu1 %v16647_v41 }
 0x394   :  { %v15810_v40 = vpack.c.bf16 %v5115_v4, %v5115_v4  ;;  %6482 = vst.msk [vmem:[#allocation3 + $0x104] sm:$0xf] %vm1236_vm5, %v15953_v61  ;;  %v4707_v34 = vpop.f32.mrf.mxu1  ;;  %6483 = vst.msk [vmem:[#allocation3 + $0x10c] sm:$0xf] %vm1236_vm5, %v15954_v20  ;;  %v3879_v5 = vadd.f32 %v18683_v26, %v20789_v45  ;;  %7903 = vmatprep.subr.bf16.mxu1 %v20761_v6  ;;  %v16617_v41 = vld [vmem:[#allocation3 + $0x24] ss:$8 sps:$4 sm:$0xff]  }
 0x395   :  { %v18851_v63 = vpop.f32.mrf.mxu0  ;;  %5868 = vrot.lane.b32.xlu1 %v15882_v29, %s17010_s19  ;;  %v5552_v24 = vld [vmem:[#allocation2 + $0x1c9] sm:$0xff]  ;;  %5052 = vst.msk [vmem:[#allocation2 + $0x1e1] sm:$0xff] %vm28_vm3, %v4988_v55  ;;  %v4925_v31 = vadd.f32 %v18791_v38, %v4856_v12 }
 0x396   :  { %5475 = vst.msk [vmem:[#allocation3 + $0x108] sm:$0xf] %vm1236_vm5, %v15810_v40  ;;  %v5120_v60 = vld [vmem:[#allocation2 + $0x1c8] sm:$0xff]  ;;  %v5813_v53 = vpop.permute.xlu1 %5812  ;;  %v15887_v50 = vpack.c.bf16 %v5552_v24, %v5552_v24  ;;  %v16616_v11 = vld [vmem:[#allocation3 + $0x10] ss:$8 sps:$4 sm:$0xff]   ;;  %v4710_v21 = vpop.f32.mrf.mxu1 }
 0x397   :  { %v3952_v13 = vpop.f32.mrf.mxu0  ;;  %v15815_v15 = vpack.c.bf16 %v5120_v60, %v5120_v60  ;;  %6023 = vst.msk [vmem:[#allocation3 + $0x28] sm:$0xf] %vm1813_vm7, %v5813_v53  ;;  %v4989_v56 = vmax.f32 %v4925_v31, 0.0  ;;  %v4857_v27 = vadd.f32 %v4710_v21, %v3876_v30  ;;  %7189 = vmatmul.mubr.bf16.vlgmr.msra.gmra.mxu0 %v16616_v11 }
 0x398   :  { %5878 = vrot.lane.b32.xlu0 %v15887_v50, %s17010_s19  ;;  %v4712_v4 = vpop.f32.mrf.mxu1  ;;  %8736 = vmatpush1.bf16.msra.mxu0 %v16650_v10  ;;  %v20790_v13 = vld [vmem:[#allocation20_spill] sm:$0xff] }
 0x399   :  { %v18865_v62 = vpop.f32.mrf.mxu0  ;;  %5480 = vst.msk [vmem:[#allocation3 + $0x130] sm:$0xf] %vm1236_vm5, %v15815_v15  ;;  %v6128_v0 = vld [vmem:[#allocation2 + $0x1ca] sm:$0xff]  ;;  %v4926_v39 = vadd.f32 %v18791_v38, %v4857_v27  ;;  %v6129_v51 = vld [vmem:[#allocation2 + $0x1d2] sm:$0xff]  ;;  %8737 = vmatprep.subr.bf16.mxu0 %v20761_v6  ;;  %v3884_v53 = vadd.f32 %v18691_v59, %v20790_v13  ;;  %14674 = vmatprep.mubr.msk.bf16.mxu0 %vm28_vm3, %v16617_v41  ;;  %v20791_v59 = vld [vmem:[#allocation21_spill] sm:$0xff] }
 0x39a   :  { %v5553_v8 = vld [vmem:[#allocation2 + $0x1d1] sm:$0xff]  ;;  %5053 = vst.msk [vmem:[#allocation2 + $0x1e9] sm:$0xff] %vm28_vm3, %v4989_v56  ;;  %v5815_v40 = vpop.permute.xlu0 %5814  ;;  %v15959_v20 = vpack.c.bf16 %v6128_v0, %v6128_v0  ;;  %v4713_v26 = vpop.f32.mrf.mxu1  ;;  %v15960_v55 = vpack.c.bf16 %v6129_v51, %v6129_v51  ;;  %v6613_v30 = vld [vmem:[#allocation3 + $0x20] sm:$0xff]  ;;  %v3887_v4 = vadd.f32 %v18701_v25, %v20791_v59 }
 0x39b   :  { %v5121_v43 = vld [vmem:[#allocation2 + $0x1d0] sm:$0xff]  ;;  %v3957_v29 = vpop.f32.mrf.mxu0  ;;  %v15888_v42 = vpack.c.bf16 %v5553_v8, %v5553_v8  ;;  %6024 = vst.msk [vmem:[#allocation3 + $0x30] sm:$0xf] %vm1813_vm7, %v5815_v40  ;;  %v4990_v12 = vmax.f32 %v4926_v39, 0.0  ;;  %v4858_v24 = vadd.f32 %v4713_v26, %v3879_v5 }
 0x39c   :  { %v15816_v61 = vpack.c.bf16 %v5121_v43, %v5121_v43  ;;  %6488 = vst.msk [vmem:[#allocation3 + $0x134] sm:$0xf] %vm1236_vm5, %v15959_v20  ;;  %v4715_v60 = vpop.f32.mrf.mxu1  ;;  %v5554_v46 = vld [vmem:[#allocation2 + $0x1e1] sm:$0xff]  ;;  %6489 = vst.msk [vmem:[#allocation3 + $0x13c] sm:$0xf] %vm1236_vm5, %v15960_v55 }
 0x39d   :  { %v18880_v34 = vpop.f32.mrf.mxu0  ;;  %5880 = vrot.lane.b32.xlu1 %v15888_v42, %s17010_s19  ;;  %v5122_v31 = vld [vmem:[#allocation2 + $0x1e0] sm:$0xff]  ;;  %5054 = vst.msk [vmem:[#allocation2 + $0x1f9] sm:$0xff] %vm28_vm3, %v4990_v12  ;;  %v4927_v50 = vadd.f32 %v18791_v38, %v4858_v24  ;;  %v15889_v15 = vpack.c.bf16 %v5554_v46, %v5554_v46 }
 0x39e   :  { %5481 = vst.msk [vmem:[#allocation3 + $0x138] sm:$0xf] %vm1236_vm5, %v15816_v61  ;;  %v5817_v11 = vpop.permute.xlu1 %5816  ;;  %v6614_v21 = vld [vmem:[#allocation3 + $0x28] sm:$0xff]  ;;  %v15817_v56 = vpack.c.bf16 %v5122_v31, %v5122_v31  ;;  %v4718_v27 = vpop.f32.mrf.mxu1 }
 0x39f   :  { %v3960_v14 = vpop.f32.mrf.mxu0  ;;  %6025 = vst.msk [vmem:[#allocation3 + $0x38] sm:$0xf] %vm1813_vm7, %v5817_v11  ;;  %v14599_v10 = vcombine.low %v6613_v30, %v6614_v21  ;;  %v4991_v45 = vmax.f32 %v4927_v50, 0.0  ;;  %v4859_v0 = vadd.f32 %v4718_v27, %v3884_v53  ;;  %5882 = vrot.lane.b32.xlu0 %v15889_v15, %s17010_s19  ;;  %v20792_v50 = vld [vmem:[#allocation22_spill] sm:$0xff]  ;;  %v16619_v27 = vld [vmem:[#allocation3 + $0x34] ss:$8 sps:$4 sm:$0xff]  }
 0x3a0   :  { %5482 = vst.msk [vmem:[#allocation3 + $0x140] sm:$0xf] %vm1236_vm5, %v15817_v56  ;;  %v4720_v39 = vpop.f32.mrf.mxu1  ;;  %v3892_v14 = vadd.f32 %v18709_v3, %v20792_v50  ;;  %v20793_v3 = vld [vmem:[#allocation23_spill] sm:$0xff] }
 0x3a1   :  { %v18891_v5 = vpop.f32.mrf.mxu0  ;;  %v6130_v8 = vld [vmem:[#allocation2 + $0x1e2] sm:$0xff]  ;;  %v6131_v43 = vld [vmem:[#allocation2 + $0x1ea] sm:$0xff]  ;;  %7197 = vmatmul.mubr.bf16.gmra.mxu0 %v14599_v10  ;;  %5055 = vst.msk [vmem:[#allocation2 + $0x201] sm:$0xff] %vm28_vm3, %v4991_v45  ;;  %v4928_v61 = vadd.f32 %v18791_v38, %v4859_v0 }
 0x3a2   :  { %v5555_v29 = vld [vmem:[#allocation2 + $0x1e9] sm:$0xff]  ;;  %v15961_v40 = vpack.c.bf16 %v6130_v8, %v6130_v8  ;;  %v15962_v42 = vpack.c.bf16 %v6131_v43, %v6131_v43  ;;  %v5819_v20 = vpop.permute.xlu0 %5818  ;;  %v4721_v12 = vpop.f32.mrf.mxu1  ;;  %14675 = vmatprep.mubr.msk.bf16.mxu0 %vm28_vm3, %v16619_v27  ;;  %v3895_v43 = vadd.f32 %v18719_v16, %v20793_v3 }
 0x3a3   :  { %v3965_v51 = vpop.f32.mrf.mxu0  ;;  %v15890_v26 = vpack.c.bf16 %v5555_v29, %v5555_v29  ;;  %v5123_v55 = vld [vmem:[#allocation2 + $0x1e8] sm:$0xff]  ;;  %6026 = vst.msk [vmem:[#allocation3 + $0x40] sm:$0xf] %vm1813_vm7, %v5819_v20  ;;  %v4992_v25 = vmax.f32 %v4928_v61, 0.0  ;;  %v4860_v46 = vadd.f32 %v4721_v12, %v3887_v4  ;;  %v6615_v13 = vld [vmem:[#allocation3 + $0x30] sm:$0xff] }
 0x3a4   :  { %v15818_v24 = vpack.c.bf16 %v5123_v55, %v5123_v55  ;;  %6490 = vst.msk [vmem:[#allocation3 + $0x144] sm:$0xf] %vm1236_vm5, %v15961_v40  ;;  %6491 = vst.msk [vmem:[#allocation3 + $0x14c] sm:$0xf] %vm1236_vm5, %v15962_v42  ;;  %v4723_v30 = vpop.f32.mrf.mxu1  ;;  %v5556_v31 = vld [vmem:[#allocation2 + $0x1f9] sm:$0xff]  ;;  %v16655_v16 = vld [vmem:[%s20736_s3 + $0x150] sm:$0xff]  }
 0x3a5   :  { %v18903_v60 = vpop.f32.mrf.mxu0  ;;  %5884 = vrot.lane.b32.xlu1 %v15890_v26, %s17010_s19  ;;  %v5124_v53 = vld [vmem:[#allocation2 + $0x1f8] sm:$0xff]  ;;  %5056 = vst.msk [vmem:[#allocation2 + $0x211] sm:$0xff] %vm28_vm3, %v4992_v25  ;;  %v4929_v11 = vadd.f32 %v18791_v38, %v4860_v46  ;;  %v15891_v41 = vpack.c.bf16 %v5556_v31, %v5556_v31  ;;  %7904 = vmatpush1.bf16.msra.mxu1 %v16655_v16 }
 0x3a6   :  { %5483 = vst.msk [vmem:[#allocation3 + $0x148] sm:$0xf] %vm1236_vm5, %v15818_v24  ;;  %v6616_v56 = vld [vmem:[#allocation3 + $0x38] sm:$0xff]  ;;  %v15819_v10 = vpack.c.bf16 %v5124_v53, %v5124_v53  ;;  %v4726_v45 = vpop.f32.mrf.mxu1  ;;  %7905 = vmatprep.subr.bf16.mxu1 %v20761_v6 }
 0x3a7   :  { %v3968_v15 = vpop.f32.mrf.mxu0  ;;  %v5821_v21 = vpop.permute.xlu1 %5820  ;;  %v14601_v0 = vcombine.low %v6615_v13, %v6616_v56  ;;  %v4993_v59 = vmax.f32 %v4929_v11, 0.0  ;;  %v4861_v8 = vadd.f32 %v4726_v45, %v3892_v14  ;;  %5886 = vrot.lane.b32.xlu0 %v15891_v41, %s17010_s19 }
 0x3a8   :  { %6027 = vst.msk [vmem:[#allocation3 + $0x48] sm:$0xf] %vm1813_vm7, %v5821_v21  ;;  %v6132_v39 = vld [vmem:[#allocation2 + $0x1fa] sm:$0xff]  ;;  %v6133_v29 = vld [vmem:[#allocation2 + $0x202] sm:$0xff]  ;;  %v4728_v40 = vpop.f32.mrf.mxu1 }
 0x3a9   :  { %v18912_v4 = vpop.f32.mrf.mxu0  ;;  %5484 = vst.msk [vmem:[#allocation3 + $0x150] sm:$0xf] %vm1236_vm5, %v15819_v10  ;;  %7205 = vmatmul.mubr.bf16.gmra.mxu0 %v14601_v0  ;;  %v5557_v42 = vld [vmem:[#allocation2 + $0x201] sm:$0xff]  ;;  %v15963_v61 = vpack.c.bf16 %v6132_v39, %v6132_v39  ;;  %v15964_v51 = vpack.c.bf16 %v6133_v29, %v6133_v29  ;;  %v4930_v20 = vadd.f32 %v18791_v38, %v4861_v8  ;;  %v20794_v15 = vld [vmem:[#allocation24_spill] sm:$0xff] }
 0x3aa   :  { %5057 = vst.msk [vmem:[#allocation2 + $0x219] sm:$0xff] %vm28_vm3, %v4993_v59  ;;  %v5823_v55 = vpop.permute.xlu0 %5822  ;;  %v15892_v12 = vpack.c.bf16 %v5557_v42, %v5557_v42  ;;  %v5125_v24 = vld [vmem:[#allocation2 + $0x200] sm:$0xff]  ;;  %v4729_v25 = vpop.f32.mrf.mxu1  ;;  %v3900_v21 = vadd.f32 %v18727_v22, %v20794_v15  ;;  %v16656_v22 = vld [vmem:[%s20736_s3 + $0x210] sm:$0xff]  }
 0x3ab   :  { %v3973_v26 = vpop.f32.mrf.mxu0  ;;  %6028 = vst.msk [vmem:[#allocation3 + $0x50] sm:$0xf] %vm1813_vm7, %v5823_v55  ;;  %v15820_v46 = vpack.c.bf16 %v5125_v24, %v5125_v24  ;;  %v4994_v30 = vmax.f32 %v4930_v20, 0.0  ;;  %v4862_v13 = vadd.f32 %v4729_v25, %v3895_v43  ;;  %v6617_v14 = vld [vmem:[#allocation3 + $0x40] sm:$0xff]  ;;  %8738 = vmatpush1.bf16.msra.mxu0 %v16656_v22 }
 0x3ac   :  { %6492 = vst.msk [vmem:[#allocation3 + $0x154] sm:$0xf] %vm1236_vm5, %v15963_v61  ;;  %6493 = vst.msk [vmem:[#allocation3 + $0x15c] sm:$0xf] %vm1236_vm5, %v15964_v51  ;;  %5888 = vrot.lane.b32.xlu1 %v15892_v12, %s17010_s19  ;;  %v4731_v53 = vpop.f32.mrf.mxu1  ;;  %v5558_v50 = vld [vmem:[#allocation2 + $0x211] sm:$0xff]  ;;  %v20795_v40 = vld [vmem:[#allocation25_spill] sm:$0xff]  ;;  %8739 = vmatprep.subr.bf16.mxu0 %v20761_v6 }
 0x3ad   :  { %v18927_v31 = vpop.f32.mrf.mxu0  ;;  %5485 = vst.msk [vmem:[#allocation3 + $0x158] sm:$0xf] %vm1236_vm5, %v15820_v46  ;;  %v5126_v11 = vld [vmem:[#allocation2 + $0x210] sm:$0xff]  ;;  %v4931_v41 = vadd.f32 %v18791_v38, %v4862_v13  ;;  %v15893_v10 = vpack.c.bf16 %v5558_v50, %v5558_v50  ;;  %v16621_v0 = vld [vmem:[#allocation3 + $0x44] ss:$8 sps:$4 sm:$0xff]   ;;  %v3903_v42 = vadd.f32 %v18737_v1, %v20795_v40 }
 0x3ae   :  { %5058 = vst.msk [vmem:[#allocation2 + $0x229] sm:$0xff] %vm28_vm3, %v4994_v30  ;;  %v15821_v59 = vpack.c.bf16 %v5126_v11, %v5126_v11  ;;  %v4734_v8 = vpop.f32.mrf.mxu1  ;;  %14676 = vmatprep.mubr.msk.bf16.mxu0 %vm28_vm3, %v16621_v0 }
 0x3af   :  { %v3976_v56 = vpop.f32.mrf.mxu0  ;;  %v5825_v27 = vpop.permute.xlu1 %5824  ;;  %v6618_v45 = vld [vmem:[#allocation3 + $0x48] sm:$0xff]  ;;  %v4995_v43 = vmax.f32 %v4931_v41, 0.0  ;;  %v4863_v29 = vadd.f32 %v4734_v8, %v3900_v21  ;;  %5890 = vrot.lane.b32.xlu0 %v15893_v10, %s17010_s19  ;;  %v16623_v8 = vld [vmem:[#allocation3 + $0x54] ss:$8 sps:$4 sm:$0xff]  }
 0x3b0   :  { %6029 = vst.msk [vmem:[#allocation3 + $0x58] sm:$0xf] %vm1813_vm7, %v5825_v27  ;;  %v14603_v3 = vcombine.low %v6617_v14, %v6618_v45  ;;  %v4736_v20 = vpop.f32.mrf.mxu1  ;;  %v3908_v56 = vadd.f32 %v18745_v47, %v18346_v35  ;;  %v3911_v35 = vadd.f32 %v18755_v48, %v18361_v57 }
 0x3b1   :  { %v18940_v39 = vpop.f32.mrf.mxu0  ;;  %5486 = vst.msk [vmem:[#allocation3 + $0x160] sm:$0xf] %vm1236_vm5, %v15821_v59  ;;  %v6134_v61 = vld [vmem:[#allocation2 + $0x212] sm:$0xff]  ;;  %v6135_v51 = vld [vmem:[#allocation2 + $0x21a] sm:$0xff]  ;;  %v4932_v24 = vadd.f32 %v18791_v38, %v4863_v29  ;;  %v5827_v46 = vpop.permute.xlu0 %5826 }
 0x3b2   :  { %7213 = vmatmul.mubr.bf16.gmra.mxu0 %v14603_v3  ;;  %v5559_v26 = vld [vmem:[#allocation2 + $0x219] sm:$0xff]  ;;  %v15965_v55 = vpack.c.bf16 %v6134_v61, %v6134_v61  ;;  %v15966_v12 = vpack.c.bf16 %v6135_v51, %v6135_v51  ;;  %5059 = vst.msk [vmem:[#allocation2 + $0x231] sm:$0xff] %vm28_vm3, %v4995_v43  ;;  %v4737_v13 = vpop.f32.mrf.mxu1  ;;  %v6619_v21 = vld [vmem:[#allocation3 + $0x50] sm:$0xff] }
 0x3b3   :  { %v3981_v25 = vpop.f32.mrf.mxu0  ;;  %v15894_v16 = vpack.c.bf16 %v5559_v26, %v5559_v26  ;;  %v5127_v30 = vld [vmem:[#allocation2 + $0x218] sm:$0xff]  ;;  %6030 = vst.msk [vmem:[#allocation3 + $0x60] sm:$0xf] %vm1813_vm7, %v5827_v46  ;;  %v4996_v53 = vmax.f32 %v4932_v24, 0.0  ;;  %v4864_v14 = vadd.f32 %v4737_v13, %v3903_v42  ;;  %14677 = vmatprep.mubr.msk.bf16.mxu0 %vm28_vm3, %v16623_v8 }
 0x3b4   :  { %v15822_v1 = vpack.c.bf16 %v5127_v30, %v5127_v30  ;;  %6494 = vst.msk [vmem:[#allocation3 + $0x164] sm:$0xf] %vm1236_vm5, %v15965_v55  ;;  %6495 = vst.msk [vmem:[#allocation3 + $0x16c] sm:$0xf] %vm1236_vm5, %v15966_v12  ;;  %v4739_v11 = vpop.f32.mrf.mxu1 }
 0x3b5   :  { %v18953_v50 = vpop.f32.mrf.mxu0  ;;  %5892 = vrot.lane.b32.xlu1 %v15894_v16, %s17010_s19  ;;  %v5560_v15 = vld [vmem:[#allocation2 + $0x229] sm:$0xff]  ;;  %5060 = vst.msk [vmem:[#allocation2 + $0x241] sm:$0xff] %vm28_vm3, %v4996_v53  ;;  %v4933_v27 = vadd.f32 %v18791_v38, %v4864_v14  ;;  %v3916_v14 = vadd.f32 %v18763_v54, %v18371_v58  ;;  %v3919_v58 = vadd.f32 %v18773_v17, %v18388_v37 }
 0x3b6   :  { %5487 = vst.msk [vmem:[#allocation3 + $0x168] sm:$0xf] %vm1236_vm5, %v15822_v1  ;;  %v5128_v41 = vld [vmem:[#allocation2 + $0x228] sm:$0xff]  ;;  %v15895_v0 = vpack.c.bf16 %v5560_v15, %v5560_v15  ;;  %v4742_v22 = vpop.f32.mrf.mxu1 }
 0x3b7   :  { %v3984_v10 = vpop.f32.mrf.mxu0  ;;  %v5829_v45 = vpop.permute.xlu1 %5828  ;;  %v6620_v59 = vld [vmem:[#allocation3 + $0x58] sm:$0xff]  ;;  %v15823_v3 = vpack.c.bf16 %v5128_v41, %v5128_v41  ;;  %v4997_v29 = vmax.f32 %v4933_v27, 0.0  ;;  %v4865_v40 = vadd.f32 %v4742_v22, %v3908_v56  ;;  %v16625_v56 = vld [vmem:[#allocation3 + $0x64] ss:$8 sps:$4 sm:$0xff]  }
 0x3b8   :  { %6031 = vst.msk [vmem:[#allocation3 + $0x68] sm:$0xf] %vm1813_vm7, %v5829_v45  ;;  %v14605_v43 = vcombine.low %v6619_v21, %v6620_v59  ;;  %5894 = vrot.lane.b32.xlu0 %v15895_v0, %s17010_s19  ;;  %v4744_v61 = vpop.f32.mrf.mxu1  ;;  %v16663_v37 = vld [vmem:[%s20736_s3 + $0x148] sm:$0xff]  }
 0x3b9   :  { %5488 = vst.msk [vmem:[#allocation3 + $0x170] sm:$0xf] %vm1236_vm5, %v15823_v3  ;;  %v6136_v47 = vld [vmem:[#allocation2 + $0x22a] sm:$0xff]  ;;  %v6137_v42 = vld [vmem:[#allocation2 + $0x232] sm:$0xff]  ;;  %v4934_v55 = vadd.f32 %v18791_v38, %v4865_v40  ;;  %v5831_v12 = vpop.permute.xlu0 %5830  ;;  %7906 = vmatpush1.bf16.msra.mxu1 %v16663_v37 }
 0x3ba   :  { %7221 = vmatmul.mubr.bf16.gmra.mxu0 %v14605_v43  ;;  %v5561_v51 = vld [vmem:[#allocation2 + $0x231] sm:$0xff]  ;;  %v15967_v20 = vpack.c.bf16 %v6136_v47, %v6136_v47  ;;  %v15968_v26 = vpack.c.bf16 %v6137_v42, %v6137_v42  ;;  %5061 = vst.msk [vmem:[#allocation2 + $0x249] sm:$0xff] %vm28_vm3, %v4997_v29  ;;  %v4745_v46 = vpop.f32.mrf.mxu1  ;;  %v6621_v1 = vld [vmem:[#allocation3 + $0x60] sm:$0xff]  ;;  %v16664_v17 = vld [vmem:[%s20736_s3 + $0x208] sm:$0xff]   ;;  %7907 = vmatprep.subr.bf16.mxu1 %v20761_v6 }
 0x3bb   :  { %v15896_v24 = vpack.c.bf16 %v5561_v51, %v5561_v51  ;;  %v5129_v25 = vld [vmem:[#allocation2 + $0x230] sm:$0xff]  ;;  %6032 = vst.msk [vmem:[#allocation3 + $0x70] sm:$0xf] %vm1813_vm7, %v5831_v12  ;;  %v4998_v57 = vmax.f32 %v4934_v55, 0.0  ;;  %v4866_v48 = vadd.f32 %v4745_v46, %v3911_v35  ;;  %14678 = vmatprep.mubr.msk.bf16.mxu0 %vm28_vm3, %v16625_v56  ;;  %v3924_v55 = vadd.f32 %v18781_v23, %v18393_v9 }
 0x3bc   :  { %v15824_v16 = vpack.c.bf16 %v5129_v25, %v5129_v25  ;;  %6496 = vst.msk [vmem:[#allocation3 + $0x174] sm:$0xf] %vm1236_vm5, %v15967_v20  ;;  %6497 = vst.msk [vmem:[#allocation3 + $0x17c] sm:$0xf] %vm1236_vm5, %v15968_v26  ;;  %v4747_v30 = vpop.f32.mrf.mxu1  ;;  %v5562_v13 = vld [vmem:[#allocation2 + $0x241] sm:$0xff]  ;;  %8740 = vmatpush1.bf16.msra.mxu0 %v16664_v17 }
 0x3bd   :  { %5896 = vrot.lane.b32.xlu1 %v15896_v24, %s17010_s19  ;;  %v5130_v53 = vld [vmem:[#allocation2 + $0x240] sm:$0xff]  ;;  %5062 = vst.msk [vmem:[#allocation2 + $0x259] sm:$0xff] %vm28_vm3, %v4998_v57  ;;  %v4935_v11 = vadd.f32 %v18791_v38, %v4866_v48  ;;  %v15897_v21 = vpack.c.bf16 %v5562_v13, %v5562_v13  ;;  %v16627_v13 = vld [vmem:[#allocation3 + $0x74] ss:$8 sps:$4 sm:$0xff]   ;;  %8741 = vmatprep.subr.bf16.mxu0 %v20761_v6 }
 0x3be   :  { %5489 = vst.msk [vmem:[#allocation3 + $0x178] sm:$0xf] %vm1236_vm5, %v15824_v16  ;;  %v5833_v15 = vpop.permute.xlu1 %5832  ;;  %v15825_v27 = vpack.c.bf16 %v5130_v53, %v5130_v53  ;;  %v4750_v10 = vpop.f32.mrf.mxu1 }
 0x3bf   :  { %v6622_v41 = vld [vmem:[#allocation3 + $0x68] sm:$0xff]  ;;  %6033 = vst.msk [vmem:[#allocation3 + $0x78] sm:$0xf] %vm1813_vm7, %v5833_v15  ;;  %v4999_v0 = vmax.f32 %v4935_v11, 0.0  ;;  %v4867_v59 = vadd.f32 %v4750_v10, %v3916_v14  ;;  %5898 = vrot.lane.b32.xlu0 %v15897_v21, %s17010_s19  ;;  %v3927_v11 = vadd.f32 %v18796_v33, %v18404_v36 }
 0x3c0   :  { %v14607_v45 = vcombine.low %v6621_v1, %v6622_v41  ;;  %5490 = vst.msk [vmem:[#allocation3 + $0x180] sm:$0xf] %vm1236_vm5, %v15825_v27  ;;  %v4752_v3 = vpop.f32.mrf.mxu1 }
 0x3c1   :  { %v6138_v54 = vld [vmem:[#allocation2 + $0x242] sm:$0xff]  ;;  %v6139_v8 = vld [vmem:[#allocation2 + $0x24a] sm:$0xff]  ;;  %5063 = vst.msk [vmem:[#allocation2 + $0x261] sm:$0xff] %vm28_vm3, %v4999_v0  ;;  %v4936_v40 = vadd.f32 %v18791_v38, %v4867_v59  ;;  %v5835_v35 = vpop.permute.xlu0 %5834 }
 0x3c2   :  { %7229 = vmatmul.mubr.bf16.gmra.mxu0 %v14607_v45  ;;  %v5563_v22 = vld [vmem:[#allocation2 + $0x249] sm:$0xff]  ;;  %v15969_v43 = vpack.c.bf16 %v6138_v54, %v6138_v54  ;;  %v15970_v29 = vpack.c.bf16 %v6139_v8, %v6139_v8  ;;  %6034 = vst.msk [vmem:[#allocation3 + $0x80] sm:$0xf] %vm1813_vm7, %v5835_v35  ;;  %v4753_v61 = vpop.f32.mrf.mxu1 }
 0x3c3   :  { %v15898_v47 = vpack.c.bf16 %v5563_v22, %v5563_v22  ;;  %v5131_v42 = vld [vmem:[#allocation2 + $0x248] sm:$0xff]  ;;  %v5000_v20 = vmax.f32 %v4936_v40, 0.0  ;;  %v4868_v26 = vadd.f32 %v4753_v61, %v3919_v58  ;;  %v6623_v25 = vld [vmem:[#allocation3 + $0x70] sm:$0xff]  ;;  %14679 = vmatprep.mubr.msk.bf16.mxu0 %vm28_vm3, %v16627_v13  ;;  %v3932_v40 = vadd.f32 %v18804_v28, %v18409_v52 }
 0x3c4   :  { %v15826_v51 = vpack.c.bf16 %v5131_v42, %v5131_v42  ;;  %6498 = vst.msk [vmem:[#allocation3 + $0x184] sm:$0xf] %vm1236_vm5, %v15969_v43  ;;  %6499 = vst.msk [vmem:[#allocation3 + $0x18c] sm:$0xf] %vm1236_vm5, %v15970_v29  ;;  %v4755_v12 = vpop.f32.mrf.mxu1  ;;  %v5564_v24 = vld [vmem:[#allocation2 + $0x259] sm:$0xff]  ;;  %v3935_v52 = vadd.f32 %v18814_v18, %v18420_v32 }
 0x3c5   :  { %5900 = vrot.lane.b32.xlu1 %v15898_v47, %s17010_s19  ;;  %v5132_v46 = vld [vmem:[#allocation2 + $0x258] sm:$0xff]  ;;  %5064 = vst.msk [vmem:[#allocation2 + $0x271] sm:$0xff] %vm28_vm3, %v5000_v20  ;;  %v4937_v16 = vadd.f32 %v18791_v38, %v4868_v26  ;;  %v15899_v48 = vpack.c.bf16 %v5564_v24, %v5564_v24 }
 0x3c6   :  { %5491 = vst.msk [vmem:[#allocation3 + $0x188] sm:$0xf] %vm1236_vm5, %v15826_v51  ;;  %v5837_v57 = vpop.permute.xlu1 %5836  ;;  %v6624_v30 = vld [vmem:[#allocation3 + $0x78] sm:$0xff]  ;;  %v15827_v1 = vpack.c.bf16 %v5132_v46, %v5132_v46  ;;  %v4758_v9 = vpop.f32.mrf.mxu1  ;;  %v16629_v51 = vld [vmem:[#allocation3 + $0x84] ss:$8 sps:$4 sm:$0xff]  }
 0x3c7   :  { %6035 = vst.msk [vmem:[#allocation3 + $0x88] sm:$0xf] %vm1813_vm7, %v5837_v57  ;;  %v14609_v23 = vcombine.low %v6623_v25, %v6624_v30  ;;  %v5001_v53 = vmax.f32 %v4937_v16, 0.0  ;;  %v4869_v14 = vadd.f32 %v4758_v9, %v3924_v55  ;;  %5902 = vrot.lane.b32.xlu0 %v15899_v48, %s17010_s19 }
 0x3c8   :  { %5492 = vst.msk [vmem:[#allocation3 + $0x190] sm:$0xf] %vm1236_vm5, %v15827_v1  ;;  %v6140_v15 = vld [vmem:[#allocation2 + $0x25a] sm:$0xff]  ;;  %v6141_v21 = vld [vmem:[#allocation2 + $0x262] sm:$0xff]  ;;  %v4760_v41 = vpop.f32.mrf.mxu1 }
 0x3c9   :  { %v5565_v56 = vld [vmem:[#allocation2 + $0x261] sm:$0xff]  ;;  %v15971_v27 = vpack.c.bf16 %v6140_v15, %v6140_v15  ;;  %v15972_v10 = vpack.c.bf16 %v6141_v21, %v6141_v21  ;;  %5065 = vst.msk [vmem:[#allocation2 + $0x279] sm:$0xff] %vm28_vm3, %v5001_v53  ;;  %v4938_v45 = vadd.f32 %v18791_v38, %v4869_v14  ;;  %v19039_v15 = vld [vmem:[%s20737_s4] ss:$0 sm:$0xff] }
 0x3ca   :  { %7237 = vmatmul.mubr.bf16.gmra.mxu0 %v14609_v23  ;;  %v5839_v0 = vpop.permute.xlu0 %5838  ;;  %v15900_v59 = vpack.c.bf16 %v5565_v56, %v5565_v56  ;;  %v5133_v58 = vld [vmem:[#allocation2 + $0x260] sm:$0xff]  ;;  %v4761_v54 = vpop.f32.mrf.mxu1 }
 0x3cb   :  { %6036 = vst.msk [vmem:[#allocation3 + $0x90] sm:$0xf] %vm1813_vm7, %v5839_v0  ;;  %v15828_v8 = vpack.c.bf16 %v5133_v58, %v5133_v58  ;;  %v5002_v36 = vmax.f32 %v4938_v45, 0.0  ;;  %v4870_v33 = vadd.f32 %v4761_v54, %v3927_v11  ;;  %v6625_v43 = vld [vmem:[#allocation3 + $0x80] sm:$0xff]  ;;  %14680 = vmatprep.mubr.msk.bf16.mxu0 %vm28_vm3, %v16629_v51  ;;  %v3940_v11 = vadd.f32 %v18822_v49, %v18428_v19 }
 0x3cc   :  { %6500 = vst.msk [vmem:[#allocation3 + $0x194] sm:$0xf] %vm1236_vm5, %v15971_v27  ;;  %6501 = vst.msk [vmem:[#allocation3 + $0x19c] sm:$0xf] %vm1236_vm5, %v15972_v10  ;;  %5904 = vrot.lane.b32.xlu1 %v15900_v59, %s17010_s19  ;;  %v4763_v3 = vpop.f32.mrf.mxu1  ;;  %v5566_v22 = vld [vmem:[#allocation2 + $0x271] sm:$0xff]  ;;  %v16669_v19 = vld [vmem:[%s20736_s3 + $0x140] sm:$0xff]   ;;  %v3943_v54 = vadd.f32 %v18833_v2, %v18440_v7 }
 0x3cd   :  { %5493 = vst.msk [vmem:[#allocation3 + $0x198] sm:$0xf] %vm1236_vm5, %v15828_v8  ;;  %v5134_v29 = vld [vmem:[#allocation2 + $0x270] sm:$0xff]  ;;  %v4939_v35 = vadd.f32 %v18791_v38, %v4870_v33  ;;  %v15901_v42 = vpack.c.bf16 %v5566_v22, %v5566_v22  ;;  %7908 = vmatpush1.bf16.msra.mxu1 %v16669_v19 }
 0x3ce   :  { %5066 = vst.msk [vmem:[#allocation2 + $0x289] sm:$0xff] %vm28_vm3, %v5002_v36  ;;  %v5841_v47 = vpop.permute.xlu1 %5840  ;;  %v6626_v61 = vld [vmem:[#allocation3 + $0x88] sm:$0xff]  ;;  %v15829_v37 = vpack.c.bf16 %v5134_v29, %v5134_v29  ;;  %v4766_v17 = vpop.f32.mrf.mxu1  ;;  %v16631_v10 = vld [vmem:[#allocation3 + $0x94] ss:$8 sps:$4 sm:$0xff]   ;;  %7909 = vmatprep.subr.bf16.mxu1 %v20761_v6 }
 0x3cf   :  { %6037 = vst.msk [vmem:[#allocation3 + $0x98] sm:$0xf] %vm1813_vm7, %v5841_v47  ;;  %v14611_v20 = vcombine.low %v6625_v43, %v6626_v61  ;;  %v5003_v26 = vmax.f32 %v4939_v35, 0.0  ;;  %v4871_v55 = vadd.f32 %v4766_v17, %v3932_v40  ;;  %5906 = vrot.lane.b32.xlu0 %v15901_v42, %s17010_s19  ;;  %v16672_v42 = vld [vmem:[%s20736_s3 + $0x200] sm:$0xff]  }
 0x3d0   :  { %5494 = vst.msk [vmem:[#allocation3 + $0x1a0] sm:$0xf] %vm1236_vm5, %v15829_v37  ;;  %v6142_v28 = vld [vmem:[#allocation2 + $0x272] sm:$0xff]  ;;  %v6143_v12 = vld [vmem:[#allocation2 + $0x27a] sm:$0xff]  ;;  %v4768_v24 = vpop.f32.mrf.mxu1  ;;  %8742 = vmatpush1.bf16.msra.mxu0 %v16672_v42 }
 0x3d1   :  { %v5567_v25 = vld [vmem:[#allocation2 + $0x279] sm:$0xff]  ;;  %v15973_v46 = vpack.c.bf16 %v6142_v28, %v6142_v28  ;;  %v15974_v16 = vpack.c.bf16 %v6143_v12, %v6143_v12  ;;  %5067 = vst.msk [vmem:[#allocation2 + $0x291] sm:$0xff] %vm28_vm3, %v5003_v26  ;;  %v4940_v57 = vadd.f32 %v18791_v38, %v4871_v55  ;;  %8743 = vmatprep.subr.bf16.mxu0 %v20761_v6  ;;  %v20796_v55 = vld [vmem:[#allocation26_spill] sm:$0xff] }
 0x3d2   :  { %7245 = vmatmul.mubr.bf16.gmra.mxu0 %v14611_v20  ;;  %v5843_v48 = vpop.permute.xlu0 %5842  ;;  %v15902_v30 = vpack.c.bf16 %v5567_v25, %v5567_v25  ;;  %v5135_v13 = vld [vmem:[#allocation2 + $0x278] sm:$0xff]  ;;  %v4769_v1 = vpop.f32.mrf.mxu1  ;;  %v6627_v14 = vld [vmem:[#allocation3 + $0x90] sm:$0xff] }
 0x3d3   :  { %6038 = vst.msk [vmem:[#allocation3 + $0xa0] sm:$0xf] %vm1813_vm7, %v5843_v48  ;;  %v15830_v9 = vpack.c.bf16 %v5135_v13, %v5135_v13  ;;  %v5004_v32 = vmax.f32 %v4940_v57, 0.0  ;;  %v4872_v18 = vadd.f32 %v4769_v1, %v3935_v52  ;;  %14681 = vmatprep.mubr.msk.bf16.mxu0 %vm28_vm3, %v16631_v10  ;;  %v3948_v52 = vadd.f32 %v18842_v44, %v20796_v55  ;;  %v20797_v44 = vld [vmem:[#allocation27_spill] sm:$0xff] }
 0x3d4   :  { %6502 = vst.msk [vmem:[#allocation3 + $0x1a4] sm:$0xf] %vm1236_vm5, %v15973_v46  ;;  %6503 = vst.msk [vmem:[#allocation3 + $0x1ac] sm:$0xf] %vm1236_vm5, %v15974_v16  ;;  %5908 = vrot.lane.b32.xlu1 %v15902_v30, %s17010_s19  ;;  %v4771_v23 = vpop.f32.mrf.mxu1  ;;  %v16633_v46 = vld [vmem:[#allocation3 + $0xa4] ss:$8 sps:$4 sm:$0xff]   ;;  %v3951_v1 = vadd.f32 %v18851_v63, %v20797_v44 }
 0x3d5   :  { %v5568_v53 = vld [vmem:[#allocation2 + $0x289] sm:$0xff]  ;;  %5495 = vst.msk [vmem:[#allocation3 + $0x1a8] sm:$0xf] %vm1236_vm5, %v15830_v9  ;;  %v4941_v21 = vadd.f32 %v19039_v15, %v4872_v18 }
 0x3d6   :  { %v5136_v38 = vld [vmem:[#allocation2 + $0x288] sm:$0xff]  ;;  %5068 = vst.msk [vmem:[#allocation2 + $0x2a1] sm:$0xff] %vm28_vm3, %v5004_v32  ;;  %v15903_v56 = vpack.c.bf16 %v5568_v53, %v5568_v53  ;;  %v6628_v27 = vld [vmem:[#allocation3 + $0x98] sm:$0xff]  ;;  %v4774_v0 = vpop.f32.mrf.mxu1 }
 0x3d7   :  { %v5845_v41 = vpop.permute.xlu1 %5844  ;;  %v15831_v45 = vpack.c.bf16 %v5136_v38, %v5136_v38  ;;  %v14613_v59 = vcombine.low %v6627_v14, %v6628_v27  ;;  %v5005_v49 = vmax.f32 %v4941_v21, 0.0  ;;  %v4873_v58 = vadd.f32 %v4774_v0, %v3940_v11 }
 0x3d8   :  { %6039 = vst.msk [vmem:[#allocation3 + $0xa8] sm:$0xf] %vm1813_vm7, %v5845_v41  ;;  %5910 = vrot.lane.b32.xlu0 %v15903_v56, %s17010_s19  ;;  %v6144_v8 = vld [vmem:[#allocation2 + $0x28a] sm:$0xff]  ;;  %v6145_v36 = vld [vmem:[#allocation2 + $0x292] sm:$0xff]  ;;  %v4776_v33 = vpop.f32.mrf.mxu1 }
 0x3d9   :  { %5496 = vst.msk [vmem:[#allocation3 + $0x1b0] sm:$0xf] %vm1236_vm5, %v15831_v45  ;;  %v5569_v3 = vld [vmem:[#allocation2 + $0x291] sm:$0xff]  ;;  %v15975_v22 = vpack.c.bf16 %v6144_v8, %v6144_v8  ;;  %v15976_v43 = vpack.c.bf16 %v6145_v36, %v6145_v36  ;;  %v4942_v29 = vadd.f32 %v19039_v15, %v4873_v58 }
 0x3da   :  { %7253 = vmatmul.mubr.bf16.gmra.mxu0 %v14613_v59  ;;  %5069 = vst.msk [vmem:[#allocation2 + $0x2a9] sm:$0xff] %vm28_vm3, %v5005_v49  ;;  %v5847_v40 = vpop.permute.xlu0 %5846  ;;  %v15904_v35 = vpack.c.bf16 %v5569_v3, %v5569_v3  ;;  %v5137_v47 = vld [vmem:[#allocation2 + $0x290] sm:$0xff]  ;;  %v4777_v7 = vpop.f32.mrf.mxu1  ;;  %v6629_v20 = vld [vmem:[#allocation3 + $0xa0] sm:$0xff]  ;;  %v20798_v49 = vld [vmem:[#allocation28_spill] sm:$0xff] }
 0x3db   :  { %6040 = vst.msk [vmem:[#allocation3 + $0xb0] sm:$0xf] %vm1813_vm7, %v5847_v40  ;;  %v15832_v2 = vpack.c.bf16 %v5137_v47, %v5137_v47  ;;  %v5006_v61 = vmax.f32 %v4942_v29, 0.0  ;;  %v4874_v51 = vadd.f32 %v4777_v7, %v3943_v54  ;;  %14682 = vmatprep.mubr.msk.bf16.mxu0 %vm28_vm3, %v16633_v46  ;;  %v3956_v58 = vadd.f32 %v18865_v62, %v20798_v49  ;;  %v16635_v3 = vld [vmem:[#allocation3 + $0xb4] ss:$8 sps:$4 sm:$0xff]   ;;  %v20799_v62 = vld [vmem:[#allocation29_spill] sm:$0xff] }
 0x3dc   :  { %6504 = vst.msk [vmem:[#allocation3 + $0x1b4] sm:$0xf] %vm1236_vm5, %v15975_v22  ;;  %6505 = vst.msk [vmem:[#allocation3 + $0x1bc] sm:$0xf] %vm1236_vm5, %v15976_v43  ;;  %5912 = vrot.lane.b32.xlu1 %v15904_v35, %s17010_s19  ;;  %v4779_v37 = vpop.f32.mrf.mxu1  ;;  %v3959_v47 = vadd.f32 %v18880_v34, %v20799_v62  ;;  %v16677_v34 = vld [vmem:[%s20736_s3 + $0x138] sm:$0xff]  }
 0x3dd   :  { %v5570_v17 = vld [vmem:[#allocation2 + $0x2a1] sm:$0xff]  ;;  %5497 = vst.msk [vmem:[#allocation3 + $0x1b8] sm:$0xf] %vm1236_vm5, %v15832_v2  ;;  %v4943_v28 = vadd.f32 %v19039_v15, %v4874_v51  ;;  %7910 = vmatpush1.bf16.msra.mxu1 %v16677_v34 }
 0x3de   :  { %v5138_v26 = vld [vmem:[#allocation2 + $0x2a0] sm:$0xff]  ;;  %5070 = vst.msk [vmem:[#allocation2 + $0x2b9] sm:$0xff] %vm28_vm3, %v5006_v61  ;;  %v15905_v24 = vpack.c.bf16 %v5570_v17, %v5570_v17  ;;  %v4782_v57 = vpop.f32.mrf.mxu1  ;;  %7911 = vmatprep.subr.bf16.mxu1 %v20761_v6 }
 0x3df   :  { %v5849_v12 = vpop.permute.xlu1 %5848  ;;  %v6630_v25 = vld [vmem:[#allocation3 + $0xa8] sm:$0xff]  ;;  %v15833_v16 = vpack.c.bf16 %v5138_v26, %v5138_v26  ;;  %v5007_v30 = vmax.f32 %v4943_v28, 0.0  ;;  %v4875_v13 = vadd.f32 %v4782_v57, %v3948_v52 }
 0x3e0   :  { %6041 = vst.msk [vmem:[#allocation3 + $0xb8] sm:$0xf] %vm1813_vm7, %v5849_v12  ;;  %v14615_v48 = vcombine.low %v6629_v20, %v6630_v25  ;;  %5914 = vrot.lane.b32.xlu0 %v15905_v24, %s17010_s19  ;;  %v4784_v18 = vpop.f32.mrf.mxu1 }
 0x3e1   :  { %5498 = vst.msk [vmem:[#allocation3 + $0x1c0] sm:$0xf] %vm1236_vm5, %v15833_v16  ;;  %v6146_v9 = vld [vmem:[#allocation2 + $0x2a2] sm:$0xff]  ;;  %v6147_v32 = vld [vmem:[#allocation2 + $0x2aa] sm:$0xff]  ;;  %v4944_v38 = vadd.f32 %v19039_v15, %v4875_v13  ;;  %v5851_v11 = vpop.permute.xlu0 %5850 }
 0x3e2   :  { %7261 = vmatmul.mubr.bf16.gmra.mxu0 %v14615_v48  ;;  %v5571_v23 = vld [vmem:[#allocation2 + $0x2a9] sm:$0xff]  ;;  %v15977_v53 = vpack.c.bf16 %v6146_v9, %v6146_v9  ;;  %v15978_v14 = vpack.c.bf16 %v6147_v32, %v6147_v32  ;;  %5071 = vst.msk [vmem:[#allocation2 + $0x2c1] sm:$0xff] %vm28_vm3, %v5007_v30  ;;  %v4785_v56 = vpop.f32.mrf.mxu1 }
 0x3e3   :  { %v15906_v21 = vpack.c.bf16 %v5571_v23, %v5571_v23  ;;  %v5139_v41 = vld [vmem:[#allocation2 + $0x2a8] sm:$0xff]  ;;  %6042 = vst.msk [vmem:[#allocation3 + $0xc0] sm:$0xf] %vm1813_vm7, %v5851_v11  ;;  %v5008_v63 = vmax.f32 %v4944_v38, 0.0  ;;  %v4876_v10 = vadd.f32 %v4785_v56, %v3951_v1  ;;  %v6631_v59 = vld [vmem:[#allocation3 + $0xb0] sm:$0xff]  ;;  %14683 = vmatprep.mubr.msk.bf16.mxu0 %vm28_vm3, %v16635_v3 }
 0x3e4   :  { %v15834_v27 = vpack.c.bf16 %v5139_v41, %v5139_v41  ;;  %6506 = vst.msk [vmem:[#allocation3 + $0x1c4] sm:$0xf] %vm1236_vm5, %v15977_v53  ;;  %6507 = vst.msk [vmem:[#allocation3 + $0x1cc] sm:$0xf] %vm1236_vm5, %v15978_v14  ;;  %v4787_v45 = vpop.f32.mrf.mxu1  ;;  %v20800_v48 = vld [vmem:[#allocation30_spill] sm:$0xff]  ;;  %v16678_v14 = vld [vmem:[%s20736_s3 + $0x1f8] sm:$0xff]  }
 0x3e5   :  { %5916 = vrot.lane.b32.xlu1 %v15906_v21, %s17010_s19  ;;  %v5572_v0 = vld [vmem:[#allocation2 + $0x2b9] sm:$0xff]  ;;  %5072 = vst.msk [vmem:[#allocation2 + $0x2d1] sm:$0xff] %vm28_vm3, %v5008_v63  ;;  %v4945_v54 = vadd.f32 %v19039_v15, %v4876_v10  ;;  %v3964_v30 = vadd.f32 %v18891_v5, %v20800_v48  ;;  %v16637_v32 = vld [vmem:[#allocation3 + $0xc4] ss:$8 sps:$4 sm:$0xff]   ;;  %v20801_v11 = vld [vmem:[#allocation31_spill] sm:$0xff]  ;;  %8744 = vmatpush1.bf16.msra.mxu0 %v16678_v14 }
 0x3e6   :  { %5499 = vst.msk [vmem:[#allocation3 + $0x1c8] sm:$0xf] %vm1236_vm5, %v15834_v27  ;;  %v5140_v19 = vld [vmem:[#allocation2 + $0x2b8] sm:$0xff]  ;;  %v15907_v36 = vpack.c.bf16 %v5572_v0, %v5572_v0  ;;  %v4790_v43 = vpop.f32.mrf.mxu1  ;;  %v3967_v21 = vadd.f32 %v18903_v60, %v20801_v11  ;;  %8745 = vmatprep.subr.bf16.mxu0 %v20761_v6 }
 0x3e7   :  { %v5853_v8 = vpop.permute.xlu1 %5852  ;;  %v6632_v33 = vld [vmem:[#allocation3 + $0xb8] sm:$0xff]  ;;  %v15835_v22 = vpack.c.bf16 %v5140_v19, %v5140_v19  ;;  %v5009_v40 = vmax.f32 %v4945_v54, 0.0  ;;  %v4877_v35 = vadd.f32 %v4790_v43, %v3956_v58 }
 0x3e8   :  { %6043 = vst.msk [vmem:[#allocation3 + $0xc8] sm:$0xf] %vm1813_vm7, %v5853_v8  ;;  %v14617_v29 = vcombine.low %v6631_v59, %v6632_v33  ;;  %5918 = vrot.lane.b32.xlu0 %v15907_v36, %s17010_s19  ;;  %v4792_v2 = vpop.f32.mrf.mxu1  ;;  %v20802_v43 = vld [vmem:[#allocation32_spill] sm:$0xff] }
 0x3e9   :  { %5500 = vst.msk [vmem:[#allocation3 + $0x1d0] sm:$0xf] %vm1236_vm5, %v15835_v22  ;;  %v6148_v42 = vld [vmem:[#allocation2 + $0x2ba] sm:$0xff]  ;;  %v6149_v7 = vld [vmem:[#allocation2 + $0x2c2] sm:$0xff]  ;;  %v4946_v17 = vadd.f32 %v19039_v15, %v4877_v35  ;;  %v5855_v20 = vpop.permute.xlu0 %5854 }
 0x3ea   :  { %7269 = vmatmul.mubr.bf16.gmra.mxu0 %v14617_v29  ;;  %v5573_v61 = vld [vmem:[#allocation2 + $0x2c1] sm:$0xff]  ;;  %v15979_v51 = vpack.c.bf16 %v6148_v42, %v6148_v42  ;;  %v15980_v37 = vpack.c.bf16 %v6149_v7, %v6149_v7  ;;  %5073 = vst.msk [vmem:[#allocation2 + $0x2d9] sm:$0xff] %vm28_vm3, %v5009_v40  ;;  %v4793_v52 = vpop.f32.mrf.mxu1  ;;  %v3972_v29 = vadd.f32 %v18912_v4, %v20802_v43  ;;  %v16639_v42 = vld [vmem:[#allocation3 + $0xd4] ss:$8 sps:$4 sm:$0xff]  }
 0x3eb   :  { %v15908_v26 = vpack.c.bf16 %v5573_v61, %v5573_v61  ;;  %v5141_v55 = vld [vmem:[#allocation2 + $0x2c0] sm:$0xff]  ;;  %6044 = vst.msk [vmem:[#allocation3 + $0xd0] sm:$0xf] %vm1813_vm7, %v5855_v20  ;;  %v5010_v12 = vmax.f32 %v4946_v17, 0.0  ;;  %v4878_v24 = vadd.f32 %v4793_v52, %v3959_v47  ;;  %14684 = vmatprep.mubr.msk.bf16.mxu0 %vm28_vm3, %v16637_v32  ;;  %v20804_v32 = vld [vmem:[#allocation34_spill] sm:$0xff] }
 0x3ec   :  { %v15836_v28 = vpack.c.bf16 %v5141_v55, %v5141_v55  ;;  %6508 = vst.msk [vmem:[#allocation3 + $0x1d4] sm:$0xf] %vm1236_vm5, %v15979_v51  ;;  %6509 = vst.msk [vmem:[#allocation3 + $0x1dc] sm:$0xf] %vm1236_vm5, %v15980_v37  ;;  %v4795_v25 = vpop.f32.mrf.mxu1  ;;  %v5574_v46 = vld [vmem:[#allocation2 + $0x2d1] sm:$0xff]  ;;  %v6633_v16 = vld [vmem:[#allocation3 + $0xc0] sm:$0xff] }
 0x3ed   :  { %5920 = vrot.lane.b32.xlu1 %v15908_v26, %s17010_s19  ;;  %v5142_v57 = vld [vmem:[#allocation2 + $0x2d0] sm:$0xff]  ;;  %5074 = vst.msk [vmem:[#allocation2 + $0x2e9] sm:$0xff] %vm28_vm3, %v5010_v12  ;;  %v4947_v13 = vadd.f32 %v19039_v15, %v4878_v24  ;;  %v15909_v1 = vpack.c.bf16 %v5574_v46, %v5574_v46  ;;  %v20803_v4 = vld [vmem:[#allocation33_spill] sm:$0xff]  ;;  %v16689_v43 = vld [vmem:[%s20736_s3 + $0x1e8] sm:$0xff]  }
 0x3ee   :  { %5501 = vst.msk [vmem:[#allocation3 + $0x1d8] sm:$0xf] %vm1236_vm5, %v15836_v28  ;;  %v5857_v44 = vpop.permute.xlu1 %5856  ;;  %v15837_v18 = vpack.c.bf16 %v5142_v57, %v5142_v57  ;;  %v4798_v23 = vpop.f32.mrf.mxu1  ;;  %v3975_v17 = vadd.f32 %v18927_v31, %v20803_v4  ;;  %v16683_v31 = vld [vmem:[%s20736_s3 + $0x130] sm:$0xff]  }
 0x3ef   :  { %v6634_v9 = vld [vmem:[#allocation3 + $0xc8] sm:$0xff]  ;;  %6045 = vst.msk [vmem:[#allocation3 + $0xd8] sm:$0xf] %vm1813_vm7, %v5857_v44  ;;  %v5011_v5 = vmax.f32 %v4947_v13, 0.0  ;;  %v4879_v38 = vadd.f32 %v4798_v23, %v3964_v30  ;;  %5922 = vrot.lane.b32.xlu0 %v15909_v1, %s17010_s19  ;;  %7912 = vmatpush1.bf16.msra.mxu1 %v16683_v31 }
 0x3f0   :  { %v14619_v53 = vcombine.low %v6633_v16, %v6634_v9  ;;  %5502 = vst.msk [vmem:[#allocation3 + $0x1e0] sm:$0xf] %vm1236_vm5, %v15837_v18  ;;  %v4800_v27 = vpop.f32.mrf.mxu1  ;;  %v3980_v18 = vadd.f32 %v18940_v39, %v20804_v32  ;;  %7913 = vmatprep.subr.bf16.mxu1 %v20761_v6  ;;  %v16685_v39 = vld [vmem:[%s20736_s3 + $0x1f0] sm:$0xff]  }
 0x3f1   :  { %v6150_v41 = vld [vmem:[#allocation2 + $0x2d2] sm:$0xff]  ;;  %v6151_v56 = vld [vmem:[#allocation2 + $0x2da] sm:$0xff]  ;;  %5075 = vst.msk [vmem:[#allocation2 + $0x2f1] sm:$0xff] %vm28_vm3, %v5011_v5  ;;  %v4948_v0 = vadd.f32 %v19039_v15, %v4879_v38  ;;  %v5859_v59 = vpop.permute.xlu0 %5858  ;;  %v16641_v38 = vld [vmem:[#allocation3 + $0xe4] ss:$8 sps:$4 sm:$0xff]   ;;  %8746 = vmatpush1.bf16.msra.mxu0 %v16685_v39 }
 0x3f2   :  { %7277 = vmatmul.mubr.bf16.gmra.mxu0 %v14619_v53  ;;  %v5575_v63 = vld [vmem:[#allocation2 + $0x2d9] sm:$0xff]  ;;  %v15981_v10 = vpack.c.bf16 %v6150_v41, %v6150_v41  ;;  %v15982_v45 = vpack.c.bf16 %v6151_v56, %v6151_v56  ;;  %6046 = vst.msk [vmem:[#allocation3 + $0xe0] sm:$0xf] %vm1813_vm7, %v5859_v59  ;;  %v4801_v58 = vpop.f32.mrf.mxu1  ;;  %v6635_v3 = vld [vmem:[#allocation3 + $0xd0] sm:$0xff]  ;;  %v16684_v56 = vld [vmem:[%s20736_s3 + $0x128] sm:$0xff]   ;;  %8747 = vmatprep.subr.bf16.mxu0 %v20761_v6 }
 0x3f3   :  { %v15910_v19 = vpack.c.bf16 %v5575_v63, %v5575_v63  ;;  %v5143_v49 = vld [vmem:[#allocation2 + $0x2d8] sm:$0xff]  ;;  %v5012_v60 = vmax.f32 %v4948_v0, 0.0  ;;  %v4880_v8 = vadd.f32 %v4801_v58, %v3967_v21  ;;  %14685 = vmatprep.mubr.msk.bf16.mxu0 %vm28_vm3, %v16639_v42  ;;  %7914 = vmatpush1.bf16.msra.mxu1 %v16684_v56  ;;  %v16694_v32 = vld [vmem:[%s20736_s3 + $0x170] sm:$0xff]  }
 0x3f4   :  { %v15838_v54 = vpack.c.bf16 %v5143_v49, %v5143_v49  ;;  %6510 = vst.msk [vmem:[#allocation3 + $0x1e4] sm:$0xf] %vm1236_vm5, %v15981_v10  ;;  %6511 = vst.msk [vmem:[#allocation3 + $0x1ec] sm:$0xf] %vm1236_vm5, %v15982_v45  ;;  %v4803_v36 = vpop.f32.mrf.mxu1  ;;  %v5576_v33 = vld [vmem:[#allocation2 + $0x2e9] sm:$0xff]  ;;  %7915 = vmatprep.subr.bf16.mxu1 %v20761_v6 }
 0x3f5   :  { %5924 = vrot.lane.b32.xlu1 %v15910_v19, %s17010_s19  ;;  %v5144_v22 = vld [vmem:[#allocation2 + $0x2e8] sm:$0xff]  ;;  %5076 = vst.msk [vmem:[#allocation2 + $0x301] sm:$0xff] %vm28_vm3, %v5012_v60  ;;  %v4949_v40 = vadd.f32 %v19039_v15, %v4880_v8  ;;  %v15911_v62 = vpack.c.bf16 %v5576_v33, %v5576_v33  ;;  %v20805_v10 = vld [vmem:[#allocation35_spill] sm:$0xff]  ;;  %8748 = vmatpush1.bf16.msra.mxu0 %v16689_v43 }
 0x3f6   :  { %5503 = vst.msk [vmem:[#allocation3 + $0x1e8] sm:$0xf] %vm1236_vm5, %v15838_v54  ;;  %v5861_v35 = vpop.permute.xlu1 %5860  ;;  %v6636_v47 = vld [vmem:[#allocation3 + $0xd8] sm:$0xff]  ;;  %v15839_v7 = vpack.c.bf16 %v5144_v22, %v5144_v22  ;;  %v4806_v2 = vpop.f32.mrf.mxu1  ;;  %v3983_v45 = vadd.f32 %v18953_v50, %v20805_v10  ;;  %v16688_v22 = vld [vmem:[%s20736_s3 + $0x120] sm:$0xff]   ;;  %8749 = vmatprep.subr.bf16.mxu0 %v20761_v6  ;;  %v16697_v56 = vld [vmem:[%s20736_s3 + $0x230] sm:$0xff]  }
 0x3f7   :  { %6047 = vst.msk [vmem:[#allocation3 + $0xe8] sm:$0xf] %vm1813_vm7, %v5861_v35  ;;  %v14621_v61 = vcombine.low %v6635_v3, %v6636_v47  ;;  %v5013_v51 = vmax.f32 %v4949_v40, 0.0  ;;  %v4881_v37 = vadd.f32 %v4806_v2, %v3972_v29  ;;  %5926 = vrot.lane.b32.xlu0 %v15911_v62, %s17010_s19  ;;  %7916 = vmatpush1.bf16.msra.mxu1 %v16688_v22  ;;  %v16648_v43 = vld [vmem:[#allocation3 + $0x134] ss:$8 sps:$4 sm:$0xff]  }
 0x3f8   :  { %5504 = vst.msk [vmem:[#allocation3 + $0x1f0] sm:$0xf] %vm1236_vm5, %v15839_v7  ;;  %v6152_v20 = vld [vmem:[#allocation2 + $0x2ea] sm:$0xff]  ;;  %v6153_v26 = vld [vmem:[#allocation2 + $0x2f2] sm:$0xff]  ;;  %v4808_v55 = vpop.f32.mrf.mxu1  ;;  %7925 = vmatprep.subr.bf16.mxu1 %v20761_v6 }
 0x3f9   :  { %v5577_v52 = vld [vmem:[#allocation2 + $0x2f1] sm:$0xff]  ;;  %v15983_v28 = vpack.c.bf16 %v6152_v20, %v6152_v20  ;;  %v15984_v34 = vpack.c.bf16 %v6153_v26, %v6153_v26  ;;  %5077 = vst.msk [vmem:[#allocation2 + $0x309] sm:$0xff] %vm28_vm3, %v5013_v51  ;;  %v4950_v12 = vadd.f32 %v19039_v15, %v4881_v37  ;;  %v6637_v1 = vld [vmem:[#allocation3 + $0xe0] sm:$0xff] }
 0x3fa   :  { %7285 = vmatmul.mubr.bf16.gmra.mxu0 %v14621_v61  ;;  %v5863_v24 = vpop.permute.xlu0 %5862  ;;  %v15912_v25 = vpack.c.bf16 %v5577_v52, %v5577_v52  ;;  %v5145_v46 = vld [vmem:[#allocation2 + $0x2f0] sm:$0xff]  ;;  %v4809_v16 = vpop.f32.mrf.mxu1  ;;  %v16690_v20 = vld [vmem:[%s20736_s3 + $0x178] sm:$0xff]  }
 0x3fb   :  { %6048 = vst.msk [vmem:[#allocation3 + $0xf0] sm:$0xf] %vm1813_vm7, %v5863_v24  ;;  %v15840_v57 = vpack.c.bf16 %v5145_v46, %v5145_v46  ;;  %v5014_v48 = vmax.f32 %v4950_v12, 0.0  ;;  %v4882_v30 = vadd.f32 %v4809_v16, %v3975_v17  ;;  %14686 = vmatprep.mubr.msk.bf16.mxu0 %vm28_vm3, %v16641_v38  ;;  %v16643_v37 = vld [vmem:[#allocation3 + $0xf4] ss:$8 sps:$4 sm:$0xff]   ;;  %v6091_v55 = vld [vmem:[#allocation2 + $0xa] sm:$0xff]  ;;  %7926 = vmatpush2.bf16.msra.mxu1 %v16690_v20 }
 0x3fc   :  { %6512 = vst.msk [vmem:[#allocation3 + $0x1f4] sm:$0xf] %vm1236_vm5, %v15983_v28  ;;  %6513 = vst.msk [vmem:[#allocation3 + $0x1fc] sm:$0xf] %vm1236_vm5, %v15984_v34  ;;  %5928 = vrot.lane.b32.xlu1 %v15912_v25, %s17010_s19  ;;  %v4811_v13 = vpop.f32.mrf.mxu1  ;;  %v5578_v44 = vld [vmem:[#allocation2 + $0x301] sm:$0xff]  ;;  %v19188_v12 = vpack.c.bf16 %v6091_v55, %v6091_v55  ;;  %7927 = vmatprep.subr.bf16.mxu1 %v20761_v6 }
 0x3fd   :  { %5505 = vst.msk [vmem:[#allocation3 + $0x1f8] sm:$0xf] %vm1236_vm5, %v15840_v57  ;;  %v5146_v9 = vld [vmem:[#allocation2 + $0x300] sm:$0xff]  ;;  %v4951_v23 = vadd.f32 %v19039_v15, %v4882_v30  ;;  %v15913_v14 = vpack.c.bf16 %v5578_v44, %v5578_v44  ;;  %v16695_v13 = vld [vmem:[%s20736_s3 + $0x238] sm:$0xff]  }
 0x3fe   :  { %5078 = vst.msk [vmem:[#allocation2 + $0x319] sm:$0xff] %vm28_vm3, %v5014_v48  ;;  %v5865_v53 = vpop.permute.xlu1 %5864  ;;  %v6638_v5 = vld [vmem:[#allocation3 + $0xe8] sm:$0xff]  ;;  %v15841_v11 = vpack.c.bf16 %v5146_v9, %v5146_v9  ;;  %v4814_v21 = vpop.f32.mrf.mxu1 }
 0x3ff   :  { %6049 = vst.msk [vmem:[#allocation3 + $0xf8] sm:$0xf] %vm1813_vm7, %v5865_v53  ;;  %v14623_v41 = vcombine.low %v6637_v1, %v6638_v5  ;;  %v5015_v27 = vmax.f32 %v4951_v23, 0.0  ;;  %v4883_v63 = vadd.f32 %v4814_v21, %v3980_v18  ;;  %5930 = vrot.lane.b32.xlu0 %v15913_v14, %s17010_s19  ;;  %v5514_v48 = vld [vmem:[#allocation2 + $0x1] sm:$0xff]  ;;  %7928 = vmatpush2.bf16.msra.mxu1 %v16694_v32  ;;  %v5515_v21 = vld [vmem:[#allocation2 + $0x9] sm:$0xff] }
 0x400   :  { %5506 = vst.msk [vmem:[#allocation3 + $0x200] sm:$0xf] %vm1236_vm5, %v15841_v11  ;;  %v6154_v0 = vld [vmem:[#allocation2 + $0x302] sm:$0xff]  ;;  %v6155_v59 = vld [vmem:[#allocation2 + $0x30a] sm:$0xff]  ;;  %v4816_v19 = vpop.f32.mrf.mxu1  ;;  %6451 = vst.msk [vmem:[#allocation3 + $0xc] sm:$0xf] %vm1236_vm5, %v19188_v12  ;;  %7929 = vmatprep.subr.bf16.mxu1 %v20761_v6 }
 0x401   :  { %v5579_v49 = vld [vmem:[#allocation2 + $0x309] sm:$0xff]  ;;  %v15985_v58 = vpack.c.bf16 %v6154_v0, %v6154_v0  ;;  %v15986_v54 = vpack.c.bf16 %v6155_v59, %v6155_v59  ;;  %5079 = vst.msk [vmem:[#allocation2 + $0x321] sm:$0xff] %vm28_vm3, %v5015_v27  ;;  %v4952_v60 = vadd.f32 %v19039_v15, %v4883_v63 }
 0x402   :  { %7293 = vmatmul.mubr.bf16.gmra.mxu0 %v14623_v41  ;;  %v5867_v8 = vpop.permute.xlu0 %5866  ;;  %v15914_v36 = vpack.c.bf16 %v5579_v49, %v5579_v49  ;;  %v5147_v33 = vld [vmem:[#allocation2 + $0x308] sm:$0xff]  ;;  %v4817_v3 = vpop.f32.mrf.mxu1  ;;  %v6639_v47 = vld [vmem:[#allocation3 + $0xf0] sm:$0xff]  ;;  %v15849_v41 = vpack.c.bf16 %v5514_v48, %v5514_v48 }
 0x403   :  { %6050 = vst.msk [vmem:[#allocation3 + $0x100] sm:$0xf] %vm1813_vm7, %v5867_v8  ;;  %v15842_v50 = vpack.c.bf16 %v5147_v33, %v5147_v33  ;;  %v5016_v29 = vmax.f32 %v4952_v60, 0.0  ;;  %v4884_v40 = vadd.f32 %v4817_v3, %v3983_v45  ;;  %14687 = vmatprep.mubr.msk.bf16.mxu0 %vm28_vm3, %v16643_v37  ;;  %v6090_v30 = vld [vmem:[#allocation2 + $0x2] sm:$0xff]  ;;  %v15850_v60 = vpack.c.bf16 %v5515_v21, %v5515_v21  ;;  %v5548_v8 = vld [vmem:[#allocation2 + $0x199] sm:$0xff] }
 0x404   :  { %6514 = vst.msk [vmem:[#allocation3 + $0x204] sm:$0xf] %vm1236_vm5, %v15985_v58  ;;  %6515 = vst.msk [vmem:[#allocation3 + $0x20c] sm:$0xf] %vm1236_vm5, %v15986_v54  ;;  %5932 = vrot.lane.b32.xlu1 %v15914_v36, %s17010_s19  ;;  %v4819_v35 = vpop.f32.mrf.mxu1  ;;  %v19203_v9 = vpack.c.bf16 %v6090_v30, %v6090_v30  ;;  %v16645_v5 = vld [vmem:[#allocation3 + $0x104] ss:$8 sps:$4 sm:$0xff]  }
 0x405   :  { %v5580_v62 = vld [vmem:[#allocation2 + $0x319] sm:$0xff]  ;;  %5507 = vst.msk [vmem:[#allocation3 + $0x208] sm:$0xf] %vm1236_vm5, %v15842_v50  ;;  %v4953_v7 = vadd.f32 %v19039_v15, %v4884_v40  ;;  %v16696_v59 = vld [vmem:[%s20736_s3 + $0x168] sm:$0xff]  }
 0x406   :  { %v5148_v42 = vld [vmem:[#allocation2 + $0x318] sm:$0xff]  ;;  %5080 = vst.msk [vmem:[#allocation2 + $0x331] sm:$0xff] %vm28_vm3, %v5016_v29  ;;  %v15915_v61 = vpack.c.bf16 %v5580_v62, %v5580_v62  ;;  %v16691_v15 = vld [vmem:[%s20736_s3 + $0x1e0] sm:$0xff]   ;;  %v16702_v54 = vld [vmem:[%s20736_s3 + $0x228] sm:$0xff]   ;;  %7930 = vmatpush2.bf16.msra.mxu1 %v16696_v59  ;;  %v15883_v29 = vpack.c.bf16 %v5548_v8, %v5548_v8 }
 0x407   :  { %v5869_v2 = vpop.permute.xlu1 %5868  ;;  %v6640_v51 = vld [vmem:[#allocation3 + $0xf8] sm:$0xff]  ;;  %v15843_v4 = vpack.c.bf16 %v5148_v42, %v5148_v42  ;;  %v5017_v26 = vmax.f32 %v4953_v7, 0.0  ;;  %8750 = vmatpush1.bf16.msra.mxu0 %v16691_v15  ;;  %6450 = vst.msk [vmem:[#allocation3 + $0x4] sm:$0xf] %vm1236_vm5, %v19203_v9  ;;  %v16701_v33 = vld [vmem:[%s20736_s3 + $0x160] sm:$0xff]   ;;  %7931 = vmatprep.subr.bf16.mxu1 %v20761_v6 }
 0x408   :  { %6051 = vst.msk [vmem:[#allocation3 + $0x108] sm:$0xf] %vm1813_vm7, %v5869_v2  ;;  %v14625_v17 = vcombine.low %v6639_v47, %v6640_v51  ;;  %5934 = vrot.lane.b32.xlu0 %v15915_v61, %s17010_s19  ;;  %v6156_v52 = vld [vmem:[#allocation2 + $0x31a] sm:$0xff]  ;;  %v6157_v28 = vld [vmem:[#allocation2 + $0x322] sm:$0xff]  ;;  %8759 = vmatprep.subr.bf16.mxu0 %v20761_v6  ;;  %v5550_v62 = vld [vmem:[#allocation2 + $0x1b1] sm:$0xff] }
 0x409   :  { %5508 = vst.msk [vmem:[#allocation3 + $0x210] sm:$0xf] %vm1236_vm5, %v15843_v4  ;;  %v5581_v34 = vld [vmem:[#allocation2 + $0x321] sm:$0xff]  ;;  %v15987_v24 = vpack.c.bf16 %v6156_v52, %v6156_v52  ;;  %v15988_v25 = vpack.c.bf16 %v6157_v28, %v6157_v28  ;;  %v5551_v42 = vld [vmem:[#allocation2 + $0x1b9] sm:$0xff]  ;;  %v15885_v2 = vpack.c.bf16 %v5550_v62, %v5550_v62 }
 0x40a   :  { %7301 = vmatmul.mubr.bf16.gmra.mxu0 %v14625_v17  ;;  %5081 = vst.msk [vmem:[#allocation2 + $0x339] sm:$0xff] %vm28_vm3, %v5017_v26  ;;  %v5879_v46 = vpop.permute.xlu0 %5878  ;;  %v15916_v16 = vpack.c.bf16 %v5581_v34, %v5581_v34  ;;  %v5149_v57 = vld [vmem:[#allocation2 + $0x320] sm:$0xff]  ;;  %7932 = vmatpush2.bf16.msra.mxu1 %v16701_v33  ;;  %v15886_v61 = vpack.c.bf16 %v5551_v42, %v5551_v42  ;;  %v16653_v28 = vld [vmem:[#allocation3 + $0x154] ss:$8 sps:$4 sm:$0xff]  }
 0x40b   :  { %6056 = vst.msk [vmem:[#allocation3 + $0x130] sm:$0xf] %vm1813_vm7, %v5879_v46  ;;  %v15844_v31 = vpack.c.bf16 %v5149_v57, %v5149_v57  ;;  %v6641_v53 = vld [vmem:[#allocation3 + $0x100] sm:$0xff]  ;;  %8760 = vmatpush2.bf16.msra.mxu0 %v16695_v13  ;;  %14688 = vmatprep.mubr.msk.bf16.mxu0 %vm28_vm3, %v16645_v5  ;;  %v16670_v8 = vld [vmem:[#allocation3 + $0x1b4] ss:$8 sps:$4 sm:$0xff]  }
 0x40c   :  { %6516 = vst.msk [vmem:[#allocation3 + $0x214] sm:$0xf] %vm1236_vm5, %v15987_v24  ;;  %6517 = vst.msk [vmem:[#allocation3 + $0x21c] sm:$0xf] %vm1236_vm5, %v15988_v25  ;;  %5936 = vrot.lane.b32.xlu1 %v15916_v16, %s17010_s19  ;;  %8761 = vmatprep.subr.bf16.mxu0 %v20761_v6  ;;  %v5549_v3 = vld [vmem:[#allocation2 + $0x1a1] sm:$0xff] }
 0x40d   :  { %v5582_v44 = vld [vmem:[#allocation2 + $0x331] sm:$0xff]  ;;  %5509 = vst.msk [vmem:[#allocation3 + $0x218] sm:$0xf] %vm1236_vm5, %v15844_v31  ;;  %v16707_v35 = vld [vmem:[%s20736_s3 + $0x220] sm:$0xff]   ;;  %v15884_v47 = vpack.c.bf16 %v5549_v3, %v5549_v3  ;;  %11359 = vmatprep.subr.bf16.mxu1 %v20761_v6 }
 0x40e   :  { %v5150_v1 = vld [vmem:[#allocation2 + $0x330] sm:$0xff]  ;;  %v15917_v23 = vpack.c.bf16 %v5582_v44, %v5582_v44  ;;  %v16651_v17 = vld [vmem:[#allocation3 + $0x144] ss:$8 sps:$4 sm:$0xff]  }
 0x40f   :  { %v5881_v18 = vpop.permute.xlu1 %5880  ;;  %v6642_v14 = vld [vmem:[#allocation3 + $0x108] sm:$0xff]  ;;  %v15845_v38 = vpack.c.bf16 %v5150_v1, %v5150_v1  ;;  %8762 = vmatpush2.bf16.msra.mxu0 %v16697_v56  ;;  %v16659_v1 = vld [vmem:[#allocation3 + $0x174] ss:$8 sps:$4 sm:$0xff]  }
 0x410   :  { %6057 = vst.msk [vmem:[#allocation3 + $0x138] sm:$0xf] %vm1813_vm7, %v5881_v18  ;;  %v14627_v11 = vcombine.low %v6641_v53, %v6642_v14  ;;  %5938 = vrot.lane.b32.xlu0 %v15917_v23, %s17010_s19  ;;  %8763 = vmatprep.subr.bf16.mxu0 %v20761_v6  ;;  %v16657_v57 = vld [vmem:[#allocation3 + $0x164] ss:$8 sps:$4 sm:$0xff]  }
 0x411   :  { %5510 = vst.msk [vmem:[#allocation3 + $0x220] sm:$0xf] %vm1236_vm5, %v15845_v38  ;;  %v6158_v39 = vld [vmem:[#allocation2 + $0x332] sm:$0xff]  ;;  %v5883_v10 = vpop.permute.xlu0 %5882  ;;  %v6159_v19 = vld [vmem:[#allocation2 + $0x33a] sm:$0xff]  ;;  %v16661_v5 = vld [vmem:[#allocation3 + $0x184] ss:$8 sps:$4 sm:$0xff]  }
 0x412   :  { %7309 = vmatmul.mubr.bf16.gmra.mxu0 %v14627_v11  ;;  %v5583_v27 = vld [vmem:[#allocation2 + $0x339] sm:$0xff]  ;;  %v15989_v49 = vpack.c.bf16 %v6158_v39, %v6158_v39  ;;  %6058 = vst.msk [vmem:[#allocation3 + $0x140] sm:$0xf] %vm1813_vm7, %v5883_v10  ;;  %v15990_v58 = vpack.c.bf16 %v6159_v19, %v6159_v19  ;;  %v6643_v36 = vld [vmem:[#allocation3 + $0x130] sm:$0xff]  ;;  %v16667_v59 = vld [vmem:[#allocation3 + $0x1a4] ss:$8 sps:$4 sm:$0xff]  }
 0x413   :  { %v5151_v63 = vld [vmem:[#allocation2 + $0x338] sm:$0xff]  ;;  %v15918_v45 = vpack.c.bf16 %v5583_v27, %v5583_v27  ;;  %8764 = vmatpush2.bf16.msra.mxu0 %v16702_v54  ;;  %14689 = vmatprep.mubr.msk.bf16.mxu0 %vm28_vm3, %v16648_v43 }
 0x414   :  { %v15846_v0 = vpack.c.bf16 %v5151_v63, %v5151_v63  ;;  %5802 = vrot.lane.b32.xlu0 %v15849_v41, %s17010_s19  ;;  %6518 = vst.msk [vmem:[#allocation3 + $0x224] sm:$0xf] %vm1236_vm5, %v15989_v49  ;;  %6519 = vst.msk [vmem:[#allocation3 + $0x22c] sm:$0xf] %vm1236_vm5, %v15990_v58  ;;  %8765 = vmatprep.subr.bf16.mxu0 %v20761_v6  ;;  %v16665_v39 = vld [vmem:[#allocation3 + $0x194] ss:$8 sps:$4 sm:$0xff]  }
 0x415   :  { %5940 = vrot.lane.b32.xlu1 %v15918_v45, %s17010_s19 }
 0x416   :  { %5511 = vst.msk [vmem:[#allocation3 + $0x228] sm:$0xf] %vm1236_vm5, %v15846_v0 }
 0x417   :  { %v5885_v50 = vpop.permute.xlu1 %5884  ;;  %v6644_v22 = vld [vmem:[#allocation3 + $0x138] sm:$0xff]  ;;  %8766 = vmatpush2.bf16.msra.mxu0 %v16707_v35  ;;  %v16673_v35 = vld [vmem:[#allocation3 + $0x1c4] ss:$8 sps:$4 sm:$0xff]  }
 0x418   :  { %6059 = vst.msk [vmem:[#allocation3 + $0x148] sm:$0xf] %vm1813_vm7, %v5885_v50  ;;  %v14629_v40 = vcombine.low %v6643_v36, %v6644_v22  ;;  %5870 = vrot.lane.b32.xlu0 %v15883_v29, %s17010_s19  ;;  %12104 = vmatprep.subr.bf16.mxu0 %v20761_v6 }
 0x419   :  { %5804 = vrot.lane.b32.xlu1 %v15850_v60, %s17010_s19  ;;  %v5887_v7 = vpop.permute.xlu0 %5886  ;;  %v6645_v51 = vld [vmem:[#allocation3 + $0x140] sm:$0xff] }
 0x41a   :  { %7317 = vmatmul.mubr.bf16.gmra.mxu0 %v14629_v40  ;;  %6060 = vst.msk [vmem:[#allocation3 + $0x150] sm:$0xf] %vm1813_vm7, %v5887_v7 }
 0x41b   :  { %14690 = vmatprep.mubr.msk.bf16.mxu0 %vm28_vm3, %v16651_v17  ;;  %v16675_v17 = vld [vmem:[#allocation3 + $0x1d4] ss:$8 sps:$4 sm:$0xff]  }
 0x41c   :  { %5874 = vrot.lane.b32.xlu0 %v15885_v2, %s17010_s19 }
 0x41d   :  { %5872 = vrot.lane.b32.xlu1 %v15884_v47, %s17010_s19 }
 0x41e   :  { %v5889_v37 = vpop.permute.xlu1 %5888 }
 0x41f   :  { %v6646_v4 = vld [vmem:[#allocation3 + $0x148] sm:$0xff]  ;;  %6061 = vst.msk [vmem:[#allocation3 + $0x158] sm:$0xf] %vm1813_vm7, %v5889_v37 }
 0x420   :  { %v14631_v20 = vcombine.low %v6645_v51, %v6646_v4 }
 0x421   :  { %5876 = vrot.lane.b32.xlu1 %v15886_v61, %s17010_s19  ;;  %v5891_v15 = vpop.permute.xlu0 %5890  ;;  %v6647_v26 = vld [vmem:[#allocation3 + $0x150] sm:$0xff] }
 0x422   :  { %7325 = vmatmul.mubr.bf16.gmra.mxu0 %v14631_v20  ;;  %6062 = vst.msk [vmem:[#allocation3 + $0x160] sm:$0xf] %vm1813_vm7, %v5891_v15 }
 0x423   :  { %14691 = vmatprep.mubr.msk.bf16.mxu0 %vm28_vm3, %v16653_v28 }
 0x426   :  { %v6648_v52 = vld [vmem:[#allocation3 + $0x158] sm:$0xff] }
 0x427   :  { %v5893_v55 = vpop.permute.xlu1 %5892  ;;  %v14633_v34 = vcombine.low %v6647_v26, %v6648_v52 }
 0x428   :  { %6063 = vst.msk [vmem:[#allocation3 + $0x168] sm:$0xf] %vm1813_vm7, %v5893_v55 }
 0x429   :  { %v6649_v25 = vld [vmem:[#allocation3 + $0x160] sm:$0xff] }
 0x42a   :  { %7333 = vmatmul.mubr.bf16.gmra.mxu0 %v14633_v34  ;;  %v5895_v24 = vpop.permute.xlu0 %5894 }
 0x42b   :  { %6064 = vst.msk [vmem:[#allocation3 + $0x170] sm:$0xf] %vm1813_vm7, %v5895_v24  ;;  %14692 = vmatprep.mubr.msk.bf16.mxu0 %vm28_vm3, %v16657_v57 }
 0x42f   :  { %v5897_v46 = vpop.permute.xlu1 %5896  ;;  %v6650_v16 = vld [vmem:[#allocation3 + $0x168] sm:$0xff] }
 0x430   :  { %6065 = vst.msk [vmem:[#allocation3 + $0x178] sm:$0xf] %vm1813_vm7, %v5897_v46  ;;  %v14635_v31 = vcombine.low %v6649_v25, %v6650_v16  ;;  %v16679_v46 = vld [vmem:[#allocation3 + $0x1e4] ss:$8 sps:$4 sm:$0xff]  }
 0x431   :  { %v5899_v48 = vpop.permute.xlu0 %5898 }
 0x432   :  { %7341 = vmatmul.mubr.bf16.gmra.mxu0 %v14635_v31  ;;  %6066 = vst.msk [vmem:[#allocation3 + $0x180] sm:$0xf] %vm1813_vm7, %v5899_v48  ;;  %v6651_v30 = vld [vmem:[#allocation3 + $0x170] sm:$0xff] }
 0x433   :  { %14693 = vmatprep.mubr.msk.bf16.mxu0 %vm28_vm3, %v16659_v1 }
 0x437   :  { %v5901_v13 = vpop.permute.xlu1 %5900  ;;  %v6652_v44 = vld [vmem:[#allocation3 + $0x178] sm:$0xff] }
 0x438   :  { %6067 = vst.msk [vmem:[#allocation3 + $0x188] sm:$0xf] %vm1813_vm7, %v5901_v13  ;;  %v14637_v32 = vcombine.low %v6651_v30, %v6652_v44 }
 0x439   :  { %v5903_v18 = vpop.permute.xlu0 %5902  ;;  %v6653_v23 = vld [vmem:[#allocation3 + $0x180] sm:$0xff] }
 0x43a   :  { %7349 = vmatmul.mubr.bf16.gmra.mxu0 %v14637_v32  ;;  %6068 = vst.msk [vmem:[#allocation3 + $0x190] sm:$0xf] %vm1813_vm7, %v5903_v18  ;;  %v16681_v18 = vld [vmem:[#allocation3 + $0x1f4] ss:$8 sps:$4 sm:$0xff]  }
 0x43b   :  { %14694 = vmatprep.mubr.msk.bf16.mxu0 %vm28_vm3, %v16661_v5 }
 0x43e   :  { %v5905_v53 = vpop.permute.xlu1 %5904 }
 0x43f   :  { %v6654_v14 = vld [vmem:[#allocation3 + $0x188] sm:$0xff]  ;;  %6069 = vst.msk [vmem:[#allocation3 + $0x198] sm:$0xf] %vm1813_vm7, %v5905_v53 }
 0x440   :  { %v14639_v38 = vcombine.low %v6653_v23, %v6654_v14 }
 0x441   :  { %v5907_v11 = vpop.permute.xlu0 %5906  ;;  %v6655_v21 = vld [vmem:[#allocation3 + $0x190] sm:$0xff] }
 0x442   :  { %7357 = vmatmul.mubr.bf16.gmra.mxu0 %v14639_v38  ;;  %6070 = vst.msk [vmem:[#allocation3 + $0x1a0] sm:$0xf] %vm1813_vm7, %v5907_v11 }
 0x443   :  { %14695 = vmatprep.mubr.msk.bf16.mxu0 %vm28_vm3, %v16665_v39  ;;  %v16686_v39 = vld [vmem:[#allocation3 + $0x204] ss:$8 sps:$4 sm:$0xff]  }
 0x446   :  { %v5909_v41 = vpop.permute.xlu1 %5908  ;;  %v6656_v56 = vld [vmem:[#allocation3 + $0x198] sm:$0xff] }
 0x447   :  { %6071 = vst.msk [vmem:[#allocation3 + $0x1a8] sm:$0xf] %vm1813_vm7, %v5909_v41  ;;  %v14641_v27 = vcombine.low %v6655_v21, %v6656_v56 }
 0x449   :  { %v6657_v10 = vld [vmem:[#allocation3 + $0x1a0] sm:$0xff] }
 0x44a   :  { %7365 = vmatmul.mubr.bf16.gmra.mxu0 %v14641_v27  ;;  %v5911_v63 = vpop.permute.xlu0 %5910 }
 0x44b   :  { %6072 = vst.msk [vmem:[#allocation3 + $0x1b0] sm:$0xf] %vm1813_vm7, %v5911_v63  ;;  %14696 = vmatprep.mubr.msk.bf16.mxu0 %vm28_vm3, %v16667_v59  ;;  %v6125_v59 = vld [vmem:[#allocation2 + $0x1a2] sm:$0xff] }
 0x44e   :  { %v5913_v45 = vpop.permute.xlu1 %5912  ;;  %v6658_v0 = vld [vmem:[#allocation3 + $0x1a8] sm:$0xff] }
 0x44f   :  { %6073 = vst.msk [vmem:[#allocation3 + $0x1b8] sm:$0xf] %vm1813_vm7, %v5913_v45  ;;  %v14643_v19 = vcombine.low %v6657_v10, %v6658_v0 }
 0x452   :  { %7373 = vmatmul.mubr.bf16.gmra.mxu0 %v14643_v19  ;;  %v5915_v49 = vpop.permute.xlu0 %5914  ;;  %v6659_v58 = vld [vmem:[#allocation3 + $0x1b0] sm:$0xff]  ;;  %v6124_v19 = vld [vmem:[#allocation2 + $0x19a] sm:$0xff] }
 0x453   :  { %6074 = vst.msk [vmem:[#allocation3 + $0x1c0] sm:$0xf] %vm1813_vm7, %v5915_v49  ;;  %14697 = vmatprep.mubr.msk.bf16.mxu0 %vm28_vm3, %v16670_v8  ;;  %v19311_v49 = vpack.c.bf16 %v6125_v59, %v6125_v59 }
 0x455   :  { %6485 = vst.msk [vmem:[#allocation3 + $0x11c] sm:$0xf] %vm1236_vm5, %v19311_v49 }
 0x456   :  { %v6660_v60 = vld [vmem:[#allocation3 + $0x1b8] sm:$0xff] }
 0x457   :  { %v5917_v54 = vpop.permute.xlu1 %5916  ;;  %v14645_v36 = vcombine.low %v6659_v58, %v6660_v60  ;;  %v19273_v33 = vpop.f32.mrf.mxu0  ;;  %v19313_v58 = vpack.c.bf16 %v6124_v19, %v6124_v19 }
 0x458   :  { %6075 = vst.msk [vmem:[#allocation3 + $0x1c8] sm:$0xf] %vm1813_vm7, %v5917_v54 }
 0x459   :  { %v7192_v50 = vpop.f32.mrf.mxu0  ;;  %6484 = vst.msk [vmem:[#allocation3 + $0x114] sm:$0xf] %vm1236_vm5, %v19313_v58 }
 0x45a   :  { %7381 = vmatmul.mubr.bf16.gmra.mxu0 %v14645_v36  ;;  %v5919_v3 = vpop.permute.xlu0 %5918  ;;  %v6661_v29 = vld [vmem:[#allocation3 + $0x1c0] sm:$0xff] }
 0x45b   :  { %6076 = vst.msk [vmem:[#allocation3 + $0x1d0] sm:$0xf] %vm1813_vm7, %v5919_v3  ;;  %v19276_v22 = vpop.f32.mrf.mxu0  ;;  %14698 = vmatprep.mubr.msk.bf16.mxu0 %vm28_vm3, %v16673_v35  ;;  %v16692_v3 = vld [vmem:[#allocation3 + $0x214] ss:$8 sps:$4 sm:$0xff]  }
 0x45c   :  { %v6126_v35 = vld [vmem:[#allocation2 + $0x1b2] sm:$0xff] }
 0x45d   :  { %v7195_v62 = vpop.f32.mrf.mxu0 }
 0x45e   :  { %v9285_v62 = vld [vmem:[#allocation2] sm:$0xff] }
 0x45f   :  { %v5921_v43 = vpop.permute.xlu1 %5920  ;;  %v6662_v40 = vld [vmem:[#allocation3 + $0x1c8] sm:$0xff] }
 0x460   :  { %6077 = vst.msk [vmem:[#allocation3 + $0x1d8] sm:$0xf] %vm1813_vm7, %v5921_v43  ;;  %v14647_v47 = vcombine.low %v6661_v29, %v6662_v40  ;;  %v6127_v40 = vld [vmem:[#allocation2 + $0x1ba] sm:$0xff] }
 0x461   :  { %v19280_v42 = vpop.f32.mrf.mxu0  ;;  %v5923_v7 = vpop.permute.xlu0 %5922 }
 0x462   :  { %7389 = vmatmul.mubr.bf16.gmra.mxu0 %v14647_v47  ;;  %6078 = vst.msk [vmem:[#allocation3 + $0x1e0] sm:$0xf] %vm1813_vm7, %v5923_v7  ;;  %v6663_v37 = vld [vmem:[#allocation3 + $0x1d0] sm:$0xff]  ;;  %v19324_v47 = vpack.c.bf16 %v6127_v40, %v6127_v40  ;;  %v19326_v7 = vpack.c.bf16 %v6126_v35, %v6126_v35 }
 0x463   :  { %v7200_v2 = vpop.f32.mrf.mxu0  ;;  %14699 = vmatprep.mubr.msk.bf16.mxu0 %vm28_vm3, %v16675_v17  ;;  %v9286_v17 = vld [vmem:[#allocation2 + $0x8] sm:$0xff]  ;;  %v16712_v35 = vld [vmem:[#allocation3 + $0x30] ss:$8 sps:$4 sm:$0xff]  }
 0x464   :  { %6487 = vst.msk [vmem:[#allocation3 + $0x12c] sm:$0xf] %vm1236_vm5, %v19324_v47  ;;  %6486 = vst.msk [vmem:[#allocation3 + $0x124] sm:$0xf] %vm1236_vm5, %v19326_v7 }
 0x465   :  { %v19283_v61 = vpop.f32.mrf.mxu0 }
 0x467   :  { %v5925_v51 = vpop.permute.xlu1 %5924  ;;  %v6664_v4 = vld [vmem:[#allocation3 + $0x1d8] sm:$0xff]  ;;  %v7203_v20 = vpop.f32.mrf.mxu0 }
 0x468   :  { %6079 = vst.msk [vmem:[#allocation3 + $0x1e8] sm:$0xf] %vm1813_vm7, %v5925_v51  ;;  %v14649_v15 = vcombine.low %v6663_v37, %v6664_v4  ;;  %v15993_v37 = vpack.c.bf16 %v9285_v62, %v9285_v62  ;;  %v16713_v62 = vld [vmem:[#allocation3 + $0x44] ss:$8 sps:$4 sm:$0xff]  }
 0x469   :  { %v19287_v26 = vpop.f32.mrf.mxu0  ;;  %v5927_v55 = vpop.permute.xlu0 %5926  ;;  %v6665_v24 = vld [vmem:[#allocation3 + $0x1e0] sm:$0xff] }
 0x46a   :  { %7397 = vmatmul.mubr.bf16.gmra.mxu0 %v14649_v15  ;;  %6080 = vst.msk [vmem:[#allocation3 + $0x1f0] sm:$0xf] %vm1813_vm7, %v5927_v55  ;;  %v9319_v55 = vld [vmem:[#allocation2 + $0x198] sm:$0xff] }
 0x46b   :  { %v7208_v52 = vpop.f32.mrf.mxu0  ;;  %14700 = vmatprep.mubr.msk.bf16.mxu0 %vm28_vm3, %v16679_v46 }
 0x46d   :  { %v19290_v28 = vpop.f32.mrf.mxu0 }
 0x46e   :  { %v5929_v34 = vpop.permute.xlu1 %5928 }
 0x46f   :  { %v6666_v25 = vld [vmem:[#allocation3 + $0x1e8] sm:$0xff]  ;;  %6081 = vst.msk [vmem:[#allocation3 + $0x1f8] sm:$0xf] %vm1813_vm7, %v5929_v34  ;;  %v7211_v16 = vpop.f32.mrf.mxu0 }
 0x470   :  { %v14651_v57 = vcombine.low %v6665_v24, %v6666_v25  ;;  %v16698_v34 = vld [vmem:[#allocation3 + $0x224] ss:$8 sps:$4 sm:$0xff]   ;;  %v15994_v25 = vpack.c.bf16 %v9286_v17, %v9286_v17  ;;  %v16716_v17 = vld [vmem:[#allocation3 + $0x54] ss:$8 sps:$4 sm:$0xff]  }
 0x471   :  { %v5931_v48 = vpop.permute.xlu0 %5930  ;;  %v6667_v1 = vld [vmem:[#allocation3 + $0x1f0] sm:$0xff] }
 0x472   :  { %v19294_v31 = vpop.f32.mrf.mxu0  ;;  %7405 = vmatmul.mubr.bf16.gmra.mxu0 %v14651_v57  ;;  %6082 = vst.msk [vmem:[#allocation3 + $0x200] sm:$0xf] %vm1813_vm7, %v5931_v48  ;;  %v9320_v57 = vld [vmem:[#allocation2 + $0x1a0] sm:$0xff] }
 0x473   :  { %14701 = vmatprep.mubr.msk.bf16.mxu0 %vm28_vm3, %v16681_v18  ;;  %v16703_v48 = vld [vmem:[#allocation3 + $0x24] ss:$8 sps:$4 sm:$0xff]  }
 0x474   :  { %v7216_v30 = vpop.f32.mrf.mxu0 }
 0x476   :  { %v19297_v13 = vpop.f32.mrf.mxu0  ;;  %v5933_v44 = vpop.permute.xlu1 %5932  ;;  %v6668_v32 = vld [vmem:[#allocation3 + $0x1f8] sm:$0xff] }
 0x477   :  { %6083 = vst.msk [vmem:[#allocation3 + $0x208] sm:$0xf] %vm1813_vm7, %v5933_v44  ;;  %v14653_v53 = vcombine.low %v6667_v1, %v6668_v32  ;;  %v16027_v1 = vpack.c.bf16 %v9319_v55, %v9319_v55  ;;  %v9321_v32 = vld [vmem:[#allocation2 + $0x1b0] sm:$0xff] }
 0x478   :  { %v7219_v23 = vpop.f32.mrf.mxu0 }
 0x479   :  { %v6669_v41 = vld [vmem:[#allocation3 + $0x200] sm:$0xff] }
 0x47a   :  { %v19301_v14 = vpop.f32.mrf.mxu0  ;;  %7413 = vmatmul.mubr.bf16.gmra.mxu0 %v14653_v53  ;;  %v5935_v5 = vpop.permute.xlu0 %5934  ;;  %v5585_v53 = vld [vmem:[#allocation2 + $0x351] sm:$0xff] }
 0x47b   :  { %6084 = vst.msk [vmem:[#allocation3 + $0x210] sm:$0xf] %vm1813_vm7, %v5935_v5  ;;  %14702 = vmatprep.mubr.msk.bf16.mxu0 %vm28_vm3, %v16686_v39  ;;  %v5584_v5 = vld [vmem:[#allocation2 + $0x349] sm:$0xff] }
 0x47c   :  { %v7224_v38 = vpop.f32.mrf.mxu0  ;;  %v15919_v39 = vpack.c.bf16 %v5584_v5, %v5584_v5  ;;  %v16725_v5 = vld [vmem:[#allocation3 + $0x84] ss:$8 sps:$4 sm:$0xff]  }
 0x47e   :  { %v19304_v11 = vpop.f32.mrf.mxu0  ;;  %v5937_v21 = vpop.permute.xlu1 %5936  ;;  %v6670_v56 = vld [vmem:[#allocation3 + $0x208] sm:$0xff]  ;;  %5942 = vrot.lane.b32.xlu0 %v15919_v39, %s17010_s19 }
 0x47f   :  { %6085 = vst.msk [vmem:[#allocation3 + $0x218] sm:$0xf] %vm1813_vm7, %v5937_v21  ;;  %v14655_v63 = vcombine.low %v6669_v41, %v6670_v56  ;;  %v15920_v56 = vpack.c.bf16 %v5585_v53, %v5585_v53  ;;  %v16724_v53 = vld [vmem:[#allocation3 + $0x70] ss:$8 sps:$4 sm:$0xff]   ;;  %v16727_v39 = vld [vmem:[#allocation3 + $0x80] ss:$8 sps:$4 sm:$0xff]  }
 0x480   :  { %v7227_v27 = vpop.f32.mrf.mxu0 }
 0x481   :  { %5944 = vrot.lane.b32.xlu1 %v15920_v56, %s17010_s19 }
 0x482   :  { %v19308_v10 = vpop.f32.mrf.mxu0  ;;  %7421 = vmatmul.mubr.bf16.gmra.mxu0 %v14655_v63  ;;  %v5939_v45 = vpop.permute.xlu0 %5938  ;;  %v6671_v8 = vld [vmem:[#allocation3 + $0x210] sm:$0xff]  ;;  %v9322_v63 = vld [vmem:[#allocation2 + $0x1b8] sm:$0xff] }
 0x483   :  { %6086 = vst.msk [vmem:[#allocation3 + $0x220] sm:$0xf] %vm1813_vm7, %v5939_v45  ;;  %14703 = vmatprep.mubr.msk.bf16.mxu0 %vm28_vm3, %v16692_v3 }
 0x484   :  { %v7232_v0 = vpop.f32.mrf.mxu0 }
 0x485   :  { %v16705_v0 = vld [vmem:[#allocation3 + $0x14] ss:$8 sps:$4 sm:$0xff]  }
 0x486   :  { %v19315_v54 = vpop.f32.mrf.mxu0  ;;  %v6672_v36 = vld [vmem:[#allocation3 + $0x218] sm:$0xff]  ;;  %v5803_v50 = vpop.permute.xlu0 %5802 }
 0x487   :  { %v5941_v60 = vpop.permute.xlu1 %5940  ;;  %6018 = vst.msk [vmem:[#allocation3] sm:$0xf] %vm1813_vm7, %v5803_v50  ;;  %v14657_v29 = vcombine.low %v6671_v8, %v6672_v36  ;;  %v16030_v8 = vpack.c.bf16 %v9322_v63, %v9322_v63  ;;  %v16709_v36 = vld [vmem:[#allocation3 + $0x34] ss:$8 sps:$4 sm:$0xff]  }
 0x488   :  { %6087 = vst.msk [vmem:[#allocation3 + $0x228] sm:$0xf] %vm1813_vm7, %v5941_v60  ;;  %v7235_v43 = vpop.f32.mrf.mxu0  ;;  %v16708_v60 = vld [vmem:[#allocation3 + $0x20] ss:$8 sps:$4 sm:$0xff]   ;;  %v16728_v63 = vld [vmem:[#allocation3 + $0x94] ss:$8 sps:$4 sm:$0xff]  }
 0x48a   :  { %v19328_v2 = vpop.f32.mrf.mxu0  ;;  %7429 = vmatmul.mubr.bf16.gmra.mxu0 %v14657_v29  ;;  %v5871_v20 = vpop.permute.xlu0 %5870 }
 0x48b   :  { %v5805_v51 = vpop.permute.xlu1 %5804  ;;  %6052 = vst.msk [vmem:[#allocation3 + $0x110] sm:$0xf] %vm1813_vm7, %v5871_v20  ;;  %14704 = vmatprep.mubr.msk.bf16.mxu0 %vm28_vm3, %v16698_v34 }
 0x48c   :  { %6019 = vst.msk [vmem:[#allocation3 + $0x8] sm:$0xf] %vm1813_vm7, %v5805_v51  ;;  %v7240_v4 = vpop.f32.mrf.mxu0 }
 0x48d   :  { %v16715_v4 = vld [vmem:[#allocation3 + $0x40] ss:$8 sps:$4 sm:$0xff]  }
 0x48e   :  { %v19335_v15 = vpop.f32.mrf.mxu0  ;;  %v6522_v52 = vld [vmem:[#allocation3] sm:$0xff]  ;;  %v5875_v30 = vpop.permute.xlu0 %5874 }
 0x48f   :  { %v5873_v24 = vpop.permute.xlu1 %5872  ;;  %9645 = vst.msk [vmem:[#allocation3] sm:$0xf] %vm1236_vm5, %v15993_v37  ;;  %10653 = vst.msk [vmem:[#allocation3 + $0x4] sm:$0xf] %vm1236_vm5, %v19203_v9  ;;  %v16700_v16 = vld [vmem:[#allocation3 + $0x220] ss:$8 sps:$4 sm:$0xff]   ;;  %v16028_v9 = vpack.c.bf16 %v9320_v57, %v9320_v57 }
 0x490   :  { %v7243_v46 = vpop.f32.mrf.mxu0  ;;  %6053 = vst.msk [vmem:[#allocation3 + $0x118] sm:$0xf] %vm1813_vm7, %v5873_v24  ;;  %6054 = vst.msk [vmem:[#allocation3 + $0x120] sm:$0xf] %vm1813_vm7, %v5875_v30  ;;  %v16718_v24 = vld [vmem:[#allocation3 + $0x50] ss:$8 sps:$4 sm:$0xff]  }
 0x491   :  { %v16721_v30 = vld [vmem:[#allocation3 + $0x60] ss:$8 sps:$4 sm:$0xff]  }
 0x492   :  { %v19343_v44 = vpop.f32.mrf.mxu0  ;;  %7437 = vmatmul.mubr.bf16.gmra.mxu0 %v16700_v16  ;;  %v19351_v27 = vld [vmem:[#allocation3 + $0x110] sm:$0xff] }
 0x493   :  { %v6523_v18 = vld [vmem:[#allocation3 + $0x8] sm:$0xff]  ;;  %14913 = vmatprep.mubr.msk.bf16.mxu0 %vm28_vm3, %v16703_v48  ;;  %v5877_v23 = vpop.permute.xlu1 %5876  ;;  %9679 = vst.msk [vmem:[#allocation3 + $0x110] sm:$0xf] %vm1236_vm5, %v16027_v1  ;;  %10687 = vst.msk [vmem:[#allocation3 + $0x114] sm:$0xf] %vm1236_vm5, %v19313_v58 }
 0x494   :  { %9646 = vst.msk [vmem:[#allocation3 + $0x8] sm:$0xf] %vm1236_vm5, %v15994_v25  ;;  %10654 = vst.msk [vmem:[#allocation3 + $0xc] sm:$0xf] %vm1236_vm5, %v19188_v12  ;;  %v7248_v38 = vpop.f32.mrf.mxu0  ;;  %v14706_v21 = vcombine.high %v6522_v52, %v6523_v18  ;;  %v14705_v41 = vcombine.low %v6522_v52, %v6523_v18  ;;  %v16029_v12 = vpack.c.bf16 %v9321_v32, %v9321_v32  ;;  %v16719_v25 = vld [vmem:[#allocation3 + $0x64] ss:$8 sps:$4 sm:$0xff]  }
 0x495   :  { %6055 = vst.msk [vmem:[#allocation3 + $0x128] sm:$0xf] %vm1813_vm7, %v5877_v23  ;;  %v16722_v1 = vld [vmem:[#allocation3 + $0x74] ss:$8 sps:$4 sm:$0xff]  }
 0x496   :  { %14781 = vmatprep.mubr.msk.bf16.mxu1 %vm28_vm3, %v14706_v21  ;;  %v19354_v45 = vpop.f32.mrf.mxu0 }
 0x497   :  { %7934 = vmatmul.mubr.bf16.vlgmr.msra.gmra.mxu1 %v14705_v41  ;;  %v19360_v59 = vld [vmem:[#allocation3 + $0x118] sm:$0xff]  ;;  %v19367_v58 = vld [vmem:[#allocation3 + $0x120] sm:$0xff] }
 0x498   :  { %14782 = vmatprep.mubr.msk.bf16.mxu1 %vm28_vm3, %v16705_v0  ;;  %v7251_v19 = vpop.f32.mrf.mxu0  ;;  %9680 = vst.msk [vmem:[#allocation3 + $0x118] sm:$0xf] %vm1236_vm5, %v16028_v9  ;;  %10688 = vst.msk [vmem:[#allocation3 + $0x11c] sm:$0xf] %vm1236_vm5, %v19311_v49  ;;  %v16711_v49 = vld [vmem:[#allocation3 + $0x10] ss:$8 sps:$4 sm:$0xff]  }
 0x499   :  { %9681 = vst.msk [vmem:[#allocation3 + $0x120] sm:$0xf] %vm1236_vm5, %v16029_v12  ;;  %10689 = vst.msk [vmem:[#allocation3 + $0x124] sm:$0xf] %vm1236_vm5, %v19326_v7 }
 0x49a   :  { %v19369_v3 = vpop.f32.mrf.mxu0  ;;  %8768 = vmatmul.mubr.bf16.vlgmr.msra.gmra.mxu0 %v16708_v60 }
 0x49b   :  { %14914 = vmatprep.mubr.msk.bf16.mxu0 %vm28_vm3, %v16709_v36 }
 0x49c   :  { %v19375_v50 = vld [vmem:[#allocation3 + $0x128] sm:$0xff]  ;;  %v7256_v43 = vpop.f32.mrf.mxu0 }
 0x49d   :  { %9682 = vst.msk [vmem:[#allocation3 + $0x128] sm:$0xf] %vm1236_vm5, %v16030_v8  ;;  %10690 = vst.msk [vmem:[#allocation3 + $0x12c] sm:$0xf] %vm1236_vm5, %v19324_v47  ;;  %v16730_v8 = vld [vmem:[#allocation3 + $0x90] ss:$8 sps:$4 sm:$0xff]  }
 0x49e   :  { %v19380_v29 = vpop.f32.mrf.mxu0 }
 0x49f   :  { %7942 = vmatmul.mubr.bf16.gmra.mxu1 %v16711_v49 }
 0x4a0   :  { %14783 = vmatprep.mubr.msk.bf16.mxu1 %vm28_vm3, %v16703_v48  ;;  %v7259_v40 = vpop.f32.mrf.mxu0 }
 0x4a2   :  { %v19383_v7 = vpop.f32.mrf.mxu0  ;;  %8776 = vmatmul.mubr.bf16.gmra.mxu0 %v16712_v35 }
 0x4a3   :  { %14915 = vmatprep.mubr.msk.bf16.mxu0 %vm28_vm3, %v16713_v62 }
 0x4a4   :  { %v7264_v51 = vpop.f32.mrf.mxu0 }
 0x4a5   :  { %v16734_v51 = vld [vmem:[#allocation3 + $0xb4] ss:$8 sps:$4 sm:$0xff]  }
 0x4a6   :  { %v19386_v37 = vpop.f32.mrf.mxu0 }
 0x4a7   :  { %7950 = vmatmul.mubr.bf16.gmra.mxu1 %v16708_v60 }
 0x4a8   :  { %14784 = vmatprep.mubr.msk.bf16.mxu1 %vm28_vm3, %v16709_v36  ;;  %v7267_v47 = vpop.f32.mrf.mxu0  ;;  %v16731_v36 = vld [vmem:[#allocation3 + $0xa4] ss:$8 sps:$4 sm:$0xff]  }
 0x4aa   :  { %v19389_v20 = vpop.f32.mrf.mxu0  ;;  %8784 = vmatmul.mubr.bf16.gmra.mxu0 %v16715_v4 }
 0x4ab   :  { %14916 = vmatprep.mubr.msk.bf16.mxu0 %vm28_vm3, %v16716_v17 }
 0x4ac   :  { %v7272_v55 = vpop.f32.mrf.mxu0 }
 0x4ae   :  { %v19392_v52 = vpop.f32.mrf.mxu0 }
 0x4af   :  { %7958 = vmatmul.mubr.bf16.gmra.mxu1 %v16712_v35 }
 0x4b0   :  { %14785 = vmatprep.mubr.msk.bf16.mxu1 %vm28_vm3, %v16713_v62  ;;  %v7275_v34 = vpop.f32.mrf.mxu0  ;;  %v16733_v62 = vld [vmem:[#allocation3 + $0xa0] ss:$8 sps:$4 sm:$0xff]  }
 0x4b1   :  { %v16736_v34 = vld [vmem:[#allocation3 + $0xb0] ss:$8 sps:$4 sm:$0xff]  }
 0x4b2   :  { %v19395_v46 = vpop.f32.mrf.mxu0  ;;  %8792 = vmatmul.mubr.bf16.gmra.mxu0 %v16718_v24 }
 0x4b3   :  { %14917 = vmatprep.mubr.msk.bf16.mxu0 %vm28_vm3, %v16719_v25 }
 0x4b4   :  { %v7280_v16 = vpop.f32.mrf.mxu0 }
 0x4b6   :  { %v19398_v57 = vpop.f32.mrf.mxu0 }
 0x4b7   :  { %7966 = vmatmul.mubr.bf16.gmra.mxu1 %v16715_v4 }
 0x4b8   :  { %14786 = vmatprep.mubr.msk.bf16.mxu1 %vm28_vm3, %v16716_v17  ;;  %v7283_v48 = vpop.f32.mrf.mxu0 }
 0x4ba   :  { %v19401_v32 = vpop.f32.mrf.mxu0  ;;  %8800 = vmatmul.mubr.bf16.gmra.mxu0 %v16721_v30 }
 0x4bb   :  { %14918 = vmatprep.mubr.msk.bf16.mxu0 %vm28_vm3, %v16722_v1 }
 0x4bc   :  { %v7288_v18 = vpop.f32.mrf.mxu0 }
 0x4bd   :  { %v16740_v18 = vld [vmem:[#allocation3 + $0xd4] ss:$8 sps:$4 sm:$0xff]  }
 0x4be   :  { %v19404_v9 = vpop.f32.mrf.mxu0 }
 0x4bf   :  { %7974 = vmatmul.mubr.bf16.gmra.mxu1 %v16718_v24  ;;  %v16737_v24 = vld [vmem:[#allocation3 + $0xc4] ss:$8 sps:$4 sm:$0xff]  }
 0x4c0   :  { %14787 = vmatprep.mubr.msk.bf16.mxu1 %vm28_vm3, %v16719_v25  ;;  %v7291_v23 = vpop.f32.mrf.mxu0 }
 0x4c2   :  { %v19407_v38 = vpop.f32.mrf.mxu0  ;;  %8808 = vmatmul.mubr.bf16.gmra.mxu0 %v16724_v53 }
 0x4c3   :  { %14919 = vmatprep.mubr.msk.bf16.mxu0 %vm28_vm3, %v16725_v5 }
 0x4c4   :  { %v7296_v21 = vpop.f32.mrf.mxu0 }
 0x4c6   :  { %v19410_v41 = vpop.f32.mrf.mxu0 }
 0x4c7   :  { %7982 = vmatmul.mubr.bf16.gmra.mxu1 %v16721_v30 }
 0x4c8   :  { %14788 = vmatprep.mubr.msk.bf16.mxu1 %vm28_vm3, %v16722_v1  ;;  %v7299_v56 = vpop.f32.mrf.mxu0  ;;  %v16739_v1 = vld [vmem:[#allocation3 + $0xc0] ss:$8 sps:$4 sm:$0xff]  }
 0x4c9   :  { %v16742_v56 = vld [vmem:[#allocation3 + $0xd0] ss:$8 sps:$4 sm:$0xff]  }
 0x4ca   :  { %v19413_v0 = vpop.f32.mrf.mxu0  ;;  %8816 = vmatmul.mubr.bf16.gmra.mxu0 %v16727_v39 }
 0x4cb   :  { %14920 = vmatprep.mubr.msk.bf16.mxu0 %vm28_vm3, %v16728_v63 }
 0x4cc   :  { %v7304_v12 = vpop.f32.mrf.mxu0 }
 0x4ce   :  { %v19416_v19 = vpop.f32.mrf.mxu0 }
 0x4cf   :  { %7990 = vmatmul.mubr.bf16.gmra.mxu1 %v16724_v53 }
 0x4d0   :  { %14789 = vmatprep.mubr.msk.bf16.mxu1 %vm28_vm3, %v16725_v5  ;;  %v7307_v60 = vpop.f32.mrf.mxu0 }
 0x4d2   :  { %v19419_v43 = vpop.f32.mrf.mxu0  ;;  %8824 = vmatmul.mubr.bf16.gmra.mxu0 %v16730_v8 }
 0x4d3   :  { %14921 = vmatprep.mubr.msk.bf16.mxu0 %vm28_vm3, %v16731_v36 }
 0x4d4   :  { %v7312_v49 = vpop.f32.mrf.mxu0 }
 0x4d5   :  { %v16745_v49 = vld [vmem:[#allocation3 + $0xe0] ss:$8 sps:$4 sm:$0xff]  }
 0x4d6   :  { %v19422_v40 = vpop.f32.mrf.mxu0 }
 0x4d7   :  { %7998 = vmatmul.mubr.bf16.gmra.mxu1 %v16727_v39  ;;  %v16743_v39 = vld [vmem:[#allocation3 + $0xe4] ss:$8 sps:$4 sm:$0xff]  }
 0x4d8   :  { %14790 = vmatprep.mubr.msk.bf16.mxu1 %vm28_vm3, %v16728_v63  ;;  %v7315_v35 = vpop.f32.mrf.mxu0  ;;  %v16786_v63 = vld [vmem:[%s20736_s3 + $0x2d8] sm:$0xff]  }
 0x4d9   :  { %11360 = vmatpush1.bf16.msra.mxu1 %v16786_v63  ;;  %v16746_v35 = vld [vmem:[#allocation3 + $0xf4] ss:$8 sps:$4 sm:$0xff]  }
 0x4da   :  { %v19425_v47 = vpop.f32.mrf.mxu0  ;;  %8832 = vmatmul.mubr.bf16.gmra.mxu0 %v16733_v62  ;;  %11361 = vmatprep.subr.bf16.mxu1 %v20761_v6  ;;  %v16793_v63 = vld [vmem:[%s20736_s3 + $0x2d0] sm:$0xff]  }
 0x4db   :  { %14922 = vmatprep.mubr.msk.bf16.mxu0 %vm28_vm3, %v16734_v51 }
 0x4dc   :  { %v7320_v4 = vpop.f32.mrf.mxu0 }
 0x4dd   :  { %11362 = vmatpush1.bf16.msra.mxu1 %v16793_v63 }
 0x4de   :  { %v19428_v17 = vpop.f32.mrf.mxu0  ;;  %11363 = vmatprep.subr.bf16.mxu1 %v20761_v6 }
 0x4df   :  { %8006 = vmatmul.mubr.bf16.gmra.mxu1 %v16730_v8 }
 0x4e0   :  { %14791 = vmatprep.mubr.msk.bf16.mxu1 %vm28_vm3, %v16731_v36  ;;  %v7323_v55 = vpop.f32.mrf.mxu0 }
 0x4e2   :  { %v19431_v25 = vpop.f32.mrf.mxu0  ;;  %8840 = vmatmul.mubr.bf16.gmra.mxu0 %v16736_v34 }
 0x4e3   :  { %14923 = vmatprep.mubr.msk.bf16.mxu0 %vm28_vm3, %v16737_v24 }
 0x4e4   :  { %v7328_v16 = vpop.f32.mrf.mxu0 }
 0x4e6   :  { %v19434_v48 = vpop.f32.mrf.mxu0 }
 0x4e7   :  { %8014 = vmatmul.mubr.bf16.gmra.mxu1 %v16733_v62 }
 0x4e8   :  { %14792 = vmatprep.mubr.msk.bf16.mxu1 %vm28_vm3, %v16734_v51  ;;  %v7331_v30 = vpop.f32.mrf.mxu0 }
 0x4ea   :  { %v19437_v23 = vpop.f32.mrf.mxu0  ;;  %8848 = vmatmul.mubr.bf16.gmra.mxu0 %v16739_v1 }
 0x4eb   :  { %14924 = vmatprep.mubr.msk.bf16.mxu0 %vm28_vm3, %v16740_v18 }
 0x4ec   :  { %v7336_v53 = vpop.f32.mrf.mxu0 }
 0x4ed   :  { %v8218_v53 = vld [vmem:[#allocation3 + $0x100] sm:$0xff] }
 0x4ee   :  { %v19440_v5 = vpop.f32.mrf.mxu0 }
 0x4ef   :  { %8022 = vmatmul.mubr.bf16.gmra.mxu1 %v16736_v34  ;;  %v16748_v34 = vld [vmem:[#allocation3 + $0xf0] ss:$8 sps:$4 sm:$0xff]  }
 0x4f0   :  { %14793 = vmatprep.mubr.msk.bf16.mxu1 %vm28_vm3, %v16737_v24  ;;  %v7339_v21 = vpop.f32.mrf.mxu0  ;;  %v16749_v24 = vld [vmem:[#allocation3 + $0x104] ss:$8 sps:$4 sm:$0xff]  }
 0x4f1   :  { %v14868_v21 = vcombine.high %v19351_v27, %v19360_v59 }
 0x4f2   :  { %v19446_v12 = vpop.f32.mrf.mxu0  ;;  %8856 = vmatmul.mubr.bf16.gmra.mxu0 %v16742_v56 }
 0x4f3   :  { %14925 = vmatprep.mubr.msk.bf16.mxu0 %vm28_vm3, %v16743_v39 }
 0x4f4   :  { %v7344_v60 = vpop.f32.mrf.mxu0 }
 0x4f5   :  { %v6161_v60 = vld [vmem:[#allocation2 + $0x352] sm:$0xff] }
 0x4f6   :  { %v19450_v8 = vpop.f32.mrf.mxu0 }
 0x4f7   :  { %8030 = vmatmul.mubr.bf16.gmra.mxu1 %v16739_v1  ;;  %v8219_v1 = vld [vmem:[#allocation3 + $0x108] sm:$0xff] }
 0x4f8   :  { %14794 = vmatprep.mubr.msk.bf16.mxu1 %vm28_vm3, %v16740_v18  ;;  %v7347_v36 = vpop.f32.mrf.mxu0 }
 0x4f9   :  { %v5945_v36 = vpop.permute.xlu1 %5944 }
 0x4fa   :  { %v19453_v62 = vpop.f32.mrf.mxu0  ;;  %8864 = vmatmul.mubr.bf16.gmra.mxu0 %v16745_v49  ;;  %6089 = vst.msk [vmem:[#allocation3 + $0x238] sm:$0xf] %vm1813_vm7, %v5945_v36  ;;  %v16751_v36 = vld [vmem:[#allocation3 + $0x144] ss:$8 sps:$4 sm:$0xff]  }
 0x4fb   :  { %14926 = vmatprep.mubr.msk.bf16.mxu0 %vm28_vm3, %v16746_v35 }
 0x4fc   :  { %v7352_v51 = vpop.f32.mrf.mxu0 }
 0x4fd   :  { %v5943_v51 = vpop.permute.xlu0 %5942 }
 0x4fe   :  { %v19456_v4 = vpop.f32.mrf.mxu0  ;;  %6088 = vst.msk [vmem:[#allocation3 + $0x230] sm:$0xf] %vm1813_vm7, %v5943_v51 }
 0x4ff   :  { %8038 = vmatmul.mubr.bf16.gmra.mxu1 %v16742_v56 }
 0x500   :  { %14795 = vmatprep.mubr.msk.bf16.mxu1 %vm28_vm3, %v16743_v39  ;;  %v7355_v55 = vpop.f32.mrf.mxu0  ;;  %v14865_v39 = vcombine.low %v8218_v53, %v8219_v1  ;;  %v14738_v1 = vcombine.high %v19367_v58, %v19375_v50  ;;  %v9356_v53 = vld [vmem:[#allocation2 + $0x350] sm:$0xff] }
 0x501   :  { %v16064_v63 = vpack.c.bf16 %v9356_v53, %v9356_v53  ;;  %v16758_v53 = vld [vmem:[#allocation3 + $0x130] ss:$8 sps:$4 sm:$0xff]  }
 0x502   :  { %v19459_v16 = vpop.f32.mrf.mxu0  ;;  %8872 = vmatmul.mubr.bf16.gmra.mxu0 %v16748_v34 }
 0x503   :  { %20806 = vst [vmem:[#allocation5_spill] sm:$0xff] %v19459_v16  ;;  %14927 = vmatprep.mubr.msk.bf16.mxu0 %vm28_vm3, %v16749_v24  ;;  %v15992_v24 = vpack.c.bf16 %v6161_v60, %v6161_v60  ;;  %v9355_v60 = vld [vmem:[#allocation2 + $0x348] sm:$0xff] }
 0x504   :  { %v7360_v30 = vpop.f32.mrf.mxu0  ;;  %v16063_v51 = vpack.c.bf16 %v9355_v60, %v9355_v60 }
 0x505   :  { %6521 = vst.msk [vmem:[#allocation3 + $0x23c] sm:$0xf] %vm1236_vm5, %v15992_v24 }
 0x506   :  { %v19462_v18 = vpop.f32.mrf.mxu0 }
 0x507   :  { %20807 = vst [vmem:[#allocation6_spill] sm:$0xff] %v19462_v18  ;;  %8046 = vmatmul.mubr.bf16.gmra.mxu1 %v16745_v49  ;;  %v6160_v49 = vld [vmem:[#allocation2 + $0x34a] sm:$0xff] }
 0x508   :  { %14796 = vmatprep.mubr.msk.bf16.mxu1 %vm28_vm3, %v16746_v35  ;;  %v7363_v56 = vpop.f32.mrf.mxu0  ;;  %v15991_v35 = vpack.c.bf16 %v6160_v49, %v6160_v49 }
 0x50a   :  { %v19470_v55 = vpop.f32.mrf.mxu0  ;;  %8880 = vmatmul.mubr.bf16.gmra.mxu0 %v14865_v39  ;;  %6520 = vst.msk [vmem:[#allocation3 + $0x234] sm:$0xf] %vm1236_vm5, %v15991_v35  ;;  %v14867_v39 = vcombine.low %v19351_v27, %v19360_v59 }
 0x50b   :  { %20808 = vst [vmem:[#allocation7_spill] sm:$0xff] %v19470_v55  ;;  %14928 = vmatprep.mubr.msk.bf16.mxu0 %vm28_vm3, %v14868_v21 }
 0x50c   :  { %v7368_v30 = vpop.f32.mrf.mxu0 }
 0x50d   :  { %v14737_v30 = vcombine.low %v19367_v58, %v19375_v50  ;;  %v16755_v50 = vld [vmem:[#allocation3 + $0x140] ss:$8 sps:$4 sm:$0xff]  }
 0x50e   :  { %v19480_v56 = vpop.f32.mrf.mxu0 }
 0x50f   :  { %20809 = vst [vmem:[#allocation8_spill] sm:$0xff] %v19480_v56  ;;  %8054 = vmatmul.mubr.bf16.gmra.mxu1 %v16748_v34  ;;  %v19490_v56 = vld [vmem:[#allocation3 + $0x238] sm:$0xff] }
 0x510   :  { %v7371_v21 = vpop.f32.mrf.mxu0  ;;  %14797 = vmatprep.mubr.msk.bf16.mxu1 %vm28_vm3, %v14738_v1  ;;  %9716 = vst.msk [vmem:[#allocation3 + $0x238] sm:$0xf] %vm1236_vm5, %v16064_v63  ;;  %10724 = vst.msk [vmem:[#allocation3 + $0x23c] sm:$0xf] %vm1236_vm5, %v15992_v24  ;;  %v16753_v34 = vld [vmem:[#allocation3 + $0x134] ss:$8 sps:$4 sm:$0xff]  }
 0x511   :  { %v19494_v27 = vld [vmem:[#allocation3 + $0x230] sm:$0xff]  ;;  %v16760_v63 = vld [vmem:[#allocation3 + $0x164] ss:$8 sps:$4 sm:$0xff]  }
 0x512   :  { %v19485_v49 = vpop.f32.mrf.mxu0  ;;  %8888 = vmatmul.mubr.bf16.gmra.mxu0 %v14867_v39  ;;  %9715 = vst.msk [vmem:[#allocation3 + $0x230] sm:$0xf] %vm1236_vm5, %v16063_v51  ;;  %10723 = vst.msk [vmem:[#allocation3 + $0x234] sm:$0xf] %vm1236_vm5, %v15991_v35  ;;  %v16756_v1 = vld [vmem:[#allocation3 + $0x154] ss:$8 sps:$4 sm:$0xff]  }
 0x513   :  { %20810 = vst [vmem:[#allocation9_spill] sm:$0xff] %v19485_v49  ;;  %14929 = vmatprep.mubr.msk.bf16.mxu0 %vm28_vm3, %v16751_v36  ;;  %v16794_v35 = vld [vmem:[%s20736_s3 + $0x2c8] sm:$0xff]   ;;  %v16759_v21 = vld [vmem:[#allocation3 + $0x150] ss:$8 sps:$4 sm:$0xff]  }
 0x514   :  { %v7376_v55 = vpop.f32.mrf.mxu0  ;;  %11364 = vmatpush1.bf16.msra.mxu1 %v16794_v35  ;;  %v8240_v49 = vld [vmem:[#allocation3 + $0x1d0] sm:$0xff] }
 0x515   :  { %11365 = vmatprep.subr.bf16.mxu1 %v20761_v6 }
 0x516   :  { %v19498_v59 = vpop.f32.mrf.mxu0 }
 0x517   :  { %20811 = vst [vmem:[#allocation10_spill] sm:$0xff] %v19498_v59  ;;  %8062 = vmatmul.mubr.bf16.gmra.mxu1 %v14737_v30 }
 0x518   :  { %14798 = vmatprep.mubr.msk.bf16.mxu1 %vm28_vm3, %v16753_v34  ;;  %v7379_v58 = vpop.f32.mrf.mxu0 }
 0x51a   :  { %v19501_v55 = vpop.f32.mrf.mxu0  ;;  %8896 = vmatmul.mubr.bf16.gmra.mxu0 %v16755_v50 }
 0x51b   :  { %20812 = vst [vmem:[#allocation11_spill] sm:$0xff] %v19501_v55  ;;  %14930 = vmatprep.mubr.msk.bf16.mxu0 %vm28_vm3, %v16756_v1  ;;  %v16780_v55 = vld [vmem:[#allocation3 + $0x1d4] ss:$8 sps:$4 sm:$0xff]  }
 0x51c   :  { %v7384_v24 = vpop.f32.mrf.mxu0 }
 0x51d   :  { %v16762_v24 = vld [vmem:[#allocation3 + $0x160] ss:$8 sps:$4 sm:$0xff]  }
 0x51e   :  { %v19507_v39 = vpop.f32.mrf.mxu0 }
 0x51f   :  { %20813 = vst [vmem:[#allocation12_spill] sm:$0xff] %v19507_v39  ;;  %8070 = vmatmul.mubr.bf16.gmra.mxu1 %v16758_v53 }
 0x520   :  { %14799 = vmatprep.mubr.msk.bf16.mxu1 %vm28_vm3, %v16751_v36  ;;  %v7387_v60 = vpop.f32.mrf.mxu0  ;;  %v16763_v36 = vld [vmem:[#allocation3 + $0x174] ss:$8 sps:$4 sm:$0xff]  }
 0x522   :  { %v19511_v51 = vpop.f32.mrf.mxu0  ;;  %8904 = vmatmul.mubr.bf16.gmra.mxu0 %v16759_v21 }
 0x523   :  { %20814 = vst [vmem:[#allocation13_spill] sm:$0xff] %v19511_v51  ;;  %14931 = vmatprep.mubr.msk.bf16.mxu0 %vm28_vm3, %v16760_v63  ;;  %v16765_v51 = vld [vmem:[#allocation3 + $0x170] ss:$8 sps:$4 sm:$0xff]  }
 0x524   :  { %v7392_v30 = vpop.f32.mrf.mxu0 }
 0x526   :  { %v19514_v34 = vpop.f32.mrf.mxu0 }
 0x527   :  { %20815 = vst [vmem:[#allocation14_spill] sm:$0xff] %v19514_v34  ;;  %8078 = vmatmul.mubr.bf16.gmra.mxu1 %v16755_v50  ;;  %v16766_v34 = vld [vmem:[#allocation3 + $0x184] ss:$8 sps:$4 sm:$0xff]  }
 0x528   :  { %14800 = vmatprep.mubr.msk.bf16.mxu1 %vm28_vm3, %v16756_v1  ;;  %v7395_v58 = vpop.f32.mrf.mxu0  ;;  %v16795_v50 = vld [vmem:[%s20736_s3 + $0x2c0] sm:$0xff]  }
 0x529   :  { %11366 = vmatpush1.bf16.msra.mxu1 %v16795_v50 }
 0x52a   :  { %v19517_v53 = vpop.f32.mrf.mxu0  ;;  %8912 = vmatmul.mubr.bf16.gmra.mxu0 %v16762_v24  ;;  %11367 = vmatprep.subr.bf16.mxu1 %v20761_v6 }
 0x52b   :  { %20816 = vst [vmem:[#allocation15_spill] sm:$0xff] %v19517_v53  ;;  %14932 = vmatprep.mubr.msk.bf16.mxu0 %vm28_vm3, %v16763_v36 }
 0x52c   :  { %v7400_v35 = vpop.f32.mrf.mxu0 }
 0x52e   :  { %v19520_v60 = vpop.f32.mrf.mxu0 }
 0x52f   :  { %20817 = vst [vmem:[#allocation16_spill] sm:$0xff] %v19520_v60  ;;  %8086 = vmatmul.mubr.bf16.gmra.mxu1 %v16759_v21 }
 0x530   :  { %14801 = vmatprep.mubr.msk.bf16.mxu1 %vm28_vm3, %v16760_v63  ;;  %v7403_v30 = vpop.f32.mrf.mxu0  ;;  %v16768_v63 = vld [vmem:[#allocation3 + $0x180] ss:$8 sps:$4 sm:$0xff]  }
 0x531   :  { %v16769_v30 = vld [vmem:[#allocation3 + $0x194] ss:$8 sps:$4 sm:$0xff]  }
 0x532   :  { %v19526_v1 = vpop.f32.mrf.mxu0  ;;  %8920 = vmatmul.mubr.bf16.gmra.mxu0 %v16765_v51 }
 0x533   :  { %20818 = vst [vmem:[#allocation17_spill] sm:$0xff] %v19526_v1  ;;  %14933 = vmatprep.mubr.msk.bf16.mxu0 %vm28_vm3, %v16766_v34 }
 0x534   :  { %v7408_v58 = vpop.f32.mrf.mxu0 }
 0x535   :  { %v16771_v58 = vld [vmem:[#allocation3 + $0x190] ss:$8 sps:$4 sm:$0xff]  }
 0x536   :  { %v19530_v35 = vpop.f32.mrf.mxu0 }
 0x537   :  { %20819 = vst [vmem:[#allocation18_spill] sm:$0xff] %v19530_v35  ;;  %8094 = vmatmul.mubr.bf16.gmra.mxu1 %v16762_v24  ;;  %v16772_v35 = vld [vmem:[#allocation3 + $0x1a4] ss:$8 sps:$4 sm:$0xff]  }
 0x538   :  { %14802 = vmatprep.mubr.msk.bf16.mxu1 %vm28_vm3, %v16763_v36  ;;  %v7411_v21 = vpop.f32.mrf.mxu0 }
 0x53a   :  { %v19533_v60 = vpop.f32.mrf.mxu0  ;;  %8928 = vmatmul.mubr.bf16.gmra.mxu0 %v16768_v63 }
 0x53b   :  { %20820 = vst [vmem:[#allocation19_spill] sm:$0xff] %v19533_v60  ;;  %14934 = vmatprep.mubr.msk.bf16.mxu0 %vm28_vm3, %v16769_v30  ;;  %v16774_v60 = vld [vmem:[#allocation3 + $0x1a0] ss:$8 sps:$4 sm:$0xff]  }
 0x53c   :  { %v7416_v1 = vpop.f32.mrf.mxu0 }
 0x53e   :  { %v19536_v53 = vpop.f32.mrf.mxu0 }
 0x53f   :  { %20821 = vst [vmem:[#allocation20_spill] sm:$0xff] %v19536_v53  ;;  %8102 = vmatmul.mubr.bf16.gmra.mxu1 %v16765_v51  ;;  %v16775_v53 = vld [vmem:[#allocation3 + $0x1b4] ss:$8 sps:$4 sm:$0xff]  }
 0x540   :  { %14803 = vmatprep.mubr.msk.bf16.mxu1 %vm28_vm3, %v16766_v34  ;;  %v7419_v50 = vpop.f32.mrf.mxu0  ;;  %v16796_v51 = vld [vmem:[%s20736_s3 + $0x2b8] sm:$0xff]  }
 0x541   :  { %11368 = vmatpush1.bf16.msra.mxu1 %v16796_v51  ;;  %v16797_v51 = vld [vmem:[%s20736_s3 + $0x2b0] sm:$0xff]  }
 0x542   :  { %v19539_v24 = vpop.f32.mrf.mxu0  ;;  %8936 = vmatmul.mubr.bf16.gmra.mxu0 %v16771_v58  ;;  %11369 = vmatprep.subr.bf16.mxu1 %v20761_v6 }
 0x543   :  { %20822 = vst [vmem:[#allocation21_spill] sm:$0xff] %v19539_v24  ;;  %14935 = vmatprep.mubr.msk.bf16.mxu0 %vm28_vm3, %v16772_v35 }
 0x544   :  { %v7424_v36 = vpop.f32.mrf.mxu0 }
 0x545   :  { %11370 = vmatpush1.bf16.msra.mxu1 %v16797_v51  ;;  %v19572_v51 = vld [vmem:[%s20737_s4 + $0x1] ss:$0 sm:$0xff] }
 0x546   :  { %v19542_v21 = vpop.f32.mrf.mxu0  ;;  %11371 = vmatprep.subr.bf16.mxu1 %v20761_v6 }
 0x547   :  { %20823 = vst [vmem:[#allocation22_spill] sm:$0xff] %v19542_v21  ;;  %8110 = vmatmul.mubr.bf16.gmra.mxu1 %v16768_v63 }
 0x548   :  { %14804 = vmatprep.mubr.msk.bf16.mxu1 %vm28_vm3, %v16769_v30  ;;  %v7427_v1 = vpop.f32.mrf.mxu0  ;;  %v16777_v30 = vld [vmem:[#allocation3 + $0x1b0] ss:$8 sps:$4 sm:$0xff]  }
 0x549   :  { %v16778_v1 = vld [vmem:[#allocation3 + $0x1c4] ss:$8 sps:$4 sm:$0xff]  }
 0x54a   :  { %v19548_v34 = vpop.f32.mrf.mxu0  ;;  %8944 = vmatmul.mubr.bf16.gmra.mxu0 %v16774_v60 }
 0x54b   :  { %20824 = vst [vmem:[#allocation23_spill] sm:$0xff] %v19548_v34  ;;  %14936 = vmatprep.mubr.msk.bf16.mxu0 %vm28_vm3, %v16775_v53 }
 0x54c   :  { %v7432_v50 = vpop.f32.mrf.mxu0 }
 0x54d   :  { %v8239_v50 = vld [vmem:[#allocation3 + $0x1c8] sm:$0xff] }
 0x54e   :  { %v19552_v36 = vpop.f32.mrf.mxu0 }
 0x54f   :  { %20825 = vst [vmem:[#allocation24_spill] sm:$0xff] %v19552_v36  ;;  %8118 = vmatmul.mubr.bf16.gmra.mxu1 %v16771_v58  ;;  %v8238_v58 = vld [vmem:[#allocation3 + $0x1c0] sm:$0xff] }
 0x550   :  { %14805 = vmatprep.mubr.msk.bf16.mxu1 %vm28_vm3, %v16772_v35  ;;  %v7435_v63 = vpop.f32.mrf.mxu0 }
 0x552   :  { %v19555_v21 = vpop.f32.mrf.mxu0  ;;  %8952 = vmatmul.mubr.bf16.gmra.mxu0 %v16777_v30 }
 0x553   :  { %20826 = vst [vmem:[#allocation25_spill] sm:$0xff] %v19555_v21  ;;  %14937 = vmatprep.mubr.msk.bf16.mxu0 %vm28_vm3, %v16778_v1  ;;  %v14885_v21 = vcombine.low %v8238_v58, %v8239_v50  ;;  %v8241_v58 = vld [vmem:[#allocation3 + $0x1d8] sm:$0xff] }
 0x554   :  { %v7440_v34 = vpop.f32.mrf.mxu0 }
 0x555   :  { %v16798_v34 = vld [vmem:[%s20736_s3 + $0x2a8] sm:$0xff]  }
 0x556   :  { %v19561_v24 = vpop.f32.mrf.mxu0  ;;  %11372 = vmatpush1.bf16.msra.mxu1 %v16798_v34 }
 0x557   :  { %20827 = vst [vmem:[#allocation26_spill] sm:$0xff] %v19561_v24  ;;  %v7935_v36 = vpop.f32.mrf.mxu1  ;;  %8126 = vmatmul.mubr.bf16.gmra.mxu1 %v16774_v60  ;;  %11373 = vmatprep.subr.bf16.mxu1 %v20761_v6 }
 0x558   :  { %v7936_v35 = vadd.f32 %v7935_v36, %v19273_v33  ;;  %14806 = vmatprep.mubr.msk.bf16.mxu1 %vm28_vm3, %v16775_v53  ;;  %v7443_v63 = vpop.f32.mrf.mxu0 }
 0x559   :  { %v7937_v39 = vpop.f32.mrf.mxu1 }
 0x55a   :  { %v8769_v59 = vpop.f32.mrf.mxu0  ;;  %8960 = vmatmul.mubr.bf16.gmra.mxu0 %v14885_v21  ;;  %v16799_v39 = vld [vmem:[%s20736_s3 + $0x2a0] sm:$0xff]  }
 0x55b   :  { %v7938_v60 = vpop.f32.mrf.mxu1  ;;  %v9024_v33 = vadd.f32 %v8769_v59, %v7936_v35  ;;  %14938 = vmatprep.mubr.msk.bf16.mxu0 %vm28_vm3, %v16780_v55  ;;  %11374 = vmatpush1.bf16.msra.mxu1 %v16799_v39 }
 0x55c   :  { %v7939_v53 = vadd.f32 %v7938_v60, %v19276_v22  ;;  %v8771_v36 = vpop.f32.mrf.mxu0  ;;  %11383 = vmatprep.subr.bf16.mxu1 %v20761_v6 }
 0x55d   :  { %v9093_v50 = vadd.f32 %v19572_v51, %v9024_v33  ;;  %v7940_v63 = vpop.f32.mrf.mxu1  ;;  %v19584_v36 = vcombine.low %v8240_v49, %v8241_v58  ;;  %v16800_v33 = vld [vmem:[%s20736_s3 + $0x2f8] sm:$0xff]  }
 0x55e   :  { %v8772_v24 = vpop.f32.mrf.mxu0  ;;  %v16801_v63 = vld [vmem:[%s20736_s3 + $0x2f0] sm:$0xff]  }
 0x55f   :  { %v9157_v34 = vmax.f32 %v9093_v50, 0.0  ;;  %v7943_v59 = vpop.f32.mrf.mxu1  ;;  %8134 = vmatmul.mubr.bf16.gmra.mxu1 %v16777_v30  ;;  %v9025_v35 = vadd.f32 %v8772_v24, %v7939_v53  ;;  %v19591_v30 = vld [vmem:[#allocation3 + $0x1e4] ss:$8 sps:$4 sm:$0xff]  }
 0x560   :  { %v7944_v22 = vadd.f32 %v7943_v59, %v19280_v42  ;;  %14807 = vmatprep.mubr.msk.bf16.mxu1 %vm28_vm3, %v16778_v1  ;;  %v8774_v60 = vpop.f32.mrf.mxu0  ;;  %11384 = vmatpush2.bf16.msra.mxu1 %v16800_v33  ;;  %v8243_v59 = vld [vmem:[#allocation3 + $0x1e8] sm:$0xff]  ;;  %v8242_v33 = vld [vmem:[#allocation3 + $0x1e0] sm:$0xff] }
 0x561   :  { %9221 = vst.msk [vmem:[#allocation2 + $0x19] sm:$0xff] %vm28_vm3, %v9157_v34  ;;  %v9094_v39 = vadd.f32 %v19572_v51, %v9025_v35  ;;  %v7945_v50 = vpop.f32.mrf.mxu1  ;;  %11385 = vmatprep.subr.bf16.mxu1 %v20761_v6 }
 0x562   :  { %v8777_v24 = vpop.f32.mrf.mxu0  ;;  %8968 = vmatmul.mubr.bf16.gmra.mxu0 %v19584_v36 }
 0x563   :  { %v9158_v42 = vmax.f32 %v9094_v39, 0.0  ;;  %v7946_v1 = vpop.f32.mrf.mxu1  ;;  %v9026_v53 = vadd.f32 %v8777_v24, %v7944_v22  ;;  %14939 = vmatprep.mubr.msk.bf16.mxu0 %vm28_vm3, %v19591_v30 }
 0x564   :  { %v7947_v49 = vadd.f32 %v7946_v1, %v19283_v61  ;;  %v8779_v58 = vpop.f32.mrf.mxu0  ;;  %11386 = vmatpush2.bf16.msra.mxu1 %v16801_v63  ;;  %v19606_v1 = vcombine.low %v8242_v33, %v8243_v59  ;;  %v19613_v63 = vld [vmem:[#allocation3 + $0x1f4] ss:$8 sps:$4 sm:$0xff]  }
 0x565   :  { %9222 = vst.msk [vmem:[#allocation2 + $0x21] sm:$0xff] %vm28_vm3, %v9158_v42  ;;  %v9095_v34 = vadd.f32 %v19572_v51, %v9026_v53  ;;  %v7948_v35 = vpop.f32.mrf.mxu1  ;;  %11387 = vmatprep.subr.bf16.mxu1 %v20761_v6  ;;  %v16802_v58 = vld [vmem:[%s20736_s3 + $0x2e8] sm:$0xff]  }
 0x566   :  { %v8780_v60 = vpop.f32.mrf.mxu0 }
 0x567   :  { %v9159_v22 = vmax.f32 %v9095_v34, 0.0  ;;  %v7951_v39 = vpop.f32.mrf.mxu1  ;;  %8142 = vmatmul.mubr.bf16.gmra.mxu1 %v14885_v21  ;;  %v9027_v50 = vadd.f32 %v8780_v60, %v7947_v49 }
 0x568   :  { %v7952_v61 = vadd.f32 %v7951_v39, %v19287_v26  ;;  %14808 = vmatprep.mubr.msk.bf16.mxu1 %vm28_vm3, %v16780_v55  ;;  %v8782_v24 = vpop.f32.mrf.mxu0  ;;  %v9719_v42 = vld [vmem:[#allocation2 + $0x19] sm:$0xff]  ;;  %11388 = vmatpush2.bf16.msra.mxu1 %v16802_v58 }
 0x569   :  { %v9287_v53 = vld [vmem:[#allocation2 + $0x18] sm:$0xff]  ;;  %9223 = vst.msk [vmem:[#allocation2 + $0x31] sm:$0xff] %vm28_vm3, %v9159_v22  ;;  %v9096_v21 = vadd.f32 %v19572_v51, %v9027_v50  ;;  %v7953_v49 = vpop.f32.mrf.mxu1  ;;  %v16067_v34 = vpack.c.bf16 %v9719_v42, %v9719_v42  ;;  %11389 = vmatprep.subr.bf16.mxu1 %v20761_v6  ;;  %v16803_v24 = vld [vmem:[%s20736_s3 + $0x2e0] sm:$0xff]  }
 0x56a   :  { %v15995_v26 = vpack.c.bf16 %v9287_v53, %v9287_v53  ;;  %v8785_v35 = vpop.f32.mrf.mxu0  ;;  %8976 = vmatmul.mubr.bf16.gmra.mxu0 %v19606_v1  ;;  %v8245_v42 = vld [vmem:[#allocation3 + $0x1f8] sm:$0xff] }
 0x56b   :  { %v9160_v55 = vmax.f32 %v9096_v21, 0.0  ;;  %v7954_v59 = vpop.f32.mrf.mxu1  ;;  %v9028_v60 = vadd.f32 %v8785_v35, %v7952_v61  ;;  %14940 = vmatprep.mubr.msk.bf16.mxu0 %vm28_vm3, %v19613_v63  ;;  %10009 = vrot.lane.b32.xlu0 %v16067_v34, %s17010_s19 }
 0x56c   :  { %9647 = vst.msk [vmem:[#allocation3 + $0x10] sm:$0xf] %vm1236_vm5, %v15995_v26  ;;  %v7955_v22 = vadd.f32 %v7954_v59, %v19290_v28  ;;  %v8787_v33 = vpop.f32.mrf.mxu0  ;;  %v9720_v39 = vld [vmem:[#allocation2 + $0x21] sm:$0xff]  ;;  %11390 = vmatpush2.bf16.msra.mxu1 %v16803_v24 }
 0x56d   :  { %v9288_v50 = vld [vmem:[#allocation2 + $0x20] sm:$0xff]  ;;  %9224 = vst.msk [vmem:[#allocation2 + $0x39] sm:$0xff] %vm28_vm3, %v9160_v55  ;;  %v9097_v61 = vadd.f32 %v19572_v51, %v9028_v60  ;;  %v7956_v53 = vpop.f32.mrf.mxu1  ;;  %v16068_v58 = vpack.c.bf16 %v9720_v39, %v9720_v39  ;;  %v8244_v33 = vld [vmem:[#allocation3 + $0x1f0] sm:$0xff]  ;;  %12938 = vmatprep.subr.bf16.mxu1 %v20761_v6 }
 0x56e   :  { %v15996_v21 = vpack.c.bf16 %v9288_v50, %v9288_v50  ;;  %v10295_v49 = vld [vmem:[#allocation2 + $0x1a] sm:$0xff]  ;;  %v10296_v34 = vld [vmem:[#allocation2 + $0x22] sm:$0xff]  ;;  %v8788_v28 = vpop.f32.mrf.mxu0  ;;  %v19633_v39 = vcombine.low %v8244_v33, %v8245_v42 }
 0x56f   :  { %v16139_v26 = vpack.c.bf16 %v10295_v49, %v10295_v49  ;;  %v16140_v35 = vpack.c.bf16 %v10296_v34, %v10296_v34  ;;  %v9161_v59 = vmax.f32 %v9097_v61, 0.0  ;;  %v7959_v18 = vpop.f32.mrf.mxu1  ;;  %8150 = vmatmul.mubr.bf16.gmra.mxu1 %v19584_v36  ;;  %v9029_v16 = vadd.f32 %v8788_v28, %v7955_v22  ;;  %10011 = vrot.lane.b32.xlu1 %v16068_v58, %s17010_s19 }
 0x570   :  { %9648 = vst.msk [vmem:[#allocation3 + $0x18] sm:$0xf] %vm1236_vm5, %v15996_v21  ;;  %v7960_v55 = vadd.f32 %v7959_v18, %v19294_v31  ;;  %14809 = vmatprep.mubr.msk.bf16.mxu1 %vm28_vm3, %v19591_v30  ;;  %v8790_v60 = vpop.f32.mrf.mxu0  ;;  %v9721_v50 = vld [vmem:[#allocation2 + $0x31] sm:$0xff]  ;;  %v19640_v31 = vld [vmem:[#allocation3 + $0x204] ss:$8 sps:$4 sm:$0xff]  }
 0x571   :  { %v9289_v24 = vld [vmem:[#allocation2 + $0x30] sm:$0xff]  ;;  %10655 = vst.msk [vmem:[#allocation3 + $0x14] sm:$0xf] %vm1236_vm5, %v16139_v26  ;;  %10656 = vst.msk [vmem:[#allocation3 + $0x1c] sm:$0xf] %vm1236_vm5, %v16140_v35  ;;  %v9098_v36 = vadd.f32 %v19572_v51, %v9029_v16  ;;  %v7961_v22 = vpop.f32.mrf.mxu1  ;;  %v16069_v18 = vpack.c.bf16 %v9721_v50, %v9721_v50  ;;  %v8247_v35 = vld [vmem:[#allocation3 + $0x208] sm:$0xff] }
 0x572   :  { %9225 = vst.msk [vmem:[#allocation2 + $0x49] sm:$0xff] %vm28_vm3, %v9161_v59  ;;  %v15997_v30 = vpack.c.bf16 %v9289_v24, %v9289_v24  ;;  %v8793_v61 = vpop.f32.mrf.mxu0  ;;  %8984 = vmatmul.mubr.bf16.gmra.mxu0 %v19633_v39 }
 0x573   :  { %v9162_v42 = vmax.f32 %v9098_v36, 0.0  ;;  %v7962_v53 = vpop.f32.mrf.mxu1  ;;  %v9030_v58 = vadd.f32 %v8793_v61, %v7960_v55  ;;  %14941 = vmatprep.mubr.msk.bf16.mxu0 %vm28_vm3, %v19640_v31  ;;  %10013 = vrot.lane.b32.xlu0 %v16069_v18, %s17010_s19  ;;  %v8246_v18 = vld [vmem:[#allocation3 + $0x200] sm:$0xff] }
 0x574   :  { %9649 = vst.msk [vmem:[#allocation3 + $0x20] sm:$0xf] %vm1236_vm5, %v15997_v30  ;;  %v7963_v16 = vadd.f32 %v7962_v53, %v19297_v13  ;;  %v8795_v21 = vpop.f32.mrf.mxu0  ;;  %v9722_v49 = vld [vmem:[#allocation2 + $0x39] sm:$0xff]  ;;  %v19658_v53 = vcombine.low %v8246_v18, %v8247_v35 }
 0x575   :  { %v10297_v34 = vld [vmem:[#allocation2 + $0x32] sm:$0xff]  ;;  %v10298_v28 = vld [vmem:[#allocation2 + $0x3a] sm:$0xff]  ;;  %9226 = vst.msk [vmem:[#allocation2 + $0x51] sm:$0xff] %vm28_vm3, %v9162_v42  ;;  %v9099_v26 = vadd.f32 %v19572_v51, %v9030_v58  ;;  %v7964_v59 = vpop.f32.mrf.mxu1  ;;  %v16070_v33 = vpack.c.bf16 %v9722_v49, %v9722_v49 }
 0x576   :  { %v16141_v55 = vpack.c.bf16 %v10297_v34, %v10297_v34  ;;  %v16142_v60 = vpack.c.bf16 %v10298_v28, %v10298_v28  ;;  %v9290_v50 = vld [vmem:[#allocation2 + $0x38] sm:$0xff]  ;;  %v8796_v24 = vpop.f32.mrf.mxu0 }
 0x577   :  { %v15998_v36 = vpack.c.bf16 %v9290_v50, %v9290_v50  ;;  %v9163_v22 = vmax.f32 %v9099_v26, 0.0  ;;  %v7967_v30 = vpop.f32.mrf.mxu1  ;;  %8158 = vmatmul.mubr.bf16.gmra.mxu1 %v19606_v1  ;;  %v9031_v13 = vadd.f32 %v8796_v24, %v7963_v16  ;;  %10015 = vrot.lane.b32.xlu1 %v16070_v33, %s17010_s19  ;;  %v19662_v49 = vld [vmem:[#allocation3 + $0x214] ss:$8 sps:$4 sm:$0xff]  }
 0x578   :  { %10657 = vst.msk [vmem:[#allocation3 + $0x24] sm:$0xf] %vm1236_vm5, %v16141_v55  ;;  %10658 = vst.msk [vmem:[#allocation3 + $0x2c] sm:$0xf] %vm1236_vm5, %v16142_v60  ;;  %v7968_v61 = vadd.f32 %v7967_v30, %v19301_v14  ;;  %14810 = vmatprep.mubr.msk.bf16.mxu1 %vm28_vm3, %v19613_v63  ;;  %v8798_v42 = vpop.f32.mrf.mxu0 }
 0x579   :  { %9650 = vst.msk [vmem:[#allocation3 + $0x28] sm:$0xf] %vm1236_vm5, %v15998_v36  ;;  %v9723_v58 = vld [vmem:[#allocation2 + $0x49] sm:$0xff]  ;;  %v9100_v1 = vadd.f32 %v19572_v51, %v9031_v13  ;;  %v7969_v16 = vpop.f32.mrf.mxu1  ;;  %v8249_v36 = vld [vmem:[#allocation3 + $0x218] sm:$0xff] }
 0x57a   :  { %v9291_v21 = vld [vmem:[#allocation2 + $0x48] sm:$0xff]  ;;  %9227 = vst.msk [vmem:[#allocation2 + $0x61] sm:$0xff] %vm28_vm3, %v9163_v22  ;;  %v16071_v34 = vpack.c.bf16 %v9723_v58, %v9723_v58  ;;  %v8801_v14 = vpop.f32.mrf.mxu0  ;;  %8992 = vmatmul.mubr.bf16.gmra.mxu0 %v19658_v53 }
 0x57b   :  { %v15999_v28 = vpack.c.bf16 %v9291_v21, %v9291_v21  ;;  %v9164_v26 = vmax.f32 %v9100_v1, 0.0  ;;  %v7970_v59 = vpop.f32.mrf.mxu1  ;;  %v9032_v63 = vadd.f32 %v8801_v14, %v7968_v61  ;;  %14942 = vmatprep.mubr.msk.bf16.mxu0 %vm28_vm3, %v19662_v49  ;;  %v8248_v1 = vld [vmem:[#allocation3 + $0x210] sm:$0xff] }
 0x57c   :  { %10017 = vrot.lane.b32.xlu0 %v16071_v34, %s17010_s19  ;;  %v7971_v35 = vadd.f32 %v7970_v59, %v19304_v11  ;;  %v8803_v33 = vpop.f32.mrf.mxu0  ;;  %v9724_v55 = vld [vmem:[#allocation2 + $0x51] sm:$0xff]  ;;  %v19680_v14 = vcombine.low %v8248_v1, %v8249_v36 }
 0x57d   :  { %9651 = vst.msk [vmem:[#allocation3 + $0x30] sm:$0xf] %vm1236_vm5, %v15999_v28  ;;  %v10300_v60 = vld [vmem:[#allocation2 + $0x52] sm:$0xff]  ;;  %v9101_v24 = vadd.f32 %v19572_v51, %v9032_v63  ;;  %v7972_v22 = vpop.f32.mrf.mxu1  ;;  %v16072_v18 = vpack.c.bf16 %v9724_v55, %v9724_v55  ;;  %v10299_v61 = vld [vmem:[#allocation2 + $0x4a] sm:$0xff] }
 0x57e   :  { %v9292_v50 = vld [vmem:[#allocation2 + $0x50] sm:$0xff]  ;;  %9228 = vst.msk [vmem:[#allocation2 + $0x69] sm:$0xff] %vm28_vm3, %v9164_v26  ;;  %v16144_v30 = vpack.c.bf16 %v10300_v60, %v10300_v60  ;;  %v8804_v42 = vpop.f32.mrf.mxu0  ;;  %v16143_v58 = vpack.c.bf16 %v10299_v61, %v10299_v61  ;;  %v8251_v61 = vld [vmem:[#allocation3 + $0x228] sm:$0xff] }
 0x57f   :  { %v16000_v13 = vpack.c.bf16 %v9292_v50, %v9292_v50  ;;  %v9165_v21 = vmax.f32 %v9101_v24, 0.0  ;;  %v7975_v16 = vpop.f32.mrf.mxu1  ;;  %8166 = vmatmul.mubr.bf16.gmra.mxu1 %v19633_v39  ;;  %v9033_v11 = vadd.f32 %v8804_v42, %v7971_v35  ;;  %10019 = vrot.lane.b32.xlu1 %v16072_v18, %s17010_s19  ;;  %v16791_v35 = vld [vmem:[#allocation3 + $0x224] ss:$8 sps:$4 sm:$0xff]  }
 0x580   :  { %10660 = vst.msk [vmem:[#allocation3 + $0x3c] sm:$0xf] %vm1236_vm5, %v16144_v30  ;;  %v7976_v34 = vadd.f32 %v7975_v16, %v19308_v10  ;;  %14811 = vmatprep.mubr.msk.bf16.mxu1 %vm28_vm3, %v19640_v31  ;;  %10659 = vst.msk [vmem:[#allocation3 + $0x34] sm:$0xf] %vm1236_vm5, %v16143_v58  ;;  %v8806_v28 = vpop.f32.mrf.mxu0 }
 0x581   :  { %9652 = vst.msk [vmem:[#allocation3 + $0x38] sm:$0xf] %vm1236_vm5, %v16000_v13  ;;  %v9293_v26 = vld [vmem:[#allocation2 + $0x60] sm:$0xff]  ;;  %v9102_v39 = vadd.f32 %v19572_v51, %v9033_v11  ;;  %v7977_v63 = vpop.f32.mrf.mxu1 }
 0x582   :  { %v9725_v59 = vld [vmem:[#allocation2 + $0x61] sm:$0xff]  ;;  %9229 = vst.msk [vmem:[#allocation2 + $0x79] sm:$0xff] %vm28_vm3, %v9165_v21  ;;  %v16001_v33 = vpack.c.bf16 %v9293_v26, %v9293_v26  ;;  %v8809_v60 = vpop.f32.mrf.mxu0  ;;  %9000 = vmatmul.mubr.bf16.gmra.mxu0 %v19680_v14 }
 0x583   :  { %v16073_v55 = vpack.c.bf16 %v9725_v59, %v9725_v59  ;;  %v9166_v10 = vmax.f32 %v9102_v39, 0.0  ;;  %v7978_v31 = vpop.f32.mrf.mxu1  ;;  %v9034_v50 = vadd.f32 %v8809_v60, %v7976_v34  ;;  %14943 = vmatprep.mubr.msk.bf16.mxu0 %vm28_vm3, %v16791_v35  ;;  %v8250_v26 = vld [vmem:[#allocation3 + $0x220] sm:$0xff]  ;;  %v14900_v39 = vcombine.high %v19494_v27, %v19490_v56 }
 0x584   :  { %9653 = vst.msk [vmem:[#allocation3 + $0x40] sm:$0xf] %vm1236_vm5, %v16001_v33  ;;  %v7979_v24 = vadd.f32 %v7978_v31, %v19315_v54  ;;  %v8811_v36 = vpop.f32.mrf.mxu0  ;;  %v14897_v33 = vcombine.low %v8250_v26, %v8251_v61  ;;  %v14899_v26 = vcombine.low %v19494_v27, %v19490_v56 }
 0x585   :  { %10021 = vrot.lane.b32.xlu0 %v16073_v55, %s17010_s19  ;;  %v9294_v22 = vld [vmem:[#allocation2 + $0x68] sm:$0xff]  ;;  %9230 = vst.msk [vmem:[#allocation2 + $0x81] sm:$0xff] %vm28_vm3, %v9166_v10  ;;  %v9103_v13 = vadd.f32 %v19572_v51, %v9034_v50  ;;  %v7980_v42 = vpop.f32.mrf.mxu1 }
 0x586   :  { %v9726_v18 = vld [vmem:[#allocation2 + $0x69] sm:$0xff]  ;;  %v16002_v58 = vpack.c.bf16 %v9294_v22, %v9294_v22  ;;  %v8812_v11 = vpop.f32.mrf.mxu0 }
 0x587   :  { %v10301_v30 = vld [vmem:[#allocation2 + $0x62] sm:$0xff]  ;;  %v16074_v21 = vpack.c.bf16 %v9726_v18, %v9726_v18  ;;  %v10302_v1 = vld [vmem:[#allocation2 + $0x6a] sm:$0xff]  ;;  %v9167_v28 = vmax.f32 %v9103_v13, 0.0  ;;  %v7983_v59 = vpop.f32.mrf.mxu1  ;;  %8174 = vmatmul.mubr.bf16.gmra.mxu1 %v19658_v53  ;;  %v9035_v54 = vadd.f32 %v8812_v11, %v7979_v24 }
 0x588   :  { %v16145_v16 = vpack.c.bf16 %v10301_v30, %v10301_v30  ;;  %v16146_v34 = vpack.c.bf16 %v10302_v1, %v10302_v1  ;;  %9654 = vst.msk [vmem:[#allocation3 + $0x48] sm:$0xf] %vm1236_vm5, %v16002_v58  ;;  %v7984_v63 = vadd.f32 %v7983_v59, %v19328_v2  ;;  %14812 = vmatprep.mubr.msk.bf16.mxu1 %vm28_vm3, %v19662_v49  ;;  %v8814_v35 = vpop.f32.mrf.mxu0 }
 0x589   :  { %10023 = vrot.lane.b32.xlu1 %v16074_v21, %s17010_s19  ;;  %v9295_v53 = vld [vmem:[#allocation2 + $0x78] sm:$0xff]  ;;  %9231 = vst.msk [vmem:[#allocation2 + $0x91] sm:$0xff] %vm28_vm3, %v9167_v28  ;;  %v9104_v60 = vadd.f32 %v19572_v51, %v9035_v54  ;;  %v7985_v10 = vpop.f32.mrf.mxu1 }
 0x58a   :  { %10661 = vst.msk [vmem:[#allocation3 + $0x44] sm:$0xf] %vm1236_vm5, %v16145_v16  ;;  %10662 = vst.msk [vmem:[#allocation3 + $0x4c] sm:$0xf] %vm1236_vm5, %v16146_v34  ;;  %v9727_v55 = vld [vmem:[#allocation2 + $0x79] sm:$0xff]  ;;  %v16003_v31 = vpack.c.bf16 %v9295_v53, %v9295_v53  ;;  %v8817_v24 = vpop.f32.mrf.mxu0  ;;  %9008 = vmatmul.mubr.bf16.gmra.mxu0 %v14897_v33 }
 0x58b   :  { %v16075_v50 = vpack.c.bf16 %v9727_v55, %v9727_v55  ;;  %v9168_v36 = vmax.f32 %v9104_v60, 0.0  ;;  %v7986_v2 = vpop.f32.mrf.mxu1  ;;  %v9036_v22 = vadd.f32 %v8817_v24, %v7984_v63  ;;  %14944 = vmatprep.mubr.msk.bf16.mxu0 %vm28_vm3, %v14900_v39 }
 0x58c   :  { %9655 = vst.msk [vmem:[#allocation3 + $0x50] sm:$0xf] %vm1236_vm5, %v16003_v31  ;;  %v7987_v49 = vadd.f32 %v7986_v2, %v19335_v15  ;;  %v8819_v18 = vpop.f32.mrf.mxu0  ;;  %v9296_v30 = vld [vmem:[#allocation2 + $0x80] sm:$0xff] }
 0x58d   :  { %10025 = vrot.lane.b32.xlu0 %v16075_v50, %s17010_s19  ;;  %v9728_v13 = vld [vmem:[#allocation2 + $0x81] sm:$0xff]  ;;  %9232 = vst.msk [vmem:[#allocation2 + $0x99] sm:$0xff] %vm28_vm3, %v9168_v36  ;;  %v9105_v42 = vadd.f32 %v19572_v51, %v9036_v22  ;;  %v7988_v58 = vpop.f32.mrf.mxu1  ;;  %v16004_v21 = vpack.c.bf16 %v9296_v30, %v9296_v30 }
 0x58e   :  { %v10303_v61 = vld [vmem:[#allocation2 + $0x7a] sm:$0xff]  ;;  %v16076_v1 = vpack.c.bf16 %v9728_v13, %v9728_v13  ;;  %v10304_v16 = vld [vmem:[#allocation2 + $0x82] sm:$0xff]  ;;  %v8820_v34 = vpop.f32.mrf.mxu0 }
 0x58f   :  { %v16147_v11 = vpack.c.bf16 %v10303_v61, %v10303_v61  ;;  %v16148_v28 = vpack.c.bf16 %v10304_v16, %v10304_v16  ;;  %v9169_v59 = vmax.f32 %v9105_v42, 0.0  ;;  %v7991_v15 = vpop.f32.mrf.mxu1  ;;  %8182 = vmatmul.mubr.bf16.gmra.mxu1 %v19680_v14  ;;  %v9037_v54 = vadd.f32 %v8820_v34, %v7987_v49  ;;  %9656 = vst.msk [vmem:[#allocation3 + $0x58] sm:$0xf] %vm1236_vm5, %v16004_v21 }
 0x590   :  { %10027 = vrot.lane.b32.xlu1 %v16076_v1, %s17010_s19  ;;  %v7992_v39 = vadd.f32 %v7991_v15, %v19343_v44  ;;  %v8822_v63 = vpop.f32.mrf.mxu0  ;;  %v9297_v35 = vld [vmem:[#allocation2 + $0x90] sm:$0xff] }
 0x591   :  { %10663 = vst.msk [vmem:[#allocation3 + $0x54] sm:$0xf] %vm1236_vm5, %v16147_v11  ;;  %10664 = vst.msk [vmem:[#allocation3 + $0x5c] sm:$0xf] %vm1236_vm5, %v16148_v28  ;;  %v9729_v33 = vld [vmem:[#allocation2 + $0x91] sm:$0xff]  ;;  %v9106_v56 = vadd.f32 %v19572_v51, %v9037_v54  ;;  %v7993_v27 = vpop.f32.mrf.mxu1  ;;  %v16005_v14 = vpack.c.bf16 %v9297_v35, %v9297_v35 }
 0x592   :  { %9233 = vst.msk [vmem:[#allocation2 + $0xa9] sm:$0xff] %vm28_vm3, %v9169_v59  ;;  %v16077_v53 = vpack.c.bf16 %v9729_v33, %v9729_v33  ;;  %v8825_v55 = vpop.f32.mrf.mxu0  ;;  %9016 = vmatmul.mubr.bf16.gmra.mxu0 %v14899_v26 }
 0x593   :  { %v9170_v60 = vmax.f32 %v9106_v56, 0.0  ;;  %v7994_v10 = vpop.f32.mrf.mxu1  ;;  %v9038_v31 = vadd.f32 %v8825_v55, %v7992_v39  ;;  %9657 = vst.msk [vmem:[#allocation3 + $0x60] sm:$0xf] %vm1236_vm5, %v16005_v14 }
 0x594   :  { %10029 = vrot.lane.b32.xlu0 %v16077_v53, %s17010_s19  ;;  %v7995_v44 = vadd.f32 %v7994_v10, %v19354_v45  ;;  %v8827_v50 = vpop.f32.mrf.mxu0  ;;  %v9298_v24 = vld [vmem:[#allocation2 + $0x98] sm:$0xff] }
 0x595   :  { %v9730_v36 = vld [vmem:[#allocation2 + $0x99] sm:$0xff]  ;;  %9234 = vst.msk [vmem:[#allocation2 + $0xb1] sm:$0xff] %vm28_vm3, %v9170_v60  ;;  %v9107_v22 = vadd.f32 %v19572_v51, %v9038_v31  ;;  %v7996_v49 = vpop.f32.mrf.mxu1  ;;  %v16006_v18 = vpack.c.bf16 %v9298_v24, %v9298_v24 }
 0x596   :  { %v10305_v2 = vld [vmem:[#allocation2 + $0x92] sm:$0xff]  ;;  %v16078_v30 = vpack.c.bf16 %v9730_v36, %v9730_v36  ;;  %v10306_v13 = vld [vmem:[#allocation2 + $0x9a] sm:$0xff]  ;;  %v8828_v42 = vpop.f32.mrf.mxu0 }
 0x597   :  { %v16149_v61 = vpack.c.bf16 %v10305_v2, %v10305_v2  ;;  %v16150_v58 = vpack.c.bf16 %v10306_v13, %v10306_v13  ;;  %v9171_v21 = vmax.f32 %v9107_v22, 0.0  ;;  %v7999_v1 = vpop.f32.mrf.mxu1  ;;  %v9039_v16 = vadd.f32 %v8828_v42, %v7995_v44  ;;  %9658 = vst.msk [vmem:[#allocation3 + $0x68] sm:$0xf] %vm1236_vm5, %v16006_v18 }
 0x598   :  { %10031 = vrot.lane.b32.xlu1 %v16078_v30, %s17010_s19  ;;  %v8000_v45 = vadd.f32 %v7999_v1, %v19369_v3  ;;  %v8830_v11 = vpop.f32.mrf.mxu0 }
 0x599   :  { %10665 = vst.msk [vmem:[#allocation3 + $0x64] sm:$0xf] %vm1236_vm5, %v16149_v61  ;;  %10666 = vst.msk [vmem:[#allocation3 + $0x6c] sm:$0xf] %vm1236_vm5, %v16150_v58  ;;  %v9299_v34 = vld [vmem:[#allocation2 + $0xa8] sm:$0xff]  ;;  %v9108_v26 = vadd.f32 %v19572_v51, %v9039_v16  ;;  %v8001_v59 = vpop.f32.mrf.mxu1 }
 0x59a   :  { %v9731_v28 = vld [vmem:[#allocation2 + $0xa9] sm:$0xff]  ;;  %9235 = vst.msk [vmem:[#allocation2 + $0xc1] sm:$0xff] %vm28_vm3, %v9171_v21  ;;  %v16007_v15 = vpack.c.bf16 %v9299_v34, %v9299_v34  ;;  %v8833_v39 = vpop.f32.mrf.mxu0 }
 0x59b   :  { %v16079_v54 = vpack.c.bf16 %v9731_v28, %v9731_v28  ;;  %v9172_v63 = vmax.f32 %v9108_v26, 0.0  ;;  %v8002_v35 = vpop.f32.mrf.mxu1  ;;  %v9040_v33 = vadd.f32 %v8833_v39, %v8000_v45 }
 0x59c   :  { %9659 = vst.msk [vmem:[#allocation3 + $0x70] sm:$0xf] %vm1236_vm5, %v16007_v15  ;;  %v8003_v3 = vadd.f32 %v8002_v35, %v19380_v29  ;;  %v8835_v56 = vpop.f32.mrf.mxu0  ;;  %v9300_v27 = vld [vmem:[#allocation2 + $0xb0] sm:$0xff] }
 0x59d   :  { %10033 = vrot.lane.b32.xlu0 %v16079_v54, %s17010_s19  ;;  %v9732_v14 = vld [vmem:[#allocation2 + $0xb1] sm:$0xff]  ;;  %9236 = vst.msk [vmem:[#allocation2 + $0xc9] sm:$0xff] %vm28_vm3, %v9172_v63  ;;  %v9109_v55 = vadd.f32 %v19572_v51, %v9040_v33  ;;  %v8004_v60 = vpop.f32.mrf.mxu1  ;;  %v16008_v10 = vpack.c.bf16 %v9300_v27, %v9300_v27 }
 0x59e   :  { %v10307_v53 = vld [vmem:[#allocation2 + $0xaa] sm:$0xff]  ;;  %v16080_v31 = vpack.c.bf16 %v9732_v14, %v9732_v14  ;;  %v10308_v44 = vld [vmem:[#allocation2 + $0xb2] sm:$0xff]  ;;  %v8836_v24 = vpop.f32.mrf.mxu0 }
 0x59f   :  { %v16151_v50 = vpack.c.bf16 %v10307_v53, %v10307_v53  ;;  %v16152_v36 = vpack.c.bf16 %v10308_v44, %v10308_v44  ;;  %v9173_v2 = vmax.f32 %v9109_v55, 0.0  ;;  %v8007_v22 = vpop.f32.mrf.mxu1  ;;  %v9041_v49 = vadd.f32 %v8836_v24, %v8003_v3  ;;  %9660 = vst.msk [vmem:[#allocation3 + $0x78] sm:$0xf] %vm1236_vm5, %v16008_v10 }
 0x5a0   :  { %10035 = vrot.lane.b32.xlu1 %v16080_v31, %s17010_s19  ;;  %v8008_v29 = vadd.f32 %v8007_v22, %v19383_v7  ;;  %v8838_v18 = vpop.f32.mrf.mxu0 }
 0x5a1   :  { %10667 = vst.msk [vmem:[#allocation3 + $0x74] sm:$0xf] %vm1236_vm5, %v16151_v50  ;;  %10668 = vst.msk [vmem:[#allocation3 + $0x7c] sm:$0xf] %vm1236_vm5, %v16152_v36  ;;  %v9301_v30 = vld [vmem:[#allocation2 + $0xc0] sm:$0xff]  ;;  %v9110_v61 = vadd.f32 %v19572_v51, %v9041_v49  ;;  %v8009_v42 = vpop.f32.mrf.mxu1 }
 0x5a2   :  { %v9733_v13 = vld [vmem:[#allocation2 + $0xc1] sm:$0xff]  ;;  %9237 = vst.msk [vmem:[#allocation2 + $0xd9] sm:$0xff] %vm28_vm3, %v9173_v2  ;;  %v16009_v58 = vpack.c.bf16 %v9301_v30, %v9301_v30  ;;  %v8841_v1 = vpop.f32.mrf.mxu0 }
 0x5a3   :  { %v16081_v21 = vpack.c.bf16 %v9733_v13, %v9733_v13  ;;  %v9174_v16 = vmax.f32 %v9110_v61, 0.0  ;;  %v8010_v45 = vpop.f32.mrf.mxu1  ;;  %v9042_v11 = vadd.f32 %v8841_v1, %v8008_v29 }
 0x5a4   :  { %9661 = vst.msk [vmem:[#allocation3 + $0x80] sm:$0xf] %vm1236_vm5, %v16009_v58  ;;  %v8011_v7 = vadd.f32 %v8010_v45, %v19386_v37  ;;  %v8843_v34 = vpop.f32.mrf.mxu0  ;;  %v9302_v28 = vld [vmem:[#allocation2 + $0xc8] sm:$0xff] }
 0x5a5   :  { %10037 = vrot.lane.b32.xlu0 %v16081_v21, %s17010_s19  ;;  %v9734_v26 = vld [vmem:[#allocation2 + $0xc9] sm:$0xff]  ;;  %9238 = vst.msk [vmem:[#allocation2 + $0xe1] sm:$0xff] %vm28_vm3, %v9174_v16  ;;  %v9111_v15 = vadd.f32 %v19572_v51, %v9042_v11  ;;  %v8012_v54 = vpop.f32.mrf.mxu1  ;;  %v16010_v39 = vpack.c.bf16 %v9302_v28, %v9302_v28 }
 0x5a6   :  { %v10309_v59 = vld [vmem:[#allocation2 + $0xc2] sm:$0xff]  ;;  %v16082_v63 = vpack.c.bf16 %v9734_v26, %v9734_v26  ;;  %v10310_v35 = vld [vmem:[#allocation2 + $0xca] sm:$0xff]  ;;  %v8844_v3 = vpop.f32.mrf.mxu0 }
 0x5a7   :  { %v16153_v33 = vpack.c.bf16 %v10309_v59, %v10309_v59  ;;  %v16154_v56 = vpack.c.bf16 %v10310_v35, %v10310_v35  ;;  %v9175_v27 = vmax.f32 %v9111_v15, 0.0  ;;  %v8015_v14 = vpop.f32.mrf.mxu1  ;;  %v9043_v53 = vadd.f32 %v8844_v3, %v8011_v7  ;;  %9662 = vst.msk [vmem:[#allocation3 + $0x88] sm:$0xf] %vm1236_vm5, %v16010_v39 }
 0x5a8   :  { %10039 = vrot.lane.b32.xlu1 %v16082_v63, %s17010_s19  ;;  %v8016_v37 = vadd.f32 %v8015_v14, %v19389_v20  ;;  %v8846_v55 = vpop.f32.mrf.mxu0 }
 0x5a9   :  { %10669 = vst.msk [vmem:[#allocation3 + $0x84] sm:$0xf] %vm1236_vm5, %v16153_v33  ;;  %10670 = vst.msk [vmem:[#allocation3 + $0x8c] sm:$0xf] %vm1236_vm5, %v16154_v56  ;;  %v9303_v60 = vld [vmem:[#allocation2 + $0xd8] sm:$0xff]  ;;  %v9112_v31 = vadd.f32 %v19572_v51, %v9043_v53  ;;  %v8017_v44 = vpop.f32.mrf.mxu1 }
 0x5aa   :  { %v9735_v10 = vld [vmem:[#allocation2 + $0xd9] sm:$0xff]  ;;  %9239 = vst.msk [vmem:[#allocation2 + $0xf1] sm:$0xff] %vm28_vm3, %v9175_v27  ;;  %v16011_v50 = vpack.c.bf16 %v9303_v60, %v9303_v60  ;;  %v8849_v36 = vpop.f32.mrf.mxu0 }
 0x5ab   :  { %v16083_v24 = vpack.c.bf16 %v9735_v10, %v9735_v10  ;;  %v9176_v2 = vmax.f32 %v9112_v31, 0.0  ;;  %v8018_v22 = vpop.f32.mrf.mxu1  ;;  %v9044_v49 = vadd.f32 %v8849_v36, %v8016_v37 }
 0x5ac   :  { %9663 = vst.msk [vmem:[#allocation3 + $0x90] sm:$0xf] %vm1236_vm5, %v16011_v50  ;;  %v8019_v20 = vadd.f32 %v8018_v22, %v19392_v52  ;;  %v8851_v29 = vpop.f32.mrf.mxu0  ;;  %v9304_v18 = vld [vmem:[#allocation2 + $0xe0] sm:$0xff] }
 0x5ad   :  { %10041 = vrot.lane.b32.xlu0 %v16083_v24, %s17010_s19  ;;  %v9736_v30 = vld [vmem:[#allocation2 + $0xe1] sm:$0xff]  ;;  %9240 = vst.msk [vmem:[#allocation2 + $0xf9] sm:$0xff] %vm28_vm3, %v9176_v2  ;;  %v9113_v61 = vadd.f32 %v19572_v51, %v9044_v49  ;;  %v8020_v42 = vpop.f32.mrf.mxu1  ;;  %v16012_v58 = vpack.c.bf16 %v9304_v18, %v9304_v18 }
 0x5ae   :  { %v10311_v13 = vld [vmem:[#allocation2 + $0xda] sm:$0xff]  ;;  %v16084_v21 = vpack.c.bf16 %v9736_v30, %v9736_v30  ;;  %v10312_v1 = vld [vmem:[#allocation2 + $0xe2] sm:$0xff]  ;;  %v8852_v45 = vpop.f32.mrf.mxu0 }
 0x5af   :  { %v16155_v16 = vpack.c.bf16 %v10311_v13, %v10311_v13  ;;  %v16156_v11 = vpack.c.bf16 %v10312_v1, %v10312_v1  ;;  %v9177_v7 = vmax.f32 %v9113_v61, 0.0  ;;  %v8023_v34 = vpop.f32.mrf.mxu1  ;;  %v9045_v28 = vadd.f32 %v8852_v45, %v8019_v20  ;;  %9664 = vst.msk [vmem:[#allocation3 + $0x98] sm:$0xf] %vm1236_vm5, %v16012_v58 }
 0x5b0   :  { %10043 = vrot.lane.b32.xlu1 %v16084_v21, %s17010_s19  ;;  %v8024_v52 = vadd.f32 %v8023_v34, %v19395_v46  ;;  %v8854_v26 = vpop.f32.mrf.mxu0 }
 0x5b1   :  { %10671 = vst.msk [vmem:[#allocation3 + $0x94] sm:$0xf] %vm1236_vm5, %v16155_v16  ;;  %10672 = vst.msk [vmem:[#allocation3 + $0x9c] sm:$0xf] %vm1236_vm5, %v16156_v11  ;;  %v9305_v59 = vld [vmem:[#allocation2 + $0xf0] sm:$0xff]  ;;  %v9114_v54 = vadd.f32 %v19572_v51, %v9045_v28  ;;  %v8025_v39 = vpop.f32.mrf.mxu1 }
 0x5b2   :  { %v9737_v15 = vld [vmem:[#allocation2 + $0xf1] sm:$0xff]  ;;  %9241 = vst.msk [vmem:[#allocation2 + $0x109] sm:$0xff] %vm28_vm3, %v9177_v7  ;;  %v16013_v63 = vpack.c.bf16 %v9305_v59, %v9305_v59  ;;  %v8857_v33 = vpop.f32.mrf.mxu0 }
 0x5b3   :  { %v16085_v35 = vpack.c.bf16 %v9737_v15, %v9737_v15  ;;  %v9178_v3 = vmax.f32 %v9114_v54, 0.0  ;;  %v8026_v56 = vpop.f32.mrf.mxu1  ;;  %v9046_v27 = vadd.f32 %v8857_v33, %v8024_v52 }
 0x5b4   :  { %9665 = vst.msk [vmem:[#allocation3 + $0xa0] sm:$0xf] %vm1236_vm5, %v16013_v63  ;;  %v8027_v46 = vadd.f32 %v8026_v56, %v19398_v57  ;;  %v8859_v14 = vpop.f32.mrf.mxu0  ;;  %v9306_v53 = vld [vmem:[#allocation2 + $0xf8] sm:$0xff] }
 0x5b5   :  { %10045 = vrot.lane.b32.xlu0 %v16085_v35, %s17010_s19  ;;  %v9738_v37 = vld [vmem:[#allocation2 + $0xf9] sm:$0xff]  ;;  %9242 = vst.msk [vmem:[#allocation2 + $0x111] sm:$0xff] %vm28_vm3, %v9178_v3  ;;  %v9115_v60 = vadd.f32 %v19572_v51, %v9046_v27  ;;  %v8028_v10 = vpop.f32.mrf.mxu1  ;;  %v16014_v31 = vpack.c.bf16 %v9306_v53, %v9306_v53 }
 0x5b6   :  { %v10313_v55 = vld [vmem:[#allocation2 + $0xf2] sm:$0xff]  ;;  %v16086_v44 = vpack.c.bf16 %v9738_v37, %v9738_v37  ;;  %v10314_v50 = vld [vmem:[#allocation2 + $0xfa] sm:$0xff]  ;;  %v8860_v36 = vpop.f32.mrf.mxu0 }
 0x5b7   :  { %v16157_v24 = vpack.c.bf16 %v10313_v55, %v10313_v55  ;;  %v16158_v2 = vpack.c.bf16 %v10314_v50, %v10314_v50  ;;  %v9179_v22 = vmax.f32 %v9115_v60, 0.0  ;;  %v8031_v49 = vpop.f32.mrf.mxu1  ;;  %v9047_v20 = vadd.f32 %v8860_v36, %v8027_v46  ;;  %9666 = vst.msk [vmem:[#allocation3 + $0xa8] sm:$0xf] %vm1236_vm5, %v16014_v31 }
 0x5b8   :  { %10047 = vrot.lane.b32.xlu1 %v16086_v44, %s17010_s19  ;;  %v8032_v57 = vadd.f32 %v8031_v49, %v19401_v32  ;;  %v8862_v29 = vpop.f32.mrf.mxu0 }
 0x5b9   :  { %10673 = vst.msk [vmem:[#allocation3 + $0xa4] sm:$0xf] %vm1236_vm5, %v16157_v24  ;;  %10674 = vst.msk [vmem:[#allocation3 + $0xac] sm:$0xf] %vm1236_vm5, %v16158_v2  ;;  %v9307_v18 = vld [vmem:[#allocation2 + $0x108] sm:$0xff]  ;;  %v9116_v13 = vadd.f32 %v19572_v51, %v9047_v20  ;;  %v8033_v61 = vpop.f32.mrf.mxu1 }
 0x5ba   :  { %v9739_v30 = vld [vmem:[#allocation2 + $0x109] sm:$0xff]  ;;  %9243 = vst.msk [vmem:[#allocation2 + $0x121] sm:$0xff] %vm28_vm3, %v9179_v22  ;;  %v16015_v42 = vpack.c.bf16 %v9307_v18, %v9307_v18  ;;  %v8865_v21 = vpop.f32.mrf.mxu0 }
 0x5bb   :  { %v16087_v58 = vpack.c.bf16 %v9739_v30, %v9739_v30  ;;  %v9180_v1 = vmax.f32 %v9116_v13, 0.0  ;;  %v8034_v16 = vpop.f32.mrf.mxu1  ;;  %v9048_v45 = vadd.f32 %v8865_v21, %v8032_v57 }
 0x5bc   :  { %9667 = vst.msk [vmem:[#allocation3 + $0xb0] sm:$0xf] %vm1236_vm5, %v16015_v42  ;;  %v8035_v32 = vadd.f32 %v8034_v16, %v19404_v9  ;;  %v8867_v11 = vpop.f32.mrf.mxu0  ;;  %v9308_v7 = vld [vmem:[#allocation2 + $0x110] sm:$0xff] }
 0x5bd   :  { %10049 = vrot.lane.b32.xlu0 %v16087_v58, %s17010_s19  ;;  %v9740_v34 = vld [vmem:[#allocation2 + $0x111] sm:$0xff]  ;;  %9244 = vst.msk [vmem:[#allocation2 + $0x129] sm:$0xff] %vm28_vm3, %v9180_v1  ;;  %v9117_v52 = vadd.f32 %v19572_v51, %v9048_v45  ;;  %v8036_v26 = vpop.f32.mrf.mxu1  ;;  %v16016_v59 = vpack.c.bf16 %v9308_v7, %v9308_v7 }
 0x5be   :  { %v10315_v28 = vld [vmem:[#allocation2 + $0x10a] sm:$0xff]  ;;  %v16088_v15 = vpack.c.bf16 %v9740_v34, %v9740_v34  ;;  %v10316_v54 = vld [vmem:[#allocation2 + $0x112] sm:$0xff]  ;;  %v8868_v63 = vpop.f32.mrf.mxu0 }
 0x5bf   :  { %v16159_v39 = vpack.c.bf16 %v10315_v28, %v10315_v28  ;;  %v16160_v35 = vpack.c.bf16 %v10316_v54, %v10316_v54  ;;  %v9181_v33 = vmax.f32 %v9117_v52, 0.0  ;;  %v8039_v3 = vpop.f32.mrf.mxu1  ;;  %v9049_v56 = vadd.f32 %v8868_v63, %v8035_v32  ;;  %9668 = vst.msk [vmem:[#allocation3 + $0xb8] sm:$0xf] %vm1236_vm5, %v16016_v59 }
 0x5c0   :  { %10051 = vrot.lane.b32.xlu1 %v16088_v15, %s17010_s19  ;;  %v8040_v9 = vadd.f32 %v8039_v3, %v19407_v38  ;;  %v8870_v27 = vpop.f32.mrf.mxu0 }
 0x5c1   :  { %10675 = vst.msk [vmem:[#allocation3 + $0xb4] sm:$0xf] %vm1236_vm5, %v16159_v39  ;;  %10676 = vst.msk [vmem:[#allocation3 + $0xbc] sm:$0xf] %vm1236_vm5, %v16160_v35  ;;  %v9309_v46 = vld [vmem:[#allocation2 + $0x120] sm:$0xff]  ;;  %v9118_v53 = vadd.f32 %v19572_v51, %v9049_v56  ;;  %v8041_v37 = vpop.f32.mrf.mxu1 }
 0x5c2   :  { %v9741_v14 = vld [vmem:[#allocation2 + $0x121] sm:$0xff]  ;;  %9245 = vst.msk [vmem:[#allocation2 + $0x139] sm:$0xff] %vm28_vm3, %v9181_v33  ;;  %v16017_v55 = vpack.c.bf16 %v9309_v46, %v9309_v46  ;;  %v8873_v10 = vpop.f32.mrf.mxu0 }
 0x5c3   :  { %v16089_v60 = vpack.c.bf16 %v9741_v14, %v9741_v14  ;;  %v9182_v31 = vmax.f32 %v9118_v53, 0.0  ;;  %v8042_v44 = vpop.f32.mrf.mxu1  ;;  %v9050_v50 = vadd.f32 %v8873_v10, %v8040_v9  ;;  %v19798_v51 = vld [vmem:[%s20737_s4 + $0x1] ss:$0 sm:$0xff] }
 0x5c4   :  { %9669 = vst.msk [vmem:[#allocation3 + $0xc0] sm:$0xf] %vm1236_vm5, %v16017_v55  ;;  %v8043_v38 = vadd.f32 %v8042_v44, %v19410_v41  ;;  %v8875_v24 = vpop.f32.mrf.mxu0  ;;  %v9310_v36 = vld [vmem:[#allocation2 + $0x128] sm:$0xff] }
 0x5c5   :  { %10053 = vrot.lane.b32.xlu0 %v16089_v60, %s17010_s19  ;;  %v9742_v2 = vld [vmem:[#allocation2 + $0x129] sm:$0xff]  ;;  %9246 = vst.msk [vmem:[#allocation2 + $0x141] sm:$0xff] %vm28_vm3, %v9182_v31  ;;  %v9119_v49 = vadd.f32 %v19798_v51, %v9050_v50  ;;  %v8044_v20 = vpop.f32.mrf.mxu1  ;;  %v16018_v57 = vpack.c.bf16 %v9310_v36, %v9310_v36 }
 0x5c6   :  { %v10317_v22 = vld [vmem:[#allocation2 + $0x122] sm:$0xff]  ;;  %v16090_v29 = vpack.c.bf16 %v9742_v2, %v9742_v2  ;;  %v10318_v18 = vld [vmem:[#allocation2 + $0x12a] sm:$0xff]  ;;  %v8876_v13 = vpop.f32.mrf.mxu0 }
 0x5c7   :  { %v16161_v30 = vpack.c.bf16 %v10317_v22, %v10317_v22  ;;  %v16162_v41 = vpack.c.bf16 %v10318_v18, %v10318_v18  ;;  %v9183_v61 = vmax.f32 %v9119_v49, 0.0  ;;  %v8047_v42 = vpop.f32.mrf.mxu1  ;;  %v9051_v58 = vadd.f32 %v8876_v13, %v8043_v38  ;;  %9670 = vst.msk [vmem:[#allocation3 + $0xc8] sm:$0xf] %vm1236_vm5, %v16018_v57 }
 0x5c8   :  { %10055 = vrot.lane.b32.xlu1 %v16090_v29, %s17010_s19  ;;  %v8048_v21 = vadd.f32 %v8047_v42, %v19413_v0  ;;  %v8878_v1 = vpop.f32.mrf.mxu0 }
 0x5c9   :  { %10677 = vst.msk [vmem:[#allocation3 + $0xc4] sm:$0xf] %vm1236_vm5, %v16161_v30  ;;  %10678 = vst.msk [vmem:[#allocation3 + $0xcc] sm:$0xf] %vm1236_vm5, %v16162_v41  ;;  %v9311_v16 = vld [vmem:[#allocation2 + $0x138] sm:$0xff]  ;;  %v9120_v32 = vadd.f32 %v19798_v51, %v9051_v58  ;;  %v8049_v11 = vpop.f32.mrf.mxu1 }
 0x5ca   :  { %v9743_v45 = vld [vmem:[#allocation2 + $0x139] sm:$0xff]  ;;  %9247 = vst.msk [vmem:[#allocation2 + $0x151] sm:$0xff] %vm28_vm3, %v9183_v61  ;;  %v16019_v7 = vpack.c.bf16 %v9311_v16, %v9311_v16  ;;  %v8881_v28 = vpop.f32.mrf.mxu0 }
 0x5cb   :  { %v16091_v34 = vpack.c.bf16 %v9743_v45, %v9743_v45  ;;  %v9184_v52 = vmax.f32 %v9120_v32, 0.0  ;;  %v8050_v26 = vpop.f32.mrf.mxu1  ;;  %v9052_v59 = vadd.f32 %v8881_v28, %v8048_v21 }
 0x5cc   :  { %9671 = vst.msk [vmem:[#allocation3 + $0xd0] sm:$0xf] %vm1236_vm5, %v16019_v7  ;;  %v8051_v0 = vadd.f32 %v8050_v26, %v19416_v19  ;;  %v8883_v15 = vpop.f32.mrf.mxu0  ;;  %v9312_v54 = vld [vmem:[#allocation2 + $0x140] sm:$0xff] }
 0x5cd   :  { %10057 = vrot.lane.b32.xlu0 %v16091_v34, %s17010_s19  ;;  %v9744_v39 = vld [vmem:[#allocation2 + $0x141] sm:$0xff]  ;;  %9248 = vst.msk [vmem:[#allocation2 + $0x159] sm:$0xff] %vm28_vm3, %v9184_v52  ;;  %v9121_v35 = vadd.f32 %v19798_v51, %v9052_v59  ;;  %v8052_v33 = vpop.f32.mrf.mxu1  ;;  %v16020_v3 = vpack.c.bf16 %v9312_v54, %v9312_v54 }
 0x5ce   :  { %v10319_v63 = vld [vmem:[#allocation2 + $0x13a] sm:$0xff]  ;;  %v16092_v56 = vpack.c.bf16 %v9744_v39, %v9744_v39  ;;  %v10320_v9 = vld [vmem:[#allocation2 + $0x142] sm:$0xff]  ;;  %v8884_v46 = vpop.f32.mrf.mxu0 }
 0x5cf   :  { %v16163_v27 = vpack.c.bf16 %v10319_v63, %v10319_v63  ;;  %v16164_v14 = vpack.c.bf16 %v10320_v9, %v10320_v9  ;;  %v9185_v53 = vmax.f32 %v9121_v35, 0.0  ;;  %v8055_v37 = vpop.f32.mrf.mxu1  ;;  %v9053_v55 = vadd.f32 %v8884_v46, %v8051_v0  ;;  %9672 = vst.msk [vmem:[#allocation3 + $0xd8] sm:$0xf] %vm1236_vm5, %v16020_v3 }
 0x5d0   :  { %10059 = vrot.lane.b32.xlu1 %v16092_v56, %s17010_s19  ;;  %v8056_v19 = vadd.f32 %v8055_v37, %v19419_v43  ;;  %v8886_v60 = vpop.f32.mrf.mxu0 }
 0x5d1   :  { %10679 = vst.msk [vmem:[#allocation3 + $0xd4] sm:$0xf] %vm1236_vm5, %v16163_v27  ;;  %10680 = vst.msk [vmem:[#allocation3 + $0xdc] sm:$0xf] %vm1236_vm5, %v16164_v14  ;;  %v9313_v10 = vld [vmem:[#allocation2 + $0x150] sm:$0xff]  ;;  %v9122_v44 = vadd.f32 %v19798_v51, %v9053_v55  ;;  %v8057_v50 = vpop.f32.mrf.mxu1 }
 0x5d2   :  { %v9745_v31 = vld [vmem:[#allocation2 + $0x151] sm:$0xff]  ;;  %9249 = vst.msk [vmem:[#allocation2 + $0x169] sm:$0xff] %vm28_vm3, %v9185_v53  ;;  %v16021_v38 = vpack.c.bf16 %v9313_v10, %v9313_v10  ;;  %v8889_v36 = vpop.f32.mrf.mxu0 }
 0x5d3   :  { %v16093_v24 = vpack.c.bf16 %v9745_v31, %v9745_v31  ;;  %v9186_v2 = vmax.f32 %v9122_v44, 0.0  ;;  %v8058_v22 = vpop.f32.mrf.mxu1  ;;  %v9054_v49 = vadd.f32 %v8889_v36, %v8056_v19 }
 0x5d4   :  { %9673 = vst.msk [vmem:[#allocation3 + $0xe0] sm:$0xf] %vm1236_vm5, %v16021_v38  ;;  %v8059_v43 = vadd.f32 %v8058_v22, %v19422_v40  ;;  %v8891_v20 = vpop.f32.mrf.mxu0  ;;  %v9314_v57 = vld [vmem:[#allocation2 + $0x158] sm:$0xff] }
 0x5d5   :  { %10061 = vrot.lane.b32.xlu0 %v16093_v24, %s17010_s19  ;;  %v9746_v29 = vld [vmem:[#allocation2 + $0x159] sm:$0xff]  ;;  %9250 = vst.msk [vmem:[#allocation2 + $0x171] sm:$0xff] %vm28_vm3, %v9186_v2  ;;  %v9123_v30 = vadd.f32 %v19798_v51, %v9054_v49  ;;  %v8060_v13 = vpop.f32.mrf.mxu1  ;;  %v16022_v41 = vpack.c.bf16 %v9314_v57, %v9314_v57 }
 0x5d6   :  { %v10321_v18 = vld [vmem:[#allocation2 + $0x152] sm:$0xff]  ;;  %v16094_v61 = vpack.c.bf16 %v9746_v29, %v9746_v29  ;;  %v10322_v42 = vld [vmem:[#allocation2 + $0x15a] sm:$0xff]  ;;  %v8892_v21 = vpop.f32.mrf.mxu0 }
 0x5d7   :  { %v16165_v58 = vpack.c.bf16 %v10321_v18, %v10321_v18  ;;  %v16166_v1 = vpack.c.bf16 %v10322_v42, %v10322_v42  ;;  %v9187_v16 = vmax.f32 %v9123_v30, 0.0  ;;  %v8063_v45 = vpop.f32.mrf.mxu1  ;;  %v9055_v32 = vadd.f32 %v8892_v21, %v8059_v43  ;;  %9674 = vst.msk [vmem:[#allocation3 + $0xe8] sm:$0xf] %vm1236_vm5, %v16022_v41 }
 0x5d8   :  { %10063 = vrot.lane.b32.xlu1 %v16094_v61, %s17010_s19  ;;  %v8064_v40 = vadd.f32 %v8063_v45, %v19425_v47  ;;  %v8894_v11 = vpop.f32.mrf.mxu0 }
 0x5d9   :  { %10681 = vst.msk [vmem:[#allocation3 + $0xe4] sm:$0xf] %vm1236_vm5, %v16165_v58  ;;  %10682 = vst.msk [vmem:[#allocation3 + $0xec] sm:$0xf] %vm1236_vm5, %v16166_v1  ;;  %v9315_v7 = vld [vmem:[#allocation2 + $0x168] sm:$0xff]  ;;  %v9124_v28 = vadd.f32 %v19798_v51, %v9055_v32  ;;  %v8065_v52 = vpop.f32.mrf.mxu1 }
 0x5da   :  { %v9747_v34 = vld [vmem:[#allocation2 + $0x169] sm:$0xff]  ;;  %9251 = vst.msk [vmem:[#allocation2 + $0x181] sm:$0xff] %vm28_vm3, %v9187_v16  ;;  %v16023_v26 = vpack.c.bf16 %v9315_v7, %v9315_v7  ;;  %v8897_v0 = vpop.f32.mrf.mxu0 }
 0x5db   :  { %v16095_v59 = vpack.c.bf16 %v9747_v34, %v9747_v34  ;;  %v9188_v15 = vmax.f32 %v9124_v28, 0.0  ;;  %v8066_v54 = vpop.f32.mrf.mxu1  ;;  %v9056_v39 = vadd.f32 %v8897_v0, %v8064_v40 }
 0x5dc   :  { %9675 = vst.msk [vmem:[#allocation3 + $0xf0] sm:$0xf] %vm1236_vm5, %v16023_v26  ;;  %v8067_v47 = vadd.f32 %v8066_v54, %v19428_v17  ;;  %v8899_v63 = vpop.f32.mrf.mxu0  ;;  %v9316_v35 = vld [vmem:[#allocation2 + $0x170] sm:$0xff] }
 0x5dd   :  { %10065 = vrot.lane.b32.xlu0 %v16095_v59, %s17010_s19  ;;  %v9748_v33 = vld [vmem:[#allocation2 + $0x171] sm:$0xff]  ;;  %9252 = vst.msk [vmem:[#allocation2 + $0x189] sm:$0xff] %vm28_vm3, %v9188_v15  ;;  %v9125_v56 = vadd.f32 %v19798_v51, %v9056_v39  ;;  %v8068_v9 = vpop.f32.mrf.mxu1  ;;  %v10010_v27 = vpop.permute.xlu0 %10009  ;;  %v16024_v46 = vpack.c.bf16 %v9316_v35, %v9316_v35 }
 0x5de   :  { %v10323_v3 = vld [vmem:[#allocation2 + $0x16a] sm:$0xff]  ;;  %v16096_v14 = vpack.c.bf16 %v9748_v33, %v9748_v33  ;;  %v10324_v53 = vld [vmem:[#allocation2 + $0x172] sm:$0xff]  ;;  %10223 = vst.msk [vmem:[#allocation3 + $0x10] sm:$0xf] %vm1813_vm7, %v10010_v27  ;;  %v8900_v55 = vpop.f32.mrf.mxu0 }
 0x5df   :  { %v16167_v37 = vpack.c.bf16 %v10323_v3, %v10323_v3  ;;  %v16168_v19 = vpack.c.bf16 %v10324_v53, %v10324_v53  ;;  %v9189_v60 = vmax.f32 %v9125_v56, 0.0  ;;  %v8071_v17 = vpop.f32.mrf.mxu1  ;;  %v9057_v10 = vadd.f32 %v8900_v55, %v8067_v47  ;;  %9676 = vst.msk [vmem:[#allocation3 + $0xf8] sm:$0xf] %vm1236_vm5, %v16024_v46  ;;  %v16806_v47 = vld [vmem:[#allocation3 + $0x14] ss:$8 sps:$4 sm:$0xff]  }
 0x5e0   :  { %10067 = vrot.lane.b32.xlu1 %v16096_v14, %s17010_s19  ;;  %v8072_v31 = vadd.f32 %v8071_v17, %v19431_v25  ;;  %v8902_v44 = vpop.f32.mrf.mxu0  ;;  %15286 = vmatprep.mubr.msk.bf16.mxu1 %vm28_vm3, %v16806_v47  ;;  %v16841_v9 = vld [vmem:[%s20736_s3 + $0x338] sm:$0xff]  }
 0x5e1   :  { %10683 = vst.msk [vmem:[#allocation3 + $0xf4] sm:$0xf] %vm1236_vm5, %v16167_v37  ;;  %10684 = vst.msk [vmem:[#allocation3 + $0xfc] sm:$0xf] %vm1236_vm5, %v16168_v19  ;;  %v9749_v50 = vld [vmem:[#allocation2 + $0x181] sm:$0xff]  ;;  %v9126_v24 = vadd.f32 %v19798_v51, %v9057_v10  ;;  %v8073_v36 = vpop.f32.mrf.mxu1  ;;  %v10012_v2 = vpop.permute.xlu1 %10011 }
 0x5e2   :  { %v9317_v38 = vld [vmem:[#allocation2 + $0x180] sm:$0xff]  ;;  %9253 = vst.msk [vmem:[#allocation2 + $0x1c9] sm:$0xff] %vm28_vm3, %v9189_v60  ;;  %v16097_v22 = vpack.c.bf16 %v9749_v50, %v9749_v50  ;;  %v8905_v43 = vpop.f32.mrf.mxu0 }
 0x5e3   :  { %v16025_v49 = vpack.c.bf16 %v9317_v38, %v9317_v38  ;;  %10224 = vst.msk [vmem:[#allocation3 + $0x18] sm:$0xf] %vm1813_vm7, %v10012_v2  ;;  %v9190_v20 = vmax.f32 %v9126_v24, 0.0  ;;  %v8074_v57 = vpop.f32.mrf.mxu1  ;;  %v9058_v29 = vadd.f32 %v8905_v43, %v8072_v31 }
 0x5e4   :  { %10069 = vrot.lane.b32.xlu0 %v16097_v22, %s17010_s19  ;;  %v8075_v25 = vadd.f32 %v8074_v57, %v19434_v48  ;;  %v8907_v18 = vpop.f32.mrf.mxu0  ;;  %v9750_v30 = vld [vmem:[#allocation2 + $0x189] sm:$0xff] }
 0x5e5   :  { %9677 = vst.msk [vmem:[#allocation3 + $0x100] sm:$0xf] %vm1236_vm5, %v16025_v49  ;;  %v9318_v13 = vld [vmem:[#allocation2 + $0x188] sm:$0xff]  ;;  %v9127_v61 = vadd.f32 %v19798_v51, %v9058_v29  ;;  %v8076_v42 = vpop.f32.mrf.mxu1  ;;  %v10014_v58 = vpop.permute.xlu0 %10013  ;;  %v16098_v21 = vpack.c.bf16 %v9750_v30, %v9750_v30 }
 0x5e6   :  { %v10325_v41 = vld [vmem:[#allocation2 + $0x182] sm:$0xff]  ;;  %9254 = vst.msk [vmem:[#allocation2 + $0x1d1] sm:$0xff] %vm28_vm3, %v9190_v20  ;;  %v16026_v1 = vpack.c.bf16 %v9318_v13, %v9318_v13  ;;  %v10326_v16 = vld [vmem:[#allocation2 + $0x18a] sm:$0xff]  ;;  %v8908_v32 = vpop.f32.mrf.mxu0 }
 0x5e7   :  { %v16169_v45 = vpack.c.bf16 %v10325_v41, %v10325_v41  ;;  %10225 = vst.msk [vmem:[#allocation3 + $0x20] sm:$0xf] %vm1813_vm7, %v10014_v58  ;;  %v16170_v40 = vpack.c.bf16 %v10326_v16, %v10326_v16  ;;  %v9191_v11 = vmax.f32 %v9127_v61, 0.0  ;;  %v8079_v48 = vpop.f32.mrf.mxu1  ;;  %v9059_v7 = vadd.f32 %v8908_v32, %v8075_v25  ;;  %10071 = vrot.lane.b32.xlu1 %v16098_v21, %s17010_s19  ;;  %v16807_v30 = vld [vmem:[#allocation3 + $0x24] ss:$8 sps:$4 sm:$0xff]  }
 0x5e8   :  { %9678 = vst.msk [vmem:[#allocation3 + $0x108] sm:$0xf] %vm1236_vm5, %v16026_v1  ;;  %v8080_v34 = vadd.f32 %v8079_v48, %v19437_v23  ;;  %v8910_v28 = vpop.f32.mrf.mxu0  ;;  %v16838_v23 = vld [vmem:[%s20736_s3 + $0x278] sm:$0xff]  }
 0x5e9   :  { %10685 = vst.msk [vmem:[#allocation3 + $0x104] sm:$0xf] %vm1236_vm5, %v16169_v45  ;;  %v9755_v52 = vld [vmem:[#allocation2 + $0x1c9] sm:$0xff]  ;;  %10686 = vst.msk [vmem:[#allocation3 + $0x10c] sm:$0xf] %vm1236_vm5, %v16170_v40  ;;  %v9128_v59 = vadd.f32 %v19798_v51, %v9059_v7  ;;  %v8081_v0 = vpop.f32.mrf.mxu1  ;;  %v10016_v15 = vpop.permute.xlu1 %10015  ;;  %12105 = vmatpush1.bf16.msra.mxu0 %v16838_v23 }
 0x5ea   :  { %v9323_v26 = vld [vmem:[#allocation2 + $0x1c8] sm:$0xff]  ;;  %9255 = vst.msk [vmem:[#allocation2 + $0x1e1] sm:$0xff] %vm28_vm3, %v9191_v11  ;;  %v16103_v54 = vpack.c.bf16 %v9755_v52, %v9755_v52  ;;  %v16804_v39 = vld [vmem:[#allocation3 + $0x10] ss:$8 sps:$4 sm:$0xff]   ;;  %v8913_v35 = vpop.f32.mrf.mxu0  ;;  %12106 = vmatprep.subr.bf16.mxu0 %v20761_v6 }
 0x5eb   :  { %v16031_v63 = vpack.c.bf16 %v9323_v26, %v9323_v26  ;;  %10226 = vst.msk [vmem:[#allocation3 + $0x28] sm:$0xf] %vm1813_vm7, %v10016_v15  ;;  %v9192_v33 = vmax.f32 %v9128_v59, 0.0  ;;  %v8082_v3 = vpop.f32.mrf.mxu1  ;;  %v9060_v56 = vadd.f32 %v8913_v35, %v8080_v34  ;;  %11392 = vmatmul.mubr.bf16.vlgmr.msra.gmra.mxu1 %v16804_v39 }
 0x5ec   :  { %10081 = vrot.lane.b32.xlu0 %v16103_v54, %s17010_s19  ;;  %v8083_v27 = vadd.f32 %v8082_v3, %v19440_v5  ;;  %v8915_v46 = vpop.f32.mrf.mxu0  ;;  %12939 = vmatpush1.bf16.msra.mxu1 %v16841_v9 }
 0x5ed   :  { %9683 = vst.msk [vmem:[#allocation3 + $0x130] sm:$0xf] %vm1236_vm5, %v16031_v63  ;;  %v9756_v14 = vld [vmem:[#allocation2 + $0x1d1] sm:$0xff]  ;;  %v9129_v55 = vadd.f32 %v19798_v51, %v9060_v56  ;;  %v8084_v19 = vpop.f32.mrf.mxu1  ;;  %12940 = vmatprep.subr.bf16.mxu1 %v20761_v6  ;;  %15287 = vmatprep.mubr.msk.bf16.mxu1 %vm28_vm3, %v16807_v30 }
 0x5ee   :  { %v9324_v53 = vld [vmem:[#allocation2 + $0x1d0] sm:$0xff]  ;;  %9256 = vst.msk [vmem:[#allocation2 + $0x1e9] sm:$0xff] %vm28_vm3, %v9192_v33  ;;  %v10018_v60 = vpop.permute.xlu0 %10017  ;;  %v16104_v17 = vpack.c.bf16 %v9756_v14, %v9756_v14  ;;  %v8916_v5 = vpop.f32.mrf.mxu0 }
 0x5ef   :  { %v10331_v37 = vld [vmem:[#allocation2 + $0x1ca] sm:$0xff]  ;;  %v16032_v10 = vpack.c.bf16 %v9324_v53, %v9324_v53  ;;  %v10332_v31 = vld [vmem:[#allocation2 + $0x1d2] sm:$0xff]  ;;  %10227 = vst.msk [vmem:[#allocation3 + $0x30] sm:$0xf] %vm1813_vm7, %v10018_v60  ;;  %v9193_v38 = vmax.f32 %v9129_v55, 0.0  ;;  %v8087_v24 = vpop.f32.mrf.mxu1  ;;  %v9061_v36 = vadd.f32 %v8916_v5, %v8083_v27 }
 0x5f0   :  { %v16175_v44 = vpack.c.bf16 %v10331_v37, %v10331_v37  ;;  %v16176_v50 = vpack.c.bf16 %v10332_v31, %v10332_v31  ;;  %10083 = vrot.lane.b32.xlu1 %v16104_v17, %s17010_s19  ;;  %v8088_v2 = vadd.f32 %v8087_v24, %v19446_v12  ;;  %v8918_v22 = vpop.f32.mrf.mxu0  ;;  %v16810_v27 = vld [vmem:[#allocation3 + $0x34] ss:$8 sps:$4 sm:$0xff]  }
 0x5f1   :  { %9684 = vst.msk [vmem:[#allocation3 + $0x138] sm:$0xf] %vm1236_vm5, %v16032_v10  ;;  %v9325_v49 = vld [vmem:[#allocation2 + $0x1e0] sm:$0xff]  ;;  %v9130_v20 = vadd.f32 %v19798_v51, %v9061_v36  ;;  %v8089_v57 = vpop.f32.mrf.mxu1  ;;  %v10020_v29 = vpop.permute.xlu1 %10019 }
 0x5f2   :  { %10691 = vst.msk [vmem:[#allocation3 + $0x134] sm:$0xf] %vm1236_vm5, %v16175_v44  ;;  %v9757_v43 = vld [vmem:[#allocation2 + $0x1e1] sm:$0xff]  ;;  %10692 = vst.msk [vmem:[#allocation3 + $0x13c] sm:$0xf] %vm1236_vm5, %v16176_v50  ;;  %v16033_v25 = vpack.c.bf16 %v9325_v49, %v9325_v49  ;;  %v8921_v41 = vpop.f32.mrf.mxu0 }
 0x5f3   :  { %9257 = vst.msk [vmem:[#allocation2 + $0x1f9] sm:$0xff] %vm28_vm3, %v9193_v38  ;;  %v16105_v18 = vpack.c.bf16 %v9757_v43, %v9757_v43  ;;  %v16809_v13 = vld [vmem:[#allocation3 + $0x20] ss:$8 sps:$4 sm:$0xff]   ;;  %v9194_v61 = vmax.f32 %v9130_v20, 0.0  ;;  %v8090_v12 = vpop.f32.mrf.mxu1  ;;  %v9062_v42 = vadd.f32 %v8921_v41, %v8088_v2 }
 0x5f4   :  { %10228 = vst.msk [vmem:[#allocation3 + $0x38] sm:$0xf] %vm1813_vm7, %v10020_v29  ;;  %v8091_v58 = vadd.f32 %v8090_v12, %v19450_v8  ;;  %v8923_v21 = vpop.f32.mrf.mxu0  ;;  %11400 = vmatmul.mubr.bf16.gmra.mxu1 %v16809_v13  ;;  %v20828_v57 = vld [vmem:[#allocation5_spill] sm:$0xff] }
 0x5f5   :  { %10085 = vrot.lane.b32.xlu0 %v16105_v18, %s17010_s19  ;;  %9685 = vst.msk [vmem:[#allocation3 + $0x140] sm:$0xf] %vm1236_vm5, %v16033_v25  ;;  %v9326_v1 = vld [vmem:[#allocation2 + $0x1e8] sm:$0xff]  ;;  %v9131_v32 = vadd.f32 %v19798_v51, %v9062_v42  ;;  %v8092_v40 = vpop.f32.mrf.mxu1  ;;  %15288 = vmatprep.mubr.msk.bf16.mxu1 %vm28_vm3, %v16810_v27 }
 0x5f6   :  { %v9758_v16 = vld [vmem:[#allocation2 + $0x1e9] sm:$0xff]  ;;  %9258 = vst.msk [vmem:[#allocation2 + $0x201] sm:$0xff] %vm28_vm3, %v9194_v61  ;;  %v16034_v48 = vpack.c.bf16 %v9326_v1, %v9326_v1  ;;  %v8924_v52 = vpop.f32.mrf.mxu0 }
 0x5f7   :  { %v10333_v45 = vld [vmem:[#allocation2 + $0x1e2] sm:$0xff]  ;;  %v10022_v11 = vpop.permute.xlu0 %10021  ;;  %v16106_v7 = vpack.c.bf16 %v9758_v16, %v9758_v16  ;;  %v10334_v34 = vld [vmem:[#allocation2 + $0x1ea] sm:$0xff]  ;;  %v9195_v8 = vmax.f32 %v9131_v32, 0.0  ;;  %v8095_v59 = vpop.f32.mrf.mxu1  ;;  %v9063_v0 = vadd.f32 %v8924_v52, %v8091_v58 }
 0x5f8   :  { %v16177_v28 = vpack.c.bf16 %v10333_v45, %v10333_v45  ;;  %10229 = vst.msk [vmem:[#allocation3 + $0x40] sm:$0xf] %vm1813_vm7, %v10022_v11  ;;  %v16178_v26 = vpack.c.bf16 %v10334_v34, %v10334_v34  ;;  %v8096_v15 = vadd.f32 %v8095_v59, %v19453_v62  ;;  %v8926_v54 = vpop.f32.mrf.mxu0  ;;  %v10818_v63 = vld [vmem:[#allocation3 + $0x30] sm:$0xff]  ;;  %v16812_v1 = vld [vmem:[#allocation3 + $0x44] ss:$8 sps:$4 sm:$0xff]  }
 0x5f9   :  { %10087 = vrot.lane.b32.xlu1 %v16106_v7, %s17010_s19  ;;  %9686 = vst.msk [vmem:[#allocation3 + $0x148] sm:$0xf] %vm1236_vm5, %v16034_v48  ;;  %v9132_v35 = vadd.f32 %v19798_v51, %v9063_v0  ;;  %v8097_v23 = vpop.f32.mrf.mxu1  ;;  %v16847_v32 = vld [vmem:[%s20736_s3 + $0x330] sm:$0xff]   ;;  %v20829_v7 = vld [vmem:[#allocation6_spill] sm:$0xff] }
 0x5fa   :  { %10693 = vst.msk [vmem:[#allocation3 + $0x144] sm:$0xf] %vm1236_vm5, %v16177_v28  ;;  %10694 = vst.msk [vmem:[#allocation3 + $0x14c] sm:$0xf] %vm1236_vm5, %v16178_v26  ;;  %v9327_v39 = vld [vmem:[#allocation2 + $0x1f8] sm:$0xff]  ;;  %v8929_v46 = vpop.f32.mrf.mxu0  ;;  %12941 = vmatpush1.bf16.msra.mxu1 %v16847_v32 }
 0x5fb   :  { %v9759_v47 = vld [vmem:[#allocation2 + $0x1f9] sm:$0xff]  ;;  %9259 = vst.msk [vmem:[#allocation2 + $0x211] sm:$0xff] %vm28_vm3, %v9195_v8  ;;  %v10024_v33 = vpop.permute.xlu1 %10023  ;;  %v16035_v3 = vpack.c.bf16 %v9327_v39, %v9327_v39  ;;  %v9196_v14 = vmax.f32 %v9132_v35, 0.0  ;;  %v8098_v53 = vpop.f32.mrf.mxu1  ;;  %v9064_v37 = vadd.f32 %v8929_v46, %v8096_v15  ;;  %12942 = vmatprep.subr.bf16.mxu1 %v20761_v6 }
 0x5fc   :  { %v16107_v56 = vpack.c.bf16 %v9759_v47, %v9759_v47  ;;  %v10819_v9 = vld [vmem:[#allocation3 + $0x38] sm:$0xff]  ;;  %10230 = vst.msk [vmem:[#allocation3 + $0x48] sm:$0xf] %vm1813_vm7, %v10024_v33  ;;  %v8099_v55 = vadd.f32 %v8098_v53, %v19456_v4  ;;  %v8931_v19 = vpop.f32.mrf.mxu0  ;;  %v16846_v4 = vld [vmem:[%s20736_s3 + $0x270] sm:$0xff]  }
 0x5fd   :  { %v15214_v62 = vcombine.low %v10818_v63, %v10819_v9  ;;  %9687 = vst.msk [vmem:[#allocation3 + $0x150] sm:$0xf] %vm1236_vm5, %v16035_v3  ;;  %v9328_v60 = vld [vmem:[#allocation2 + $0x200] sm:$0xff]  ;;  %v9133_v31 = vadd.f32 %v19798_v51, %v9064_v37  ;;  %v8100_v44 = vpop.f32.mrf.mxu1  ;;  %12107 = vmatpush1.bf16.msra.mxu0 %v16846_v4  ;;  %v20830_v9 = vld [vmem:[#allocation7_spill] sm:$0xff] }
 0x5fe   :  { %10089 = vrot.lane.b32.xlu0 %v16107_v56, %s17010_s19  ;;  %v9760_v17 = vld [vmem:[#allocation2 + $0x201] sm:$0xff]  ;;  %9260 = vst.msk [vmem:[#allocation2 + $0x219] sm:$0xff] %vm28_vm3, %v9196_v14  ;;  %v16036_v50 = vpack.c.bf16 %v9328_v60, %v9328_v60  ;;  %v8932_v2 = vpop.f32.mrf.mxu0  ;;  %12108 = vmatprep.subr.bf16.mxu0 %v20761_v6 }
 0x5ff   :  { %11408 = vmatmul.mubr.bf16.gmra.mxu1 %v15214_v62  ;;  %v10335_v10 = vld [vmem:[#allocation2 + $0x1fa] sm:$0xff]  ;;  %v10026_v5 = vpop.permute.xlu0 %10025  ;;  %v16108_v38 = vpack.c.bf16 %v9760_v17, %v9760_v17  ;;  %v10336_v24 = vld [vmem:[#allocation2 + $0x202] sm:$0xff]  ;;  %v9197_v49 = vmax.f32 %v9133_v31, 0.0  ;;  %v8103_v43 = vpop.f32.mrf.mxu1  ;;  %v9065_v20 = vadd.f32 %v8932_v2, %v8099_v55 }
 0x600   :  { %v16179_v36 = vpack.c.bf16 %v10335_v10, %v10335_v10  ;;  %10231 = vst.msk [vmem:[#allocation3 + $0x50] sm:$0xf] %vm1813_vm7, %v10026_v5  ;;  %v16180_v22 = vpack.c.bf16 %v10336_v24, %v10336_v24  ;;  %v8104_v29 = vadd.f32 %v8103_v43, %v20828_v57  ;;  %v8934_v25 = vpop.f32.mrf.mxu0  ;;  %v10820_v13 = vld [vmem:[#allocation3 + $0x40] sm:$0xff]  ;;  %15289 = vmatprep.mubr.msk.bf16.mxu1 %vm28_vm3, %v16812_v1  ;;  %v16814_v31 = vld [vmem:[#allocation3 + $0x54] ss:$8 sps:$4 sm:$0xff]  }
 0x601   :  { %10091 = vrot.lane.b32.xlu1 %v16108_v38, %s17010_s19  ;;  %9688 = vst.msk [vmem:[#allocation3 + $0x158] sm:$0xf] %vm1236_vm5, %v16036_v50  ;;  %v9134_v41 = vadd.f32 %v19798_v51, %v9065_v20  ;;  %v8105_v61 = vpop.f32.mrf.mxu1 }
 0x602   :  { %10695 = vst.msk [vmem:[#allocation3 + $0x154] sm:$0xf] %vm1236_vm5, %v16179_v36  ;;  %10696 = vst.msk [vmem:[#allocation3 + $0x15c] sm:$0xf] %vm1236_vm5, %v16180_v22  ;;  %v9329_v18 = vld [vmem:[#allocation2 + $0x210] sm:$0xff]  ;;  %v10028_v12 = vpop.permute.xlu1 %10027  ;;  %v8937_v16 = vpop.f32.mrf.mxu0  ;;  %v20831_v36 = vld [vmem:[#allocation8_spill] sm:$0xff] }
 0x603   :  { %v9761_v30 = vld [vmem:[#allocation2 + $0x211] sm:$0xff]  ;;  %9261 = vst.msk [vmem:[#allocation2 + $0x229] sm:$0xff] %vm28_vm3, %v9197_v49  ;;  %v16037_v42 = vpack.c.bf16 %v9329_v18, %v9329_v18  ;;  %v10821_v21 = vld [vmem:[#allocation3 + $0x48] sm:$0xff]  ;;  %v9198_v40 = vmax.f32 %v9134_v41, 0.0  ;;  %v8106_v11 = vpop.f32.mrf.mxu1  ;;  %v9066_v48 = vadd.f32 %v8937_v16, %v8104_v29 }
 0x604   :  { %v16109_v58 = vpack.c.bf16 %v9761_v30, %v9761_v30  ;;  %10232 = vst.msk [vmem:[#allocation3 + $0x58] sm:$0xf] %vm1813_vm7, %v10028_v12  ;;  %v15216_v45 = vcombine.low %v10820_v13, %v10821_v21  ;;  %v8107_v34 = vadd.f32 %v8106_v11, %v20829_v7  ;;  %v8939_v28 = vpop.f32.mrf.mxu0  ;;  %v20832_v21 = vld [vmem:[#allocation9_spill] sm:$0xff] }
 0x605   :  { %9689 = vst.msk [vmem:[#allocation3 + $0x160] sm:$0xf] %vm1236_vm5, %v16037_v42  ;;  %v9330_v52 = vld [vmem:[#allocation2 + $0x218] sm:$0xff]  ;;  %v9135_v59 = vadd.f32 %v19798_v51, %v9066_v48  ;;  %v8108_v0 = vpop.f32.mrf.mxu1 }
 0x606   :  { %10093 = vrot.lane.b32.xlu0 %v16109_v58, %s17010_s19  ;;  %v9762_v26 = vld [vmem:[#allocation2 + $0x219] sm:$0xff]  ;;  %9262 = vst.msk [vmem:[#allocation2 + $0x231] sm:$0xff] %vm28_vm3, %v9198_v40  ;;  %v10030_v15 = vpop.permute.xlu0 %10029  ;;  %v16038_v54 = vpack.c.bf16 %v9330_v52, %v9330_v52  ;;  %v8940_v35 = vpop.f32.mrf.mxu0 }
 0x607   :  { %11416 = vmatmul.mubr.bf16.gmra.mxu1 %v15216_v45  ;;  %v10337_v8 = vld [vmem:[#allocation2 + $0x212] sm:$0xff]  ;;  %v16110_v39 = vpack.c.bf16 %v9762_v26, %v9762_v26  ;;  %v10338_v47 = vld [vmem:[#allocation2 + $0x21a] sm:$0xff]  ;;  %10233 = vst.msk [vmem:[#allocation3 + $0x60] sm:$0xf] %vm1813_vm7, %v10030_v15  ;;  %v9199_v33 = vmax.f32 %v9135_v59, 0.0  ;;  %v8111_v3 = vpop.f32.mrf.mxu1  ;;  %v9067_v56 = vadd.f32 %v8940_v35, %v8107_v34 }
 0x608   :  { %v16181_v63 = vpack.c.bf16 %v10337_v8, %v10337_v8  ;;  %v16182_v23 = vpack.c.bf16 %v10338_v47, %v10338_v47  ;;  %9690 = vst.msk [vmem:[#allocation3 + $0x168] sm:$0xf] %vm1236_vm5, %v16038_v54  ;;  %v8112_v27 = vadd.f32 %v8111_v3, %v20830_v9  ;;  %v8942_v46 = vpop.f32.mrf.mxu0  ;;  %v10822_v53 = vld [vmem:[#allocation3 + $0x50] sm:$0xff]  ;;  %15290 = vmatprep.mubr.msk.bf16.mxu1 %vm28_vm3, %v16814_v31  ;;  %v16816_v26 = vld [vmem:[#allocation3 + $0x64] ss:$8 sps:$4 sm:$0xff]  }
 0x609   :  { %10095 = vrot.lane.b32.xlu1 %v16110_v39, %s17010_s19  ;;  %9263 = vst.msk [vmem:[#allocation2 + $0x241] sm:$0xff] %vm28_vm3, %v9199_v33  ;;  %v9136_v37 = vadd.f32 %v19798_v51, %v9067_v56  ;;  %v8113_v55 = vpop.f32.mrf.mxu1  ;;  %v20833_v39 = vld [vmem:[#allocation10_spill] sm:$0xff]  ;;  %v20834_v31 = vld [vmem:[#allocation11_spill] sm:$0xff] }
 0x60a   :  { %10697 = vst.msk [vmem:[#allocation3 + $0x164] sm:$0xf] %vm1236_vm5, %v16181_v63  ;;  %10698 = vst.msk [vmem:[#allocation3 + $0x16c] sm:$0xf] %vm1236_vm5, %v16182_v23  ;;  %v9331_v62 = vld [vmem:[#allocation2 + $0x228] sm:$0xff]  ;;  %v10032_v19 = vpop.permute.xlu1 %10031  ;;  %v8945_v44 = vpop.f32.mrf.mxu0 }
 0x60b   :  { %v9763_v14 = vld [vmem:[#allocation2 + $0x229] sm:$0xff]  ;;  %v16039_v60 = vpack.c.bf16 %v9331_v62, %v9331_v62  ;;  %v10823_v10 = vld [vmem:[#allocation3 + $0x58] sm:$0xff]  ;;  %10234 = vst.msk [vmem:[#allocation3 + $0x68] sm:$0xf] %vm1813_vm7, %v10032_v19  ;;  %v9200_v50 = vmax.f32 %v9136_v37, 0.0  ;;  %v8114_v38 = vpop.f32.mrf.mxu1  ;;  %v9068_v24 = vadd.f32 %v8945_v44, %v8112_v27 }
 0x60c   :  { %v16111_v17 = vpack.c.bf16 %v9763_v14, %v9763_v14  ;;  %v15218_v5 = vcombine.low %v10822_v53, %v10823_v10  ;;  %v8115_v2 = vadd.f32 %v8114_v38, %v20831_v36  ;;  %v8947_v22 = vpop.f32.mrf.mxu0  ;;  %v16854_v55 = vld [vmem:[%s20736_s3 + $0x268] sm:$0xff]  }
 0x60d   :  { %9691 = vst.msk [vmem:[#allocation3 + $0x170] sm:$0xf] %vm1236_vm5, %v16039_v60  ;;  %v9332_v4 = vld [vmem:[#allocation2 + $0x230] sm:$0xff]  ;;  %v9137_v20 = vadd.f32 %v19798_v51, %v9068_v24  ;;  %v8116_v57 = vpop.f32.mrf.mxu1  ;;  %v16855_v19 = vld [vmem:[%s20736_s3 + $0x328] sm:$0xff]   ;;  %12109 = vmatpush1.bf16.msra.mxu0 %v16854_v55 }
 0x60e   :  { %10097 = vrot.lane.b32.xlu0 %v16111_v17, %s17010_s19  ;;  %v9764_v49 = vld [vmem:[#allocation2 + $0x231] sm:$0xff]  ;;  %9264 = vst.msk [vmem:[#allocation2 + $0x249] sm:$0xff] %vm28_vm3, %v9200_v50  ;;  %v16040_v25 = vpack.c.bf16 %v9332_v4, %v9332_v4  ;;  %v8948_v41 = vpop.f32.mrf.mxu0  ;;  %v10824_v40 = vld [vmem:[#allocation3 + $0x60] sm:$0xff]  ;;  %12943 = vmatpush1.bf16.msra.mxu1 %v16855_v19 }
 0x60f   :  { %11424 = vmatmul.mubr.bf16.gmra.mxu1 %v15218_v5  ;;  %v10339_v43 = vld [vmem:[#allocation2 + $0x22a] sm:$0xff]  ;;  %v10034_v29 = vpop.permute.xlu0 %10033  ;;  %v16112_v18 = vpack.c.bf16 %v9764_v49, %v9764_v49  ;;  %v10340_v30 = vld [vmem:[#allocation2 + $0x232] sm:$0xff]  ;;  %v9201_v12 = vmax.f32 %v9137_v20, 0.0  ;;  %v8119_v42 = vpop.f32.mrf.mxu1  ;;  %v9069_v58 = vadd.f32 %v8948_v41, %v8115_v2  ;;  %12110 = vmatprep.subr.bf16.mxu0 %v20761_v6 }
 0x610   :  { %v16183_v13 = vpack.c.bf16 %v10339_v43, %v10339_v43  ;;  %10235 = vst.msk [vmem:[#allocation3 + $0x70] sm:$0xf] %vm1813_vm7, %v10034_v29  ;;  %v16184_v61 = vpack.c.bf16 %v10340_v30, %v10340_v30  ;;  %v8120_v1 = vadd.f32 %v8119_v42, %v20832_v21  ;;  %v8950_v16 = vpop.f32.mrf.mxu0  ;;  %v9333_v45 = vld [vmem:[#allocation2 + $0x240] sm:$0xff]  ;;  %15291 = vmatprep.mubr.msk.bf16.mxu1 %vm28_vm3, %v16816_v26  ;;  %v16818_v20 = vld [vmem:[#allocation3 + $0x74] ss:$8 sps:$4 sm:$0xff]  }
 0x611   :  { %10099 = vrot.lane.b32.xlu1 %v16112_v18, %s17010_s19  ;;  %9692 = vst.msk [vmem:[#allocation3 + $0x178] sm:$0xf] %vm1236_vm5, %v16040_v25  ;;  %v9765_v32 = vld [vmem:[#allocation2 + $0x241] sm:$0xff]  ;;  %v9138_v11 = vadd.f32 %v19798_v51, %v9069_v58  ;;  %v8121_v48 = vpop.f32.mrf.mxu1  ;;  %v16041_v34 = vpack.c.bf16 %v9333_v45, %v9333_v45  ;;  %12944 = vmatprep.subr.bf16.mxu1 %v20761_v6 }
 0x612   :  { %10699 = vst.msk [vmem:[#allocation3 + $0x174] sm:$0xf] %vm1236_vm5, %v16183_v13  ;;  %10700 = vst.msk [vmem:[#allocation3 + $0x17c] sm:$0xf] %vm1236_vm5, %v16184_v61  ;;  %v10036_v7 = vpop.permute.xlu1 %10035  ;;  %v16113_v28 = vpack.c.bf16 %v9765_v32, %v9765_v32  ;;  %v10825_v52 = vld [vmem:[#allocation3 + $0x68] sm:$0xff]  ;;  %v8953_v8 = vpop.f32.mrf.mxu0  ;;  %v20835_v13 = vld [vmem:[#allocation12_spill] sm:$0xff] }
 0x613   :  { %9265 = vst.msk [vmem:[#allocation2 + $0x259] sm:$0xff] %vm28_vm3, %v9201_v12  ;;  %v15220_v59 = vcombine.low %v10824_v40, %v10825_v52  ;;  %v9202_v0 = vmax.f32 %v9138_v11, 0.0  ;;  %v8122_v15 = vpop.f32.mrf.mxu1  ;;  %v9070_v54 = vadd.f32 %v8953_v8, %v8120_v1 }
 0x614   :  { %10236 = vst.msk [vmem:[#allocation3 + $0x78] sm:$0xf] %vm1813_vm7, %v10036_v7  ;;  %10101 = vrot.lane.b32.xlu0 %v16113_v28, %s17010_s19  ;;  %v8123_v47 = vadd.f32 %v8122_v15, %v20833_v39  ;;  %v8955_v63 = vpop.f32.mrf.mxu0 }
 0x615   :  { %9693 = vst.msk [vmem:[#allocation3 + $0x180] sm:$0xf] %vm1236_vm5, %v16041_v34  ;;  %v9334_v35 = vld [vmem:[#allocation2 + $0x248] sm:$0xff]  ;;  %v9139_v3 = vadd.f32 %v19798_v51, %v9070_v54  ;;  %v8124_v56 = vpop.f32.mrf.mxu1  ;;  %v19990_v54 = vld [vmem:[%s20737_s4 + $0x1] ss:$0 sm:$0xff] }
 0x616   :  { %v9766_v23 = vld [vmem:[#allocation2 + $0x249] sm:$0xff]  ;;  %9266 = vst.msk [vmem:[#allocation2 + $0x261] sm:$0xff] %vm28_vm3, %v9202_v0  ;;  %v16042_v27 = vpack.c.bf16 %v9334_v35, %v9334_v35  ;;  %v8956_v53 = vpop.f32.mrf.mxu0 }
 0x617   :  { %11432 = vmatmul.mubr.bf16.gmra.mxu1 %v15220_v59  ;;  %v10341_v33 = vld [vmem:[#allocation2 + $0x242] sm:$0xff]  ;;  %v10038_v9 = vpop.permute.xlu0 %10037  ;;  %v16114_v46 = vpack.c.bf16 %v9766_v23, %v9766_v23  ;;  %v10342_v62 = vld [vmem:[#allocation2 + $0x24a] sm:$0xff]  ;;  %v9203_v60 = vmax.f32 %v9139_v3, 0.0  ;;  %v8127_v17 = vpop.f32.mrf.mxu1  ;;  %v9071_v10 = vadd.f32 %v8956_v53, %v8123_v47 }
 0x618   :  { %v16185_v14 = vpack.c.bf16 %v10341_v33, %v10341_v33  ;;  %10237 = vst.msk [vmem:[#allocation3 + $0x80] sm:$0xf] %vm1813_vm7, %v10038_v9  ;;  %v16186_v37 = vpack.c.bf16 %v10342_v62, %v10342_v62  ;;  %v8128_v44 = vadd.f32 %v8127_v17, %v20834_v31  ;;  %v8958_v5 = vpop.f32.mrf.mxu0  ;;  %v10826_v24 = vld [vmem:[#allocation3 + $0x70] sm:$0xff]  ;;  %15292 = vmatprep.mubr.msk.bf16.mxu1 %vm28_vm3, %v16818_v20  ;;  %v16820_v3 = vld [vmem:[#allocation3 + $0x84] ss:$8 sps:$4 sm:$0xff]  }
 0x619   :  { %10103 = vrot.lane.b32.xlu1 %v16114_v46, %s17010_s19  ;;  %9694 = vst.msk [vmem:[#allocation3 + $0x188] sm:$0xf] %vm1236_vm5, %v16042_v27  ;;  %v9140_v36 = vadd.f32 %v19798_v51, %v9071_v10  ;;  %v8129_v2 = vpop.f32.mrf.mxu1 }
 0x61a   :  { %10701 = vst.msk [vmem:[#allocation3 + $0x184] sm:$0xf] %vm1236_vm5, %v16185_v14  ;;  %10702 = vst.msk [vmem:[#allocation3 + $0x18c] sm:$0xf] %vm1236_vm5, %v16186_v37  ;;  %v9335_v50 = vld [vmem:[#allocation2 + $0x258] sm:$0xff]  ;;  %v10040_v22 = vpop.permute.xlu1 %10039  ;;  %v8961_v57 = vpop.f32.mrf.mxu0  ;;  %v20837_v14 = vld [vmem:[#allocation14_spill] sm:$0xff] }
 0x61b   :  { %v9767_v38 = vld [vmem:[#allocation2 + $0x259] sm:$0xff]  ;;  %9267 = vst.msk [vmem:[#allocation2 + $0x271] sm:$0xff] %vm28_vm3, %v9203_v60  ;;  %v16043_v4 = vpack.c.bf16 %v9335_v50, %v9335_v50  ;;  %v9204_v25 = vmax.f32 %v9140_v36, 0.0  ;;  %v8130_v18 = vpop.f32.mrf.mxu1  ;;  %v9072_v30 = vadd.f32 %v8961_v57, %v8128_v44 }
 0x61c   :  { %v16115_v49 = vpack.c.bf16 %v9767_v38, %v9767_v38  ;;  %v10827_v43 = vld [vmem:[#allocation3 + $0x78] sm:$0xff]  ;;  %10238 = vst.msk [vmem:[#allocation3 + $0x88] sm:$0xf] %vm1813_vm7, %v10040_v22  ;;  %v8131_v41 = vadd.f32 %v8130_v18, %v20835_v13  ;;  %v8963_v61 = vpop.f32.mrf.mxu0 }
 0x61d   :  { %v15222_v29 = vcombine.low %v10826_v24, %v10827_v43  ;;  %9695 = vst.msk [vmem:[#allocation3 + $0x190] sm:$0xf] %vm1236_vm5, %v16043_v4  ;;  %v9336_v12 = vld [vmem:[#allocation2 + $0x260] sm:$0xff]  ;;  %v9141_v21 = vadd.f32 %v19798_v51, %v9072_v30  ;;  %v8132_v1 = vpop.f32.mrf.mxu1 }
 0x61e   :  { %10105 = vrot.lane.b32.xlu0 %v16115_v49, %s17010_s19  ;;  %v9768_v42 = vld [vmem:[#allocation2 + $0x261] sm:$0xff]  ;;  %9268 = vst.msk [vmem:[#allocation2 + $0x279] sm:$0xff] %vm28_vm3, %v9204_v25  ;;  %v16044_v45 = vpack.c.bf16 %v9336_v12, %v9336_v12  ;;  %v8964_v48 = vpop.f32.mrf.mxu0  ;;  %v20838_v49 = vld [vmem:[#allocation15_spill] sm:$0xff] }
 0x61f   :  { %11440 = vmatmul.mubr.bf16.gmra.mxu1 %v15222_v29  ;;  %v10343_v58 = vld [vmem:[#allocation2 + $0x25a] sm:$0xff]  ;;  %v10042_v16 = vpop.permute.xlu0 %10041  ;;  %v16116_v32 = vpack.c.bf16 %v9768_v42, %v9768_v42  ;;  %v10344_v40 = vld [vmem:[#allocation2 + $0x262] sm:$0xff]  ;;  %v9205_v34 = vmax.f32 %v9141_v21, 0.0  ;;  %v8135_v28 = vpop.f32.mrf.mxu1  ;;  %v9073_v52 = vadd.f32 %v8964_v48, %v8131_v41 }
 0x620   :  { %v16187_v11 = vpack.c.bf16 %v10343_v58, %v10343_v58  ;;  %10239 = vst.msk [vmem:[#allocation3 + $0x90] sm:$0xf] %vm1813_vm7, %v10042_v16  ;;  %v16188_v7 = vpack.c.bf16 %v10344_v40, %v10344_v40  ;;  %v20836_v51 = vld [vmem:[#allocation13_spill] sm:$0xff]  ;;  %v8966_v8 = vpop.f32.mrf.mxu0  ;;  %15293 = vmatprep.mubr.msk.bf16.mxu1 %vm28_vm3, %v16820_v3  ;;  %v16822_v42 = vld [vmem:[#allocation3 + $0x94] ss:$8 sps:$4 sm:$0xff]  }
 0x621   :  { %10107 = vrot.lane.b32.xlu1 %v16116_v32, %s17010_s19  ;;  %9696 = vst.msk [vmem:[#allocation3 + $0x198] sm:$0xf] %vm1236_vm5, %v16044_v45  ;;  %v8136_v26 = vadd.f32 %v8135_v28, %v20836_v51  ;;  %v10828_v15 = vld [vmem:[#allocation3 + $0x80] sm:$0xff]  ;;  %v9142_v39 = vadd.f32 %v19990_v54, %v9073_v52  ;;  %v8137_v47 = vpop.f32.mrf.mxu1  ;;  %v20839_v40 = vld [vmem:[#allocation16_spill] sm:$0xff] }
 0x622   :  { %10703 = vst.msk [vmem:[#allocation3 + $0x194] sm:$0xf] %vm1236_vm5, %v16187_v11  ;;  %10704 = vst.msk [vmem:[#allocation3 + $0x19c] sm:$0xf] %vm1236_vm5, %v16188_v7  ;;  %v9337_v59 = vld [vmem:[#allocation2 + $0x270] sm:$0xff]  ;;  %v10044_v63 = vpop.permute.xlu1 %10043  ;;  %v8969_v56 = vpop.f32.mrf.mxu0  ;;  %v16860_v1 = vld [vmem:[%s20736_s3 + $0x260] sm:$0xff]  }
 0x623   :  { %v9769_v0 = vld [vmem:[#allocation2 + $0x271] sm:$0xff]  ;;  %9269 = vst.msk [vmem:[#allocation2 + $0x289] sm:$0xff] %vm28_vm3, %v9205_v34  ;;  %v16045_v35 = vpack.c.bf16 %v9337_v59, %v9337_v59  ;;  %v10829_v33 = vld [vmem:[#allocation3 + $0x88] sm:$0xff]  ;;  %v9206_v27 = vmax.f32 %v9142_v39, 0.0  ;;  %v8138_v46 = vpop.f32.mrf.mxu1  ;;  %v9074_v62 = vadd.f32 %v8969_v56, %v8136_v26  ;;  %12111 = vmatpush1.bf16.msra.mxu0 %v16860_v1  ;;  %v16863_v39 = vld [vmem:[%s20736_s3 + $0x320] sm:$0xff]  }
 0x624   :  { %v16117_v23 = vpack.c.bf16 %v9769_v0, %v9769_v0  ;;  %10240 = vst.msk [vmem:[#allocation3 + $0x98] sm:$0xf] %vm1813_vm7, %v10044_v63  ;;  %v15224_v9 = vcombine.low %v10828_v15, %v10829_v33  ;;  %v8139_v53 = vadd.f32 %v8138_v46, %v20837_v14  ;;  %v8971_v37 = vpop.f32.mrf.mxu0  ;;  %12112 = vmatprep.subr.bf16.mxu0 %v20761_v6  ;;  %v20840_v3 = vld [vmem:[#allocation17_spill] sm:$0xff] }
 0x625   :  { %9697 = vst.msk [vmem:[#allocation3 + $0x1a0] sm:$0xf] %vm1236_vm5, %v16045_v35  ;;  %v9338_v55 = vld [vmem:[#allocation2 + $0x278] sm:$0xff]  ;;  %v9143_v17 = vadd.f32 %v19990_v54, %v9074_v62  ;;  %v8140_v10 = vpop.f32.mrf.mxu1  ;;  %12945 = vmatpush1.bf16.msra.mxu1 %v16863_v39 }
 0x626   :  { %10109 = vrot.lane.b32.xlu0 %v16117_v23, %s17010_s19  ;;  %v9770_v19 = vld [vmem:[#allocation2 + $0x279] sm:$0xff]  ;;  %9270 = vst.msk [vmem:[#allocation2 + $0x291] sm:$0xff] %vm28_vm3, %v9206_v27  ;;  %v16046_v44 = vpack.c.bf16 %v9338_v55, %v9338_v55  ;;  %v8972_v24 = vpop.f32.mrf.mxu0  ;;  %12946 = vmatprep.subr.bf16.mxu1 %v20761_v6 }
 0x627   :  { %11448 = vmatmul.mubr.bf16.gmra.mxu1 %v15224_v9  ;;  %v10345_v60 = vld [vmem:[#allocation2 + $0x272] sm:$0xff]  ;;  %v10046_v31 = vpop.permute.xlu0 %10045  ;;  %v16118_v5 = vpack.c.bf16 %v9770_v19, %v9770_v19  ;;  %v10346_v50 = vld [vmem:[#allocation2 + $0x27a] sm:$0xff]  ;;  %v9207_v2 = vmax.f32 %v9143_v17, 0.0  ;;  %v8143_v22 = vpop.f32.mrf.mxu1  ;;  %v9075_v4 = vadd.f32 %v8972_v24, %v8139_v53  ;;  %v16824_v17 = vld [vmem:[#allocation3 + $0xa4] ss:$8 sps:$4 sm:$0xff]  }
 0x628   :  { %v16189_v38 = vpack.c.bf16 %v10345_v60, %v10345_v60  ;;  %10241 = vst.msk [vmem:[#allocation3 + $0xa0] sm:$0xf] %vm1813_vm7, %v10046_v31  ;;  %v16190_v36 = vpack.c.bf16 %v10346_v50, %v10346_v50  ;;  %v8144_v43 = vadd.f32 %v8143_v22, %v20838_v49  ;;  %v8974_v20 = vpop.f32.mrf.mxu0  ;;  %v10830_v25 = vld [vmem:[#allocation3 + $0x90] sm:$0xff]  ;;  %15294 = vmatprep.mubr.msk.bf16.mxu1 %vm28_vm3, %v16822_v42 }
 0x629   :  { %10111 = vrot.lane.b32.xlu1 %v16118_v5, %s17010_s19  ;;  %9698 = vst.msk [vmem:[#allocation3 + $0x1a8] sm:$0xf] %vm1236_vm5, %v16046_v44  ;;  %v9144_v18 = vadd.f32 %v19990_v54, %v9075_v4  ;;  %v8145_v30 = vpop.f32.mrf.mxu1  ;;  %v20842_v42 = vld [vmem:[#allocation19_spill] sm:$0xff] }
 0x62a   :  { %10705 = vst.msk [vmem:[#allocation3 + $0x1a4] sm:$0xf] %vm1236_vm5, %v16189_v38  ;;  %10706 = vst.msk [vmem:[#allocation3 + $0x1ac] sm:$0xf] %vm1236_vm5, %v16190_v36  ;;  %v9339_v57 = vld [vmem:[#allocation2 + $0x288] sm:$0xff]  ;;  %v10048_v13 = vpop.permute.xlu1 %10047  ;;  %v8977_v58 = vpop.f32.mrf.mxu0 }
 0x62b   :  { %v9771_v29 = vld [vmem:[#allocation2 + $0x289] sm:$0xff]  ;;  %9271 = vst.msk [vmem:[#allocation2 + $0x2a1] sm:$0xff] %vm28_vm3, %v9207_v2  ;;  %v16047_v41 = vpack.c.bf16 %v9339_v57, %v9339_v57  ;;  %v10831_v12 = vld [vmem:[#allocation3 + $0x98] sm:$0xff]  ;;  %v9208_v16 = vmax.f32 %v9144_v18, 0.0  ;;  %v8146_v45 = vpop.f32.mrf.mxu1  ;;  %v9076_v32 = vadd.f32 %v8977_v58, %v8144_v43 }
 0x62c   :  { %v16119_v61 = vpack.c.bf16 %v9771_v29, %v9771_v29  ;;  %10242 = vst.msk [vmem:[#allocation3 + $0xa8] sm:$0xf] %vm1813_vm7, %v10048_v13  ;;  %v15226_v21 = vcombine.low %v10830_v25, %v10831_v12  ;;  %v8147_v11 = vadd.f32 %v8146_v45, %v20839_v40  ;;  %v8979_v48 = vpop.f32.mrf.mxu0  ;;  %v20841_v38 = vld [vmem:[#allocation18_spill] sm:$0xff] }
 0x62d   :  { %9699 = vst.msk [vmem:[#allocation3 + $0x1b0] sm:$0xf] %vm1236_vm5, %v16047_v41  ;;  %v9340_v7 = vld [vmem:[#allocation2 + $0x290] sm:$0xff]  ;;  %v9145_v52 = vadd.f32 %v19990_v54, %v9076_v32  ;;  %v8148_v51 = vpop.f32.mrf.mxu1 }
 0x62e   :  { %10113 = vrot.lane.b32.xlu0 %v16119_v61, %s17010_s19  ;;  %v9772_v34 = vld [vmem:[#allocation2 + $0x291] sm:$0xff]  ;;  %9272 = vst.msk [vmem:[#allocation2 + $0x2a9] sm:$0xff] %vm28_vm3, %v9208_v16  ;;  %v16048_v8 = vpack.c.bf16 %v9340_v7, %v9340_v7  ;;  %v8980_v47 = vpop.f32.mrf.mxu0 }
 0x62f   :  { %11456 = vmatmul.mubr.bf16.gmra.mxu1 %v15226_v21  ;;  %v10347_v28 = vld [vmem:[#allocation2 + $0x28a] sm:$0xff]  ;;  %v10050_v26 = vpop.permute.xlu0 %10049  ;;  %v16120_v59 = vpack.c.bf16 %v9772_v34, %v9772_v34  ;;  %v10348_v0 = vld [vmem:[#allocation2 + $0x292] sm:$0xff]  ;;  %v9209_v35 = vmax.f32 %v9145_v52, 0.0  ;;  %v8151_v23 = vpop.f32.mrf.mxu1  ;;  %v9077_v33 = vadd.f32 %v8980_v47, %v8147_v11  ;;  %v10832_v62 = vld [vmem:[#allocation3 + $0xa0] sm:$0xff] }
 0x630   :  { %v16191_v15 = vpack.c.bf16 %v10347_v28, %v10347_v28  ;;  %10243 = vst.msk [vmem:[#allocation3 + $0xb0] sm:$0xf] %vm1813_vm7, %v10050_v26  ;;  %v16192_v63 = vpack.c.bf16 %v10348_v0, %v10348_v0  ;;  %v8152_v56 = vadd.f32 %v8151_v23, %v20840_v3  ;;  %v8982_v9 = vpop.f32.mrf.mxu0  ;;  %15295 = vmatprep.mubr.msk.bf16.mxu1 %vm28_vm3, %v16824_v17  ;;  %v16826_v28 = vld [vmem:[#allocation3 + $0xb4] ss:$8 sps:$4 sm:$0xff]  }
 0x631   :  { %10115 = vrot.lane.b32.xlu1 %v16120_v59, %s17010_s19  ;;  %9700 = vst.msk [vmem:[#allocation3 + $0x1b8] sm:$0xf] %vm1236_vm5, %v16048_v8  ;;  %v9146_v14 = vadd.f32 %v19990_v54, %v9077_v33  ;;  %v8153_v53 = vpop.f32.mrf.mxu1  ;;  %v20843_v0 = vld [vmem:[#allocation20_spill] sm:$0xff] }
 0x632   :  { %10707 = vst.msk [vmem:[#allocation3 + $0x1b4] sm:$0xf] %vm1236_vm5, %v16191_v15  ;;  %10708 = vst.msk [vmem:[#allocation3 + $0x1bc] sm:$0xf] %vm1236_vm5, %v16192_v63  ;;  %v9341_v27 = vld [vmem:[#allocation2 + $0x2a0] sm:$0xff]  ;;  %v10052_v37 = vpop.permute.xlu1 %10051  ;;  %v8985_v10 = vpop.f32.mrf.mxu0  ;;  %v16868_v53 = vld [vmem:[%s20736_s3 + $0x258] sm:$0xff]  }
 0x633   :  { %v9773_v46 = vld [vmem:[#allocation2 + $0x2a1] sm:$0xff]  ;;  %9273 = vst.msk [vmem:[#allocation2 + $0x2b9] sm:$0xff] %vm28_vm3, %v9209_v35  ;;  %v16049_v55 = vpack.c.bf16 %v9341_v27, %v9341_v27  ;;  %v9210_v44 = vmax.f32 %v9146_v14, 0.0  ;;  %v8154_v5 = vpop.f32.mrf.mxu1  ;;  %v9078_v50 = vadd.f32 %v8985_v10, %v8152_v56  ;;  %12113 = vmatpush1.bf16.msra.mxu0 %v16868_v53 }
 0x634   :  { %v16121_v19 = vpack.c.bf16 %v9773_v46, %v9773_v46  ;;  %v10833_v60 = vld [vmem:[#allocation3 + $0xa8] sm:$0xff]  ;;  %10244 = vst.msk [vmem:[#allocation3 + $0xb8] sm:$0xf] %vm1813_vm7, %v10052_v37  ;;  %v8155_v24 = vadd.f32 %v8154_v5, %v20841_v38  ;;  %v8987_v36 = vpop.f32.mrf.mxu0  ;;  %12114 = vmatprep.subr.bf16.mxu0 %v20761_v6 }
 0x635   :  { %v15228_v31 = vcombine.low %v10832_v62, %v10833_v60  ;;  %9701 = vst.msk [vmem:[#allocation3 + $0x1c0] sm:$0xf] %vm1236_vm5, %v16049_v55  ;;  %v9342_v2 = vld [vmem:[#allocation2 + $0x2a8] sm:$0xff]  ;;  %v9147_v49 = vadd.f32 %v19990_v54, %v9078_v50  ;;  %v8156_v43 = vpop.f32.mrf.mxu1  ;;  %v20844_v60 = vld [vmem:[#allocation21_spill] sm:$0xff] }
 0x636   :  { %10117 = vrot.lane.b32.xlu0 %v16121_v19, %s17010_s19  ;;  %v9774_v22 = vld [vmem:[#allocation2 + $0x2a9] sm:$0xff]  ;;  %9274 = vst.msk [vmem:[#allocation2 + $0x2c1] sm:$0xff] %vm28_vm3, %v9210_v44  ;;  %v16050_v57 = vpack.c.bf16 %v9342_v2, %v9342_v2  ;;  %v8988_v30 = vpop.f32.mrf.mxu0 }
 0x637   :  { %11464 = vmatmul.mubr.bf16.gmra.mxu1 %v15228_v31  ;;  %v10349_v4 = vld [vmem:[#allocation2 + $0x2a2] sm:$0xff]  ;;  %v10054_v20 = vpop.permute.xlu0 %10053  ;;  %v16122_v29 = vpack.c.bf16 %v9774_v22, %v9774_v22  ;;  %v10350_v25 = vld [vmem:[#allocation2 + $0x2aa] sm:$0xff]  ;;  %v9211_v41 = vmax.f32 %v9147_v49, 0.0  ;;  %v8159_v61 = vpop.f32.mrf.mxu1  ;;  %v9079_v12 = vadd.f32 %v8988_v30, %v8155_v24 }
 0x638   :  { %v16193_v18 = vpack.c.bf16 %v10349_v4, %v10349_v4  ;;  %10245 = vst.msk [vmem:[#allocation3 + $0xc0] sm:$0xf] %vm1813_vm7, %v10054_v20  ;;  %v16194_v13 = vpack.c.bf16 %v10350_v25, %v10350_v25  ;;  %v8160_v58 = vadd.f32 %v8159_v61, %v20842_v42  ;;  %v8990_v21 = vpop.f32.mrf.mxu0  ;;  %v10834_v45 = vld [vmem:[#allocation3 + $0xb0] sm:$0xff]  ;;  %15296 = vmatprep.mubr.msk.bf16.mxu1 %vm28_vm3, %v16826_v28  ;;  %v16828_v4 = vld [vmem:[#allocation3 + $0xc4] ss:$8 sps:$4 sm:$0xff]   ;;  %v16869_v20 = vld [vmem:[%s20736_s3 + $0x318] sm:$0xff]  }
 0x639   :  { %10119 = vrot.lane.b32.xlu1 %v16122_v29, %s17010_s19  ;;  %9702 = vst.msk [vmem:[#allocation3 + $0x1c8] sm:$0xf] %vm1236_vm5, %v16050_v57  ;;  %v9148_v32 = vadd.f32 %v19990_v54, %v9079_v12  ;;  %v8161_v40 = vpop.f32.mrf.mxu1  ;;  %12947 = vmatpush1.bf16.msra.mxu1 %v16869_v20  ;;  %v20846_v28 = vld [vmem:[#allocation23_spill] sm:$0xff] }
 0x63a   :  { %10709 = vst.msk [vmem:[#allocation3 + $0x1c4] sm:$0xf] %vm1236_vm5, %v16193_v18  ;;  %10710 = vst.msk [vmem:[#allocation3 + $0x1cc] sm:$0xf] %vm1236_vm5, %v16194_v13  ;;  %v9343_v1 = vld [vmem:[#allocation2 + $0x2b8] sm:$0xff]  ;;  %v10056_v11 = vpop.permute.xlu1 %10055  ;;  %v8993_v52 = vpop.f32.mrf.mxu0  ;;  %v20845_v18 = vld [vmem:[#allocation22_spill] sm:$0xff]  ;;  %12948 = vmatprep.subr.bf16.mxu1 %v20761_v6 }
 0x63b   :  { %v9775_v16 = vld [vmem:[#allocation2 + $0x2b9] sm:$0xff]  ;;  %9275 = vst.msk [vmem:[#allocation2 + $0x2d1] sm:$0xff] %vm28_vm3, %v9211_v41  ;;  %v16051_v48 = vpack.c.bf16 %v9343_v1, %v9343_v1  ;;  %v9212_v26 = vmax.f32 %v9148_v32, 0.0  ;;  %v8162_v8 = vpop.f32.mrf.mxu1  ;;  %v9080_v59 = vadd.f32 %v8993_v52, %v8160_v58 }
 0x63c   :  { %v16123_v7 = vpack.c.bf16 %v9775_v16, %v9775_v16  ;;  %v10835_v34 = vld [vmem:[#allocation3 + $0xb8] sm:$0xff]  ;;  %10246 = vst.msk [vmem:[#allocation3 + $0xc8] sm:$0xf] %vm1813_vm7, %v10056_v11  ;;  %v8163_v15 = vadd.f32 %v8162_v8, %v20843_v0  ;;  %v8995_v39 = vpop.f32.mrf.mxu0 }
 0x63d   :  { %v15230_v51 = vcombine.low %v10834_v45, %v10835_v34  ;;  %9703 = vst.msk [vmem:[#allocation3 + $0x1d0] sm:$0xf] %vm1236_vm5, %v16051_v48  ;;  %v9344_v47 = vld [vmem:[#allocation2 + $0x2c0] sm:$0xff]  ;;  %v9149_v23 = vadd.f32 %v19990_v54, %v9080_v59  ;;  %v8164_v33 = vpop.f32.mrf.mxu1 }
 0x63e   :  { %10121 = vrot.lane.b32.xlu0 %v16123_v7, %s17010_s19  ;;  %v9776_v63 = vld [vmem:[#allocation2 + $0x2c1] sm:$0xff]  ;;  %9276 = vst.msk [vmem:[#allocation2 + $0x2d9] sm:$0xff] %vm28_vm3, %v9212_v26  ;;  %v16052_v56 = vpack.c.bf16 %v9344_v47, %v9344_v47  ;;  %v8996_v62 = vpop.f32.mrf.mxu0 }
 0x63f   :  { %11472 = vmatmul.mubr.bf16.gmra.mxu1 %v15230_v51  ;;  %v10351_v35 = vld [vmem:[#allocation2 + $0x2ba] sm:$0xff]  ;;  %v10058_v3 = vpop.permute.xlu0 %10057  ;;  %v16124_v9 = vpack.c.bf16 %v9776_v63, %v9776_v63  ;;  %v10352_v27 = vld [vmem:[#allocation2 + $0x2c2] sm:$0xff]  ;;  %v9213_v37 = vmax.f32 %v9149_v23, 0.0  ;;  %v8167_v55 = vpop.f32.mrf.mxu1  ;;  %v9081_v19 = vadd.f32 %v8996_v62, %v8163_v15 }
 0x640   :  { %v16195_v46 = vpack.c.bf16 %v10351_v35, %v10351_v35  ;;  %10247 = vst.msk [vmem:[#allocation3 + $0xd0] sm:$0xf] %vm1813_vm7, %v10058_v3  ;;  %v16196_v14 = vpack.c.bf16 %v10352_v27, %v10352_v27  ;;  %v8168_v17 = vadd.f32 %v8167_v55, %v20844_v60  ;;  %v8998_v10 = vpop.f32.mrf.mxu0  ;;  %v10836_v5 = vld [vmem:[#allocation3 + $0xc0] sm:$0xff]  ;;  %15297 = vmatprep.mubr.msk.bf16.mxu1 %vm28_vm3, %v16828_v4  ;;  %v16830_v23 = vld [vmem:[#allocation3 + $0xd4] ss:$8 sps:$4 sm:$0xff]  }
 0x641   :  { %10123 = vrot.lane.b32.xlu1 %v16124_v9, %s17010_s19  ;;  %9704 = vst.msk [vmem:[#allocation3 + $0x1d8] sm:$0xf] %vm1236_vm5, %v16052_v56  ;;  %v9150_v50 = vadd.f32 %v19990_v54, %v9081_v19  ;;  %v8169_v38 = vpop.f32.mrf.mxu1  ;;  %v20848_v4 = vld [vmem:[#allocation25_spill] sm:$0xff] }
 0x642   :  { %10711 = vst.msk [vmem:[#allocation3 + $0x1d4] sm:$0xf] %vm1236_vm5, %v16195_v46  ;;  %10712 = vst.msk [vmem:[#allocation3 + $0x1dc] sm:$0xf] %vm1236_vm5, %v16196_v14  ;;  %v9345_v31 = vld [vmem:[#allocation2 + $0x2d0] sm:$0xff]  ;;  %v10060_v24 = vpop.permute.xlu1 %10059  ;;  %v9001_v49 = vpop.f32.mrf.mxu0  ;;  %v20847_v46 = vld [vmem:[#allocation24_spill] sm:$0xff] }
 0x643   :  { %v9777_v44 = vld [vmem:[#allocation2 + $0x2d1] sm:$0xff]  ;;  %9277 = vst.msk [vmem:[#allocation2 + $0x2e9] sm:$0xff] %vm28_vm3, %v9213_v37  ;;  %v16053_v36 = vpack.c.bf16 %v9345_v31, %v9345_v31  ;;  %v10837_v22 = vld [vmem:[#allocation3 + $0xc8] sm:$0xff]  ;;  %v9214_v57 = vmax.f32 %v9150_v50, 0.0  ;;  %v8170_v29 = vpop.f32.mrf.mxu1  ;;  %v9082_v25 = vadd.f32 %v9001_v49, %v8168_v17 }
 0x644   :  { %v16125_v2 = vpack.c.bf16 %v9777_v44, %v9777_v44  ;;  %10248 = vst.msk [vmem:[#allocation3 + $0xd8] sm:$0xf] %vm1813_vm7, %v10060_v24  ;;  %v15232_v43 = vcombine.low %v10836_v5, %v10837_v22  ;;  %v8171_v30 = vadd.f32 %v8170_v29, %v20845_v18  ;;  %v9003_v13 = vpop.f32.mrf.mxu0  ;;  %v16874_v24 = vld [vmem:[%s20736_s3 + $0x250] sm:$0xff]  }
 0x645   :  { %9705 = vst.msk [vmem:[#allocation3 + $0x1e0] sm:$0xf] %vm1236_vm5, %v16053_v36  ;;  %v9346_v41 = vld [vmem:[#allocation2 + $0x2d8] sm:$0xff]  ;;  %v9151_v42 = vadd.f32 %v19990_v54, %v9082_v25  ;;  %v8172_v58 = vpop.f32.mrf.mxu1  ;;  %12115 = vmatpush1.bf16.msra.mxu0 %v16874_v24 }
 0x646   :  { %10125 = vrot.lane.b32.xlu0 %v16125_v2, %s17010_s19  ;;  %v9778_v61 = vld [vmem:[#allocation2 + $0x2d9] sm:$0xff]  ;;  %9278 = vst.msk [vmem:[#allocation2 + $0x2f1] sm:$0xff] %vm28_vm3, %v9214_v57  ;;  %v16054_v1 = vpack.c.bf16 %v9346_v41, %v9346_v41  ;;  %v9004_v40 = vpop.f32.mrf.mxu0  ;;  %12116 = vmatprep.subr.bf16.mxu0 %v20761_v6 }
 0x647   :  { %11480 = vmatmul.mubr.bf16.gmra.mxu1 %v15232_v43  ;;  %v10353_v12 = vld [vmem:[#allocation2 + $0x2d2] sm:$0xff]  ;;  %v10062_v21 = vpop.permute.xlu0 %10061  ;;  %v16126_v16 = vpack.c.bf16 %v9778_v61, %v9778_v61  ;;  %v10354_v45 = vld [vmem:[#allocation2 + $0x2da] sm:$0xff]  ;;  %v9215_v48 = vmax.f32 %v9151_v42, 0.0  ;;  %v8175_v7 = vpop.f32.mrf.mxu1  ;;  %v9083_v34 = vadd.f32 %v9004_v40, %v8171_v30  ;;  %v20849_v40 = vld [vmem:[#allocation26_spill] sm:$0xff] }
 0x648   :  { %v16197_v32 = vpack.c.bf16 %v10353_v12, %v10353_v12  ;;  %10249 = vst.msk [vmem:[#allocation3 + $0xe0] sm:$0xf] %vm1813_vm7, %v10062_v21  ;;  %v16198_v11 = vpack.c.bf16 %v10354_v45, %v10354_v45  ;;  %v8176_v52 = vadd.f32 %v8175_v7, %v20846_v28  ;;  %v9006_v51 = vpop.f32.mrf.mxu0  ;;  %v10838_v59 = vld [vmem:[#allocation3 + $0xd0] sm:$0xff]  ;;  %15298 = vmatprep.mubr.msk.bf16.mxu1 %vm28_vm3, %v16830_v23  ;;  %v16832_v12 = vld [vmem:[#allocation3 + $0xe4] ss:$8 sps:$4 sm:$0xff]  }
 0x649   :  { %10127 = vrot.lane.b32.xlu1 %v16126_v16, %s17010_s19  ;;  %9706 = vst.msk [vmem:[#allocation3 + $0x1e8] sm:$0xf] %vm1236_vm5, %v16054_v1  ;;  %v9152_v0 = vadd.f32 %v19990_v54, %v9083_v34  ;;  %v8177_v15 = vpop.f32.mrf.mxu1  ;;  %v16875_v21 = vld [vmem:[%s20736_s3 + $0x248] sm:$0xff]   ;;  %v16876_v1 = vld [vmem:[%s20736_s3 + $0x310] sm:$0xff]  }
 0x64a   :  { %10713 = vst.msk [vmem:[#allocation3 + $0x1e4] sm:$0xf] %vm1236_vm5, %v16197_v32  ;;  %10714 = vst.msk [vmem:[#allocation3 + $0x1ec] sm:$0xf] %vm1236_vm5, %v16198_v11  ;;  %v9347_v26 = vld [vmem:[#allocation2 + $0x2e8] sm:$0xff]  ;;  %v10064_v39 = vpop.permute.xlu1 %10063  ;;  %v9009_v33 = vpop.f32.mrf.mxu0  ;;  %12117 = vmatpush1.bf16.msra.mxu0 %v16875_v21  ;;  %12949 = vmatpush1.bf16.msra.mxu1 %v16876_v1 }
 0x64b   :  { %v9779_v8 = vld [vmem:[#allocation2 + $0x2e9] sm:$0xff]  ;;  %9279 = vst.msk [vmem:[#allocation2 + $0x301] sm:$0xff] %vm28_vm3, %v9215_v48  ;;  %v16055_v47 = vpack.c.bf16 %v9347_v26, %v9347_v26  ;;  %v10839_v35 = vld [vmem:[#allocation3 + $0xd8] sm:$0xff]  ;;  %v9216_v56 = vmax.f32 %v9152_v0, 0.0  ;;  %v8178_v9 = vpop.f32.mrf.mxu1  ;;  %v9084_v27 = vadd.f32 %v9009_v33, %v8176_v52  ;;  %12118 = vmatprep.subr.bf16.mxu0 %v20761_v6  ;;  %12950 = vmatprep.subr.bf16.mxu1 %v20761_v6 }
 0x64c   :  { %v16127_v63 = vpack.c.bf16 %v9779_v8, %v9779_v8  ;;  %10250 = vst.msk [vmem:[#allocation3 + $0xe8] sm:$0xf] %vm1813_vm7, %v10064_v39  ;;  %v15234_v3 = vcombine.low %v10838_v59, %v10839_v35  ;;  %v8179_v62 = vadd.f32 %v8178_v9, %v20847_v46  ;;  %v9011_v14 = vpop.f32.mrf.mxu0  ;;  %v16880_v35 = vld [vmem:[%s20736_s3 + $0x308] sm:$0xff]  }
 0x64d   :  { %9707 = vst.msk [vmem:[#allocation3 + $0x1f0] sm:$0xf] %vm1236_vm5, %v16055_v47  ;;  %v9348_v53 = vld [vmem:[#allocation2 + $0x2f0] sm:$0xff]  ;;  %v9153_v19 = vadd.f32 %v19990_v54, %v9084_v27  ;;  %v8180_v60 = vpop.f32.mrf.mxu1 }
 0x64e   :  { %10129 = vrot.lane.b32.xlu0 %v16127_v63, %s17010_s19  ;;  %v9780_v37 = vld [vmem:[#allocation2 + $0x2f1] sm:$0xff]  ;;  %9280 = vst.msk [vmem:[#allocation2 + $0x309] sm:$0xff] %vm28_vm3, %v9216_v56  ;;  %v16056_v10 = vpack.c.bf16 %v9348_v53, %v9348_v53  ;;  %v9012_v50 = vpop.f32.mrf.mxu0  ;;  %v16879_v63 = vld [vmem:[%s20736_s3 + $0x240] sm:$0xff]   ;;  %12951 = vmatpush1.bf16.msra.mxu1 %v16880_v35 }
 0x64f   :  { %11488 = vmatmul.mubr.bf16.gmra.mxu1 %v15234_v3  ;;  %v10355_v55 = vld [vmem:[#allocation2 + $0x2ea] sm:$0xff]  ;;  %v10066_v17 = vpop.permute.xlu0 %10065  ;;  %v16128_v31 = vpack.c.bf16 %v9780_v37, %v9780_v37  ;;  %v10356_v44 = vld [vmem:[#allocation2 + $0x2f2] sm:$0xff]  ;;  %v9217_v36 = vmax.f32 %v9153_v19, 0.0  ;;  %v8183_v2 = vpop.f32.mrf.mxu1  ;;  %v9085_v22 = vadd.f32 %v9012_v50, %v8179_v62  ;;  %v10840_v29 = vld [vmem:[#allocation3 + $0xe0] sm:$0xff]  ;;  %12119 = vmatpush1.bf16.msra.mxu0 %v16879_v63 }
 0x650   :  { %v16199_v5 = vpack.c.bf16 %v10355_v55, %v10355_v55  ;;  %10251 = vst.msk [vmem:[#allocation3 + $0xf0] sm:$0xf] %vm1813_vm7, %v10066_v17  ;;  %v16200_v38 = vpack.c.bf16 %v10356_v44, %v10356_v44  ;;  %v8184_v49 = vadd.f32 %v8183_v2, %v20848_v4  ;;  %v9014_v43 = vpop.f32.mrf.mxu0  ;;  %15299 = vmatprep.mubr.msk.bf16.mxu1 %vm28_vm3, %v16832_v12  ;;  %v16834_v55 = vld [vmem:[#allocation3 + $0xf4] ss:$8 sps:$4 sm:$0xff]  }
 0x651   :  { %10131 = vrot.lane.b32.xlu1 %v16128_v31, %s17010_s19  ;;  %9708 = vst.msk [vmem:[#allocation3 + $0x1f8] sm:$0xf] %vm1236_vm5, %v16056_v10  ;;  %v9154_v25 = vadd.f32 %v19990_v54, %v9085_v22  ;;  %v8185_v18 = vpop.f32.mrf.mxu1  ;;  %12128 = vmatprep.subr.bf16.mxu0 %v20761_v6  ;;  %v16881_v60 = vld [vmem:[%s20736_s3 + $0x298] sm:$0xff]   ;;  %v16885_v22 = vld [vmem:[%s20736_s3 + $0x290] sm:$0xff]   ;;  %v9717_v43 = vld [vmem:[#allocation2 + $0x1] sm:$0xff] }
 0x652   :  { %10715 = vst.msk [vmem:[#allocation3 + $0x1f4] sm:$0xf] %vm1236_vm5, %v16199_v5  ;;  %10716 = vst.msk [vmem:[#allocation3 + $0x1fc] sm:$0xf] %vm1236_vm5, %v16200_v38  ;;  %v9349_v20 = vld [vmem:[#allocation2 + $0x300] sm:$0xff]  ;;  %v10068_v30 = vpop.permute.xlu1 %10067  ;;  %v9017_v42 = vpop.f32.mrf.mxu0  ;;  %12952 = vmatprep.subr.bf16.mxu1 %v20761_v6  ;;  %v16886_v4 = vld [vmem:[%s20736_s3 + $0x358] sm:$0xff]  }
 0x653   :  { %v9781_v57 = vld [vmem:[#allocation2 + $0x301] sm:$0xff]  ;;  %9281 = vst.msk [vmem:[#allocation2 + $0x319] sm:$0xff] %vm28_vm3, %v9217_v36  ;;  %v16057_v13 = vpack.c.bf16 %v9349_v20, %v9349_v20  ;;  %v9218_v16 = vmax.f32 %v9154_v25, 0.0  ;;  %v8186_v45 = vpop.f32.mrf.mxu1  ;;  %v9086_v32 = vadd.f32 %v9017_v42, %v8184_v49  ;;  %12129 = vmatpush2.bf16.msra.mxu0 %v16881_v60  ;;  %v9718_v42 = vld [vmem:[#allocation2 + $0x9] sm:$0xff]  ;;  %v9753_v35 = vld [vmem:[#allocation2 + $0x1b1] sm:$0xff] }
 0x654   :  { %v16129_v41 = vpack.c.bf16 %v9781_v57, %v9781_v57  ;;  %v10841_v61 = vld [vmem:[#allocation3 + $0xe8] sm:$0xff]  ;;  %10252 = vst.msk [vmem:[#allocation3 + $0xf8] sm:$0xf] %vm1813_vm7, %v10068_v30  ;;  %v8187_v11 = vadd.f32 %v8186_v45, %v20849_v40  ;;  %v9019_v48 = vpop.f32.mrf.mxu0  ;;  %12130 = vmatprep.subr.bf16.mxu0 %v20761_v6  ;;  %v16844_v60 = vld [vmem:[#allocation3 + $0x154] ss:$8 sps:$4 sm:$0xff]  }
 0x655   :  { %v15236_v58 = vcombine.low %v10840_v29, %v10841_v61  ;;  %9709 = vst.msk [vmem:[#allocation3 + $0x200] sm:$0xf] %vm1236_vm5, %v16057_v13  ;;  %v9350_v7 = vld [vmem:[#allocation2 + $0x308] sm:$0xff]  ;;  %v9155_v52 = vadd.f32 %v19990_v54, %v9086_v32  ;;  %v8188_v51 = vpop.f32.mrf.mxu1  ;;  %v16888_v61 = vld [vmem:[%s20736_s3 + $0x350] sm:$0xff]  }
 0x656   :  { %10133 = vrot.lane.b32.xlu0 %v16129_v41, %s17010_s19  ;;  %v9782_v34 = vld [vmem:[#allocation2 + $0x309] sm:$0xff]  ;;  %9282 = vst.msk [vmem:[#allocation2 + $0x321] sm:$0xff] %vm28_vm3, %v9218_v16  ;;  %v10070_v26 = vpop.permute.xlu0 %10069  ;;  %v16058_v8 = vpack.c.bf16 %v9350_v7, %v9350_v7  ;;  %v9020_v39 = vpop.f32.mrf.mxu0  ;;  %v16892_v7 = vld [vmem:[%s20736_s3 + $0x280] sm:$0xff]   ;;  %v16066_v51 = vpack.c.bf16 %v9718_v42, %v9718_v42 }
 0x657   :  { %11496 = vmatmul.mubr.bf16.gmra.mxu1 %v15236_v58  ;;  %v10357_v28 = vld [vmem:[#allocation2 + $0x302] sm:$0xff]  ;;  %v16130_v59 = vpack.c.bf16 %v9782_v34, %v9782_v34  ;;  %v10358_v0 = vld [vmem:[#allocation2 + $0x30a] sm:$0xff]  ;;  %10253 = vst.msk [vmem:[#allocation3 + $0x100] sm:$0xf] %vm1813_vm7, %v10070_v26  ;;  %v9219_v23 = vmax.f32 %v9155_v52, 0.0  ;;  %v9087_v33 = vadd.f32 %v9020_v39, %v8187_v11  ;;  %12131 = vmatpush2.bf16.msra.mxu0 %v16885_v22  ;;  %v9751_v52 = vld [vmem:[#allocation2 + $0x199] sm:$0xff] }
 0x658   :  { %v16201_v15 = vpack.c.bf16 %v10357_v28, %v10357_v28  ;;  %v16202_v47 = vpack.c.bf16 %v10358_v0, %v10358_v0  ;;  %9710 = vst.msk [vmem:[#allocation3 + $0x208] sm:$0xf] %vm1236_vm5, %v16058_v8  ;;  %v9022_v3 = vpop.f32.mrf.mxu0  ;;  %v10842_v27 = vld [vmem:[#allocation3 + $0xf0] sm:$0xff]  ;;  %15300 = vmatprep.mubr.msk.bf16.mxu1 %vm28_vm3, %v16834_v55  ;;  %v16887_v29 = vld [vmem:[%s20736_s3 + $0x288] sm:$0xff]   ;;  %12132 = vmatprep.subr.bf16.mxu0 %v20761_v6 }
 0x659   :  { %10135 = vrot.lane.b32.xlu1 %v16130_v59, %s17010_s19  ;;  %9283 = vst.msk [vmem:[#allocation2 + $0x331] sm:$0xff] %vm28_vm3, %v9219_v23  ;;  %v9156_v46 = vadd.f32 %v19990_v54, %v9087_v33  ;;  %v10072_v62 = vpop.permute.xlu1 %10071  ;;  %v16882_v54 = vld [vmem:[%s20736_s3 + $0x300] sm:$0xff]   ;;  %v16065_v58 = vpack.c.bf16 %v9717_v43, %v9717_v43  ;;  %v16893_v28 = vld [vmem:[%s20736_s3 + $0x348] sm:$0xff]   ;;  %v16099_v59 = vpack.c.bf16 %v9751_v52, %v9751_v52  ;;  %v16839_v39 = vld [vmem:[#allocation3 + $0x134] ss:$8 sps:$4 sm:$0xff]  }
 0x65a   :  { %10717 = vst.msk [vmem:[#allocation3 + $0x204] sm:$0xf] %vm1236_vm5, %v16201_v15  ;;  %10718 = vst.msk [vmem:[#allocation3 + $0x20c] sm:$0xf] %vm1236_vm5, %v16202_v47  ;;  %v9351_v56 = vld [vmem:[#allocation2 + $0x318] sm:$0xff]  ;;  %12953 = vmatpush1.bf16.msra.mxu1 %v16882_v54  ;;  %v9752_v8 = vld [vmem:[#allocation2 + $0x1a1] sm:$0xff]  ;;  %v16101_v3 = vpack.c.bf16 %v9753_v35, %v9753_v35 }
 0x65b   :  { %v9783_v9 = vld [vmem:[#allocation2 + $0x319] sm:$0xff]  ;;  %v16059_v14 = vpack.c.bf16 %v9351_v56, %v9351_v56  ;;  %10254 = vst.msk [vmem:[#allocation3 + $0x108] sm:$0xf] %vm1813_vm7, %v10072_v62  ;;  %v9220_v17 = vmax.f32 %v9156_v46, 0.0  ;;  %12962 = vmatprep.subr.bf16.mxu1 %v20761_v6  ;;  %v16836_v13 = vld [vmem:[#allocation3 + $0x104] ss:$8 sps:$4 sm:$0xff]   ;;  %12133 = vmatpush2.bf16.msra.mxu0 %v16887_v29  ;;  %v16100_v23 = vpack.c.bf16 %v9752_v8, %v9752_v8 }
 0x65c   :  { %v16131_v53 = vpack.c.bf16 %v9783_v9, %v9783_v9  ;;  %v10843_v37 = vld [vmem:[#allocation3 + $0xf8] sm:$0xff]  ;;  %12134 = vmatprep.subr.bf16.mxu0 %v20761_v6  ;;  %v16902_v47 = vld [vmem:[%s20736_s3 + $0x340] sm:$0xff]  }
 0x65d   :  { %v15238_v19 = vcombine.low %v10842_v27, %v10843_v37  ;;  %9711 = vst.msk [vmem:[#allocation3 + $0x210] sm:$0xf] %vm1236_vm5, %v16059_v14  ;;  %v9352_v10 = vld [vmem:[#allocation2 + $0x320] sm:$0xff]  ;;  %v16850_v22 = vld [vmem:[#allocation3 + $0x174] ss:$8 sps:$4 sm:$0xff]  }
 0x65e   :  { %10137 = vrot.lane.b32.xlu0 %v16131_v53, %s17010_s19  ;;  %v9784_v31 = vld [vmem:[#allocation2 + $0x321] sm:$0xff]  ;;  %9284 = vst.msk [vmem:[#allocation2 + $0x339] sm:$0xff] %vm28_vm3, %v9220_v17  ;;  %v10082_v5 = vpop.permute.xlu0 %10081  ;;  %v16060_v50 = vpack.c.bf16 %v9352_v10, %v9352_v10  ;;  %12963 = vmatpush2.bf16.msra.mxu1 %v16886_v4  ;;  %v9754_v33 = vld [vmem:[#allocation2 + $0x1b9] sm:$0xff] }
 0x65f   :  { %11504 = vmatmul.mubr.bf16.gmra.mxu1 %v15238_v19  ;;  %v10359_v44 = vld [vmem:[#allocation2 + $0x31a] sm:$0xff]  ;;  %v16132_v38 = vpack.c.bf16 %v9784_v31, %v9784_v31  ;;  %v10360_v24 = vld [vmem:[#allocation2 + $0x322] sm:$0xff]  ;;  %10259 = vst.msk [vmem:[#allocation3 + $0x130] sm:$0xf] %vm1813_vm7, %v10082_v5  ;;  %12964 = vmatprep.subr.bf16.mxu1 %v20761_v6  ;;  %v16102_v9 = vpack.c.bf16 %v9754_v33, %v9754_v33 }
 0x660   :  { %v16203_v36 = vpack.c.bf16 %v10359_v44, %v10359_v44  ;;  %v16204_v2 = vpack.c.bf16 %v10360_v24, %v10360_v24  ;;  %9712 = vst.msk [vmem:[#allocation3 + $0x218] sm:$0xf] %vm1236_vm5, %v16060_v50  ;;  %v10844_v49 = vld [vmem:[#allocation3 + $0x100] sm:$0xff]  ;;  %v9785_v20 = vld [vmem:[#allocation2 + $0x331] sm:$0xff]  ;;  %15301 = vmatprep.mubr.msk.bf16.mxu1 %vm28_vm3, %v16836_v13  ;;  %12135 = vmatpush2.bf16.msra.mxu0 %v16892_v7 }
 0x661   :  { %10139 = vrot.lane.b32.xlu1 %v16132_v38, %s17010_s19  ;;  %v9353_v57 = vld [vmem:[#allocation2 + $0x330] sm:$0xff]  ;;  %v16133_v18 = vpack.c.bf16 %v9785_v20, %v9785_v20  ;;  %v16842_v62 = vld [vmem:[#allocation3 + $0x144] ss:$8 sps:$4 sm:$0xff]  }
 0x662   :  { %10719 = vst.msk [vmem:[#allocation3 + $0x214] sm:$0xf] %vm1236_vm5, %v16203_v36  ;;  %10720 = vst.msk [vmem:[#allocation3 + $0x21c] sm:$0xf] %vm1236_vm5, %v16204_v2  ;;  %v10084_v25 = vpop.permute.xlu1 %10083  ;;  %v10845_v30 = vld [vmem:[#allocation3 + $0x108] sm:$0xff]  ;;  %v16061_v41 = vpack.c.bf16 %v9353_v57, %v9353_v57  ;;  %12965 = vmatpush2.bf16.msra.mxu1 %v16888_v61 }
 0x663   :  { %10260 = vst.msk [vmem:[#allocation3 + $0x138] sm:$0xf] %vm1813_vm7, %v10084_v25  ;;  %v15240_v12 = vcombine.low %v10844_v49, %v10845_v30  ;;  %10141 = vrot.lane.b32.xlu0 %v16133_v18, %s17010_s19  ;;  %12966 = vmatprep.subr.bf16.mxu1 %v20761_v6  ;;  %v16848_v5 = vld [vmem:[#allocation3 + $0x164] ss:$8 sps:$4 sm:$0xff]   ;;  %v16856_v61 = vld [vmem:[#allocation3 + $0x194] ss:$8 sps:$4 sm:$0xff]  }
 0x664   :  { %9713 = vst.msk [vmem:[#allocation3 + $0x220] sm:$0xf] %vm1236_vm5, %v16061_v41  ;;  %v16852_v29 = vld [vmem:[#allocation3 + $0x184] ss:$8 sps:$4 sm:$0xff]   ;;  %v16861_v7 = vld [vmem:[#allocation3 + $0x1b4] ss:$8 sps:$4 sm:$0xff]  }
 0x665   :  { %v9786_v21 = vld [vmem:[#allocation2 + $0x339] sm:$0xff] }
 0x666   :  { %v9354_v1 = vld [vmem:[#allocation2 + $0x338] sm:$0xff]  ;;  %v16134_v32 = vpack.c.bf16 %v9786_v21, %v9786_v21  ;;  %v10846_v26 = vld [vmem:[#allocation3 + $0x130] sm:$0xff]  ;;  %12967 = vmatpush2.bf16.msra.mxu1 %v16893_v28 }
 0x667   :  { %11512 = vmatmul.mubr.bf16.gmra.mxu1 %v15240_v12  ;;  %v10361_v16 = vld [vmem:[#allocation2 + $0x332] sm:$0xff]  ;;  %v10086_v45 = vpop.permute.xlu0 %10085  ;;  %v16062_v40 = vpack.c.bf16 %v9354_v1, %v9354_v1  ;;  %v10362_v11 = vld [vmem:[#allocation2 + $0x33a] sm:$0xff]  ;;  %10005 = vrot.lane.b32.xlu0 %v16065_v58, %s17010_s19 }
 0x668   :  { %v16205_v48 = vpack.c.bf16 %v10361_v16, %v10361_v16  ;;  %10261 = vst.msk [vmem:[#allocation3 + $0x140] sm:$0xf] %vm1813_vm7, %v10086_v45  ;;  %v16206_v34 = vpack.c.bf16 %v10362_v11, %v10362_v11  ;;  %10143 = vrot.lane.b32.xlu1 %v16134_v32, %s17010_s19  ;;  %12968 = vmatprep.subr.bf16.mxu1 %v20761_v6  ;;  %v16858_v16 = vld [vmem:[#allocation3 + $0x1a4] ss:$8 sps:$4 sm:$0xff]  }
 0x669   :  { %9714 = vst.msk [vmem:[#allocation3 + $0x228] sm:$0xf] %vm1236_vm5, %v16062_v40  ;;  %15302 = vmatprep.mubr.msk.bf16.mxu1 %vm28_vm3, %v16839_v39 }
 0x66a   :  { %10721 = vst.msk [vmem:[#allocation3 + $0x224] sm:$0xf] %vm1236_vm5, %v16205_v48  ;;  %10722 = vst.msk [vmem:[#allocation3 + $0x22c] sm:$0xf] %vm1236_vm5, %v16206_v34  ;;  %v10847_v15 = vld [vmem:[#allocation3 + $0x138] sm:$0xff]  ;;  %12969 = vmatpush2.bf16.msra.mxu1 %v16902_v47 }
 0x66b   :  { %v10088_v0 = vpop.permute.xlu1 %10087  ;;  %v15242_v63 = vcombine.low %v10846_v26, %v10847_v15  ;;  %10073 = vrot.lane.b32.xlu0 %v16099_v59, %s17010_s19  ;;  %v16864_v15 = vld [vmem:[#allocation3 + $0x1c4] ss:$8 sps:$4 sm:$0xff]  }
 0x66c   :  { %10262 = vst.msk [vmem:[#allocation3 + $0x148] sm:$0xf] %vm1813_vm7, %v10088_v0  ;;  %10007 = vrot.lane.b32.xlu1 %v16066_v51, %s17010_s19 }
 0x66f   :  { %11520 = vmatmul.mubr.bf16.gmra.mxu1 %v15242_v63  ;;  %v10848_v27 = vld [vmem:[#allocation3 + $0x140] sm:$0xff]  ;;  %10077 = vrot.lane.b32.xlu0 %v16101_v3, %s17010_s19 }
 0x670   :  { %v10090_v56 = vpop.permute.xlu0 %10089  ;;  %10075 = vrot.lane.b32.xlu1 %v16100_v23, %s17010_s19  ;;  %15303 = vmatprep.mubr.msk.bf16.mxu1 %vm28_vm3, %v16842_v62 }
 0x671   :  { %10263 = vst.msk [vmem:[#allocation3 + $0x150] sm:$0xf] %vm1813_vm7, %v10090_v56 }
 0x673   :  { %v10092_v6 = vpop.permute.xlu1 %10091  ;;  %v10849_v46 = vld [vmem:[#allocation3 + $0x148] sm:$0xff] }
 0x674   :  { %10264 = vst.msk [vmem:[#allocation3 + $0x158] sm:$0xf] %vm1813_vm7, %v10092_v6  ;;  %v15244_v14 = vcombine.low %v10848_v27, %v10849_v46  ;;  %10079 = vrot.lane.b32.xlu1 %v16102_v9, %s17010_s19  ;;  %v16866_v27 = vld [vmem:[#allocation3 + $0x1d4] ss:$8 sps:$4 sm:$0xff]  }
 0x677   :  { %11528 = vmatmul.mubr.bf16.gmra.mxu1 %v15244_v14 }
 0x678   :  { %v10094_v53 = vpop.permute.xlu0 %10093  ;;  %v10850_v37 = vld [vmem:[#allocation3 + $0x150] sm:$0xff]  ;;  %15304 = vmatprep.mubr.msk.bf16.mxu1 %vm28_vm3, %v16844_v60 }
 0x679   :  { %10265 = vst.msk [vmem:[#allocation3 + $0x160] sm:$0xf] %vm1813_vm7, %v10094_v53 }
 0x67b   :  { %v10096_v55 = vpop.permute.xlu1 %10095  ;;  %v10851_v19 = vld [vmem:[#allocation3 + $0x158] sm:$0xff] }
 0x67c   :  { %10266 = vst.msk [vmem:[#allocation3 + $0x168] sm:$0xf] %vm1813_vm7, %v10096_v55  ;;  %v15246_v54 = vcombine.low %v10850_v37, %v10851_v19 }
 0x67f   :  { %11536 = vmatmul.mubr.bf16.gmra.mxu1 %v15246_v54  ;;  %v16870_v54 = vld [vmem:[#allocation3 + $0x1e4] ss:$8 sps:$4 sm:$0xff]  }
 0x680   :  { %v10098_v17 = vpop.permute.xlu0 %10097  ;;  %v10852_v10 = vld [vmem:[#allocation3 + $0x160] sm:$0xff]  ;;  %15305 = vmatprep.mubr.msk.bf16.mxu1 %vm28_vm3, %v16848_v5 }
 0x681   :  { %10267 = vst.msk [vmem:[#allocation3 + $0x170] sm:$0xf] %vm1813_vm7, %v10098_v17 }
 0x683   :  { %v10100_v31 = vpop.permute.xlu1 %10099  ;;  %v10853_v44 = vld [vmem:[#allocation3 + $0x168] sm:$0xff] }
 0x684   :  { %10268 = vst.msk [vmem:[#allocation3 + $0x178] sm:$0xf] %vm1813_vm7, %v10100_v31  ;;  %v15248_v50 = vcombine.low %v10852_v10, %v10853_v44 }
 0x686   :  { %v10102_v38 = vpop.permute.xlu0 %10101 }
 0x687   :  { %11544 = vmatmul.mubr.bf16.gmra.mxu1 %v15248_v50  ;;  %10269 = vst.msk [vmem:[#allocation3 + $0x180] sm:$0xf] %vm1813_vm7, %v10102_v38 }
 0x688   :  { %v10854_v24 = vld [vmem:[#allocation3 + $0x170] sm:$0xff]  ;;  %15306 = vmatprep.mubr.msk.bf16.mxu1 %vm28_vm3, %v16850_v22 }
 0x68b   :  { %v10104_v36 = vpop.permute.xlu1 %10103  ;;  %v10855_v2 = vld [vmem:[#allocation3 + $0x178] sm:$0xff] }
 0x68c   :  { %10270 = vst.msk [vmem:[#allocation3 + $0x188] sm:$0xf] %vm1813_vm7, %v10104_v36  ;;  %v15250_v4 = vcombine.low %v10854_v24, %v10855_v2  ;;  %v16872_v2 = vld [vmem:[#allocation3 + $0x1f4] ss:$8 sps:$4 sm:$0xff]  }
 0x68e   :  { %v10856_v43 = vld [vmem:[#allocation3 + $0x180] sm:$0xff] }
 0x68f   :  { %11552 = vmatmul.mubr.bf16.gmra.mxu1 %v15250_v4 }
 0x690   :  { %v10106_v49 = vpop.permute.xlu0 %10105  ;;  %15307 = vmatprep.mubr.msk.bf16.mxu1 %vm28_vm3, %v16852_v29 }
 0x691   :  { %10271 = vst.msk [vmem:[#allocation3 + $0x190] sm:$0xf] %vm1813_vm7, %v10106_v49 }
 0x693   :  { %v10108_v20 = vpop.permute.xlu1 %10107  ;;  %v10857_v57 = vld [vmem:[#allocation3 + $0x188] sm:$0xff] }
 0x694   :  { %10272 = vst.msk [vmem:[#allocation3 + $0x198] sm:$0xf] %vm1813_vm7, %v10108_v20  ;;  %v15252_v25 = vcombine.low %v10856_v43, %v10857_v57 }
 0x697   :  { %11560 = vmatmul.mubr.bf16.gmra.mxu1 %v15252_v25 }
 0x698   :  { %v10110_v18 = vpop.permute.xlu0 %10109  ;;  %v10858_v30 = vld [vmem:[#allocation3 + $0x190] sm:$0xff]  ;;  %15308 = vmatprep.mubr.msk.bf16.mxu1 %vm28_vm3, %v16856_v61 }
 0x699   :  { %10273 = vst.msk [vmem:[#allocation3 + $0x1a0] sm:$0xf] %vm1813_vm7, %v10110_v18 }
 0x69b   :  { %v10112_v13 = vpop.permute.xlu1 %10111  ;;  %v10859_v41 = vld [vmem:[#allocation3 + $0x198] sm:$0xff] }
 0x69c   :  { %10274 = vst.msk [vmem:[#allocation3 + $0x1a8] sm:$0xf] %vm1813_vm7, %v10112_v13  ;;  %v15254_v12 = vcombine.low %v10858_v30, %v10859_v41  ;;  %v16877_v30 = vld [vmem:[#allocation3 + $0x204] ss:$8 sps:$4 sm:$0xff]  }
 0x69f   :  { %11568 = vmatmul.mubr.bf16.gmra.mxu1 %v15254_v12 }
 0x6a0   :  { %v10114_v42 = vpop.permute.xlu0 %10113  ;;  %v10860_v58 = vld [vmem:[#allocation3 + $0x1a0] sm:$0xff]  ;;  %15309 = vmatprep.mubr.msk.bf16.mxu1 %vm28_vm3, %v16858_v16 }
 0x6a1   :  { %10275 = vst.msk [vmem:[#allocation3 + $0x1b0] sm:$0xf] %vm1813_vm7, %v10114_v42 }
 0x6a3   :  { %v10116_v21 = vpop.permute.xlu1 %10115  ;;  %v10861_v1 = vld [vmem:[#allocation3 + $0x1a8] sm:$0xff] }
 0x6a4   :  { %10276 = vst.msk [vmem:[#allocation3 + $0x1b8] sm:$0xf] %vm1813_vm7, %v10116_v21  ;;  %v15256_v45 = vcombine.low %v10860_v58, %v10861_v1 }
 0x6a7   :  { %11576 = vmatmul.mubr.bf16.gmra.mxu1 %v15256_v45  ;;  %v16883_v45 = vld [vmem:[#allocation3 + $0x214] ss:$8 sps:$4 sm:$0xff]  }
 0x6a8   :  { %v10118_v32 = vpop.permute.xlu0 %10117  ;;  %v10862_v40 = vld [vmem:[#allocation3 + $0x1b0] sm:$0xff]  ;;  %15310 = vmatprep.mubr.msk.bf16.mxu1 %vm28_vm3, %v16861_v7 }
 0x6a9   :  { %10277 = vst.msk [vmem:[#allocation3 + $0x1c0] sm:$0xf] %vm1813_vm7, %v10118_v32 }
 0x6ab   :  { %v10120_v11 = vpop.permute.xlu1 %10119  ;;  %v10863_v48 = vld [vmem:[#allocation3 + $0x1b8] sm:$0xff]  ;;  %v20218_v28 = vpop.f32.mrf.mxu1 }
 0x6ac   :  { %10278 = vst.msk [vmem:[#allocation3 + $0x1c8] sm:$0xf] %vm1813_vm7, %v10120_v11  ;;  %v15258_v34 = vcombine.low %v10862_v40, %v10863_v48 }
 0x6ad   :  { %v11395_v51 = vpop.f32.mrf.mxu1 }
 0x6af   :  { %11584 = vmatmul.mubr.bf16.gmra.mxu1 %v15258_v34  ;;  %v20221_v26 = vpop.f32.mrf.mxu1 }
 0x6b0   :  { %v10122_v52 = vpop.permute.xlu0 %10121  ;;  %v10864_v8 = vld [vmem:[#allocation3 + $0x1c0] sm:$0xff]  ;;  %15311 = vmatprep.mubr.msk.bf16.mxu1 %vm28_vm3, %v16864_v15 }
 0x6b1   :  { %10279 = vst.msk [vmem:[#allocation3 + $0x1d0] sm:$0xf] %vm1813_vm7, %v10122_v52  ;;  %v11398_v39 = vpop.f32.mrf.mxu1 }
 0x6b3   :  { %v10124_v59 = vpop.permute.xlu1 %10123  ;;  %v10865_v0 = vld [vmem:[#allocation3 + $0x1c8] sm:$0xff] }
 0x6b4   :  { %10280 = vst.msk [vmem:[#allocation3 + $0x1d8] sm:$0xf] %vm1813_vm7, %v10124_v59  ;;  %v15260_v47 = vcombine.low %v10864_v8, %v10865_v0  ;;  %v20225_v63 = vpop.f32.mrf.mxu1  ;;  %v16889_v8 = vld [vmem:[#allocation3 + $0x224] ss:$8 sps:$4 sm:$0xff]  }
 0x6b6   :  { %v11403_v23 = vpop.f32.mrf.mxu1 }
 0x6b7   :  { %11592 = vmatmul.mubr.bf16.gmra.mxu1 %v15260_v47  ;;  %v16896_v47 = vld [vmem:[#allocation3 + $0x24] ss:$8 sps:$4 sm:$0xff]  }
 0x6b8   :  { %v10126_v35 = vpop.permute.xlu0 %10125  ;;  %v20228_v33 = vpop.f32.mrf.mxu1  ;;  %v10866_v3 = vld [vmem:[#allocation3 + $0x1d0] sm:$0xff]  ;;  %15312 = vmatprep.mubr.msk.bf16.mxu1 %vm28_vm3, %v16866_v27 }
 0x6b9   :  { %10281 = vst.msk [vmem:[#allocation3 + $0x1e0] sm:$0xf] %vm1813_vm7, %v10126_v35  ;;  %v9788_v27 = vld [vmem:[#allocation2 + $0x351] sm:$0xff] }
 0x6ba   :  { %v11406_v6 = vpop.f32.mrf.mxu1 }
 0x6bb   :  { %v10128_v56 = vpop.permute.xlu1 %10127  ;;  %v10867_v9 = vld [vmem:[#allocation3 + $0x1d8] sm:$0xff]  ;;  %v9787_v6 = vld [vmem:[#allocation2 + $0x349] sm:$0xff] }
 0x6bc   :  { %10282 = vst.msk [vmem:[#allocation3 + $0x1e8] sm:$0xf] %vm1813_vm7, %v10128_v56  ;;  %v15262_v46 = vcombine.low %v10866_v3, %v10867_v9  ;;  %v16899_v3 = vld [vmem:[#allocation3 + $0x4] ss:$8 sps:$4 sm:$0xff]  }
 0x6bd   :  { %15394 = vmatprep.mubr.msk.bf16.mxu0 %vm28_vm3, %v16899_v3 }
 0x6bf   :  { %v20232_v62 = vpop.f32.mrf.mxu1  ;;  %11600 = vmatmul.mubr.bf16.gmra.mxu1 %v15262_v46  ;;  %v16900_v46 = vld [vmem:[#allocation3 + $0x14] ss:$8 sps:$4 sm:$0xff]  }
 0x6c0   :  { %v10130_v14 = vpop.permute.xlu0 %10129  ;;  %v10868_v55 = vld [vmem:[#allocation3 + $0x1e0] sm:$0xff]  ;;  %15313 = vmatprep.mubr.msk.bf16.mxu1 %vm28_vm3, %v16870_v54  ;;  %v16903_v54 = vld [vmem:[#allocation3 + $0x34] ss:$8 sps:$4 sm:$0xff]  }
 0x6c1   :  { %10283 = vst.msk [vmem:[#allocation3 + $0x1f0] sm:$0xf] %vm1813_vm7, %v10130_v14  ;;  %v11411_v53 = vpop.f32.mrf.mxu1  ;;  %v16136_v14 = vpack.c.bf16 %v9788_v27, %v9788_v27 }
 0x6c2   :  { %v16135_v53 = vpack.c.bf16 %v9787_v6, %v9787_v6  ;;  %v16924_v6 = vld [vmem:[#allocation3 + $0x90] ss:$8 sps:$4 sm:$0xff]  }
 0x6c3   :  { %v20235_v37 = vpop.f32.mrf.mxu1  ;;  %v10132_v19 = vpop.permute.xlu1 %10131  ;;  %v10869_v60 = vld [vmem:[#allocation3 + $0x1e8] sm:$0xff]  ;;  %10147 = vrot.lane.b32.xlu1 %v16136_v14, %s17010_s19 }
 0x6c4   :  { %10284 = vst.msk [vmem:[#allocation3 + $0x1f8] sm:$0xf] %vm1813_vm7, %v10132_v19  ;;  %v15264_v10 = vcombine.low %v10868_v55, %v10869_v60  ;;  %v16894_v19 = vld [vmem:[#allocation3 + $0x20] ss:$8 sps:$4 sm:$0xff]   ;;  %10145 = vrot.lane.b32.xlu0 %v16135_v53, %s17010_s19 }
 0x6c5   :  { %v11414_v17 = vpop.f32.mrf.mxu1 }
 0x6c7   :  { %v20239_v31 = vpop.f32.mrf.mxu1  ;;  %11608 = vmatmul.mubr.bf16.gmra.mxu1 %v15264_v10 }
 0x6c8   :  { %v10134_v44 = vpop.permute.xlu0 %10133  ;;  %v10870_v38 = vld [vmem:[#allocation3 + $0x1f0] sm:$0xff]  ;;  %15314 = vmatprep.mubr.msk.bf16.mxu1 %vm28_vm3, %v16872_v2 }
 0x6c9   :  { %10285 = vst.msk [vmem:[#allocation3 + $0x200] sm:$0xf] %vm1813_vm7, %v10134_v44  ;;  %v11419_v5 = vpop.f32.mrf.mxu1  ;;  %v16905_v44 = vld [vmem:[#allocation3 + $0x10] ss:$8 sps:$4 sm:$0xff]  }
 0x6cb   :  { %v20242_v50 = vpop.f32.mrf.mxu1  ;;  %v10136_v24 = vpop.permute.xlu1 %10135  ;;  %v10871_v36 = vld [vmem:[#allocation3 + $0x1f8] sm:$0xff] }
 0x6cc   :  { %10286 = vst.msk [vmem:[#allocation3 + $0x208] sm:$0xf] %vm1813_vm7, %v10136_v24  ;;  %v15266_v4 = vcombine.low %v10870_v38, %v10871_v36  ;;  %v16906_v24 = vld [vmem:[#allocation3 + $0x30] ss:$8 sps:$4 sm:$0xff]   ;;  %v16907_v36 = vld [vmem:[#allocation3 + $0x44] ss:$8 sps:$4 sm:$0xff]  }
 0x6cd   :  { %v11422_v22 = vpop.f32.mrf.mxu1 }
 0x6cf   :  { %v20246_v49 = vpop.f32.mrf.mxu1  ;;  %11616 = vmatmul.mubr.bf16.gmra.mxu1 %v15266_v4 }
 0x6d0   :  { %v10138_v43 = vpop.permute.xlu0 %10137  ;;  %v10872_v29 = vld [vmem:[#allocation3 + $0x200] sm:$0xff]  ;;  %15315 = vmatprep.mubr.msk.bf16.mxu1 %vm28_vm3, %v16877_v30 }
 0x6d1   :  { %10287 = vst.msk [vmem:[#allocation3 + $0x210] sm:$0xf] %vm1813_vm7, %v10138_v43  ;;  %v11427_v20 = vpop.f32.mrf.mxu1 }
 0x6d2   :  { %v16909_v20 = vld [vmem:[#allocation3 + $0x40] ss:$8 sps:$4 sm:$0xff]  }
 0x6d3   :  { %v20249_v57 = vpop.f32.mrf.mxu1  ;;  %v10140_v25 = vpop.permute.xlu1 %10139  ;;  %v10873_v18 = vld [vmem:[#allocation3 + $0x208] sm:$0xff] }
 0x6d4   :  { %10288 = vst.msk [vmem:[#allocation3 + $0x218] sm:$0xf] %vm1813_vm7, %v10140_v25  ;;  %v15268_v41 = vcombine.low %v10872_v29, %v10873_v18  ;;  %v16910_v29 = vld [vmem:[#allocation3 + $0x54] ss:$8 sps:$4 sm:$0xff]  }
 0x6d5   :  { %v11430_v13 = vpop.f32.mrf.mxu1  ;;  %v10142_v12 = vpop.permute.xlu0 %10141 }
 0x6d6   :  { %10289 = vst.msk [vmem:[#allocation3 + $0x220] sm:$0xf] %vm1813_vm7, %v10142_v12  ;;  %v16913_v12 = vld [vmem:[#allocation3 + $0x64] ss:$8 sps:$4 sm:$0xff]  }
 0x6d7   :  { %v20253_v61 = vpop.f32.mrf.mxu1  ;;  %11624 = vmatmul.mubr.bf16.gmra.mxu1 %v15268_v41  ;;  %v16912_v41 = vld [vmem:[#allocation3 + $0x50] ss:$8 sps:$4 sm:$0xff]  }
 0x6d8   :  { %v10874_v21 = vld [vmem:[#allocation3 + $0x210] sm:$0xff]  ;;  %15316 = vmatprep.mubr.msk.bf16.mxu1 %vm28_vm3, %v16883_v45  ;;  %v16915_v45 = vld [vmem:[#allocation3 + $0x60] ss:$8 sps:$4 sm:$0xff]  }
 0x6d9   :  { %v11435_v42 = vpop.f32.mrf.mxu1  ;;  %v10006_v32 = vpop.permute.xlu0 %10005 }
 0x6da   :  { %v10144_v1 = vpop.permute.xlu1 %10143  ;;  %10221 = vst.msk [vmem:[#allocation3] sm:$0xf] %vm1813_vm7, %v10006_v32  ;;  %v16916_v32 = vld [vmem:[#allocation3 + $0x74] ss:$8 sps:$4 sm:$0xff]  }
 0x6db   :  { %v20256_v58 = vpop.f32.mrf.mxu1  ;;  %v10875_v16 = vld [vmem:[#allocation3 + $0x218] sm:$0xff]  ;;  %10290 = vst.msk [vmem:[#allocation3 + $0x228] sm:$0xf] %vm1813_vm7, %v10144_v1 }
 0x6dc   :  { %v15270_v11 = vcombine.low %v10874_v21, %v10875_v16 }
 0x6dd   :  { %v11438_v40 = vpop.f32.mrf.mxu1  ;;  %v10074_v52 = vpop.permute.xlu0 %10073 }
 0x6de   :  { %v10008_v7 = vpop.permute.xlu1 %10007  ;;  %10255 = vst.msk [vmem:[#allocation3 + $0x110] sm:$0xf] %vm1813_vm7, %v10074_v52  ;;  %v16918_v52 = vld [vmem:[#allocation3 + $0x70] ss:$8 sps:$4 sm:$0xff]  }
 0x6df   :  { %v20261_v48 = vpop.f32.mrf.mxu1  ;;  %11632 = vmatmul.mubr.bf16.gmra.mxu1 %v15270_v11  ;;  %10222 = vst.msk [vmem:[#allocation3 + $0x8] sm:$0xf] %vm1813_vm7, %v10008_v7 }
 0x6e0   :  { %15317 = vmatprep.mubr.msk.bf16.mxu1 %vm28_vm3, %v16889_v8  ;;  %v16919_v8 = vld [vmem:[#allocation3 + $0x84] ss:$8 sps:$4 sm:$0xff]  }
 0x6e1   :  { %v11443_v34 = vpop.f32.mrf.mxu1  ;;  %v10078_v39 = vpop.permute.xlu0 %10077 }
 0x6e2   :  { %v16891_v59 = vld [vmem:[#allocation3 + $0x220] ss:$8 sps:$4 sm:$0xff]   ;;  %v10076_v0 = vpop.permute.xlu1 %10075  ;;  %10257 = vst.msk [vmem:[#allocation3 + $0x120] sm:$0xf] %vm1813_vm7, %v10078_v39 }
 0x6e3   :  { %v20265_v51 = vpop.f32.mrf.mxu1  ;;  %10256 = vst.msk [vmem:[#allocation3 + $0x118] sm:$0xf] %vm1813_vm7, %v10076_v0 }
 0x6e5   :  { %v11446_v15 = vpop.f32.mrf.mxu1 }
 0x6e6   :  { %v16897_v23 = vld [vmem:[#allocation3] ss:$8 sps:$4 sm:$0xff]   ;;  %v10080_v56 = vpop.permute.xlu1 %10079 }
 0x6e7   :  { %v20270_v35 = vpop.f32.mrf.mxu1  ;;  %11640 = vmatmul.mubr.bf16.gmra.mxu1 %v16891_v59  ;;  %10258 = vst.msk [vmem:[#allocation3 + $0x128] sm:$0xf] %vm1813_vm7, %v10080_v56  ;;  %12137 = vmatmul.mubr.bf16.vlgmr.msra.gmra.mxu0 %v16897_v23  ;;  %v16922_v23 = vld [vmem:[#allocation3 + $0x94] ss:$8 sps:$4 sm:$0xff]  }
 0x6e8   :  { %15526 = vmatprep.mubr.msk.bf16.mxu1 %vm28_vm3, %v16896_v47  ;;  %15395 = vmatprep.mubr.msk.bf16.mxu0 %vm28_vm3, %v16900_v46  ;;  %v16925_v46 = vld [vmem:[#allocation3 + $0xa4] ss:$8 sps:$4 sm:$0xff]  }
 0x6e9   :  { %v11451_v9 = vpop.f32.mrf.mxu1 }
 0x6eb   :  { %v20275_v55 = vpop.f32.mrf.mxu1 }
 0x6ed   :  { %v11454_v60 = vpop.f32.mrf.mxu1 }
 0x6ef   :  { %v20280_v17 = vpop.f32.mrf.mxu1  ;;  %12971 = vmatmul.mubr.bf16.vlgmr.msra.gmra.mxu1 %v16894_v19  ;;  %12145 = vmatmul.mubr.bf16.gmra.mxu0 %v16905_v44 }
 0x6f0   :  { %15527 = vmatprep.mubr.msk.bf16.mxu1 %vm28_vm3, %v16903_v54  ;;  %15396 = vmatprep.mubr.msk.bf16.mxu0 %vm28_vm3, %v16896_v47  ;;  %v16921_v47 = vld [vmem:[#allocation3 + $0x80] ss:$8 sps:$4 sm:$0xff]  }
 0x6f1   :  { %v11459_v10 = vpop.f32.mrf.mxu1 }
 0x6f2   :  { %v16928_v10 = vld [vmem:[#allocation3 + $0xb4] ss:$8 sps:$4 sm:$0xff]  }
 0x6f3   :  { %v20283_v5 = vpop.f32.mrf.mxu1 }
 0x6f5   :  { %v11462_v38 = vpop.f32.mrf.mxu1 }
 0x6f7   :  { %v20286_v2 = vpop.f32.mrf.mxu1  ;;  %12979 = vmatmul.mubr.bf16.gmra.mxu1 %v16906_v24  ;;  %12153 = vmatmul.mubr.bf16.gmra.mxu0 %v16894_v19 }
 0x6f8   :  { %15528 = vmatprep.mubr.msk.bf16.mxu1 %vm28_vm3, %v16907_v36  ;;  %15397 = vmatprep.mubr.msk.bf16.mxu0 %vm28_vm3, %v16903_v54  ;;  %v16927_v54 = vld [vmem:[#allocation3 + $0xa0] ss:$8 sps:$4 sm:$0xff]  }
 0x6f9   :  { %v11467_v22 = vpop.f32.mrf.mxu1 }
 0x6fa   :  { %v16930_v22 = vld [vmem:[#allocation3 + $0xb0] ss:$8 sps:$4 sm:$0xff]  }
 0x6fb   :  { %v20289_v4 = vpop.f32.mrf.mxu1 }
 0x6fd   :  { %v11470_v43 = vpop.f32.mrf.mxu1 }
 0x6fe   :  { %v16931_v43 = vld [vmem:[#allocation3 + $0xc4] ss:$8 sps:$4 sm:$0xff]  }
 0x6ff   :  { %v20292_v25 = vpop.f32.mrf.mxu1  ;;  %12987 = vmatmul.mubr.bf16.gmra.mxu1 %v16909_v20  ;;  %12161 = vmatmul.mubr.bf16.gmra.mxu0 %v16906_v24 }
 0x700   :  { %15529 = vmatprep.mubr.msk.bf16.mxu1 %vm28_vm3, %v16910_v29  ;;  %15398 = vmatprep.mubr.msk.bf16.mxu0 %vm28_vm3, %v16907_v36 }
 0x701   :  { %v11475_v18 = vpop.f32.mrf.mxu1 }
 0x703   :  { %v20295_v30 = vpop.f32.mrf.mxu1 }
 0x705   :  { %v11478_v13 = vpop.f32.mrf.mxu1 }
 0x707   :  { %v20298_v42 = vpop.f32.mrf.mxu1  ;;  %12995 = vmatmul.mubr.bf16.gmra.mxu1 %v16912_v41  ;;  %12169 = vmatmul.mubr.bf16.gmra.mxu0 %v16909_v20 }
 0x708   :  { %15530 = vmatprep.mubr.msk.bf16.mxu1 %vm28_vm3, %v16913_v12  ;;  %15399 = vmatprep.mubr.msk.bf16.mxu0 %vm28_vm3, %v16910_v29 }
 0x709   :  { %v11483_v21 = vpop.f32.mrf.mxu1 }
 0x70b   :  { %v20301_v1 = vpop.f32.mrf.mxu1 }
 0x70d   :  { %v11486_v16 = vpop.f32.mrf.mxu1 }
 0x70f   :  { %v20304_v40 = vpop.f32.mrf.mxu1  ;;  %13003 = vmatmul.mubr.bf16.gmra.mxu1 %v16915_v45  ;;  %12177 = vmatmul.mubr.bf16.gmra.mxu0 %v16912_v41  ;;  %v16933_v41 = vld [vmem:[#allocation3 + $0xc0] ss:$8 sps:$4 sm:$0xff]  }
 0x710   :  { %15531 = vmatprep.mubr.msk.bf16.mxu1 %vm28_vm3, %v16916_v32  ;;  %15400 = vmatprep.mubr.msk.bf16.mxu0 %vm28_vm3, %v16913_v12  ;;  %v16934_v12 = vld [vmem:[#allocation3 + $0xd4] ss:$8 sps:$4 sm:$0xff]  }
 0x711   :  { %v11491_v11 = vpop.f32.mrf.mxu1 }
 0x712   :  { %v16936_v11 = vld [vmem:[#allocation3 + $0xd0] ss:$8 sps:$4 sm:$0xff]  }
 0x713   :  { %v20307_v7 = vpop.f32.mrf.mxu1 }
 0x715   :  { %v11494_v34 = vpop.f32.mrf.mxu1 }
 0x716   :  { %v16937_v34 = vld [vmem:[#allocation3 + $0xe4] ss:$8 sps:$4 sm:$0xff]  }
 0x717   :  { %v20310_v59 = vpop.f32.mrf.mxu1  ;;  %13011 = vmatmul.mubr.bf16.gmra.mxu1 %v16918_v52  ;;  %12185 = vmatmul.mubr.bf16.gmra.mxu0 %v16915_v45 }
 0x718   :  { %15532 = vmatprep.mubr.msk.bf16.mxu1 %vm28_vm3, %v16919_v8  ;;  %15401 = vmatprep.mubr.msk.bf16.mxu0 %vm28_vm3, %v16916_v32 }
 0x719   :  { %v11499_v0 = vpop.f32.mrf.mxu1 }
 0x71b   :  { %v20313_v15 = vpop.f32.mrf.mxu1 }
 0x71d   :  { %v11502_v39 = vpop.f32.mrf.mxu1 }
 0x71f   :  { %v20316_v3 = vpop.f32.mrf.mxu1  ;;  %13019 = vmatmul.mubr.bf16.gmra.mxu1 %v16921_v47  ;;  %12193 = vmatmul.mubr.bf16.gmra.mxu0 %v16918_v52 }
 0x720   :  { %15533 = vmatprep.mubr.msk.bf16.mxu1 %vm28_vm3, %v16922_v23  ;;  %15402 = vmatprep.mubr.msk.bf16.mxu0 %vm28_vm3, %v16919_v8 }
 0x721   :  { %v11507_v56 = vpop.f32.mrf.mxu1 }
 0x723   :  { %v20319_v9 = vpop.f32.mrf.mxu1 }
 0x725   :  { %v11510_v27 = vpop.f32.mrf.mxu1 }
 0x727   :  { %v20322_v14 = vpop.f32.mrf.mxu1  ;;  %13027 = vmatmul.mubr.bf16.gmra.mxu1 %v16924_v6  ;;  %12201 = vmatmul.mubr.bf16.gmra.mxu0 %v16921_v47  ;;  %v16939_v47 = vld [vmem:[#allocation3 + $0xe0] ss:$8 sps:$4 sm:$0xff]  }
 0x728   :  { %15534 = vmatprep.mubr.msk.bf16.mxu1 %vm28_vm3, %v16925_v46  ;;  %15403 = vmatprep.mubr.msk.bf16.mxu0 %vm28_vm3, %v16922_v23  ;;  %v16940_v23 = vld [vmem:[#allocation3 + $0xf4] ss:$8 sps:$4 sm:$0xff]  }
 0x729   :  { %v11515_v53 = vpop.f32.mrf.mxu1 }
 0x72a   :  { %v16942_v53 = vld [vmem:[#allocation3 + $0xf0] ss:$8 sps:$4 sm:$0xff]  }
 0x72b   :  { %v20325_v19 = vpop.f32.mrf.mxu1 }
 0x72d   :  { %v11518_v60 = vpop.f32.mrf.mxu1 }
 0x72e   :  { %v16943_v60 = vld [vmem:[#allocation3 + $0x104] ss:$8 sps:$4 sm:$0xff]  }
 0x72f   :  { %v20328_v44 = vpop.f32.mrf.mxu1  ;;  %13035 = vmatmul.mubr.bf16.gmra.mxu1 %v16927_v54  ;;  %12209 = vmatmul.mubr.bf16.gmra.mxu0 %v16924_v6 }
 0x730   :  { %15535 = vmatprep.mubr.msk.bf16.mxu1 %vm28_vm3, %v16928_v10  ;;  %15404 = vmatprep.mubr.msk.bf16.mxu0 %vm28_vm3, %v16925_v46 }
 0x731   :  { %v11523_v38 = vpop.f32.mrf.mxu1 }
 0x732   :  { %v12422_v38 = vld [vmem:[#allocation3 + $0x108] sm:$0xff] }
 0x733   :  { %v20331_v24 = vpop.f32.mrf.mxu1 }
 0x735   :  { %v11526_v36 = vpop.f32.mrf.mxu1 }
 0x737   :  { %v20334_v20 = vpop.f32.mrf.mxu1  ;;  %13043 = vmatmul.mubr.bf16.gmra.mxu1 %v16930_v22  ;;  %12217 = vmatmul.mubr.bf16.gmra.mxu0 %v16927_v54 }
 0x738   :  { %15536 = vmatprep.mubr.msk.bf16.mxu1 %vm28_vm3, %v16931_v43  ;;  %15405 = vmatprep.mubr.msk.bf16.mxu0 %vm28_vm3, %v16928_v10 }
 0x739   :  { %v11531_v29 = vpop.f32.mrf.mxu1 }
 0x73b   :  { %v20337_v18 = vpop.f32.mrf.mxu1 }
 0x73d   :  { %v11534_v13 = vpop.f32.mrf.mxu1 }
 0x73f   :  { %v20340_v21 = vpop.f32.mrf.mxu1  ;;  %13051 = vmatmul.mubr.bf16.gmra.mxu1 %v16933_v41  ;;  %12225 = vmatmul.mubr.bf16.gmra.mxu0 %v16930_v22  ;;  %v12421_v22 = vld [vmem:[#allocation3 + $0x100] sm:$0xff] }
 0x740   :  { %15537 = vmatprep.mubr.msk.bf16.mxu1 %vm28_vm3, %v16934_v12  ;;  %15406 = vmatprep.mubr.msk.bf16.mxu0 %vm28_vm3, %v16931_v43  ;;  %v16945_v43 = vld [vmem:[#allocation3 + $0x114] ss:$8 sps:$4 sm:$0xff]   ;;  %v15478_v13 = vcombine.low %v12421_v22, %v12422_v38 }
 0x741   :  { %v11539_v16 = vpop.f32.mrf.mxu1  ;;  %v16956_v22 = vld [vmem:[#allocation3 + $0x154] ss:$8 sps:$4 sm:$0xff]  }
 0x742   :  { %v10146_v16 = vpop.permute.xlu0 %10145 }
 0x743   :  { %v20343_v45 = vpop.f32.mrf.mxu1  ;;  %10291 = vst.msk [vmem:[#allocation3 + $0x230] sm:$0xf] %vm1813_vm7, %v10146_v16 }
 0x745   :  { %v11542_v32 = vpop.f32.mrf.mxu1 }
 0x746   :  { %v16950_v32 = vld [vmem:[#allocation3 + $0x124] ss:$8 sps:$4 sm:$0xff]  }
 0x747   :  { %v20346_v52 = vpop.f32.mrf.mxu1  ;;  %13059 = vmatmul.mubr.bf16.gmra.mxu1 %v16936_v11  ;;  %12233 = vmatmul.mubr.bf16.gmra.mxu0 %v16933_v41  ;;  %v10148_v41 = vpop.permute.xlu1 %10147 }
 0x748   :  { %15538 = vmatprep.mubr.msk.bf16.mxu1 %vm28_vm3, %v16937_v34  ;;  %15407 = vmatprep.mubr.msk.bf16.mxu0 %vm28_vm3, %v16934_v12  ;;  %10292 = vst.msk [vmem:[#allocation3 + $0x238] sm:$0xf] %vm1813_vm7, %v10148_v41 }
 0x749   :  { %v11547_v8 = vpop.f32.mrf.mxu1 }
 0x74a   :  { %v16947_v8 = vld [vmem:[#allocation3 + $0x110] ss:$8 sps:$4 sm:$0xff]  }
 0x74b   :  { %v20349_v0 = vpop.f32.mrf.mxu1 }
 0x74d   :  { %v11550_v39 = vpop.f32.mrf.mxu1 }
 0x74f   :  { %v20352_v56 = vpop.f32.mrf.mxu1  ;;  %13067 = vmatmul.mubr.bf16.gmra.mxu1 %v16939_v47  ;;  %12241 = vmatmul.mubr.bf16.gmra.mxu0 %v16936_v11 }
 0x750   :  { %15539 = vmatprep.mubr.msk.bf16.mxu1 %vm28_vm3, %v16940_v23  ;;  %15408 = vmatprep.mubr.msk.bf16.mxu0 %vm28_vm3, %v16937_v34 }
 0x751   :  { %v11555_v27 = vpop.f32.mrf.mxu1 }
 0x752   :  { %v16952_v27 = vld [vmem:[#allocation3 + $0x120] ss:$8 sps:$4 sm:$0xff]  }
 0x753   :  { %v20355_v6 = vpop.f32.mrf.mxu1 }
 0x755   :  { %v11558_v46 = vpop.f32.mrf.mxu1 }
 0x757   :  { %v20358_v54 = vpop.f32.mrf.mxu1  ;;  %13075 = vmatmul.mubr.bf16.gmra.mxu1 %v16942_v53  ;;  %12249 = vmatmul.mubr.bf16.gmra.mxu0 %v16939_v47  ;;  %v16948_v47 = vld [vmem:[#allocation3 + $0x144] ss:$8 sps:$4 sm:$0xff]  }
 0x758   :  { %15540 = vmatprep.mubr.msk.bf16.mxu1 %vm28_vm3, %v16943_v60  ;;  %15409 = vmatprep.mubr.msk.bf16.mxu0 %vm28_vm3, %v16940_v23  ;;  %v16953_v60 = vld [vmem:[#allocation3 + $0x134] ss:$8 sps:$4 sm:$0xff]  }
 0x759   :  { %v11563_v10 = vpop.f32.mrf.mxu1 }
 0x75b   :  { %v20361_v36 = vpop.f32.mrf.mxu1 }
 0x75d   :  { %v11566_v29 = vpop.f32.mrf.mxu1 }
 0x75f   :  { %v20364_v12 = vpop.f32.mrf.mxu1  ;;  %13083 = vmatmul.mubr.bf16.gmra.mxu1 %v15478_v13  ;;  %12257 = vmatmul.mubr.bf16.gmra.mxu0 %v16942_v53  ;;  %v16955_v53 = vld [vmem:[#allocation3 + $0x140] ss:$8 sps:$4 sm:$0xff]   ;;  %v16958_v13 = vld [vmem:[#allocation3 + $0x130] ss:$8 sps:$4 sm:$0xff]  }
 0x760   :  { %15541 = vmatprep.mubr.msk.bf16.mxu1 %vm28_vm3, %v16945_v43  ;;  %15410 = vmatprep.mubr.msk.bf16.mxu0 %vm28_vm3, %v16950_v32  ;;  %v16959_v32 = vld [vmem:[#allocation3 + $0x150] ss:$8 sps:$4 sm:$0xff]  }
 0x761   :  { %v11571_v11 = vpop.f32.mrf.mxu1 }
 0x762   :  { %v16960_v11 = vld [vmem:[#allocation3 + $0x164] ss:$8 sps:$4 sm:$0xff]  }
 0x763   :  { %v20369_v34 = vpop.f32.mrf.mxu1 }
 0x764   :  { %20850 = vst [vmem:[#allocation27_spill] sm:$0xff] %v20369_v34  ;;  %v16984_v34 = vld [vmem:[#allocation3 + $0x1e4] ss:$8 sps:$4 sm:$0xff]  }
 0x765   :  { %v11574_v39 = vpop.f32.mrf.mxu1 }
 0x767   :  { %v20372_v23 = vpop.f32.mrf.mxu1  ;;  %13091 = vmatmul.mubr.bf16.gmra.mxu1 %v16947_v8  ;;  %12265 = vmatmul.mubr.bf16.gmra.mxu0 %v16952_v27 }
 0x768   :  { %20851 = vst [vmem:[#allocation28_spill] sm:$0xff] %v20372_v23  ;;  %15542 = vmatprep.mubr.msk.bf16.mxu1 %vm28_vm3, %v16948_v47  ;;  %15411 = vmatprep.mubr.msk.bf16.mxu0 %vm28_vm3, %v16953_v60  ;;  %v16962_v60 = vld [vmem:[#allocation3 + $0x160] ss:$8 sps:$4 sm:$0xff]  }
 0x769   :  { %v11579_v46 = vpop.f32.mrf.mxu1 }
 0x76b   :  { %v20375_v10 = vpop.f32.mrf.mxu1 }
 0x76c   :  { %20852 = vst [vmem:[#allocation29_spill] sm:$0xff] %v20375_v10 }
 0x76d   :  { %v11582_v38 = vpop.f32.mrf.mxu1 }
 0x76e   :  { %v16963_v38 = vld [vmem:[#allocation3 + $0x174] ss:$8 sps:$4 sm:$0xff]  }
 0x76f   :  { %v20378_v43 = vpop.f32.mrf.mxu1  ;;  %13099 = vmatmul.mubr.bf16.gmra.mxu1 %v16955_v53  ;;  %12273 = vmatmul.mubr.bf16.gmra.mxu0 %v16958_v13 }
 0x770   :  { %20853 = vst [vmem:[#allocation30_spill] sm:$0xff] %v20378_v43  ;;  %15543 = vmatprep.mubr.msk.bf16.mxu1 %vm28_vm3, %v16956_v22  ;;  %15412 = vmatprep.mubr.msk.bf16.mxu0 %vm28_vm3, %v16948_v47  ;;  %v16983_v43 = vld [vmem:[#allocation3 + $0x1d0] ss:$8 sps:$4 sm:$0xff]  }
 0x771   :  { %v11587_v29 = vpop.f32.mrf.mxu1 }
 0x773   :  { %v20381_v41 = vpop.f32.mrf.mxu1 }
 0x774   :  { %20854 = vst [vmem:[#allocation31_spill] sm:$0xff] %v20381_v41 }
 0x775   :  { %v11590_v16 = vpop.f32.mrf.mxu1 }
 0x777   :  { %v20384_v8 = vpop.f32.mrf.mxu1  ;;  %13107 = vmatmul.mubr.bf16.gmra.mxu1 %v16959_v32  ;;  %12281 = vmatmul.mubr.bf16.gmra.mxu0 %v16955_v53 }
 0x778   :  { %20855 = vst [vmem:[#allocation32_spill] sm:$0xff] %v20384_v8  ;;  %15544 = vmatprep.mubr.msk.bf16.mxu1 %vm28_vm3, %v16960_v11  ;;  %15413 = vmatprep.mubr.msk.bf16.mxu0 %vm28_vm3, %v16956_v22 }
 0x779   :  { %v11595_v39 = vpop.f32.mrf.mxu1 }
 0x77a   :  { %v16965_v39 = vld [vmem:[#allocation3 + $0x170] ss:$8 sps:$4 sm:$0xff]  }
 0x77b   :  { %v20387_v27 = vpop.f32.mrf.mxu1 }
 0x77c   :  { %20856 = vst [vmem:[#allocation33_spill] sm:$0xff] %v20387_v27  ;;  %v16966_v27 = vld [vmem:[#allocation3 + $0x184] ss:$8 sps:$4 sm:$0xff]  }
 0x77d   :  { %v11598_v46 = vpop.f32.mrf.mxu1 }
 0x77f   :  { %v20390_v29 = vpop.f32.mrf.mxu1  ;;  %13115 = vmatmul.mubr.bf16.gmra.mxu1 %v16962_v60  ;;  %12289 = vmatmul.mubr.bf16.gmra.mxu0 %v16959_v32 }
 0x780   :  { %20857 = vst [vmem:[#allocation34_spill] sm:$0xff] %v20390_v29  ;;  %15545 = vmatprep.mubr.msk.bf16.mxu1 %vm28_vm3, %v16963_v38  ;;  %15414 = vmatprep.mubr.msk.bf16.mxu0 %vm28_vm3, %v16960_v11  ;;  %v16968_v29 = vld [vmem:[#allocation3 + $0x180] ss:$8 sps:$4 sm:$0xff]  }
 0x781   :  { %v11603_v47 = vpop.f32.mrf.mxu1 }
 0x783   :  { %v20393_v13 = vpop.f32.mrf.mxu1 }
 0x784   :  { %20858 = vst [vmem:[#allocation35_spill] sm:$0xff] %v20393_v13  ;;  %v16969_v13 = vld [vmem:[#allocation3 + $0x194] ss:$8 sps:$4 sm:$0xff]  }
 0x785   :  { %v11606_v16 = vpop.f32.mrf.mxu1 }
 0x787   :  { %v20396_v53 = vpop.f32.mrf.mxu1  ;;  %13123 = vmatmul.mubr.bf16.gmra.mxu1 %v16965_v39  ;;  %12297 = vmatmul.mubr.bf16.gmra.mxu0 %v16962_v60 }
 0x788   :  { %20859 = vst [vmem:[#allocation5_spill] sm:$0xff] %v20396_v53  ;;  %15546 = vmatprep.mubr.msk.bf16.mxu1 %vm28_vm3, %v16966_v27  ;;  %15415 = vmatprep.mubr.msk.bf16.mxu0 %vm28_vm3, %v16963_v38  ;;  %v16971_v53 = vld [vmem:[#allocation3 + $0x190] ss:$8 sps:$4 sm:$0xff]  }
 0x789   :  { %v11611_v22 = vpop.f32.mrf.mxu1 }
 0x78b   :  { %v20399_v46 = vpop.f32.mrf.mxu1 }
 0x78c   :  { %20860 = vst [vmem:[#allocation6_spill] sm:$0xff] %v20399_v46  ;;  %v16972_v46 = vld [vmem:[#allocation3 + $0x1a4] ss:$8 sps:$4 sm:$0xff]  }
 0x78d   :  { %v11614_v47 = vpop.f32.mrf.mxu1 }
 0x78f   :  { %v20402_v32 = vpop.f32.mrf.mxu1  ;;  %13131 = vmatmul.mubr.bf16.gmra.mxu1 %v16968_v29  ;;  %12305 = vmatmul.mubr.bf16.gmra.mxu0 %v16965_v39 }
 0x790   :  { %20861 = vst [vmem:[#allocation7_spill] sm:$0xff] %v20402_v32  ;;  %15547 = vmatprep.mubr.msk.bf16.mxu1 %vm28_vm3, %v16969_v13  ;;  %15416 = vmatprep.mubr.msk.bf16.mxu0 %vm28_vm3, %v16966_v27  ;;  %v16974_v32 = vld [vmem:[#allocation3 + $0x1a0] ss:$8 sps:$4 sm:$0xff]  }
 0x791   :  { %v11619_v11 = vpop.f32.mrf.mxu1 }
 0x793   :  { %v20405_v16 = vpop.f32.mrf.mxu1 }
 0x794   :  { %20862 = vst [vmem:[#allocation8_spill] sm:$0xff] %v20405_v16  ;;  %v16975_v16 = vld [vmem:[#allocation3 + $0x1b4] ss:$8 sps:$4 sm:$0xff]  }
 0x795   :  { %v11622_v22 = vpop.f32.mrf.mxu1 }
 0x797   :  { %v20408_v60 = vpop.f32.mrf.mxu1  ;;  %13139 = vmatmul.mubr.bf16.gmra.mxu1 %v16971_v53  ;;  %12313 = vmatmul.mubr.bf16.gmra.mxu0 %v16968_v29 }
 0x798   :  { %20863 = vst [vmem:[#allocation9_spill] sm:$0xff] %v20408_v60  ;;  %15548 = vmatprep.mubr.msk.bf16.mxu1 %vm28_vm3, %v16972_v46  ;;  %15417 = vmatprep.mubr.msk.bf16.mxu0 %vm28_vm3, %v16969_v13  ;;  %v16977_v60 = vld [vmem:[#allocation3 + $0x1b0] ss:$8 sps:$4 sm:$0xff]  }
 0x799   :  { %v11627_v38 = vpop.f32.mrf.mxu1 }
 0x79b   :  { %v20411_v47 = vpop.f32.mrf.mxu1 }
 0x79c   :  { %20864 = vst [vmem:[#allocation10_spill] sm:$0xff] %v20411_v47  ;;  %v16978_v47 = vld [vmem:[#allocation3 + $0x1c4] ss:$8 sps:$4 sm:$0xff]  }
 0x79d   :  { %v11630_v11 = vpop.f32.mrf.mxu1 }
 0x79f   :  { %v20414_v39 = vpop.f32.mrf.mxu1  ;;  %13147 = vmatmul.mubr.bf16.gmra.mxu1 %v16974_v32  ;;  %12321 = vmatmul.mubr.bf16.gmra.mxu0 %v16971_v53  ;;  %v16980_v53 = vld [vmem:[#allocation3 + $0x1c0] ss:$8 sps:$4 sm:$0xff]  }
 0x7a0   :  { %20865 = vst [vmem:[#allocation11_spill] sm:$0xff] %v20414_v39  ;;  %15549 = vmatprep.mubr.msk.bf16.mxu1 %vm28_vm3, %v16975_v16  ;;  %15418 = vmatprep.mubr.msk.bf16.mxu0 %vm28_vm3, %v16972_v46 }
 0x7a1   :  { %v11635_v27 = vpop.f32.mrf.mxu1 }
 0x7a3   :  { %v20417_v22 = vpop.f32.mrf.mxu1 }
 0x7a4   :  { %20866 = vst [vmem:[#allocation12_spill] sm:$0xff] %v20417_v22 }
 0x7a5   :  { %v11638_v38 = vpop.f32.mrf.mxu1 }
 0x7a6   :  { %v16981_v38 = vld [vmem:[#allocation3 + $0x1d4] ss:$8 sps:$4 sm:$0xff]  }
 0x7a7   :  { %v20420_v29 = vpop.f32.mrf.mxu1  ;;  %13155 = vmatmul.mubr.bf16.gmra.mxu1 %v16977_v60  ;;  %v12138_v39 = vpop.f32.mrf.mxu0  ;;  %12329 = vmatmul.mubr.bf16.gmra.mxu0 %v16974_v32 }
 0x7a8   :  { %20867 = vst [vmem:[#allocation13_spill] sm:$0xff] %v20420_v29  ;;  %15550 = vmatprep.mubr.msk.bf16.mxu1 %vm28_vm3, %v16978_v47  ;;  %15419 = vmatprep.mubr.msk.bf16.mxu0 %vm28_vm3, %v16975_v16  ;;  %v12139_v46 = vadd.f32 %v12138_v39, %v20218_v28 }
 0x7a9   :  { %v11643_v13 = vpop.f32.mrf.mxu1  ;;  %v12140_v22 = vpop.f32.mrf.mxu0 }
 0x7aa   :  { %v20431_v13 = vld [vmem:[%s20737_s4 + $0x2] ss:$0 sm:$0xff] }
 0x7ab   :  { %v20423_v11 = vpop.f32.mrf.mxu1  ;;  %v12141_v8 = vpop.f32.mrf.mxu0 }
 0x7ac   :  { %20868 = vst [vmem:[#allocation14_spill] sm:$0xff] %v20423_v11  ;;  %v12142_v16 = vadd.f32 %v12141_v8, %v20221_v26 }
 0x7ad   :  { %v11646_v27 = vpop.f32.mrf.mxu1  ;;  %v12143_v32 = vpop.f32.mrf.mxu0 }
 0x7af   :  { %v12972_v41 = vpop.f32.mrf.mxu1  ;;  %13163 = vmatmul.mubr.bf16.gmra.mxu1 %v16980_v53  ;;  %v12146_v22 = vpop.f32.mrf.mxu0  ;;  %12337 = vmatmul.mubr.bf16.gmra.mxu0 %v16977_v60 }
 0x7b0   :  { %v13227_v29 = vadd.f32 %v12972_v41, %v12139_v46  ;;  %15551 = vmatprep.mubr.msk.bf16.mxu1 %vm28_vm3, %v16981_v38  ;;  %15420 = vmatprep.mubr.msk.bf16.mxu0 %vm28_vm3, %v16978_v47  ;;  %v12147_v10 = vadd.f32 %v12146_v22, %v20225_v63 }
 0x7b1   :  { %v12974_v11 = vpop.f32.mrf.mxu1  ;;  %v12148_v41 = vpop.f32.mrf.mxu0 }
 0x7b2   :  { %v13296_v28 = vadd.f32 %v20431_v13, %v13227_v29 }
 0x7b3   :  { %v12975_v27 = vpop.f32.mrf.mxu1  ;;  %v12149_v32 = vpop.f32.mrf.mxu0 }
 0x7b4   :  { %v13228_v39 = vadd.f32 %v12975_v27, %v12142_v16  ;;  %v13360_v26 = vmax.f32 %v13296_v28, 0.0  ;;  %v12150_v47 = vadd.f32 %v12149_v32, %v20228_v33 }
 0x7b5   :  { %v12977_v46 = vpop.f32.mrf.mxu1  ;;  %v12151_v29 = vpop.f32.mrf.mxu0 }
 0x7b6   :  { %v13297_v23 = vadd.f32 %v20431_v13, %v13228_v39  ;;  %v16987_v29 = vld [vmem:[#allocation3 + $0x1f4] ss:$8 sps:$4 sm:$0xff]  }
 0x7b7   :  { %v12980_v11 = vpop.f32.mrf.mxu1  ;;  %13171 = vmatmul.mubr.bf16.gmra.mxu1 %v16983_v43  ;;  %v12154_v41 = vpop.f32.mrf.mxu0  ;;  %12345 = vmatmul.mubr.bf16.gmra.mxu0 %v16980_v53 }
 0x7b8   :  { %v13361_v8 = vmax.f32 %v13297_v23, 0.0  ;;  %v13229_v60 = vadd.f32 %v12980_v11, %v12147_v10  ;;  %15552 = vmatprep.mubr.msk.bf16.mxu1 %vm28_vm3, %v16984_v34  ;;  %15421 = vmatprep.mubr.msk.bf16.mxu0 %vm28_vm3, %v16981_v38  ;;  %v16986_v23 = vld [vmem:[#allocation3 + $0x1e0] ss:$8 sps:$4 sm:$0xff]   ;;  %v12155_v10 = vadd.f32 %v12154_v41, %v20232_v62 }
 0x7b9   :  { %v12982_v16 = vpop.f32.mrf.mxu1  ;;  %v12156_v46 = vpop.f32.mrf.mxu0 }
 0x7ba   :  { %v20439_v27 = vpack.c.bf16 %v13361_v8, %v13360_v26  ;;  %v13298_v22 = vadd.f32 %v20431_v13, %v13229_v60 }
 0x7bb   :  { %v12983_v63 = vpop.f32.mrf.mxu1  ;;  %v12157_v26 = vpop.f32.mrf.mxu0 }
 0x7bc   :  { %20869 = vst [vmem:[#allocation15_spill] sm:$0xff] %v20439_v27  ;;  %v13230_v39 = vadd.f32 %v12983_v63, %v12150_v47  ;;  %v13362_v33 = vmax.f32 %v13298_v22, 0.0  ;;  %v12158_v38 = vadd.f32 %v12157_v26, %v20235_v37 }
 0x7bd   :  { %v12985_v28 = vpop.f32.mrf.mxu1  ;;  %v12159_v60 = vpop.f32.mrf.mxu0 }
 0x7be   :  { %v13299_v11 = vadd.f32 %v20431_v13, %v13230_v39  ;;  %v16989_v28 = vld [vmem:[#allocation3 + $0x1f0] ss:$8 sps:$4 sm:$0xff]  }
 0x7bf   :  { %v12988_v8 = vpop.f32.mrf.mxu1  ;;  %13179 = vmatmul.mubr.bf16.gmra.mxu1 %v16986_v23  ;;  %v12162_v63 = vpop.f32.mrf.mxu0  ;;  %12353 = vmatmul.mubr.bf16.gmra.mxu0 %v16983_v43 }
 0x7c0   :  { %v13363_v32 = vmax.f32 %v13299_v11, 0.0  ;;  %v13231_v53 = vadd.f32 %v12988_v8, %v12155_v10  ;;  %15553 = vmatprep.mubr.msk.bf16.mxu1 %vm28_vm3, %v16987_v29  ;;  %15422 = vmatprep.mubr.msk.bf16.mxu0 %vm28_vm3, %v16984_v34  ;;  %v12163_v10 = vadd.f32 %v12162_v63, %v20239_v31  ;;  %v16990_v8 = vld [vmem:[#allocation3 + $0x204] ss:$8 sps:$4 sm:$0xff]  }
 0x7c1   :  { %v12990_v16 = vpop.f32.mrf.mxu1  ;;  %v12164_v46 = vpop.f32.mrf.mxu0 }
 0x7c2   :  { %v20447_v47 = vpack.c.bf16 %v13363_v32, %v13362_v33  ;;  %v13300_v41 = vadd.f32 %v20431_v13, %v13231_v53  ;;  %v16992_v46 = vld [vmem:[#allocation3 + $0x200] ss:$8 sps:$4 sm:$0xff]  }
 0x7c3   :  { %v12991_v62 = vpop.f32.mrf.mxu1  ;;  %v12165_v33 = vpop.f32.mrf.mxu0 }
 0x7c4   :  { %20870 = vst [vmem:[#allocation16_spill] sm:$0xff] %v20447_v47  ;;  %v13232_v39 = vadd.f32 %v12991_v62, %v12158_v38  ;;  %v13364_v37 = vmax.f32 %v13300_v41, 0.0  ;;  %v12166_v34 = vadd.f32 %v12165_v33, %v20242_v50 }
 0x7c5   :  { %v12993_v22 = vpop.f32.mrf.mxu1  ;;  %v12167_v53 = vpop.f32.mrf.mxu0 }
 0x7c6   :  { %v13301_v11 = vadd.f32 %v20431_v13, %v13232_v39 }
 0x7c7   :  { %v12996_v32 = vpop.f32.mrf.mxu1  ;;  %13187 = vmatmul.mubr.bf16.gmra.mxu1 %v16989_v28  ;;  %v12170_v38 = vpop.f32.mrf.mxu0  ;;  %12361 = vmatmul.mubr.bf16.gmra.mxu0 %v16986_v23 }
 0x7c8   :  { %v13365_v26 = vmax.f32 %v13301_v11, 0.0  ;;  %v13233_v43 = vadd.f32 %v12996_v32, %v12163_v10  ;;  %15554 = vmatprep.mubr.msk.bf16.mxu1 %vm28_vm3, %v16990_v8  ;;  %15423 = vmatprep.mubr.msk.bf16.mxu0 %vm28_vm3, %v16987_v29  ;;  %v12171_v22 = vadd.f32 %v12170_v38, %v20246_v49  ;;  %v16993_v11 = vld [vmem:[#allocation3 + $0x214] ss:$8 sps:$4 sm:$0xff]  }
 0x7c9   :  { %v12998_v60 = vpop.f32.mrf.mxu1  ;;  %v12172_v39 = vpop.f32.mrf.mxu0 }
 0x7ca   :  { %v20455_v16 = vpack.c.bf16 %v13365_v26, %v13364_v37  ;;  %v13302_v63 = vadd.f32 %v20431_v13, %v13233_v43 }
 0x7cb   :  { %v12999_v31 = vpop.f32.mrf.mxu1  ;;  %v12173_v32 = vpop.f32.mrf.mxu0 }
 0x7cc   :  { %v13234_v62 = vadd.f32 %v12999_v31, %v12166_v34  ;;  %v13366_v50 = vmax.f32 %v13302_v63, 0.0  ;;  %v12174_v29 = vadd.f32 %v12173_v32, %v20249_v57 }
 0x7cd   :  { %v13001_v41 = vpop.f32.mrf.mxu1  ;;  %v12175_v26 = vpop.f32.mrf.mxu0 }
 0x7ce   :  { %v13303_v10 = vadd.f32 %v20431_v13, %v13234_v62  ;;  %v16995_v62 = vld [vmem:[#allocation3 + $0x210] ss:$8 sps:$4 sm:$0xff]   ;;  %v12454_v26 = vld [vmem:[#allocation3 + $0x228] sm:$0xff] }
 0x7cf   :  { %v13004_v37 = vpop.f32.mrf.mxu1  ;;  %13195 = vmatmul.mubr.bf16.gmra.mxu1 %v16992_v46  ;;  %v12178_v60 = vpop.f32.mrf.mxu0  ;;  %12369 = vmatmul.mubr.bf16.gmra.mxu0 %v16989_v28 }
 0x7d0   :  { %v13367_v33 = vmax.f32 %v13303_v10, 0.0  ;;  %v13235_v23 = vadd.f32 %v13004_v37, %v12171_v22  ;;  %15555 = vmatprep.mubr.msk.bf16.mxu1 %vm28_vm3, %v16993_v11  ;;  %15424 = vmatprep.mubr.msk.bf16.mxu0 %vm28_vm3, %v16990_v8  ;;  %v12179_v39 = vadd.f32 %v12178_v60, %v20253_v61  ;;  %v16996_v22 = vld [vmem:[#allocation3 + $0x224] ss:$8 sps:$4 sm:$0xff]  }
 0x7d1   :  { %v13006_v43 = vpop.f32.mrf.mxu1  ;;  %v12180_v31 = vpop.f32.mrf.mxu0  ;;  %v12453_v60 = vld [vmem:[#allocation3 + $0x220] sm:$0xff] }
 0x7d2   :  { %v20463_v53 = vpack.c.bf16 %v13367_v33, %v13366_v50  ;;  %v13304_v34 = vadd.f32 %v20431_v13, %v13235_v23 }
 0x7d3   :  { %v13007_v49 = vpop.f32.mrf.mxu1  ;;  %v12181_v10 = vpop.f32.mrf.mxu0 }
 0x7d4   :  { %v13236_v38 = vadd.f32 %v13007_v49, %v12174_v29  ;;  %v13368_v57 = vmax.f32 %v13304_v34, 0.0  ;;  %v12182_v8 = vadd.f32 %v12181_v10, %v20256_v58  ;;  %v16998_v34 = vld [vmem:[#allocation3 + $0x234] ss:$8 sps:$4 sm:$0xff]  }
 0x7d5   :  { %v13009_v63 = vpop.f32.mrf.mxu1  ;;  %v12183_v50 = vpop.f32.mrf.mxu0 }
 0x7d6   :  { %v13305_v41 = vadd.f32 %v20431_v13, %v13236_v38  ;;  %v15510_v63 = vcombine.low %v12453_v60, %v12454_v26 }
 0x7d7   :  { %v13012_v37 = vpop.f32.mrf.mxu1  ;;  %13203 = vmatmul.mubr.bf16.gmra.mxu1 %v16995_v62  ;;  %v12186_v43 = vpop.f32.mrf.mxu0  ;;  %12377 = vmatmul.mubr.bf16.gmra.mxu0 %v16992_v46 }
 0x7d8   :  { %v13369_v32 = vmax.f32 %v13305_v41, 0.0  ;;  %v13237_v28 = vadd.f32 %v13012_v37, %v12179_v39  ;;  %15556 = vmatprep.mubr.msk.bf16.mxu1 %vm28_vm3, %v16996_v22  ;;  %15425 = vmatprep.mubr.msk.bf16.mxu0 %vm28_vm3, %v16993_v11  ;;  %v12187_v39 = vadd.f32 %v12186_v43, %v20261_v48  ;;  %v17000_v48 = vld [vmem:[#allocation3 + $0x230] ss:$8 sps:$4 sm:$0xff]  }
 0x7d9   :  { %v13014_v33 = vpop.f32.mrf.mxu1  ;;  %v12188_v38 = vpop.f32.mrf.mxu0 }
 0x7da   :  { %v20471_v23 = vpack.c.bf16 %v13369_v32, %v13368_v57  ;;  %v13306_v29 = vadd.f32 %v20431_v13, %v13237_v28 }
 0x7db   :  { %v13015_v61 = vpop.f32.mrf.mxu1  ;;  %v12189_v22 = vpop.f32.mrf.mxu0 }
 0x7dc   :  { %v13238_v49 = vadd.f32 %v13015_v61, %v12182_v8  ;;  %v13370_v10 = vmax.f32 %v13306_v29, 0.0  ;;  %v12190_v11 = vadd.f32 %v12189_v22, %v20265_v51 }
 0x7dd   :  { %v13017_v31 = vpop.f32.mrf.mxu1  ;;  %v12191_v57 = vpop.f32.mrf.mxu0 }
 0x7de   :  { %v13307_v41 = vadd.f32 %v20431_v13, %v13238_v49 }
 0x7df   :  { %v13020_v58 = vpop.f32.mrf.mxu1  ;;  %13211 = vmatmul.mubr.bf16.gmra.mxu1 %v15510_v63  ;;  %v12194_v50 = vpop.f32.mrf.mxu0  ;;  %12385 = vmatmul.mubr.bf16.gmra.mxu0 %v16995_v62 }
 0x7e0   :  { %v13371_v46 = vmax.f32 %v13307_v41, 0.0  ;;  %v13239_v37 = vadd.f32 %v13020_v58, %v12187_v39  ;;  %15557 = vmatprep.mubr.msk.bf16.mxu1 %vm28_vm3, %v16998_v34  ;;  %v12195_v29 = vadd.f32 %v12194_v50, %v20270_v35 }
 0x7e1   :  { %v13022_v32 = vpop.f32.mrf.mxu1  ;;  %v12196_v43 = vpop.f32.mrf.mxu0 }
 0x7e2   :  { %v20479_v28 = vpack.c.bf16 %v13371_v46, %v13370_v10  ;;  %v13308_v8 = vadd.f32 %v20431_v13, %v13239_v37 }
 0x7e3   :  { %v13023_v33 = vpop.f32.mrf.mxu1  ;;  %v12197_v49 = vpop.f32.mrf.mxu0 }
 0x7e4   :  { %v13240_v26 = vadd.f32 %v13023_v33, %v12190_v11  ;;  %v13372_v38 = vmax.f32 %v13308_v8, 0.0  ;;  %v12198_v41 = vadd.f32 %v12197_v49, %v20275_v55 }
 0x7e5   :  { %v13025_v61 = vpop.f32.mrf.mxu1  ;;  %v12199_v51 = vpop.f32.mrf.mxu0 }
 0x7e6   :  { %v13309_v60 = vadd.f32 %v20431_v13, %v13240_v26 }
 0x7e7   :  { %v13028_v34 = vpop.f32.mrf.mxu1  ;;  %13219 = vmatmul.mubr.bf16.gmra.mxu1 %v17000_v48  ;;  %v12202_v22 = vpop.f32.mrf.mxu0 }
 0x7e8   :  { %v13373_v31 = vmax.f32 %v13309_v60, 0.0  ;;  %v13241_v63 = vadd.f32 %v13028_v34, %v12195_v29  ;;  %v12203_v57 = vadd.f32 %v12202_v22, %v20280_v17 }
 0x7e9   :  { %v13030_v39 = vpop.f32.mrf.mxu1  ;;  %v12204_v35 = vpop.f32.mrf.mxu0 }
 0x7ea   :  { %v20485_v62 = vpack.c.bf16 %v13373_v31, %v13372_v38  ;;  %v13310_v10 = vadd.f32 %v20431_v13, %v13241_v63 }
 0x7eb   :  { %v13031_v58 = vpop.f32.mrf.mxu1  ;;  %v12205_v11 = vpop.f32.mrf.mxu0 }
 0x7ec   :  { %v13242_v46 = vadd.f32 %v13031_v58, %v12198_v41  ;;  %v13374_v33 = vmax.f32 %v13310_v10, 0.0  ;;  %v12206_v55 = vadd.f32 %v12205_v11, %v20283_v5 }
 0x7ed   :  { %v13033_v37 = vpop.f32.mrf.mxu1  ;;  %v12207_v26 = vpop.f32.mrf.mxu0 }
 0x7ee   :  { %v13311_v32 = vadd.f32 %v20431_v13, %v13242_v46 }
 0x7ef   :  { %v13036_v50 = vpop.f32.mrf.mxu1  ;;  %v12210_v29 = vpop.f32.mrf.mxu0 }
 0x7f0   :  { %v13375_v48 = vmax.f32 %v13311_v32, 0.0  ;;  %v13243_v8 = vadd.f32 %v13036_v50, %v12203_v57  ;;  %v12211_v31 = vadd.f32 %v12210_v29, %v20286_v2 }
 0x7f1   :  { %v13038_v43 = vpop.f32.mrf.mxu1  ;;  %v12212_v38 = vpop.f32.mrf.mxu0 }
 0x7f2   :  { %v20491_v61 = vpack.c.bf16 %v13375_v48, %v13374_v33  ;;  %v13312_v49 = vadd.f32 %v20431_v13, %v13243_v8 }
 0x7f3   :  { %v13039_v60 = vpop.f32.mrf.mxu1  ;;  %v12213_v51 = vpop.f32.mrf.mxu0 }
 0x7f4   :  { %v13244_v34 = vadd.f32 %v13039_v60, %v12206_v55  ;;  %v13376_v41 = vmax.f32 %v13312_v49, 0.0  ;;  %v12214_v5 = vadd.f32 %v12213_v51, %v20289_v4 }
 0x7f5   :  { %v13041_v17 = vpop.f32.mrf.mxu1  ;;  %v12215_v10 = vpop.f32.mrf.mxu0 }
 0x7f6   :  { %v13313_v63 = vadd.f32 %v20431_v13, %v13244_v34 }
 0x7f7   :  { %v13044_v39 = vpop.f32.mrf.mxu1  ;;  %v12218_v37 = vpop.f32.mrf.mxu0 }
 0x7f8   :  { %v13377_v22 = vmax.f32 %v13313_v63, 0.0  ;;  %v13245_v58 = vadd.f32 %v13044_v39, %v12211_v31  ;;  %v12219_v33 = vadd.f32 %v12218_v37, %v20292_v25 }
 0x7f9   :  { %v13046_v46 = vpop.f32.mrf.mxu1  ;;  %v12220_v50 = vpop.f32.mrf.mxu0 }
 0x7fa   :  { %v20497_v35 = vpack.c.bf16 %v13377_v22, %v13376_v41  ;;  %v13314_v32 = vadd.f32 %v20431_v13, %v13245_v58 }
 0x7fb   :  { %v13047_v57 = vpop.f32.mrf.mxu1  ;;  %v12221_v8 = vpop.f32.mrf.mxu0 }
 0x7fc   :  { %20871 = vst [vmem:[#allocation17_spill] sm:$0xff] %v20497_v35  ;;  %v13246_v11 = vadd.f32 %v13047_v57, %v12214_v5  ;;  %v13378_v43 = vmax.f32 %v13314_v32, 0.0  ;;  %v12222_v4 = vadd.f32 %v12221_v8, %v20295_v30 }
 0x7fd   :  { %v13049_v2 = vpop.f32.mrf.mxu1  ;;  %v12223_v60 = vpop.f32.mrf.mxu0 }
 0x7fe   :  { %v13315_v48 = vadd.f32 %v20431_v13, %v13246_v11 }
 0x7ff   :  { %v13052_v26 = vpop.f32.mrf.mxu1  ;;  %v20506_v38 = vpop.f32.mrf.mxu0 }
 0x800   :  { %v13379_v55 = vmax.f32 %v13315_v48, 0.0  ;;  %v13247_v29 = vadd.f32 %v13052_v26, %v12219_v33 }
 0x801   :  { %v13054_v49 = vpop.f32.mrf.mxu1  ;;  %v12228_v25 = vpop.f32.mrf.mxu0 }
 0x802   :  { %v20503_v34 = vpack.c.bf16 %v13379_v55, %v13378_v43  ;;  %v13316_v31 = vadd.f32 %v20431_v13, %v13247_v29 }
 0x803   :  { %v13055_v17 = vpop.f32.mrf.mxu1  ;;  %v20510_v41 = vpop.f32.mrf.mxu0 }
 0x804   :  { %v13248_v63 = vadd.f32 %v13055_v17, %v12222_v4  ;;  %v13380_v58 = vmax.f32 %v13316_v31, 0.0 }
 0x805   :  { %v13057_v51 = vpop.f32.mrf.mxu1  ;;  %v12231_v46 = vpop.f32.mrf.mxu0 }
 0x806   :  { %v13317_v39 = vadd.f32 %v20431_v13, %v13248_v63 }
 0x807   :  { %v20512_v22 = vpop.f32.mrf.mxu1  ;;  %v20516_v30 = vpop.f32.mrf.mxu0 }
 0x808   :  { %v13381_v10 = vmax.f32 %v13317_v39, 0.0 }
 0x809   :  { %v13062_v5 = vpop.f32.mrf.mxu1  ;;  %v12236_v32 = vpop.f32.mrf.mxu0 }
 0x80a   :  { %v20514_v37 = vpack.c.bf16 %v13381_v10, %v13380_v58 }
 0x80b   :  { %v20518_v57 = vpop.f32.mrf.mxu1  ;;  %v20520_v50 = vpop.f32.mrf.mxu0 }
 0x80d   :  { %v13065_v11 = vpop.f32.mrf.mxu1  ;;  %v12239_v33 = vpop.f32.mrf.mxu0 }
 0x80f   :  { %v20522_v2 = vpop.f32.mrf.mxu1  ;;  %v12242_v8 = vpop.f32.mrf.mxu0 }
 0x811   :  { %v13070_v48 = vpop.f32.mrf.mxu1  ;;  %v12244_v43 = vpop.f32.mrf.mxu0 }
 0x813   :  { %v20524_v26 = vpop.f32.mrf.mxu1  ;;  %v12245_v29 = vpop.f32.mrf.mxu0 }
 0x815   :  { %v13073_v55 = vpop.f32.mrf.mxu1  ;;  %v12247_v49 = vpop.f32.mrf.mxu0 }
 0x817   :  { %v13076_v60 = vpop.f32.mrf.mxu1  ;;  %v12250_v17 = vpop.f32.mrf.mxu0 }
 0x818   :  { %v12251_v49 = vadd.f32 %v12250_v17, %v20316_v3 }
 0x819   :  { %v13078_v4 = vpop.f32.mrf.mxu1  ;;  %v12252_v63 = vpop.f32.mrf.mxu0 }
 0x81b   :  { %v13079_v31 = vpop.f32.mrf.mxu1  ;;  %v12253_v51 = vpop.f32.mrf.mxu0 }
 0x81c   :  { %v12254_v33 = vadd.f32 %v12253_v51, %v20319_v9 }
 0x81d   :  { %v13081_v25 = vpop.f32.mrf.mxu1  ;;  %v12255_v58 = vpop.f32.mrf.mxu0 }
 0x81f   :  { %v13084_v39 = vpop.f32.mrf.mxu1  ;;  %v12258_v46 = vpop.f32.mrf.mxu0 }
 0x820   :  { %v12259_v48 = vadd.f32 %v12258_v46, %v20322_v14  ;;  %v13255_v35 = vadd.f32 %v13084_v39, %v12251_v49  ;;  %v12246_v14 = vadd.f32 %v12245_v29, %v20313_v15  ;;  %v12243_v39 = vadd.f32 %v12242_v8, %v20310_v59 }
 0x821   :  { %v13086_v10 = vpop.f32.mrf.mxu1  ;;  %v12260_v32 = vpop.f32.mrf.mxu0 }
 0x822   :  { %v13324_v3 = vadd.f32 %v20431_v13, %v13255_v35  ;;  %v13253_v15 = vadd.f32 %v13076_v60, %v12243_v39 }
 0x823   :  { %v13087_v5 = vpop.f32.mrf.mxu1  ;;  %v12261_v43 = vpop.f32.mrf.mxu0 }
 0x824   :  { %v13256_v4 = vadd.f32 %v13087_v5, %v12254_v33  ;;  %v12262_v58 = vadd.f32 %v12261_v43, %v20325_v19  ;;  %v13254_v19 = vadd.f32 %v13079_v31, %v12246_v14  ;;  %v13388_v29 = vmax.f32 %v13324_v3, 0.0 }
 0x825   :  { %v13089_v11 = vpop.f32.mrf.mxu1  ;;  %v12263_v63 = vpop.f32.mrf.mxu0  ;;  %v13484_v31 = vsel %vm28_vm3, %v20491_v61, 0 }
 0x826   :  { %v13325_v32 = vadd.f32 %v20431_v13, %v13256_v4 }
 0x827   :  { %v13092_v55 = vpop.f32.mrf.mxu1  ;;  %v12266_v10 = vpop.f32.mrf.mxu0 }
 0x828   :  { %v13257_v27 = vadd.f32 %v13092_v55, %v12259_v48  ;;  %v12267_v17 = vadd.f32 %v12266_v10, %v20328_v44  ;;  %v13389_v43 = vmax.f32 %v13325_v32, 0.0  ;;  %v20541_v44 = vld [vmem:[%s20738_s5] sm:$0x1] }
 0x829   :  { %v13094_v25 = vpop.f32.mrf.mxu1  ;;  %v12268_v51 = vpop.f32.mrf.mxu0  ;;  %16258 = vmatprep.mubr.msk.bf16.mxu0 %vm28_vm3, %v20541_v44 }
 0x82a   :  { %v13326_v11 = vadd.f32 %v20431_v13, %v13257_v27  ;;  %v13323_v25 = vadd.f32 %v20431_v13, %v13254_v19  ;;  %v13439_v60 = vpack.c.bf16 %v13389_v43, %v13388_v29  ;;  %v12235_v51 = vadd.f32 %v20516_v30, %v20304_v40 }
 0x82b   :  { %v13095_v47 = vpop.f32.mrf.mxu1  ;;  %v12269_v33 = vpop.f32.mrf.mxu0  ;;  %v13481_v40 = vsel %vm28_vm3, %v20485_v62, 0  ;;  %v12227_v62 = vadd.f32 %v20506_v38, %v20298_v42  ;;  %v13478_v42 = vsel %vm28_vm3, %v20479_v28, 0 }
 0x82c   :  { %v13258_v9 = vadd.f32 %v13095_v47, %v12262_v58  ;;  %v13390_v55 = vmax.f32 %v13326_v11, 0.0  ;;  %v12270_v35 = vadd.f32 %v12269_v33, %v20331_v24  ;;  %v12238_v24 = vadd.f32 %v20520_v50, %v20307_v7 }
 0x82d   :  { %v13097_v46 = vpop.f32.mrf.mxu1  ;;  %v12271_v47 = vpop.f32.mrf.mxu0 }
 0x82e   :  { %v13327_v5 = vadd.f32 %v20431_v13, %v13258_v9  ;;  %v13322_v9 = vadd.f32 %v20431_v13, %v13253_v15  ;;  %v13252_v46 = vadd.f32 %v20524_v26, %v12238_v24  ;;  %v12230_v15 = vadd.f32 %v20510_v41, %v20301_v1 }
 0x82f   :  { %v13100_v48 = vpop.f32.mrf.mxu1  ;;  %v12274_v59 = vpop.f32.mrf.mxu0  ;;  %v13249_v24 = vadd.f32 %v20512_v22, %v12227_v62 }
 0x830   :  { %v13391_v49 = vmax.f32 %v13327_v5, 0.0  ;;  %v13259_v27 = vadd.f32 %v13100_v48, %v12267_v17  ;;  %v12275_v61 = vadd.f32 %v12274_v59, %v20334_v20  ;;  %v13387_v5 = vmax.f32 %v13323_v25, 0.0 }
 0x831   :  { %v13102_v4 = vpop.f32.mrf.mxu1  ;;  %v12276_v32 = vpop.f32.mrf.mxu0  ;;  %v13251_v48 = vadd.f32 %v20522_v2, %v12235_v51  ;;  %v13386_v20 = vmax.f32 %v13322_v9, 0.0  ;;  %v13321_v30 = vadd.f32 %v20431_v13, %v13252_v46  ;;  %v13250_v59 = vadd.f32 %v20518_v57, %v12230_v15 }
 0x832   :  { %v13440_v63 = vpack.c.bf16 %v13391_v49, %v13390_v55  ;;  %v13328_v58 = vadd.f32 %v20431_v13, %v13259_v27  ;;  %v13318_v22 = vadd.f32 %v20431_v13, %v13249_v24 }
 0x833   :  { %v13103_v8 = vpop.f32.mrf.mxu1  ;;  %v12277_v3 = vpop.f32.mrf.mxu0  ;;  %v13438_v26 = vpack.c.bf16 %v13387_v5, %v13386_v20  ;;  %v13385_v25 = vmax.f32 %v13321_v30, 0.0  ;;  %v13319_v38 = vadd.f32 %v20431_v13, %v13250_v59 }
 0x834   :  { %v13260_v10 = vadd.f32 %v13103_v8, %v12270_v35  ;;  %16368 = vmatprep.subr.msk.bf16.mxu0 %vm28_vm3, %v13440_v63  ;;  %v13392_v7 = vmax.f32 %v13328_v58, 0.0  ;;  %v12278_v55 = vadd.f32 %v12277_v3, %v20337_v18  ;;  %v13320_v63 = vadd.f32 %v20431_v13, %v13251_v48 }
 0x835   :  { %v13105_v11 = vpop.f32.mrf.mxu1  ;;  %16243 = vmatpush3.bf16.xpose.msra.mxu0 %v13484_v31  ;;  %v12279_v19 = vpop.f32.mrf.mxu0  ;;  %v13383_v28 = vmax.f32 %v13319_v38, 0.0  ;;  %v13382_v20 = vmax.f32 %v13318_v22, 0.0  ;;  %v13469_v22 = vsel %vm28_vm3, %v20455_v16, 0  ;;  %v20872_v16 = vld [vmem:[#allocation27_spill] sm:$0xff] }
 0x836   :  { %v13329_v14 = vadd.f32 %v20431_v13, %v13260_v10  ;;  %16369 = vmatprep.subr.msk.bf16.mxu0 %vm28_vm3, %v13439_v60 }
 0x837   :  { %v13108_v17 = vpop.f32.mrf.mxu1  ;;  %v12282_v49 = vpop.f32.mrf.mxu0 }
 0x838   :  { %v13393_v50 = vmax.f32 %v13329_v14, 0.0  ;;  %v13261_v39 = vadd.f32 %v13108_v17, %v12275_v61  ;;  %v12283_v18 = vadd.f32 %v12282_v49, %v20340_v21  ;;  %v13384_v21 = vmax.f32 %v13320_v63, 0.0 }
 0x839   :  { %v13110_v33 = vpop.f32.mrf.mxu1  ;;  %v12284_v2 = vpop.f32.mrf.mxu0 }
 0x83a   :  { %v20560_v43 = vpack.c.bf16 %v13393_v50, %v13392_v7  ;;  %v13330_v47 = vadd.f32 %v20431_v13, %v13261_v39  ;;  %v13437_v57 = vpack.c.bf16 %v13385_v25, %v13384_v21 }
 0x83b   :  { %v13111_v27 = vpop.f32.mrf.mxu1  ;;  %v12285_v8 = vpop.f32.mrf.mxu0 }
 0x83c   :  { %v13262_v4 = vadd.f32 %v13111_v27, %v12278_v55  ;;  %v13394_v1 = vmax.f32 %v13330_v47, 0.0  ;;  %v12286_v11 = vadd.f32 %v12285_v8, %v20343_v45  ;;  %v13475_v47 = vsel %vm28_vm3, %v20471_v23, 0 }
 0x83d   :  { %v13113_v29 = vpop.f32.mrf.mxu1  ;;  %16245 = vmatpush3.bf16.xpose.msra.mxu0 %v13481_v40  ;;  %v12287_v58 = vpop.f32.mrf.mxu0 }
 0x83e   :  { %v13331_v35 = vadd.f32 %v20431_v13, %v13262_v4  ;;  %16370 = vmatprep.subr.msk.bf16.mxu0 %vm28_vm3, %v13438_v26 }
 0x83f   :  { %v13116_v31 = vpop.f32.mrf.mxu1  ;;  %v12290_v9 = vpop.f32.mrf.mxu0 }
 0x840   :  { %v13395_v41 = vmax.f32 %v13331_v35, 0.0  ;;  %v13263_v60 = vadd.f32 %v13116_v31, %v12283_v18  ;;  %v12291_v17 = vadd.f32 %v12290_v9, %v20346_v52  ;;  %v13436_v52 = vpack.c.bf16 %v13383_v28, %v13382_v20 }
 0x841   :  { %v13118_v10 = vpop.f32.mrf.mxu1  ;;  %v12292_v46 = vpop.f32.mrf.mxu0 }
 0x842   :  { %v20577_v32 = vpack.c.bf16 %v13395_v41, %v13394_v1  ;;  %v13332_v14 = vadd.f32 %v20431_v13, %v13263_v60  ;;  %v13472_v60 = vsel %vm28_vm3, %v20463_v53, 0 }
 0x843   :  { %v13119_v61 = vpop.f32.mrf.mxu1  ;;  %v12293_v5 = vpop.f32.mrf.mxu0 }
 0x844   :  { %v13264_v51 = vadd.f32 %v13119_v61, %v12286_v11  ;;  %v13396_v50 = vmax.f32 %v13332_v14, 0.0  ;;  %v12294_v49 = vadd.f32 %v12293_v5, %v20349_v0 }
 0x845   :  { %v13121_v3 = vpop.f32.mrf.mxu1  ;;  %16247 = vmatpush3.bf16.xpose.msra.mxu0 %v13478_v42  ;;  %v12295_v33 = vpop.f32.mrf.mxu0 }
 0x846   :  { %v13333_v45 = vadd.f32 %v20431_v13, %v13264_v51  ;;  %16371 = vmatprep.subr.msk.bf16.mxu0 %vm28_vm3, %v13437_v57 }
 0x847   :  { %v13124_v7 = vpop.f32.mrf.mxu1  ;;  %v12298_v27 = vpop.f32.mrf.mxu0 }
 0x848   :  { %v13397_v39 = vmax.f32 %v13333_v45, 0.0  ;;  %v13265_v19 = vadd.f32 %v13124_v7, %v12291_v17  ;;  %v12299_v2 = vadd.f32 %v12298_v27, %v20352_v56 }
 0x849   :  { %v13126_v48 = vpop.f32.mrf.mxu1  ;;  %v12300_v4 = vpop.f32.mrf.mxu0 }
 0x84a   :  { %v20588_v55 = vpack.c.bf16 %v13397_v39, %v13396_v50  ;;  %v13334_v30 = vadd.f32 %v20431_v13, %v13265_v19 }
 0x84b   :  { %v13127_v40 = vpop.f32.mrf.mxu1  ;;  %v12301_v63 = vpop.f32.mrf.mxu0 }
 0x84c   :  { %v13266_v26 = vadd.f32 %v13127_v40, %v12294_v49  ;;  %v13398_v18 = vmax.f32 %v13334_v30, 0.0  ;;  %v12302_v23 = vadd.f32 %v12301_v63, %v20355_v6 }
 0x84d   :  { %v13129_v15 = vpop.f32.mrf.mxu1  ;;  %16249 = vmatpush3.bf16.xpose.msra.mxu0 %v13475_v47  ;;  %v12303_v59 = vpop.f32.mrf.mxu0  ;;  %v20874_v47 = vld [vmem:[#allocation28_spill] sm:$0xff] }
 0x84e   :  { %v13335_v29 = vadd.f32 %v20431_v13, %v13266_v26  ;;  %16372 = vmatprep.subr.msk.bf16.mxu0 %vm28_vm3, %v13436_v52  ;;  %v20873_v52 = vld [vmem:[#allocation16_spill] sm:$0xff] }
 0x84f   :  { %v13132_v0 = vpop.f32.mrf.mxu1  ;;  %v12306_v25 = vpop.f32.mrf.mxu0  ;;  %v13466_v30 = vsel %vm28_vm3, %v20873_v52, 0  ;;  %v20881_v52 = vld [vmem:[#allocation33_spill] sm:$0xff] }
 0x850   :  { %v13399_v35 = vmax.f32 %v13335_v29, 0.0  ;;  %v13267_v62 = vadd.f32 %v13132_v0, %v12299_v2  ;;  %v12307_v24 = vadd.f32 %v12306_v25, %v20358_v54  ;;  %v20875_v2 = vld [vmem:[#allocation17_spill] sm:$0xff] }
 0x851   :  { %v13134_v8 = vpop.f32.mrf.mxu1  ;;  %v12308_v58 = vpop.f32.mrf.mxu0 }
 0x852   :  { %v20597_v31 = vpack.c.bf16 %v13399_v35, %v13398_v18  ;;  %v13336_v41 = vadd.f32 %v20431_v13, %v13267_v62  ;;  %v20877_v58 = vld [vmem:[#allocation15_spill] sm:$0xff] }
 0x853   :  { %v13135_v1 = vpop.f32.mrf.mxu1  ;;  %v12309_v11 = vpop.f32.mrf.mxu0 }
 0x854   :  { %v13268_v56 = vadd.f32 %v13135_v1, %v12302_v23  ;;  %v13400_v9 = vmax.f32 %v13336_v41, 0.0  ;;  %v12310_v53 = vadd.f32 %v12309_v11, %v20361_v36  ;;  %v20876_v23 = vld [vmem:[#allocation29_spill] sm:$0xff]  ;;  %v20878_v11 = vld [vmem:[#allocation30_spill] sm:$0xff] }
 0x855   :  { %v13137_v10 = vpop.f32.mrf.mxu1  ;;  %16251 = vmatpush3.bf16.xpose.msra.mxu0 %v13472_v60  ;;  %v12311_v38 = vpop.f32.mrf.mxu0 }
 0x856   :  { %v13337_v21 = vadd.f32 %v20431_v13, %v13268_v56  ;;  %16373 = vmatprep.subr.msk.bf16.mxu0 %vm28_vm3, %v20514_v37  ;;  %v13463_v10 = vsel %vm28_vm3, %v20877_v58, 0 }
 0x857   :  { %v13140_v6 = vpop.f32.mrf.mxu1  ;;  %v12314_v51 = vpop.f32.mrf.mxu0 }
 0x858   :  { %v13401_v61 = vmax.f32 %v13337_v21, 0.0  ;;  %v13269_v42 = vadd.f32 %v13140_v6, %v12307_v24  ;;  %v12315_v45 = vadd.f32 %v12314_v51, %v20364_v12 }
 0x859   :  { %v13142_v57 = vpop.f32.mrf.mxu1  ;;  %v12316_v37 = vpop.f32.mrf.mxu0 }
 0x85a   :  { %v20607_v14 = vpack.c.bf16 %v13401_v61, %v13400_v9  ;;  %v13338_v54 = vadd.f32 %v20431_v13, %v13269_v42 }
 0x85b   :  { %v13143_v46 = vpop.f32.mrf.mxu1  ;;  %v12317_v7 = vpop.f32.mrf.mxu0 }
 0x85c   :  { %v13270_v3 = vadd.f32 %v13143_v46, %v12310_v53  ;;  %v13402_v28 = vmax.f32 %v13338_v54, 0.0  ;;  %v12318_v20 = vadd.f32 %v12317_v7, %v20872_v16 }
 0x85d   :  { %v13145_v17 = vpop.f32.mrf.mxu1  ;;  %16253 = vmatpush3.bf16.xpose.msra.mxu0 %v13469_v22  ;;  %v12319_v19 = vpop.f32.mrf.mxu0 }
 0x85e   :  { %v13339_v5 = vadd.f32 %v20431_v13, %v13270_v3  ;;  %16374 = vmatprep.subr.msk.bf16.mxu0 %vm28_vm3, %v20503_v34  ;;  %v20879_v3 = vld [vmem:[#allocation31_spill] sm:$0xff] }
 0x85f   :  { %v13148_v36 = vpop.f32.mrf.mxu1  ;;  %v12322_v49 = vpop.f32.mrf.mxu0 }
 0x860   :  { %v13403_v50 = vmax.f32 %v13339_v5, 0.0  ;;  %v13271_v39 = vadd.f32 %v13148_v36, %v12315_v45  ;;  %v12323_v4 = vadd.f32 %v12322_v49, %v20874_v47 }
 0x861   :  { %v13150_v33 = vpop.f32.mrf.mxu1  ;;  %v12324_v34 = vpop.f32.mrf.mxu0 }
 0x862   :  { %v20617_v48 = vpack.c.bf16 %v13403_v50, %v13402_v28  ;;  %v13340_v12 = vadd.f32 %v20431_v13, %v13271_v39  ;;  %v20880_v28 = vld [vmem:[#allocation32_spill] sm:$0xff] }
 0x863   :  { %v13151_v27 = vpop.f32.mrf.mxu1  ;;  %v12325_v29 = vpop.f32.mrf.mxu0 }
 0x864   :  { %v13272_v40 = vadd.f32 %v13151_v27, %v12318_v20  ;;  %v13404_v0 = vmax.f32 %v13340_v12, 0.0  ;;  %v12326_v25 = vadd.f32 %v12325_v29, %v20876_v23  ;;  %v20882_v29 = vld [vmem:[#allocation34_spill] sm:$0xff] }
 0x865   :  { %v13153_v26 = vpop.f32.mrf.mxu1  ;;  %16255 = vmatpush3.bf16.xpose.msra.mxu0 %v13466_v30  ;;  %v12327_v62 = vpop.f32.mrf.mxu0 }
 0x866   :  { %v13341_v15 = vadd.f32 %v20431_v13, %v13272_v40  ;;  %16375 = vmatprep.subr.msk.bf16.mxu0 %vm28_vm3, %v20875_v2 }
 0x867   :  { %v13156_v63 = vpop.f32.mrf.mxu1  ;;  %v12330_v1 = vpop.f32.mrf.mxu0 }
 0x868   :  { %v13405_v18 = vmax.f32 %v13341_v15, 0.0  ;;  %v13273_v35 = vadd.f32 %v13156_v63, %v12323_v4  ;;  %v12331_v6 = vadd.f32 %v12330_v1, %v20878_v11 }
 0x869   :  { %v13158_v59 = vpop.f32.mrf.mxu1  ;;  %v12332_v24 = vpop.f32.mrf.mxu0 }
 0x86a   :  { %v20627_v8 = vpack.c.bf16 %v13405_v18, %v13404_v0  ;;  %v13342_v56 = vadd.f32 %v20431_v13, %v13273_v35  ;;  %v20659_v24 = vld [vmem:[%s20737_s4 + $0x2] ss:$0 sm:$0xff] }
 0x86b   :  { %v13159_v41 = vpop.f32.mrf.mxu1  ;;  %v12333_v61 = vpop.f32.mrf.mxu0 }
 0x86c   :  { %v13274_v60 = vadd.f32 %v13159_v41, %v12326_v25  ;;  %v13406_v38 = vmax.f32 %v13342_v56, 0.0  ;;  %v12334_v22 = vadd.f32 %v12333_v61, %v20879_v3  ;;  %v20883_v56 = vld [vmem:[#allocation35_spill] sm:$0xff] }
 0x86d   :  { %v13161_v21 = vpop.f32.mrf.mxu1  ;;  %16257 = vmatpush3.bf16.xpose.msra.mxu0 %v13463_v10  ;;  %v12335_v51 = vpop.f32.mrf.mxu0 }
 0x86e   :  { %v13343_v9 = vadd.f32 %v20431_v13, %v13274_v60 }
 0x86f   :  { %v13164_v42 = vpop.f32.mrf.mxu1  ;;  %v12338_v37 = vpop.f32.mrf.mxu0 }
 0x870   :  { %v13407_v57 = vmax.f32 %v13343_v9, 0.0  ;;  %v13275_v53 = vadd.f32 %v13164_v42, %v12331_v6  ;;  %v12339_v50 = vadd.f32 %v12338_v37, %v20880_v28 }
 0x871   :  { %v13166_v46 = vpop.f32.mrf.mxu1  ;;  %v12340_v7 = vpop.f32.mrf.mxu0 }
 0x872   :  { %v20635_v54 = vpack.c.bf16 %v13407_v57, %v13406_v38  ;;  %v13344_v45 = vadd.f32 %v20431_v13, %v13275_v53 }
 0x873   :  { %v13167_v17 = vpop.f32.mrf.mxu1  ;;  %v12341_v19 = vpop.f32.mrf.mxu0 }
 0x874   :  { %v13276_v5 = vadd.f32 %v13167_v17, %v12334_v22  ;;  %16259 = vmatmul.mubr.msk.bf16.vlgmr.msra.gmra.mxu0 %vm28_vm3, %v20541_v44  ;;  %v13408_v16 = vmax.f32 %v13344_v45, 0.0  ;;  %v12342_v30 = vadd.f32 %v12341_v19, %v20881_v52 }
 0x875   :  { %v13169_v36 = vpop.f32.mrf.mxu1  ;;  %16276 = vmatprep.mubr.msk.bf16.mxu0 %vm28_vm3, %v20541_v44  ;;  %v12343_v27 = vpop.f32.mrf.mxu0 }
 0x876   :  { %v13345_v39 = vadd.f32 %v20431_v13, %v13276_v5 }
 0x877   :  { %v13172_v33 = vpop.f32.mrf.mxu1  ;;  %v12346_v34 = vpop.f32.mrf.mxu0 }
 0x878   :  { %v13409_v20 = vmax.f32 %v13345_v39, 0.0  ;;  %v13277_v49 = vadd.f32 %v13172_v33, %v12339_v50  ;;  %v12347_v63 = vadd.f32 %v12346_v34, %v20882_v29 }
 0x879   :  { %v13174_v12 = vpop.f32.mrf.mxu1  ;;  %v12348_v15 = vpop.f32.mrf.mxu0 }
 0x87a   :  { %v20645_v40 = vpack.c.bf16 %v13409_v20, %v13408_v16  ;;  %v13346_v47 = vadd.f32 %v20431_v13, %v13277_v49 }
 0x87b   :  { %v13175_v26 = vpop.f32.mrf.mxu1  ;;  %v12349_v18 = vpop.f32.mrf.mxu0 }
 0x87c   :  { %v13278_v4 = vadd.f32 %v13175_v26, %v12342_v30  ;;  %v13410_v62 = vmax.f32 %v13346_v47, 0.0  ;;  %v12350_v60 = vadd.f32 %v12349_v18, %v20883_v56 }
 0x87d   :  { %v13177_v2 = vpop.f32.mrf.mxu1  ;;  %v12351_v25 = vpop.f32.mrf.mxu0 }
 0x87e   :  { %v13347_v0 = vadd.f32 %v20431_v13, %v13278_v4  ;;  %v20886_v25 = vld [vmem:[#allocation11_spill] sm:$0xff] }
 0x87f   :  { %v13180_v35 = vpop.f32.mrf.mxu1  ;;  %v20654_v58 = vpop.f32.mrf.mxu0 }
 0x880   :  { %v13411_v59 = vmax.f32 %v13347_v0, 0.0  ;;  %v13279_v23 = vadd.f32 %v13180_v35, %v12347_v63  ;;  %v20884_v0 = vld [vmem:[#allocation12_spill] sm:$0xff]  ;;  %v20885_v35 = vld [vmem:[#allocation13_spill] sm:$0xff] }
 0x881   :  { %v13182_v1 = vpop.f32.mrf.mxu1  ;;  %v12356_v11 = vpop.f32.mrf.mxu0 }
 0x882   :  { %v20651_v41 = vpack.c.bf16 %v13411_v59, %v13410_v62  ;;  %v13348_v13 = vadd.f32 %v20659_v24, %v13279_v23  ;;  %v20887_v11 = vld [vmem:[#allocation14_spill] sm:$0xff] }
 0x883   :  { %v13183_v10 = vpop.f32.mrf.mxu1  ;;  %v20663_v61 = vpop.f32.mrf.mxu0 }
 0x884   :  { %v13280_v21 = vadd.f32 %v13183_v10, %v12350_v60  ;;  %v13412_v38 = vmax.f32 %v13348_v13, 0.0 }
 0x885   :  { %v13185_v6 = vpop.f32.mrf.mxu1  ;;  %v12359_v53 = vpop.f32.mrf.mxu0 }
 0x886   :  { %v13349_v9 = vadd.f32 %v20659_v24, %v13280_v21 }
 0x887   :  { %v20665_v42 = vpop.f32.mrf.mxu1  ;;  %v20669_v3 = vpop.f32.mrf.mxu0 }
 0x888   :  { %v13413_v57 = vmax.f32 %v13349_v9, 0.0 }
 0x889   :  { %v13190_v51 = vpop.f32.mrf.mxu1  ;;  %v12364_v37 = vpop.f32.mrf.mxu0 }
 0x88a   :  { %v20667_v46 = vpack.c.bf16 %v13413_v57, %v13412_v38  ;;  %v20888_v37 = vld [vmem:[#allocation10_spill] sm:$0xff] }
 0x88b   :  { %v20671_v22 = vpop.f32.mrf.mxu1  ;;  %v12365_v45 = vpop.f32.mrf.mxu0 }
 0x88d   :  { %v13193_v17 = vpop.f32.mrf.mxu1  ;;  %v12367_v7 = vpop.f32.mrf.mxu0 }
 0x88f   :  { %v13196_v5 = vpop.f32.mrf.mxu1  ;;  %v12370_v28 = vpop.f32.mrf.mxu0 }
 0x891   :  { %v13198_v36 = vpop.f32.mrf.mxu1  ;;  %v12372_v39 = vpop.f32.mrf.mxu0 }
 0x892   :  { %v20889_v39 = vld [vmem:[#allocation9_spill] sm:$0xff] }
 0x893   :  { %v13199_v50 = vpop.f32.mrf.mxu1  ;;  %v12373_v33 = vpop.f32.mrf.mxu0 }
 0x894   :  { %v12374_v17 = vadd.f32 %v12373_v33, %v20888_v37  ;;  %v13532_v33 = vsel %vm28_vm3, %v20635_v54, 0  ;;  %v13529_v54 = vsel %vm28_vm3, %v20627_v8, 0 }
 0x895   :  { %v13201_v19 = vpop.f32.mrf.mxu1  ;;  %v12375_v20 = vpop.f32.mrf.mxu0 }
 0x896   :  { %v12371_v19 = vadd.f32 %v12370_v28, %v20889_v39 }
 0x897   :  { %v13204_v16 = vpop.f32.mrf.mxu1  ;;  %v12378_v27 = vpop.f32.mrf.mxu0 }
 0x898   :  { %v12379_v1 = vadd.f32 %v12378_v27, %v20886_v25  ;;  %v20893_v25 = vld [vmem:[#allocation5_spill] sm:$0xff] }
 0x899   :  { %v13206_v49 = vpop.f32.mrf.mxu1  ;;  %v12380_v52 = vpop.f32.mrf.mxu0 }
 0x89b   :  { %v13207_v12 = vpop.f32.mrf.mxu1  ;;  %v12381_v34 = vpop.f32.mrf.mxu0 }
 0x89c   :  { %v12382_v18 = vadd.f32 %v12381_v34, %v20884_v0  ;;  %v13286_v20 = vadd.f32 %v13207_v12, %v12374_v17  ;;  %v20891_v12 = vld [vmem:[#allocation7_spill] sm:$0xff] }
 0x89d   :  { %v13209_v30 = vpop.f32.mrf.mxu1  ;;  %v12383_v47 = vpop.f32.mrf.mxu0 }
 0x89e   :  { %v13285_v30 = vadd.f32 %v13204_v16, %v12371_v19  ;;  %v13355_v47 = vadd.f32 %v20659_v24, %v13286_v20  ;;  %v12363_v16 = vadd.f32 %v20669_v3, %v20891_v12  ;;  %v12355_v3 = vadd.f32 %v20654_v58, %v20893_v25 }
 0x89f   :  { %v13212_v26 = vpop.f32.mrf.mxu1  ;;  %v12386_v15 = vpop.f32.mrf.mxu0 }
 0x8a0   :  { %v12387_v62 = vadd.f32 %v12386_v15, %v20885_v35  ;;  %v13287_v21 = vadd.f32 %v13212_v26, %v12379_v1  ;;  %v20890_v15 = vld [vmem:[#allocation8_spill] sm:$0xff]  ;;  %v13354_v28 = vadd.f32 %v20659_v24, %v13285_v30  ;;  %v13283_v0 = vadd.f32 %v13196_v5, %v12363_v16 }
 0x8a1   :  { %v13214_v4 = vpop.f32.mrf.mxu1  ;;  %v12388_v29 = vpop.f32.mrf.mxu0  ;;  %v13281_v1 = vadd.f32 %v20665_v42, %v12355_v3  ;;  %v13520_v42 = vsel %vm28_vm3, %v20597_v31, 0  ;;  %v13511_v31 = vsel %vm28_vm3, %v20560_v43, 0 }
 0x8a2   :  { %v13356_v7 = vadd.f32 %v20659_v24, %v13287_v21 }
 0x8a3   :  { %v13215_v2 = vpop.f32.mrf.mxu1  ;;  %v12389_v59 = vpop.f32.mrf.mxu0 }
 0x8a4   :  { %v13288_v56 = vadd.f32 %v13215_v2, %v12382_v18  ;;  %v12390_v6 = vadd.f32 %v12389_v59, %v20887_v11  ;;  %v13420_v34 = vmax.f32 %v13356_v7, 0.0  ;;  %v12366_v2 = vadd.f32 %v12365_v45, %v20890_v15  ;;  %v20892_v59 = vld [vmem:[#allocation6_spill] sm:$0xff] }
 0x8a5   :  { %v13217_v63 = vpop.f32.mrf.mxu1  ;;  %v12391_v10 = vpop.f32.mrf.mxu0  ;;  %v13418_v18 = vmax.f32 %v13354_v28, 0.0  ;;  %v12358_v45 = vadd.f32 %v20663_v61, %v20892_v59  ;;  %v13350_v61 = vadd.f32 %v20659_v24, %v13281_v1 }
 0x8a6   :  { %v13357_v38 = vadd.f32 %v20659_v24, %v13288_v56  ;;  %v13284_v29 = vadd.f32 %v13199_v50, %v12366_v2  ;;  %v13419_v63 = vmax.f32 %v13355_v47, 0.0  ;;  %v13526_v10 = vsel %vm28_vm3, %v20617_v48, 0 }
 0x8a7   :  { %v13220_v23 = vpop.f32.mrf.mxu1  ;;  %v13282_v5 = vadd.f32 %v20671_v22, %v12358_v45  ;;  %v13414_v21 = vmax.f32 %v13350_v61, 0.0  ;;  %v13523_v22 = vsel %vm28_vm3, %v20607_v14, 0  ;;  %v13517_v48 = vsel %vm28_vm3, %v20588_v55, 0 }
 0x8a8   :  { %v13289_v60 = vadd.f32 %v13220_v23, %v12387_v62  ;;  %v13421_v49 = vmax.f32 %v13357_v38, 0.0  ;;  %v13353_v35 = vadd.f32 %v20659_v24, %v13284_v29  ;;  %v13454_v62 = vpack.c.bf16 %v13419_v63, %v13418_v18 }
 0x8a9   :  { %v13222_v13 = vpop.f32.mrf.mxu1  ;;  %v13352_v23 = vadd.f32 %v20659_v24, %v13283_v0  ;;  %v13514_v14 = vsel %vm28_vm3, %v20577_v32, 0  ;;  %v13458_v55 = vstv %s20739_s6  ;;  %v17011_v38 = vmov 1966171168  }
 0x8aa   :  { %v13358_v57 = vadd.f32 %v20659_v24, %v13289_v60  ;;  %v13455_v4 = vpack.c.bf16 %v13421_v49, %v13420_v34  ;;  %v13417_v50 = vmax.f32 %v13353_v35, 0.0  ;;  %v13351_v60 = vadd.f32 %v20659_v24, %v13282_v5 }
 0x8ab   :  { %v13223_v9 = vpop.f32.mrf.mxu1  ;;  %v13416_v56 = vmax.f32 %v13352_v23, 0.0 }
 0x8ac   :  { %v13290_v53 = vadd.f32 %v13223_v9, %v12390_v6  ;;  %v13422_v27 = vmax.f32 %v13358_v57, 0.0  ;;  %v13415_v13 = vmax.f32 %v13351_v60, 0.0  ;;  %v13649_v57 = vlaneseq }
 0x8ad   :  { %v13225_v51 = vpop.f32.mrf.mxu1  ;;  %v13453_v8 = vpack.c.bf16 %v13417_v50, %v13416_v56 }
 0x8ae   :  { %v13359_v36 = vadd.f32 %v20659_v24, %v13290_v53  ;;  %v13452_v58 = vpack.c.bf16 %v13415_v13, %v13414_v21  ;;  %v13650_v43 = vshrl.u32 %v13649_v57, 7  ;;  %vm13671_vm8 = vcmp.lt.s32.totalorder %v13649_v57, 512 }
 0x8b0   :  { %v13423_v52 = vmax.f32 %v13359_v36, 0.0 }
 0x8b2   :  { %v13456_v26 = vpack.c.bf16 %v13423_v52, %v13422_v27 }
 0x8b4   :  { %16376 = vmatprep.subr.msk.bf16.mxu0 %vm28_vm3, %v13456_v26 }
 0x8b5   :  { %16261 = vmatpush3.bf16.xpose.msra.mxu0 %v13532_v33 }
 0x8b6   :  { %16377 = vmatprep.subr.msk.bf16.mxu0 %vm28_vm3, %v13455_v4 }
 0x8bd   :  { %16263 = vmatpush3.bf16.xpose.msra.mxu0 %v13529_v54 }
 0x8be   :  { %16378 = vmatprep.subr.msk.bf16.mxu0 %vm28_vm3, %v13454_v62 }
 0x8c5   :  { %16265 = vmatpush3.bf16.xpose.msra.mxu0 %v13526_v10 }
 0x8c6   :  { %16379 = vmatprep.subr.msk.bf16.mxu0 %vm28_vm3, %v13453_v8 }
 0x8cd   :  { %16267 = vmatpush3.bf16.xpose.msra.mxu0 %v13523_v22 }
 0x8ce   :  { %16380 = vmatprep.subr.msk.bf16.mxu0 %vm28_vm3, %v13452_v58 }
 0x8d5   :  { %16269 = vmatpush3.bf16.xpose.msra.mxu0 %v13520_v42 }
 0x8d6   :  { %16381 = vmatprep.subr.msk.bf16.mxu0 %vm28_vm3, %v20667_v46 }
 0x8dd   :  { %16271 = vmatpush3.bf16.xpose.msra.mxu0 %v13517_v48 }
 0x8de   :  { %16382 = vmatprep.subr.msk.bf16.mxu0 %vm28_vm3, %v20651_v41 }
 0x8e5   :  { %16273 = vmatpush3.bf16.xpose.msra.mxu0 %v13514_v14 }
 0x8e6   :  { %16383 = vmatprep.subr.msk.bf16.mxu0 %vm28_vm3, %v20645_v40  ;;  %v13647_v40 = vunpack.c.l.s4 %v17011_v38 }
 0x8e8   :  { %v13648_v53 = vunpack.c.0.s8 %v13647_v40 }
 0x8ea   :  { %v13651_v17 = vsub.s32 %v13648_v53, %v13650_v43 }
 0x8ed   :  { %16275 = vmatpush3.bf16.xpose.msra.mxu0 %v13511_v31 }
 0x8f4   :  { %16277 = vmatmul.mubr.msk.bf16.vlgmr.msra.gmra.mxu0 %vm28_vm3, %v20541_v44 }
 0x934   :  { %v13592_v24 = vpop.f32.mrf.mxu0 }
 0x935   :  { %v13593_v41 = vadd.f32 %v13592_v24, %v13458_v55 }
 0x936   :  { %v13594_v46 = vpop.f32.mrf.mxu0 }
 0x937   :  { %v13595_v11 = vadd.f32 %v13594_v46, %v13458_v55 }
 0x938   :  { %v13596_v32 = vpop.f32.mrf.mxu0 }
 0x939   :  { %v13644_v6 = vcombine.low %v13593_v41, %v13595_v11 }
 0x93a   :  { %v13597_v9 = vpop.f32.mrf.mxu0 }
 0x93b   :  { %v13652_v20 = vrot.slane %v13644_v6, %v13651_v17 }
 0x9b4   :  { %v13633_v51 = vpop.f32.mrf.mxu0 }
 0x9b5   :  { %v13634_v44 = vadd.f32 %v13633_v51, %v13458_v55 }
 0x9b6   :  { %v13635_v37 = vpop.f32.mrf.mxu0 }
 0x9b7   :  { %v13636_v7 = vadd.f32 %v13635_v37, %v13458_v55 }
 0x9b8   :  { %v13637_v36 = vpop.f32.mrf.mxu0 }
 0x9b9   :  { %v13645_v39 = vcombine.low %v13634_v44, %v13636_v7 }
 0x9ba   :  { %v13638_v19 = vpop.f32.mrf.mxu0 }
 0x9bb   :  { %v13659_v49 = vrot.slane %v13645_v39, %v13651_v17 }
 0x9bd   :  { %v13660_v27 = vcombine.low %v13652_v20, %v13659_v49 }
 0x9bf   :  { %v13667_v52 = vrot.slane %v13660_v27, %v13651_v17 }
 0x9c1   :  { %13673 = vst.msk [vmem:[%s20740_s7] sm:$0xf] %vm13671_vm8, %v13667_v52 }

</bundles_post_ra>
